<compile_context>
chip_gen: v7x
topology: tpu7x:2x2x1
jax: 0.10.0
libtpu: 0.0.40
codegen_flags: <defaults>
</compile_context>

<pallas_src>
import functools

import jax
import jax.numpy as jnp
from jax.experimental import pallas as pl
from jax.experimental.pallas import tpu as pltpu

LRELU_SLOPE = 0.2
IN_EPS = 1e-5


def _round_up(v, m):
    return (v + m - 1) // m * m


@functools.lru_cache(maxsize=None)
def _vmem_budget_bytes():
    # Generation-aware budget: ~3/4 of physical VMEM (96 MiB on 128 MiB parts,
    # 48 MiB on v7x's 64 MiB), leaving headroom for Mosaic internal scratch.
    try:
        cap = int(pltpu.get_tpu_info().vmem_capacity_bytes)
    except Exception:
        cap = 64 * 1024 * 1024
    return max(32 * 1024 * 1024, min(cap * 3 // 4, 96 * 1024 * 1024))


# ---------------------------------------------------------------------------
# Fused space-to-depth conv kernel (4x4, stride 2, pad 1)
# ---------------------------------------------------------------------------
def _conv_s2d_kernel(xm_ref, xn_ref, w_ref, b_ref, o_ref, *, apply_lrelu):
    # xm_ref: (1, TOH, PW, C4) bf16   rows t*TOH .. t*TOH+TOH-1 of s2d
    # xn_ref: (1, 1,   PW, C4) bf16   boundary row t*TOH+TOH of s2d
    # w_ref : (4, C4, Cout)    bf16   tap-major weights
    # b_ref : (1, Cout)        f32
    # o_ref : (1, TOH, OW, Cout)
    _, toh, pw, c4 = xm_ref.shape
    ow = pw - 1
    cout = o_ref.shape[3]

    xm = xm_ref[0]        # (TOH, PW, C4)
    xlast = xn_ref[0]     # (1, PW, C4)

    acc = jnp.zeros((toh * ow, cout), jnp.float32)
    for a in (0, 1):
        if a == 0:
            rows = xm
        elif toh == 1:
            rows = xlast
        else:
            rows = jnp.concatenate([xm[1:], xlast], axis=0)   # (TOH, PW, C4)
        for bc in (0, 1):
            win = rows[:, bc:bc + ow, :].reshape(toh * ow, c4)
            acc = acc + jnp.dot(win, w_ref[2 * a + bc],
                                preferred_element_type=jnp.float32)
    acc = acc + b_ref[...]
    if apply_lrelu:
        acc = jnp.maximum(acc, LRELU_SLOPE * acc)
    o_ref[...] = acc.reshape(1, toh, ow, cout).astype(o_ref.dtype)


def _pick_toh(OH, OW, C4, Cout, out_bytes):
    budget = _vmem_budget_bytes() // 2
    target_rows = max(1, 2048 // max(OW, 1))     # aim for ~2048-row MXU tiles
    toh = min(OH, max(1, target_rows))
    while OH % toh:
        toh -= 1

    def tile_bytes(t):
        main = 2 * t * (OW + 1) * C4 * 2          # bf16, double buffered
        bnd = 2 * (OW + 1) * C4 * 2
        out = 2 * t * OW * Cout * out_bytes
        wgt = 4 * C4 * Cout * 2
        return main + bnd + out + wgt

    while toh > 1 and tile_bytes(toh) > budget:
        toh -= 1
        while OH % toh:
            toh -= 1
    return toh


def _conv2d_stride2_s2d(x_nhwc, w_hwio, b, apply_lrelu, out_dtype):
    x = x_nhwc.astype(jnp.bfloat16)
    N, H, W, Cin = x.shape
    KH, KW, _, Cout = w_hwio.shape
    OH, OW = H // 2, W // 2
    PW = OW + 1
    C4 = 4 * Cin

    # pad by 1, then space-to-depth(2):
    #   xp[n, 2p+di, 2q+dj, c] -> s2d[n, p, q, (2*di+dj)*Cin + c]
    xp = jnp.pad(x, ((0, 0), (1, 1), (1, 1), (0, 0)))
    s2d = xp.reshape(N, OH + 1, 2, PW, 2, Cin)
    s2d = s2d.transpose(0, 1, 3, 2, 4, 5).reshape(N, OH + 1, PW, C4)

    out_bytes = jnp.dtype(out_dtype).itemsize
    TOH = _pick_toh(OH, OW, C4, Cout, out_bytes)
    T = OH // TOH

    main = s2d[:, :OH]              # (N, OH, PW, C4)  rows for tap a=0
    nxt = s2d[:, TOH::TOH]          # (N, T,  PW, C4)  boundary row per tile (a=1)

    # W2[2a+b, (2*di+dj)*Cin+ci, co] = W[2a+di, 2b+dj, ci, co]
    w2 = w_hwio.reshape(2, 2, 2, 2, Cin, Cout).transpose(0, 2, 1, 3, 4, 5)
    w2 = w2.reshape(4, C4, Cout).astype(jnp.bfloat16)
    b2 = b.reshape(1, Cout).astype(jnp.float32)

    flops = 2 * N * OH * OW * KH * KW * Cin * Cout
    bytes_accessed = ((main.size + nxt.size + w2.size) * 2
                      + N * OH * OW * Cout * out_bytes + Cout * 4)

    return pl.pallas_call(
        functools.partial(_conv_s2d_kernel, apply_lrelu=apply_lrelu),
        out_shape=jax.ShapeDtypeStruct((N, OH, OW, Cout), out_dtype),
        grid=(N, T),
        in_specs=[
            pl.BlockSpec((1, TOH, PW, C4), lambda n, t: (n, t, 0, 0)),
            pl.BlockSpec((1, 1, PW, C4), lambda n, t: (n, t, 0, 0)),
            pl.BlockSpec((4, C4, Cout), lambda n, t: (0, 0, 0)),   # resident
            pl.BlockSpec((1, Cout), lambda n, t: (0, 0)),          # resident
        ],
        out_specs=pl.BlockSpec((1, TOH, OW, Cout), lambda n, t: (n, t, 0, 0)),
        compiler_params=pltpu.CompilerParams(
            dimension_semantics=("parallel", "parallel"),
            vmem_limit_bytes=_vmem_budget_bytes()),
        cost_estimate=pl.CostEstimate(
            flops=flops, transcendentals=0, bytes_accessed=bytes_accessed),
    )(main, nxt, w2, b2)


# ---------------------------------------------------------------------------
# im2col matmul path (conv5 / odd-spatial fallback)
# ---------------------------------------------------------------------------
def _conv_mm_kernel(p_ref, w_ref, b_ref, o_ref, *, apply_lrelu):
    acc = jnp.dot(p_ref[...], w_ref[...], preferred_element_type=jnp.float32)
    acc = acc + b_ref[...]
    if apply_lrelu:
        acc = jnp.maximum(acc, LRELU_SLOPE * acc)
    o_ref[...] = acc.astype(o_ref.dtype)


def _pick_tm(M, K, Np, out_bytes):
    budget = _vmem_budget_bytes()
    weight_bytes = K * Np * 2 + Np * 4
    per_row = 2 * (K * 2 + Np * out_bytes)          # double-buffered in + out rows
    avail = max(budget - weight_bytes - (4 << 20), per_row)
    tm = max(256, min(2048, avail // per_row // 256 * 256))
    return int(min(tm, _round_up(M, 8)))


def _matmul_bias(patches, w, b, apply_lrelu, out_dtype):
    """patches:[M,K] bf16, w:[K,N] bf16, b:[N] f32 -> [M,N] (bias+lrelu fused)."""
    M, K = patches.shape
    _, N = w.shape
    Np = N if N >= 64 else 128                      # pad only the 1-channel head
    if Np != N:
        w = jnp.pad(w, ((0, 0), (0, Np - N)))
        b = jnp.pad(b, ((0, Np - N),))
    b2 = b.reshape(1, Np).astype(jnp.float32)
    out_bytes = jnp.dtype(out_dtype).itemsize
    TM = _pick_tm(M, K, Np, out_bytes)

    out = pl.pallas_call(
        functools.partial(_conv_mm_kernel, apply_lrelu=apply_lrelu),
        out_shape=jax.ShapeDtypeStruct((M, Np), out_dtype),
        grid=(pl.cdiv(M, TM),),
        in_specs=[
            pl.BlockSpec((TM, K), lambda i: (i, 0)),   # patches streamed per M-tile
            pl.BlockSpec((K, Np), lambda i: (0, 0)),   # weight resident
            pl.BlockSpec((1, Np), lambda i: (0, 0)),   # bias resident
        ],
        out_specs=pl.BlockSpec((TM, Np), lambda i: (i, 0)),
        compiler_params=pltpu.CompilerParams(
            dimension_semantics=("parallel",),
            vmem_limit_bytes=_vmem_budget_bytes()),
        cost_estimate=pl.CostEstimate(
            flops=2 * M * K * Np, transcendentals=0,
            bytes_accessed=M * K * 2 + K * Np * 2 + M * Np * out_bytes),
    )(patches, w, b2)
    return out if Np == N else out[:, :N]


def _im2col(x, kh, kw, stride, pad):
    N, H, W, C = x.shape
    xp = jnp.pad(x, ((0, 0), (pad, pad), (pad, pad), (0, 0)))
    OH = (H + 2 * pad - kh) // stride + 1
    OW = (W + 2 * pad - kw) // stride + 1
    cols = []
    for i in range(kh):
        for j in range(kw):
            cols.append(xp[:, i:i + (OH - 1) * stride + 1:stride,
                              j:j + (OW - 1) * stride + 1:stride, :])
    patches = jnp.concatenate(cols, axis=-1)
    return patches.reshape(N * OH * OW, kh * kw * C), OH, OW


def _conv2d_im2col(x_nhwc, w_hwio, b, stride, pad, apply_lrelu, out_dtype):
    KH, KW, Cin, Cout = w_hwio.shape
    x = x_nhwc.astype(jnp.bfloat16)
    patches, OH, OW = _im2col(x, KH, KW, stride, pad)
    w_flat = w_hwio.reshape(KH * KW * Cin, Cout).astype(jnp.bfloat16)
    out = _matmul_bias(patches, w_flat, b, apply_lrelu, out_dtype)
    return out.reshape(x.shape[0], OH, OW, Cout)


def _conv2d_stride2(x_nhwc, w_hwio, b, apply_lrelu, out_dtype):
    N, H, W, _ = x_nhwc.shape
    if H % 2 == 0 and W % 2 == 0 and H >= 2 and W >= 2:
        return _conv2d_stride2_s2d(x_nhwc, w_hwio, b, apply_lrelu, out_dtype)
    # TODO(synk): odd spatial dims still take the HBM im2col fallback path.
    return _conv2d_im2col(x_nhwc, w_hwio, b, 2, 1, apply_lrelu, out_dtype)


# ---------------------------------------------------------------------------
# InstanceNorm2d(affine=False) + LeakyReLU(0.2)  (bf16 output)
# ---------------------------------------------------------------------------
def _in_fused_kernel(x_ref, o_ref, *, inv_hw):
    x = x_ref[0].astype(jnp.float32)                 # (HW, TC)
    mean = jnp.sum(x, axis=0, keepdims=True) * inv_hw
    ex2 = jnp.sum(x * x, axis=0, keepdims=True) * inv_hw
    var = jnp.maximum(ex2 - mean * mean, 0.0)
    y = (x - mean) * jax.lax.rsqrt(var + IN_EPS)
    o_ref[0] = jnp.maximum(y, LRELU_SLOPE * y).astype(o_ref.dtype)


def _in_stats_kernel(x_ref, stat_ref):
    @pl.when(pl.program_id(2) == 0)
    def _():
        stat_ref[...] = jnp.zeros_like(stat_ref)
    x = x_ref[0].astype(jnp.float32)                 # (THW, TC)
    s = jnp.sum(x, axis=0, keepdims=True)
    s2 = jnp.sum(x * x, axis=0, keepdims=True)
    stat_ref[0] += jnp.concatenate([s, s2], axis=0)  # (2, TC): [sum, sum_sq]


def _in_apply_kernel(x_ref, stat_ref, o_ref, *, inv_hw):
    x = x_ref[0].astype(jnp.float32)                 # (THW, TC)
    st = stat_ref[0]                                 # (2, TC)
    mean = st[0:1, :] * inv_hw
    var = jnp.maximum(st[1:2, :] * inv_hw - mean * mean, 0.0)
    y = (x - mean) * jax.lax.rsqrt(var + IN_EPS)
    o_ref[0] = jnp.maximum(y, LRELU_SLOPE * y).astype(o_ref.dtype)


def _pick_thw(HW, cap):
    t = min(HW, max(cap, 8))
    t -= t % 8
    while t >= 8:
        if HW % t == 0:
            return t
        t -= 8
    return None


def _instancenorm_lrelu(x_nhwc, out_dtype=jnp.bfloat16, row_cap=None):
    N, H, W, C = x_nhwc.shape
    HW = H * W
    x2 = x_nhwc.reshape(N, HW, C)                    # channels on lanes
    if C % 256 == 0:
        TC = 256
    elif C % 128 == 0:
        TC = 128
    else:
        TC = C
    in_b = x2.dtype.itemsize
    out_b = jnp.dtype(out_dtype).itemsize
    budget = _vmem_budget_bytes()
    inv_hw = 1.0 / float(HW)

    fused_bytes = 2 * HW * TC * (in_b + out_b)       # double-buffered in + out
    use_fused = row_cap is None and fused_bytes <= budget // 2
    thw = None
    if not use_fused:
        cap = row_cap if row_cap is not None else max(
            8, (budget // 4) // (2 * TC * (in_b + out_b)) // 8 * 8)
        thw = _pick_thw(HW, cap)
        if thw is None:
            use_fused = True   # TODO(synk): HW has no multiple-of-8 divisor; single block

    if use_fused:
        out = pl.pallas_call(
            functools.partial(_in_fused_kernel, inv_hw=inv_hw),
            out_shape=jax.ShapeDtypeStruct((N, HW, C), out_dtype),
            grid=(N, C // TC),
            in_specs=[pl.BlockSpec((1, HW, TC), lambda n, c: (n, 0, c))],
            out_specs=pl.BlockSpec((1, HW, TC), lambda n, c: (n, 0, c)),
            compiler_params=pltpu.CompilerParams(
                dimension_semantics=("parallel", "parallel"),
                vmem_limit_bytes=budget),
            cost_estimate=pl.CostEstimate(
                flops=6 * N * HW * C, transcendentals=N * C,
                bytes_accessed=N * HW * C * (in_b + out_b)),
        )(x2)
        return out.reshape(N, H, W, C)

    # Tiled two-pass path: accumulate sum / sum_sq over an "arbitrary" HW axis,
    # then normalize + LeakyReLU.  Keeps VMEM bounded for large H*W (v7x).
    grid = (N, C // TC, HW // thw)
    stats = pl.pallas_call(
        _in_stats_kernel,
        out_shape=jax.ShapeDtypeStruct((N, 2, C), jnp.float32),
        grid=grid,
        in_specs=[pl.BlockSpec((1, thw, TC), lambda n, c, h: (n, h, c))],
        out_specs=pl.BlockSpec((1, 2, TC), lambda n, c, h: (n, 0, c)),
        compiler_params=pltpu.CompilerParams(
            dimension_semantics=("parallel", "parallel", "arbitrary"),
            vmem_limit_bytes=budget),
        cost_estimate=pl.CostEstimate(
            flops=3 * N * HW * C, transcendentals=0,
            bytes_accessed=N * HW * C * in_b + N * 2 * C * 4),
    )(x2)
    out = pl.pallas_call(
        functools.partial(_in_apply_kernel, inv_hw=inv_hw),
        out_shape=jax.ShapeDtypeStruct((N, HW, C), out_dtype),
        grid=grid,
        in_specs=[pl.BlockSpec((1, thw, TC), lambda n, c, h: (n, h, c)),
                  pl.BlockSpec((1, 2, TC), lambda n, c, h: (n, 0, c))],
        out_specs=pl.BlockSpec((1, thw, TC), lambda n, c, h: (n, h, c)),
        compiler_params=pltpu.CompilerParams(
            dimension_semantics=("parallel", "parallel", "parallel"),
            vmem_limit_bytes=budget),
        cost_estimate=pl.CostEstimate(
            flops=5 * N * HW * C, transcendentals=N * C,
            bytes_accessed=N * HW * C * (in_b + out_b) + N * 2 * C * 4),
    )(x2, stats)
    return out.reshape(N, H, W, C)


# ---------------------------------------------------------------------------
# Forward pass
# ---------------------------------------------------------------------------
def discriminator_local(x_nchw, params):
    x = jnp.transpose(x_nchw, (0, 2, 3, 1))                                   # -> NHWC
    x = _conv2d_stride2(x, params["w1"], params["b1"], True, jnp.bfloat16)    # conv1+lrelu
    x = _conv2d_stride2(x, params["w2"], params["b2"], False, jnp.float32)    # conv2
    x = _instancenorm_lrelu(x)                                                # IN+lrelu -> bf16
    x = _conv2d_stride2(x, params["w3"], params["b3"], False, jnp.float32)    # conv3
    x = _instancenorm_lrelu(x)
    x = _conv2d_stride2(x, params["w4"], params["b4"], False, jnp.float32)    # conv4
    x = _instancenorm_lrelu(x)
    x = _conv2d_im2col(x, params["w5"], params["b5"], 1, 1, False, jnp.float32)  # conv5
    return jnp.transpose(x, (0, 3, 1, 2))                                     # -> NCHW


# ---------------------------------------------------------------------------
# Deterministic parameter init (shapes from nn.Module __init__; HWIO layout)
# ---------------------------------------------------------------------------
def init_params(key, input_channel=3):
    specs = [
        ("1", 4, 4, input_channel, 64),
        ("2", 4, 4, 64, 128),
        ("3", 4, 4, 128, 256),
        ("4", 4, 4, 256, 512),
        ("5", 4, 4, 512, 1),
    ]
    params = {}
    for name, kh, kw, cin, cout in specs:
        key, kw_key, kb_key = jax.random.split(key, 3)
        scale = 1.0 / jnp.sqrt(kh * kw * cin)
        params["w" + name] = (
            jax.random.normal(kw_key, (kh, kw, cin, cout), jnp.float32) * scale)
        params["b" + name] = (
            jax.random.normal(kb_key, (cout,), jnp.float32) * 0.01)
    return params


# ---------------------------------------------------------------------------
# Pure-JAX reference (same bf16-input / f32-accumulate precision for the convs)
# ---------------------------------------------------------------------------
def _ref_conv(x, w, b, stride, pad):
    y = jax.lax.conv_general_dilated(
        x.astype(jnp.bfloat16), w.astype(jnp.bfloat16),
        (stride, stride), [(pad, pad), (pad, pad)],
        dimension_numbers=("NHWC", "HWIO", "NHWC"),
        preferred_element_type=jnp.float32)
    return y + b


def _ref_in_lrelu(x):
    mean = jnp.mean(x, axis=(1, 2), keepdims=True)
    var = jnp.mean(jnp.square(x - mean), axis=(1, 2), keepdims=True)
    y = (x - mean) * jax.lax.rsqrt(var + IN_EPS)
    return jnp.where(y > 0, y, LRELU_SLOPE * y)


def reference_forward(x_nchw, params):
    x = jnp.transpose(x_nchw, (0, 2, 3, 1)).astype(jnp.float32)
    x = _ref_conv(x, params["w1"], params["b1"], 2, 1)
    x = jnp.where(x > 0, x, LRELU_SLOPE * x)
    x = _ref_in_lrelu(_ref_conv(x, params["w2"], params["b2"], 2, 1))
    x = _ref_in_lrelu(_ref_conv(x, params["w3"], params["b3"], 2, 1))
    x = _ref_in_lrelu(_ref_conv(x, params["w4"], params["b4"], 2, 1))
    x = _ref_conv(x, params["w5"], params["b5"], 1, 1)
    return jnp.transpose(x, (0, 3, 1, 2))


if __name__ == "__main__":
    key = jax.random.PRNGKey(0)
    pkey, xkey, ikey = jax.random.split(key, 3)
    params = init_params(pkey, input_channel=3)
    # smallest spatial size that survives 4 stride-2 convs + the final 4x4 conv
    x = jax.random.normal(xkey, (2, 3, 32, 32), jnp.float32)

    fwd = jax.jit(discriminator_local)
    out = jax.block_until_ready(fwd(x, params))
    assert out.shape == (2, 1, 1, 1), out.shape

    ref = jax.block_until_ready(reference_forward(x, params))
    max_err = float(jnp.max(jnp.abs(out - ref)))
    assert jnp.allclose(out, ref, rtol=2e-2, atol=2e-2), max_err

    # Also exercise the HW-tiled two-pass InstanceNorm path (used for large H*W)
    xin = jax.random.normal(ikey, (2, 16, 16, 128), jnp.float32)
    out_t = jax.block_until_ready(_instancenorm_lrelu(xin, row_cap=64))
    ref_t = _ref_in_lrelu(xin)
    err_t = float(jnp.max(jnp.abs(out_t.astype(jnp.float32) - ref_t)))
    assert err_t < 2e-2, err_t

    print("KERNEL_OK")
</pallas_src>

<mosaic_0001>
module attributes {stable_mosaic.version = 11 : i64} {
  func.func @_conv_s2d_kernel(%arg0: i32, %arg1: i32, %arg2: memref<1x16x17x12xbf16, #tpu.memory_space<vmem>>, %arg3: memref<1x1x17x12xbf16, #tpu.memory_space<vmem>>, %arg4: memref<4x12x64xbf16, #tpu.memory_space<vmem>>, %arg5: memref<1x64xf32, #tpu.memory_space<vmem>>, %arg6: memref<1x16x16x64xbf16, #tpu.memory_space<vmem>>) attributes {dimension_semantics = [#tpu.dimension_semantics<parallel>, #tpu.dimension_semantics<parallel>], iteration_bounds = array<i64: 2, 1>, scalar_prefetch = 0 : i64, scratch_operands = 0 : i64, tpu.core_type = #tpu.core_type<tc>, window_params = [{transform_indices = @transform_0, window_bounds = array<i64: 1, 16, 17, 12>}, {transform_indices = @transform_1, window_bounds = array<i64: 1, 1, 17, 12>}, {pipeline_mode = #tpu.pipeline_mode<synchronous>, transform_indices = @transform_2, window_bounds = array<i64: 4, 12, 64>}, {pipeline_mode = #tpu.pipeline_mode<synchronous>, transform_indices = @transform_3, window_bounds = array<i64: 1, 64>}, {transform_indices = @transform_4, window_bounds = array<i64: 1, 16, 16, 64>}]} {
    %c0 = arith.constant 0 : index
    %c0_0 = arith.constant 0 : index
    %c0_1 = arith.constant 0 : index
    %c0_2 = arith.constant 0 : index
    %0 = vector.load %arg2[%c0, %c0_0, %c0_1, %c0_2] : memref<1x16x17x12xbf16, #tpu.memory_space<vmem>>, vector<1x16x17x12xbf16>
    %1 = vector.shape_cast %0 : vector<1x16x17x12xbf16> to vector<16x17x12xbf16>
    %c0_3 = arith.constant 0 : index
    %c0_4 = arith.constant 0 : index
    %c0_5 = arith.constant 0 : index
    %c0_6 = arith.constant 0 : index
    %2 = vector.load %arg3[%c0_3, %c0_4, %c0_5, %c0_6] : memref<1x1x17x12xbf16, #tpu.memory_space<vmem>>, vector<1x1x17x12xbf16>
    %3 = vector.shape_cast %2 : vector<1x1x17x12xbf16> to vector<1x17x12xbf16>
    %cst = arith.constant 0.000000e+00 : f32
    %4 = vector.broadcast %cst : f32 to vector<256x64xf32>
    %5 = vector.extract_strided_slice %1 {offsets = [0, 0, 0], sizes = [16, 16, 12], strides = [1, 1, 1]} : vector<16x17x12xbf16> to vector<16x16x12xbf16>
    %6 = vector.shape_cast %5 : vector<16x16x12xbf16> to vector<256x12xbf16>
    %c0_7 = arith.constant 0 : index
    %c0_8 = arith.constant 0 : index
    %c0_9 = arith.constant 0 : index
    %7 = vector.load %arg4[%c0_7, %c0_8, %c0_9] : memref<4x12x64xbf16, #tpu.memory_space<vmem>>, vector<1x12x64xbf16>
    %8 = vector.shape_cast %7 : vector<1x12x64xbf16> to vector<12x64xbf16>
    %cst_10 = arith.constant dense<0.000000e+00> : vector<256x64xf32>
    %9 = tpu.matmul %6, %8, %cst_10 {dimension_numbers = #tpu.dot_dimension_numbers<[1], [0], [0], [1], [0, 0, 1, 1], [], []>} : vector<256x12xbf16>, vector<12x64xbf16>, vector<256x64xf32> -> vector<256x64xf32>
    %10 = arith.addf %4, %9 : vector<256x64xf32>
    %11 = vector.extract_strided_slice %1 {offsets = [0, 1, 0], sizes = [16, 16, 12], strides = [1, 1, 1]} : vector<16x17x12xbf16> to vector<16x16x12xbf16>
    %12 = vector.shape_cast %11 : vector<16x16x12xbf16> to vector<256x12xbf16>
    %c1 = arith.constant 1 : index
    %c0_11 = arith.constant 0 : index
    %c0_12 = arith.constant 0 : index
    %13 = vector.load %arg4[%c1, %c0_11, %c0_12] : memref<4x12x64xbf16, #tpu.memory_space<vmem>>, vector<1x12x64xbf16>
    %14 = vector.shape_cast %13 : vector<1x12x64xbf16> to vector<12x64xbf16>
    %cst_13 = arith.constant dense<0.000000e+00> : vector<256x64xf32>
    %15 = tpu.matmul %12, %14, %cst_13 {dimension_numbers = #tpu.dot_dimension_numbers<[1], [0], [0], [1], [0, 0, 1, 1], [], []>} : vector<256x12xbf16>, vector<12x64xbf16>, vector<256x64xf32> -> vector<256x64xf32>
    %16 = arith.addf %10, %15 : vector<256x64xf32>
    %17 = vector.extract_strided_slice %1 {offsets = [1, 0, 0], sizes = [15, 17, 12], strides = [1, 1, 1]} : vector<16x17x12xbf16> to vector<15x17x12xbf16>
    %18 = tpu.concatenate %17, %3 in 0 : vector<15x17x12xbf16>, vector<1x17x12xbf16> -> vector<16x17x12xbf16>
    %19 = vector.extract_strided_slice %18 {offsets = [0, 0, 0], sizes = [16, 16, 12], strides = [1, 1, 1]} : vector<16x17x12xbf16> to vector<16x16x12xbf16>
    %20 = vector.shape_cast %19 : vector<16x16x12xbf16> to vector<256x12xbf16>
    %c2 = arith.constant 2 : index
    %c0_14 = arith.constant 0 : index
    %c0_15 = arith.constant 0 : index
    %21 = vector.load %arg4[%c2, %c0_14, %c0_15] : memref<4x12x64xbf16, #tpu.memory_space<vmem>>, vector<1x12x64xbf16>
    %22 = vector.shape_cast %21 : vector<1x12x64xbf16> to vector<12x64xbf16>
    %cst_16 = arith.constant dense<0.000000e+00> : vector<256x64xf32>
    %23 = tpu.matmul %20, %22, %cst_16 {dimension_numbers = #tpu.dot_dimension_numbers<[1], [0], [0], [1], [0, 0, 1, 1], [], []>} : vector<256x12xbf16>, vector<12x64xbf16>, vector<256x64xf32> -> vector<256x64xf32>
    %24 = arith.addf %16, %23 : vector<256x64xf32>
    %25 = vector.extract_strided_slice %18 {offsets = [0, 1, 0], sizes = [16, 16, 12], strides = [1, 1, 1]} : vector<16x17x12xbf16> to vector<16x16x12xbf16>
    %26 = vector.shape_cast %25 : vector<16x16x12xbf16> to vector<256x12xbf16>
    %c3 = arith.constant 3 : index
    %c0_17 = arith.constant 0 : index
    %c0_18 = arith.constant 0 : index
    %27 = vector.load %arg4[%c3, %c0_17, %c0_18] : memref<4x12x64xbf16, #tpu.memory_space<vmem>>, vector<1x12x64xbf16>
    %28 = vector.shape_cast %27 : vector<1x12x64xbf16> to vector<12x64xbf16>
    %cst_19 = arith.constant dense<0.000000e+00> : vector<256x64xf32>
    %29 = tpu.matmul %26, %28, %cst_19 {dimension_numbers = #tpu.dot_dimension_numbers<[1], [0], [0], [1], [0, 0, 1, 1], [], []>} : vector<256x12xbf16>, vector<12x64xbf16>, vector<256x64xf32> -> vector<256x64xf32>
    %30 = arith.addf %24, %29 : vector<256x64xf32>
    %c0_20 = arith.constant 0 : index
    %c0_21 = arith.constant 0 : index
    %31 = vector.load %arg5[%c0_20, %c0_21] : memref<1x64xf32, #tpu.memory_space<vmem>>, vector<1x64xf32>
    %32 = vector.broadcast %31 : vector<1x64xf32> to vector<256x64xf32>
    %33 = arith.addf %30, %32 : vector<256x64xf32>
    %cst_22 = arith.constant 2.000000e-01 : f32
    %34 = vector.broadcast %cst_22 : f32 to vector<256x64xf32>
    %35 = arith.mulf %34, %33 : vector<256x64xf32>
    %36 = arith.maximumf %33, %35 : vector<256x64xf32>
    %37 = vector.shape_cast %36 : vector<256x64xf32> to vector<1x16x16x64xf32>
    %38 = arith.truncf %37 : vector<1x16x16x64xf32> to vector<1x16x16x64xbf16>
    %c0_23 = arith.constant 0 : index
    %c0_24 = arith.constant 0 : index
    %c0_25 = arith.constant 0 : index
    %c0_26 = arith.constant 0 : index
    %39 = vector.load %arg6[%c0_23, %c0_24, %c0_25, %c0_26] : memref<1x16x16x64xbf16, #tpu.memory_space<vmem>>, vector<1x16x16x64xbf16>
    tpu.vector_store %arg6[%c0_23, %c0_24, %c0_25, %c0_26], %38 {strides = array<i32>} : memref<1x16x16x64xbf16, #tpu.memory_space<vmem>>, vector<1x16x16x64xbf16>,
    return
  }
  func.func @transform_0(%arg0: i32, %arg1: i32) -> (i32, i32, i32, i32) {
    %c0_i32 = arith.constant 0 : i32
    %c0_i32_0 = arith.constant 0 : i32
    %c0_i32_1 = arith.constant 0 : i32
    return %arg0, %arg1, %c0_i32, %c0_i32_0 : i32, i32, i32, i32
  }
  func.func @transform_1(%arg0: i32, %arg1: i32) -> (i32, i32, i32, i32) {
    %c0_i32 = arith.constant 0 : i32
    %c0_i32_0 = arith.constant 0 : i32
    %c0_i32_1 = arith.constant 0 : i32
    return %arg0, %arg1, %c0_i32, %c0_i32_0 : i32, i32, i32, i32
  }
  func.func @transform_2(%arg0: i32, %arg1: i32) -> (i32, i32, i32) {
    %c0_i32 = arith.constant 0 : i32
    %c0_i32_0 = arith.constant 0 : i32
    %c0_i32_1 = arith.constant 0 : i32
    %c0_i32_2 = arith.constant 0 : i32
    return %c0_i32, %c0_i32_0, %c0_i32_1 : i32, i32, i32
  }
  func.func @transform_3(%arg0: i32, %arg1: i32) -> (i32, i32) {
    %c0_i32 = arith.constant 0 : i32
    %c0_i32_0 = arith.constant 0 : i32
    %c0_i32_1 = arith.constant 0 : i32
    return %c0_i32, %c0_i32_0 : i32, i32
  }
  func.func @transform_4(%arg0: i32, %arg1: i32) -> (i32, i32, i32, i32) {
    %c0_i32 = arith.constant 0 : i32
    %c0_i32_0 = arith.constant 0 : i32
    %c0_i32_1 = arith.constant 0 : i32
    return %arg0, %arg1, %c0_i32, %c0_i32_0 : i32, i32, i32, i32
  }
}

module attributes {stable_mosaic.version = 11 : i64} {
  func.func @_in_fused_kernel(%arg0: i32, %arg1: i32, %arg2: memref<1x64x128xf32, #tpu.memory_space<vmem>>, %arg3: memref<1x64x128xbf16, #tpu.memory_space<vmem>>) attributes {dimension_semantics = [#tpu.dimension_semantics<parallel>, #tpu.dimension_semantics<parallel>], iteration_bounds = array<i64: 2, 1>, scalar_prefetch = 0 : i64, scratch_operands = 0 : i64, tpu.core_type = #tpu.core_type<tc>, window_params = [{transform_indices = @transform_0, window_bounds = array<i64: 1, 64, 128>}, {transform_indices = @transform_1, window_bounds = array<i64: 1, 64, 128>}]} {
    %c0 = arith.constant 0 : index
    %c0_0 = arith.constant 0 : index
    %c0_1 = arith.constant 0 : index
    %0 = vector.load %arg2[%c0, %c0_0, %c0_1] : memref<1x64x128xf32, #tpu.memory_space<vmem>>, vector<1x64x128xf32>
    %1 = vector.shape_cast %0 : vector<1x64x128xf32> to vector<64x128xf32>
    %cst = arith.constant dense<0.000000e+00> : vector<128xf32>
    %2 = vector.multi_reduction <add>, %1, %cst [0] : vector<64x128xf32> to vector<128xf32>
    %3 = vector.shape_cast %2 : vector<128xf32> to vector<1x128xf32>
    %cst_2 = arith.constant 1.562500e-02 : f32
    %4 = vector.broadcast %cst_2 : f32 to vector<1x128xf32>
    %5 = arith.mulf %3, %4 : vector<1x128xf32>
    %6 = arith.mulf %1, %1 : vector<64x128xf32>
    %cst_3 = arith.constant dense<0.000000e+00> : vector<128xf32>
    %7 = vector.multi_reduction <add>, %6, %cst_3 [0] : vector<64x128xf32> to vector<128xf32>
    %8 = vector.shape_cast %7 : vector<128xf32> to vector<1x128xf32>
    %cst_4 = arith.constant 1.562500e-02 : f32
    %9 = vector.broadcast %cst_4 : f32 to vector<1x128xf32>
    %10 = arith.mulf %8, %9 : vector<1x128xf32>
    %11 = arith.mulf %5, %5 : vector<1x128xf32>
    %12 = arith.subf %10, %11 : vector<1x128xf32>
    %cst_5 = arith.constant 0.000000e+00 : f32
    %13 = vector.broadcast %cst_5 : f32 to vector<1x128xf32>
    %14 = arith.maximumf %12, %13 : vector<1x128xf32>
    %15 = vector.broadcast %5 : vector<1x128xf32> to vector<64x128xf32>
    %16 = arith.subf %1, %15 : vector<64x128xf32>
    %cst_6 = arith.constant 9.99999974E-6 : f32
    %17 = vector.broadcast %cst_6 : f32 to vector<1x128xf32>
    %18 = arith.addf %14, %17 : vector<1x128xf32>
    %19 = math.rsqrt %18 : vector<1x128xf32>
    %20 = vector.broadcast %19 : vector<1x128xf32> to vector<64x128xf32>
    %21 = arith.mulf %16, %20 : vector<64x128xf32>
    %cst_7 = arith.constant 2.000000e-01 : f32
    %22 = vector.broadcast %cst_7 : f32 to vector<64x128xf32>
    %23 = arith.mulf %22, %21 : vector<64x128xf32>
    %24 = arith.maximumf %21, %23 : vector<64x128xf32>
    %25 = arith.truncf %24 : vector<64x128xf32> to vector<64x128xbf16>
    %c0_8 = arith.constant 0 : index
    %c0_9 = arith.constant 0 : index
    %c0_10 = arith.constant 0 : index
    %26 = vector.load %arg3[%c0_8, %c0_9, %c0_10] : memref<1x64x128xbf16, #tpu.memory_space<vmem>>, vector<1x64x128xbf16>
    %27 = vector.shape_cast %26 : vector<1x64x128xbf16> to vector<64x128xbf16>
    %28 = vector.shape_cast %25 : vector<64x128xbf16> to vector<1x64x128xbf16>
    tpu.vector_store %arg3[%c0_8, %c0_9, %c0_10], %28 {strides = array<i32>} : memref<1x64x128xbf16, #tpu.memory_space<vmem>>, vector<1x64x128xbf16>,
    return
  }
  func.func @transform_0(%arg0: i32, %arg1: i32) -> (i32, i32, i32) {
    %c0_i32 = arith.constant 0 : i32
    %c0_i32_0 = arith.constant 0 : i32
    return %arg0, %c0_i32, %arg1 : i32, i32, i32
  }
  func.func @transform_1(%arg0: i32, %arg1: i32) -> (i32, i32, i32) {
    %c0_i32 = arith.constant 0 : i32
    %c0_i32_0 = arith.constant 0 : i32
    return %arg0, %c0_i32, %arg1 : i32, i32, i32
  }
}

module attributes {stable_mosaic.version = 11 : i64} {
  func.func @_conv_s2d_kernel(%arg0: i32, %arg1: i32, %arg2: memref<1x8x9x256xbf16, #tpu.memory_space<vmem>>, %arg3: memref<1x1x9x256xbf16, #tpu.memory_space<vmem>>, %arg4: memref<4x256x128xbf16, #tpu.memory_space<vmem>>, %arg5: memref<1x128xf32, #tpu.memory_space<vmem>>, %arg6: memref<1x8x8x128xf32, #tpu.memory_space<vmem>>) attributes {dimension_semantics = [#tpu.dimension_semantics<parallel>, #tpu.dimension_semantics<parallel>], iteration_bounds = array<i64: 2, 1>, scalar_prefetch = 0 : i64, scratch_operands = 0 : i64, tpu.core_type = #tpu.core_type<tc>, window_params = [{transform_indices = @transform_0, window_bounds = array<i64: 1, 8, 9, 256>}, {transform_indices = @transform_1, window_bounds = array<i64: 1, 1, 9, 256>}, {pipeline_mode = #tpu.pipeline_mode<synchronous>, transform_indices = @transform_2, window_bounds = array<i64: 4, 256, 128>}, {pipeline_mode = #tpu.pipeline_mode<synchronous>, transform_indices = @transform_3, window_bounds = array<i64: 1, 128>}, {transform_indices = @transform_4, window_bounds = array<i64: 1, 8, 8, 128>}]} {
    %c0 = arith.constant 0 : index
    %c0_0 = arith.constant 0 : index
    %c0_1 = arith.constant 0 : index
    %c0_2 = arith.constant 0 : index
    %0 = vector.load %arg2[%c0, %c0_0, %c0_1, %c0_2] : memref<1x8x9x256xbf16, #tpu.memory_space<vmem>>, vector<1x8x9x256xbf16>
    %1 = vector.shape_cast %0 : vector<1x8x9x256xbf16> to vector<8x9x256xbf16>
    %c0_3 = arith.constant 0 : index
    %c0_4 = arith.constant 0 : index
    %c0_5 = arith.constant 0 : index
    %c0_6 = arith.constant 0 : index
    %2 = vector.load %arg3[%c0_3, %c0_4, %c0_5, %c0_6] : memref<1x1x9x256xbf16, #tpu.memory_space<vmem>>, vector<1x1x9x256xbf16>
    %3 = vector.shape_cast %2 : vector<1x1x9x256xbf16> to vector<1x9x256xbf16>
    %cst = arith.constant 0.000000e+00 : f32
    %4 = vector.broadcast %cst : f32 to vector<64x128xf32>
    %5 = vector.extract_strided_slice %1 {offsets = [0, 0, 0], sizes = [8, 8, 256], strides = [1, 1, 1]} : vector<8x9x256xbf16> to vector<8x8x256xbf16>
    %6 = vector.shape_cast %5 : vector<8x8x256xbf16> to vector<64x256xbf16>
    %c0_7 = arith.constant 0 : index
    %c0_8 = arith.constant 0 : index
    %c0_9 = arith.constant 0 : index
    %7 = vector.load %arg4[%c0_7, %c0_8, %c0_9] : memref<4x256x128xbf16, #tpu.memory_space<vmem>>, vector<1x256x128xbf16>
    %8 = vector.shape_cast %7 : vector<1x256x128xbf16> to vector<256x128xbf16>
    %cst_10 = arith.constant dense<0.000000e+00> : vector<64x128xf32>
    %9 = tpu.matmul %6, %8, %cst_10 {dimension_numbers = #tpu.dot_dimension_numbers<[1], [0], [0], [1], [0, 0, 1, 1], [], []>} : vector<64x256xbf16>, vector<256x128xbf16>, vector<64x128xf32> -> vector<64x128xf32>
    %10 = arith.addf %4, %9 : vector<64x128xf32>
    %11 = vector.extract_strided_slice %1 {offsets = [0, 1, 0], sizes = [8, 8, 256], strides = [1, 1, 1]} : vector<8x9x256xbf16> to vector<8x8x256xbf16>
    %12 = vector.shape_cast %11 : vector<8x8x256xbf16> to vector<64x256xbf16>
    %c1 = arith.constant 1 : index
    %c0_11 = arith.constant 0 : index
    %c0_12 = arith.constant 0 : index
    %13 = vector.load %arg4[%c1, %c0_11, %c0_12] : memref<4x256x128xbf16, #tpu.memory_space<vmem>>, vector<1x256x128xbf16>
    %14 = vector.shape_cast %13 : vector<1x256x128xbf16> to vector<256x128xbf16>
    %cst_13 = arith.constant dense<0.000000e+00> : vector<64x128xf32>
    %15 = tpu.matmul %12, %14, %cst_13 {dimension_numbers = #tpu.dot_dimension_numbers<[1], [0], [0], [1], [0, 0, 1, 1], [], []>} : vector<64x256xbf16>, vector<256x128xbf16>, vector<64x128xf32> -> vector<64x128xf32>
    %16 = arith.addf %10, %15 : vector<64x128xf32>
    %17 = vector.extract_strided_slice %1 {offsets = [1, 0, 0], sizes = [7, 9, 256], strides = [1, 1, 1]} : vector<8x9x256xbf16> to vector<7x9x256xbf16>
    %18 = tpu.concatenate %17, %3 in 0 : vector<7x9x256xbf16>, vector<1x9x256xbf16> -> vector<8x9x256xbf16>
    %19 = vector.extract_strided_slice %18 {offsets = [0, 0, 0], sizes = [8, 8, 256], strides = [1, 1, 1]} : vector<8x9x256xbf16> to vector<8x8x256xbf16>
    %20 = vector.shape_cast %19 : vector<8x8x256xbf16> to vector<64x256xbf16>
    %c2 = arith.constant 2 : index
    %c0_14 = arith.constant 0 : index
    %c0_15 = arith.constant 0 : index
    %21 = vector.load %arg4[%c2, %c0_14, %c0_15] : memref<4x256x128xbf16, #tpu.memory_space<vmem>>, vector<1x256x128xbf16>
    %22 = vector.shape_cast %21 : vector<1x256x128xbf16> to vector<256x128xbf16>
    %cst_16 = arith.constant dense<0.000000e+00> : vector<64x128xf32>
    %23 = tpu.matmul %20, %22, %cst_16 {dimension_numbers = #tpu.dot_dimension_numbers<[1], [0], [0], [1], [0, 0, 1, 1], [], []>} : vector<64x256xbf16>, vector<256x128xbf16>, vector<64x128xf32> -> vector<64x128xf32>
    %24 = arith.addf %16, %23 : vector<64x128xf32>
    %25 = vector.extract_strided_slice %18 {offsets = [0, 1, 0], sizes = [8, 8, 256], strides = [1, 1, 1]} : vector<8x9x256xbf16> to vector<8x8x256xbf16>
    %26 = vector.shape_cast %25 : vector<8x8x256xbf16> to vector<64x256xbf16>
    %c3 = arith.constant 3 : index
    %c0_17 = arith.constant 0 : index
    %c0_18 = arith.constant 0 : index
    %27 = vector.load %arg4[%c3, %c0_17, %c0_18] : memref<4x256x128xbf16, #tpu.memory_space<vmem>>, vector<1x256x128xbf16>
    %28 = vector.shape_cast %27 : vector<1x256x128xbf16> to vector<256x128xbf16>
    %cst_19 = arith.constant dense<0.000000e+00> : vector<64x128xf32>
    %29 = tpu.matmul %26, %28, %cst_19 {dimension_numbers = #tpu.dot_dimension_numbers<[1], [0], [0], [1], [0, 0, 1, 1], [], []>} : vector<64x256xbf16>, vector<256x128xbf16>, vector<64x128xf32> -> vector<64x128xf32>
    %30 = arith.addf %24, %29 : vector<64x128xf32>
    %c0_20 = arith.constant 0 : index
    %c0_21 = arith.constant 0 : index
    %31 = vector.load %arg5[%c0_20, %c0_21] : memref<1x128xf32, #tpu.memory_space<vmem>>, vector<1x128xf32>
    %32 = vector.broadcast %31 : vector<1x128xf32> to vector<64x128xf32>
    %33 = arith.addf %30, %32 : vector<64x128xf32>
    %34 = vector.shape_cast %33 : vector<64x128xf32> to vector<1x8x8x128xf32>
    %c0_22 = arith.constant 0 : index
    %c0_23 = arith.constant 0 : index
    %c0_24 = arith.constant 0 : index
    %c0_25 = arith.constant 0 : index
    %35 = vector.load %arg6[%c0_22, %c0_23, %c0_24, %c0_25] : memref<1x8x8x128xf32, #tpu.memory_space<vmem>>, vector<1x8x8x128xf32>
    tpu.vector_store %arg6[%c0_22, %c0_23, %c0_24, %c0_25], %34 {strides = array<i32>} : memref<1x8x8x128xf32, #tpu.memory_space<vmem>>, vector<1x8x8x128xf32>,
    return
  }
  func.func @transform_0(%arg0: i32, %arg1: i32) -> (i32, i32, i32, i32) {
    %c0_i32 = arith.constant 0 : i32
    %c0_i32_0 = arith.constant 0 : i32
    %c0_i32_1 = arith.constant 0 : i32
    return %arg0, %arg1, %c0_i32, %c0_i32_0 : i32, i32, i32, i32
  }
  func.func @transform_1(%arg0: i32, %arg1: i32) -> (i32, i32, i32, i32) {
    %c0_i32 = arith.constant 0 : i32
    %c0_i32_0 = arith.constant 0 : i32
    %c0_i32_1 = arith.constant 0 : i32
    return %arg0, %arg1, %c0_i32, %c0_i32_0 : i32, i32, i32, i32
  }
  func.func @transform_2(%arg0: i32, %arg1: i32) -> (i32, i32, i32) {
    %c0_i32 = arith.constant 0 : i32
    %c0_i32_0 = arith.constant 0 : i32
    %c0_i32_1 = arith.constant 0 : i32
    %c0_i32_2 = arith.constant 0 : i32
    return %c0_i32, %c0_i32_0, %c0_i32_1 : i32, i32, i32
  }
  func.func @transform_3(%arg0: i32, %arg1: i32) -> (i32, i32) {
    %c0_i32 = arith.constant 0 : i32
    %c0_i32_0 = arith.constant 0 : i32
    %c0_i32_1 = arith.constant 0 : i32
    return %c0_i32, %c0_i32_0 : i32, i32
  }
  func.func @transform_4(%arg0: i32, %arg1: i32) -> (i32, i32, i32, i32) {
    %c0_i32 = arith.constant 0 : i32
    %c0_i32_0 = arith.constant 0 : i32
    %c0_i32_1 = arith.constant 0 : i32
    return %arg0, %arg1, %c0_i32, %c0_i32_0 : i32, i32, i32, i32
  }
}

module attributes {stable_mosaic.version = 11 : i64} {
  func.func @_in_fused_kernel(%arg0: i32, %arg1: i32, %arg2: memref<1x16x256xf32, #tpu.memory_space<vmem>>, %arg3: memref<1x16x256xbf16, #tpu.memory_space<vmem>>) attributes {dimension_semantics = [#tpu.dimension_semantics<parallel>, #tpu.dimension_semantics<parallel>], iteration_bounds = array<i64: 2, 1>, scalar_prefetch = 0 : i64, scratch_operands = 0 : i64, tpu.core_type = #tpu.core_type<tc>, window_params = [{transform_indices = @transform_0, window_bounds = array<i64: 1, 16, 256>}, {transform_indices = @transform_1, window_bounds = array<i64: 1, 16, 256>}]} {
    %c0 = arith.constant 0 : index
    %c0_0 = arith.constant 0 : index
    %c0_1 = arith.constant 0 : index
    %0 = vector.load %arg2[%c0, %c0_0, %c0_1] : memref<1x16x256xf32, #tpu.memory_space<vmem>>, vector<1x16x256xf32>
    %1 = vector.shape_cast %0 : vector<1x16x256xf32> to vector<16x256xf32>
    %cst = arith.constant dense<0.000000e+00> : vector<256xf32>
    %2 = vector.multi_reduction <add>, %1, %cst [0] : vector<16x256xf32> to vector<256xf32>
    %3 = vector.shape_cast %2 : vector<256xf32> to vector<1x256xf32>
    %cst_2 = arith.constant 6.250000e-02 : f32
    %4 = vector.broadcast %cst_2 : f32 to vector<1x256xf32>
    %5 = arith.mulf %3, %4 : vector<1x256xf32>
    %6 = arith.mulf %1, %1 : vector<16x256xf32>
    %cst_3 = arith.constant dense<0.000000e+00> : vector<256xf32>
    %7 = vector.multi_reduction <add>, %6, %cst_3 [0] : vector<16x256xf32> to vector<256xf32>
    %8 = vector.shape_cast %7 : vector<256xf32> to vector<1x256xf32>
    %cst_4 = arith.constant 6.250000e-02 : f32
    %9 = vector.broadcast %cst_4 : f32 to vector<1x256xf32>
    %10 = arith.mulf %8, %9 : vector<1x256xf32>
    %11 = arith.mulf %5, %5 : vector<1x256xf32>
    %12 = arith.subf %10, %11 : vector<1x256xf32>
    %cst_5 = arith.constant 0.000000e+00 : f32
    %13 = vector.broadcast %cst_5 : f32 to vector<1x256xf32>
    %14 = arith.maximumf %12, %13 : vector<1x256xf32>
    %15 = vector.broadcast %5 : vector<1x256xf32> to vector<16x256xf32>
    %16 = arith.subf %1, %15 : vector<16x256xf32>
    %cst_6 = arith.constant 9.99999974E-6 : f32
    %17 = vector.broadcast %cst_6 : f32 to vector<1x256xf32>
    %18 = arith.addf %14, %17 : vector<1x256xf32>
    %19 = math.rsqrt %18 : vector<1x256xf32>
    %20 = vector.broadcast %19 : vector<1x256xf32> to vector<16x256xf32>
    %21 = arith.mulf %16, %20 : vector<16x256xf32>
    %cst_7 = arith.constant 2.000000e-01 : f32
    %22 = vector.broadcast %cst_7 : f32 to vector<16x256xf32>
    %23 = arith.mulf %22, %21 : vector<16x256xf32>
    %24 = arith.maximumf %21, %23 : vector<16x256xf32>
    %25 = arith.truncf %24 : vector<16x256xf32> to vector<16x256xbf16>
    %c0_8 = arith.constant 0 : index
    %c0_9 = arith.constant 0 : index
    %c0_10 = arith.constant 0 : index
    %26 = vector.load %arg3[%c0_8, %c0_9, %c0_10] : memref<1x16x256xbf16, #tpu.memory_space<vmem>>, vector<1x16x256xbf16>
    %27 = vector.shape_cast %26 : vector<1x16x256xbf16> to vector<16x256xbf16>
    %28 = vector.shape_cast %25 : vector<16x256xbf16> to vector<1x16x256xbf16>
    tpu.vector_store %arg3[%c0_8, %c0_9, %c0_10], %28 {strides = array<i32>} : memref<1x16x256xbf16, #tpu.memory_space<vmem>>, vector<1x16x256xbf16>,
    return
  }
  func.func @transform_0(%arg0: i32, %arg1: i32) -> (i32, i32, i32) {
    %c0_i32 = arith.constant 0 : i32
    %c0_i32_0 = arith.constant 0 : i32
    return %arg0, %c0_i32, %arg1 : i32, i32, i32
  }
  func.func @transform_1(%arg0: i32, %arg1: i32) -> (i32, i32, i32) {
    %c0_i32 = arith.constant 0 : i32
    %c0_i32_0 = arith.constant 0 : i32
    return %arg0, %c0_i32, %arg1 : i32, i32, i32
  }
}

module attributes {stable_mosaic.version = 11 : i64} {
  func.func @_conv_s2d_kernel(%arg0: i32, %arg1: i32, %arg2: memref<1x4x5x512xbf16, #tpu.memory_space<vmem>>, %arg3: memref<1x1x5x512xbf16, #tpu.memory_space<vmem>>, %arg4: memref<4x512x256xbf16, #tpu.memory_space<vmem>>, %arg5: memref<1x256xf32, #tpu.memory_space<vmem>>, %arg6: memref<1x4x4x256xf32, #tpu.memory_space<vmem>>) attributes {dimension_semantics = [#tpu.dimension_semantics<parallel>, #tpu.dimension_semantics<parallel>], iteration_bounds = array<i64: 2, 1>, scalar_prefetch = 0 : i64, scratch_operands = 0 : i64, tpu.core_type = #tpu.core_type<tc>, window_params = [{transform_indices = @transform_0, window_bounds = array<i64: 1, 4, 5, 512>}, {transform_indices = @transform_1, window_bounds = array<i64: 1, 1, 5, 512>}, {pipeline_mode = #tpu.pipeline_mode<synchronous>, transform_indices = @transform_2, window_bounds = array<i64: 4, 512, 256>}, {pipeline_mode = #tpu.pipeline_mode<synchronous>, transform_indices = @transform_3, window_bounds = array<i64: 1, 256>}, {transform_indices = @transform_4, window_bounds = array<i64: 1, 4, 4, 256>}]} {
    %c0 = arith.constant 0 : index
    %c0_0 = arith.constant 0 : index
    %c0_1 = arith.constant 0 : index
    %c0_2 = arith.constant 0 : index
    %0 = vector.load %arg2[%c0, %c0_0, %c0_1, %c0_2] : memref<1x4x5x512xbf16, #tpu.memory_space<vmem>>, vector<1x4x5x512xbf16>
    %1 = vector.shape_cast %0 : vector<1x4x5x512xbf16> to vector<4x5x512xbf16>
    %c0_3 = arith.constant 0 : index
    %c0_4 = arith.constant 0 : index
    %c0_5 = arith.constant 0 : index
    %c0_6 = arith.constant 0 : index
    %2 = vector.load %arg3[%c0_3, %c0_4, %c0_5, %c0_6] : memref<1x1x5x512xbf16, #tpu.memory_space<vmem>>, vector<1x1x5x512xbf16>
    %3 = vector.shape_cast %2 : vector<1x1x5x512xbf16> to vector<1x5x512xbf16>
    %cst = arith.constant 0.000000e+00 : f32
    %4 = vector.broadcast %cst : f32 to vector<16x256xf32>
    %5 = vector.extract_strided_slice %1 {offsets = [0, 0, 0], sizes = [4, 4, 512], strides = [1, 1, 1]} : vector<4x5x512xbf16> to vector<4x4x512xbf16>
    %6 = vector.shape_cast %5 : vector<4x4x512xbf16> to vector<16x512xbf16>
    %c0_7 = arith.constant 0 : index
    %c0_8 = arith.constant 0 : index
    %c0_9 = arith.constant 0 : index
    %7 = vector.load %arg4[%c0_7, %c0_8, %c0_9] : memref<4x512x256xbf16, #tpu.memory_space<vmem>>, vector<1x512x256xbf16>
    %8 = vector.shape_cast %7 : vector<1x512x256xbf16> to vector<512x256xbf16>
    %cst_10 = arith.constant dense<0.000000e+00> : vector<16x256xf32>
    %9 = tpu.matmul %6, %8, %cst_10 {dimension_numbers = #tpu.dot_dimension_numbers<[1], [0], [0], [1], [0, 0, 1, 1], [], []>} : vector<16x512xbf16>, vector<512x256xbf16>, vector<16x256xf32> -> vector<16x256xf32>
    %10 = arith.addf %4, %9 : vector<16x256xf32>
    %11 = vector.extract_strided_slice %1 {offsets = [0, 1, 0], sizes = [4, 4, 512], strides = [1, 1, 1]} : vector<4x5x512xbf16> to vector<4x4x512xbf16>
    %12 = vector.shape_cast %11 : vector<4x4x512xbf16> to vector<16x512xbf16>
    %c1 = arith.constant 1 : index
    %c0_11 = arith.constant 0 : index
    %c0_12 = arith.constant 0 : index
    %13 = vector.load %arg4[%c1, %c0_11, %c0_12] : memref<4x512x256xbf16, #tpu.memory_space<vmem>>, vector<1x512x256xbf16>
    %14 = vector.shape_cast %13 : vector<1x512x256xbf16> to vector<512x256xbf16>
    %cst_13 = arith.constant dense<0.000000e+00> : vector<16x256xf32>
    %15 = tpu.matmul %12, %14, %cst_13 {dimension_numbers = #tpu.dot_dimension_numbers<[1], [0], [0], [1], [0, 0, 1, 1], [], []>} : vector<16x512xbf16>, vector<512x256xbf16>, vector<16x256xf32> -> vector<16x256xf32>
    %16 = arith.addf %10, %15 : vector<16x256xf32>
    %17 = vector.extract_strided_slice %1 {offsets = [1, 0, 0], sizes = [3, 5, 512], strides = [1, 1, 1]} : vector<4x5x512xbf16> to vector<3x5x512xbf16>
    %18 = tpu.concatenate %17, %3 in 0 : vector<3x5x512xbf16>, vector<1x5x512xbf16> -> vector<4x5x512xbf16>
    %19 = vector.extract_strided_slice %18 {offsets = [0, 0, 0], sizes = [4, 4, 512], strides = [1, 1, 1]} : vector<4x5x512xbf16> to vector<4x4x512xbf16>
    %20 = vector.shape_cast %19 : vector<4x4x512xbf16> to vector<16x512xbf16>
    %c2 = arith.constant 2 : index
    %c0_14 = arith.constant 0 : index
    %c0_15 = arith.constant 0 : index
    %21 = vector.load %arg4[%c2, %c0_14, %c0_15] : memref<4x512x256xbf16, #tpu.memory_space<vmem>>, vector<1x512x256xbf16>
    %22 = vector.shape_cast %21 : vector<1x512x256xbf16> to vector<512x256xbf16>
    %cst_16 = arith.constant dense<0.000000e+00> : vector<16x256xf32>
    %23 = tpu.matmul %20, %22, %cst_16 {dimension_numbers = #tpu.dot_dimension_numbers<[1], [0], [0], [1], [0, 0, 1, 1], [], []>} : vector<16x512xbf16>, vector<512x256xbf16>, vector<16x256xf32> -> vector<16x256xf32>
    %24 = arith.addf %16, %23 : vector<16x256xf32>
    %25 = vector.extract_strided_slice %18 {offsets = [0, 1, 0], sizes = [4, 4, 512], strides = [1, 1, 1]} : vector<4x5x512xbf16> to vector<4x4x512xbf16>
    %26 = vector.shape_cast %25 : vector<4x4x512xbf16> to vector<16x512xbf16>
    %c3 = arith.constant 3 : index
    %c0_17 = arith.constant 0 : index
    %c0_18 = arith.constant 0 : index
    %27 = vector.load %arg4[%c3, %c0_17, %c0_18] : memref<4x512x256xbf16, #tpu.memory_space<vmem>>, vector<1x512x256xbf16>
    %28 = vector.shape_cast %27 : vector<1x512x256xbf16> to vector<512x256xbf16>
    %cst_19 = arith.constant dense<0.000000e+00> : vector<16x256xf32>
    %29 = tpu.matmul %26, %28, %cst_19 {dimension_numbers = #tpu.dot_dimension_numbers<[1], [0], [0], [1], [0, 0, 1, 1], [], []>} : vector<16x512xbf16>, vector<512x256xbf16>, vector<16x256xf32> -> vector<16x256xf32>
    %30 = arith.addf %24, %29 : vector<16x256xf32>
    %c0_20 = arith.constant 0 : index
    %c0_21 = arith.constant 0 : index
    %31 = vector.load %arg5[%c0_20, %c0_21] : memref<1x256xf32, #tpu.memory_space<vmem>>, vector<1x256xf32>
    %32 = vector.broadcast %31 : vector<1x256xf32> to vector<16x256xf32>
    %33 = arith.addf %30, %32 : vector<16x256xf32>
    %34 = vector.shape_cast %33 : vector<16x256xf32> to vector<1x4x4x256xf32>
    %c0_22 = arith.constant 0 : index
    %c0_23 = arith.constant 0 : index
    %c0_24 = arith.constant 0 : index
    %c0_25 = arith.constant 0 : index
    %35 = vector.load %arg6[%c0_22, %c0_23, %c0_24, %c0_25] : memref<1x4x4x256xf32, #tpu.memory_space<vmem>>, vector<1x4x4x256xf32>
    tpu.vector_store %arg6[%c0_22, %c0_23, %c0_24, %c0_25], %34 {strides = array<i32>} : memref<1x4x4x256xf32, #tpu.memory_space<vmem>>, vector<1x4x4x256xf32>,
    return
  }
  func.func @transform_0(%arg0: i32, %arg1: i32) -> (i32, i32, i32, i32) {
    %c0_i32 = arith.constant 0 : i32
    %c0_i32_0 = arith.constant 0 : i32
    %c0_i32_1 = arith.constant 0 : i32
    return %arg0, %arg1, %c0_i32, %c0_i32_0 : i32, i32, i32, i32
  }
  func.func @transform_1(%arg0: i32, %arg1: i32) -> (i32, i32, i32, i32) {
    %c0_i32 = arith.constant 0 : i32
    %c0_i32_0 = arith.constant 0 : i32
    %c0_i32_1 = arith.constant 0 : i32
    return %arg0, %arg1, %c0_i32, %c0_i32_0 : i32, i32, i32, i32
  }
  func.func @transform_2(%arg0: i32, %arg1: i32) -> (i32, i32, i32) {
    %c0_i32 = arith.constant 0 : i32
    %c0_i32_0 = arith.constant 0 : i32
    %c0_i32_1 = arith.constant 0 : i32
    %c0_i32_2 = arith.constant 0 : i32
    return %c0_i32, %c0_i32_0, %c0_i32_1 : i32, i32, i32
  }
  func.func @transform_3(%arg0: i32, %arg1: i32) -> (i32, i32) {
    %c0_i32 = arith.constant 0 : i32
    %c0_i32_0 = arith.constant 0 : i32
    %c0_i32_1 = arith.constant 0 : i32
    return %c0_i32, %c0_i32_0 : i32, i32
  }
  func.func @transform_4(%arg0: i32, %arg1: i32) -> (i32, i32, i32, i32) {
    %c0_i32 = arith.constant 0 : i32
    %c0_i32_0 = arith.constant 0 : i32
    %c0_i32_1 = arith.constant 0 : i32
    return %arg0, %arg1, %c0_i32, %c0_i32_0 : i32, i32, i32, i32
  }
}

module attributes {stable_mosaic.version = 11 : i64} {
  func.func @_conv_s2d_kernel(%arg0: i32, %arg1: i32, %arg2: memref<1x2x3x1024xbf16, #tpu.memory_space<vmem>>, %arg3: memref<1x1x3x1024xbf16, #tpu.memory_space<vmem>>, %arg4: memref<4x1024x512xbf16, #tpu.memory_space<vmem>>, %arg5: memref<1x512xf32, #tpu.memory_space<vmem>>, %arg6: memref<1x2x2x512xf32, #tpu.memory_space<vmem>>) attributes {dimension_semantics = [#tpu.dimension_semantics<parallel>, #tpu.dimension_semantics<parallel>], iteration_bounds = array<i64: 2, 1>, scalar_prefetch = 0 : i64, scratch_operands = 0 : i64, tpu.core_type = #tpu.core_type<tc>, window_params = [{transform_indices = @transform_0, window_bounds = array<i64: 1, 2, 3, 1024>}, {transform_indices = @transform_1, window_bounds = array<i64: 1, 1, 3, 1024>}, {pipeline_mode = #tpu.pipeline_mode<synchronous>, transform_indices = @transform_2, window_bounds = array<i64: 4, 1024, 512>}, {pipeline_mode = #tpu.pipeline_mode<synchronous>, transform_indices = @transform_3, window_bounds = array<i64: 1, 512>}, {transform_indices = @transform_4, window_bounds = array<i64: 1, 2, 2, 512>}]} {
    %c0 = arith.constant 0 : index
    %c0_0 = arith.constant 0 : index
    %c0_1 = arith.constant 0 : index
    %c0_2 = arith.constant 0 : index
    %0 = vector.load %arg2[%c0, %c0_0, %c0_1, %c0_2] : memref<1x2x3x1024xbf16, #tpu.memory_space<vmem>>, vector<1x2x3x1024xbf16>
    %1 = vector.shape_cast %0 : vector<1x2x3x1024xbf16> to vector<2x3x1024xbf16>
    %c0_3 = arith.constant 0 : index
    %c0_4 = arith.constant 0 : index
    %c0_5 = arith.constant 0 : index
    %c0_6 = arith.constant 0 : index
    %2 = vector.load %arg3[%c0_3, %c0_4, %c0_5, %c0_6] : memref<1x1x3x1024xbf16, #tpu.memory_space<vmem>>, vector<1x1x3x1024xbf16>
    %3 = vector.shape_cast %2 : vector<1x1x3x1024xbf16> to vector<1x3x1024xbf16>
    %cst = arith.constant 0.000000e+00 : f32
    %4 = vector.broadcast %cst : f32 to vector<4x512xf32>
    %5 = vector.extract_strided_slice %1 {offsets = [0, 0, 0], sizes = [2, 2, 1024], strides = [1, 1, 1]} : vector<2x3x1024xbf16> to vector<2x2x1024xbf16>
    %6 = vector.shape_cast %5 : vector<2x2x1024xbf16> to vector<4x1024xbf16>
    %c0_7 = arith.constant 0 : index
    %c0_8 = arith.constant 0 : index
    %c0_9 = arith.constant 0 : index
    %7 = vector.load %arg4[%c0_7, %c0_8, %c0_9] : memref<4x1024x512xbf16, #tpu.memory_space<vmem>>, vector<1x1024x512xbf16>
    %8 = vector.shape_cast %7 : vector<1x1024x512xbf16> to vector<1024x512xbf16>
    %cst_10 = arith.constant dense<0.000000e+00> : vector<4x512xf32>
    %9 = tpu.matmul %6, %8, %cst_10 {dimension_numbers = #tpu.dot_dimension_numbers<[1], [0], [0], [1], [0, 0, 1, 1], [], []>} : vector<4x1024xbf16>, vector<1024x512xbf16>, vector<4x512xf32> -> vector<4x512xf32>
    %10 = arith.addf %4, %9 : vector<4x512xf32>
    %11 = vector.extract_strided_slice %1 {offsets = [0, 1, 0], sizes = [2, 2, 1024], strides = [1, 1, 1]} : vector<2x3x1024xbf16> to vector<2x2x1024xbf16>
    %12 = vector.shape_cast %11 : vector<2x2x1024xbf16> to vector<4x1024xbf16>
    %c1 = arith.constant 1 : index
    %c0_11 = arith.constant 0 : index
    %c0_12 = arith.constant 0 : index
    %13 = vector.load %arg4[%c1, %c0_11, %c0_12] : memref<4x1024x512xbf16, #tpu.memory_space<vmem>>, vector<1x1024x512xbf16>
    %14 = vector.shape_cast %13 : vector<1x1024x512xbf16> to vector<1024x512xbf16>
    %cst_13 = arith.constant dense<0.000000e+00> : vector<4x512xf32>
    %15 = tpu.matmul %12, %14, %cst_13 {dimension_numbers = #tpu.dot_dimension_numbers<[1], [0], [0], [1], [0, 0, 1, 1], [], []>} : vector<4x1024xbf16>, vector<1024x512xbf16>, vector<4x512xf32> -> vector<4x512xf32>
    %16 = arith.addf %10, %15 : vector<4x512xf32>
    %17 = vector.extract_strided_slice %1 {offsets = [1, 0, 0], sizes = [1, 3, 1024], strides = [1, 1, 1]} : vector<2x3x1024xbf16> to vector<1x3x1024xbf16>
    %18 = tpu.concatenate %17, %3 in 0 : vector<1x3x1024xbf16>, vector<1x3x1024xbf16> -> vector<2x3x1024xbf16>
    %19 = vector.extract_strided_slice %18 {offsets = [0, 0, 0], sizes = [2, 2, 1024], strides = [1, 1, 1]} : vector<2x3x1024xbf16> to vector<2x2x1024xbf16>
    %20 = vector.shape_cast %19 : vector<2x2x1024xbf16> to vector<4x1024xbf16>
    %c2 = arith.constant 2 : index
    %c0_14 = arith.constant 0 : index
    %c0_15 = arith.constant 0 : index
    %21 = vector.load %arg4[%c2, %c0_14, %c0_15] : memref<4x1024x512xbf16, #tpu.memory_space<vmem>>, vector<1x1024x512xbf16>
    %22 = vector.shape_cast %21 : vector<1x1024x512xbf16> to vector<1024x512xbf16>
    %cst_16 = arith.constant dense<0.000000e+00> : vector<4x512xf32>
    %23 = tpu.matmul %20, %22, %cst_16 {dimension_numbers = #tpu.dot_dimension_numbers<[1], [0], [0], [1], [0, 0, 1, 1], [], []>} : vector<4x1024xbf16>, vector<1024x512xbf16>, vector<4x512xf32> -> vector<4x512xf32>
    %24 = arith.addf %16, %23 : vector<4x512xf32>
    %25 = vector.extract_strided_slice %18 {offsets = [0, 1, 0], sizes = [2, 2, 1024], strides = [1, 1, 1]} : vector<2x3x1024xbf16> to vector<2x2x1024xbf16>
    %26 = vector.shape_cast %25 : vector<2x2x1024xbf16> to vector<4x1024xbf16>
    %c3 = arith.constant 3 : index
    %c0_17 = arith.constant 0 : index
    %c0_18 = arith.constant 0 : index
    %27 = vector.load %arg4[%c3, %c0_17, %c0_18] : memref<4x1024x512xbf16, #tpu.memory_space<vmem>>, vector<1x1024x512xbf16>
    %28 = vector.shape_cast %27 : vector<1x1024x512xbf16> to vector<1024x512xbf16>
    %cst_19 = arith.constant dense<0.000000e+00> : vector<4x512xf32>
    %29 = tpu.matmul %26, %28, %cst_19 {dimension_numbers = #tpu.dot_dimension_numbers<[1], [0], [0], [1], [0, 0, 1, 1], [], []>} : vector<4x1024xbf16>, vector<1024x512xbf16>, vector<4x512xf32> -> vector<4x512xf32>
    %30 = arith.addf %24, %29 : vector<4x512xf32>
    %c0_20 = arith.constant 0 : index
    %c0_21 = arith.constant 0 : index
    %31 = vector.load %arg5[%c0_20, %c0_21] : memref<1x512xf32, #tpu.memory_space<vmem>>, vector<1x512xf32>
    %32 = vector.broadcast %31 : vector<1x512xf32> to vector<4x512xf32>
    %33 = arith.addf %30, %32 : vector<4x512xf32>
    %34 = vector.shape_cast %33 : vector<4x512xf32> to vector<1x2x2x512xf32>
    %c0_22 = arith.constant 0 : index
    %c0_23 = arith.constant 0 : index
    %c0_24 = arith.constant 0 : index
    %c0_25 = arith.constant 0 : index
    %35 = vector.load %arg6[%c0_22, %c0_23, %c0_24, %c0_25] : memref<1x2x2x512xf32, #tpu.memory_space<vmem>>, vector<1x2x2x512xf32>
    tpu.vector_store %arg6[%c0_22, %c0_23, %c0_24, %c0_25], %34 {strides = array<i32>} : memref<1x2x2x512xf32, #tpu.memory_space<vmem>>, vector<1x2x2x512xf32>,
    return
  }
  func.func @transform_0(%arg0: i32, %arg1: i32) -> (i32, i32, i32, i32) {
    %c0_i32 = arith.constant 0 : i32
    %c0_i32_0 = arith.constant 0 : i32
    %c0_i32_1 = arith.constant 0 : i32
    return %arg0, %arg1, %c0_i32, %c0_i32_0 : i32, i32, i32, i32
  }
  func.func @transform_1(%arg0: i32, %arg1: i32) -> (i32, i32, i32, i32) {
    %c0_i32 = arith.constant 0 : i32
    %c0_i32_0 = arith.constant 0 : i32
    %c0_i32_1 = arith.constant 0 : i32
    return %arg0, %arg1, %c0_i32, %c0_i32_0 : i32, i32, i32, i32
  }
  func.func @transform_2(%arg0: i32, %arg1: i32) -> (i32, i32, i32) {
    %c0_i32 = arith.constant 0 : i32
    %c0_i32_0 = arith.constant 0 : i32
    %c0_i32_1 = arith.constant 0 : i32
    %c0_i32_2 = arith.constant 0 : i32
    return %c0_i32, %c0_i32_0, %c0_i32_1 : i32, i32, i32
  }
  func.func @transform_3(%arg0: i32, %arg1: i32) -> (i32, i32) {
    %c0_i32 = arith.constant 0 : i32
    %c0_i32_0 = arith.constant 0 : i32
    %c0_i32_1 = arith.constant 0 : i32
    return %c0_i32, %c0_i32_0 : i32, i32
  }
  func.func @transform_4(%arg0: i32, %arg1: i32) -> (i32, i32, i32, i32) {
    %c0_i32 = arith.constant 0 : i32
    %c0_i32_0 = arith.constant 0 : i32
    %c0_i32_1 = arith.constant 0 : i32
    return %arg0, %arg1, %c0_i32, %c0_i32_0 : i32, i32, i32, i32
  }
}

module attributes {stable_mosaic.version = 11 : i64} {
  func.func @_in_fused_kernel(%arg0: i32, %arg1: i32, %arg2: memref<1x4x256xf32, #tpu.memory_space<vmem>>, %arg3: memref<1x4x256xbf16, #tpu.memory_space<vmem>>) attributes {dimension_semantics = [#tpu.dimension_semantics<parallel>, #tpu.dimension_semantics<parallel>], iteration_bounds = array<i64: 2, 2>, scalar_prefetch = 0 : i64, scratch_operands = 0 : i64, tpu.core_type = #tpu.core_type<tc>, window_params = [{transform_indices = @transform_0, window_bounds = array<i64: 1, 4, 256>}, {transform_indices = @transform_1, window_bounds = array<i64: 1, 4, 256>}]} {
    %c0 = arith.constant 0 : index
    %c0_0 = arith.constant 0 : index
    %c0_1 = arith.constant 0 : index
    %0 = vector.load %arg2[%c0, %c0_0, %c0_1] : memref<1x4x256xf32, #tpu.memory_space<vmem>>, vector<1x4x256xf32>
    %1 = vector.shape_cast %0 : vector<1x4x256xf32> to vector<4x256xf32>
    %cst = arith.constant dense<0.000000e+00> : vector<256xf32>
    %2 = vector.multi_reduction <add>, %1, %cst [0] : vector<4x256xf32> to vector<256xf32>
    %3 = vector.shape_cast %2 : vector<256xf32> to vector<1x256xf32>
    %cst_2 = arith.constant 2.500000e-01 : f32
    %4 = vector.broadcast %cst_2 : f32 to vector<1x256xf32>
    %5 = arith.mulf %3, %4 : vector<1x256xf32>
    %6 = arith.mulf %1, %1 : vector<4x256xf32>
    %cst_3 = arith.constant dense<0.000000e+00> : vector<256xf32>
    %7 = vector.multi_reduction <add>, %6, %cst_3 [0] : vector<4x256xf32> to vector<256xf32>
    %8 = vector.shape_cast %7 : vector<256xf32> to vector<1x256xf32>
    %cst_4 = arith.constant 2.500000e-01 : f32
    %9 = vector.broadcast %cst_4 : f32 to vector<1x256xf32>
    %10 = arith.mulf %8, %9 : vector<1x256xf32>
    %11 = arith.mulf %5, %5 : vector<1x256xf32>
    %12 = arith.subf %10, %11 : vector<1x256xf32>
    %cst_5 = arith.constant 0.000000e+00 : f32
    %13 = vector.broadcast %cst_5 : f32 to vector<1x256xf32>
    %14 = arith.maximumf %12, %13 : vector<1x256xf32>
    %15 = vector.broadcast %5 : vector<1x256xf32> to vector<4x256xf32>
    %16 = arith.subf %1, %15 : vector<4x256xf32>
    %cst_6 = arith.constant 9.99999974E-6 : f32
    %17 = vector.broadcast %cst_6 : f32 to vector<1x256xf32>
    %18 = arith.addf %14, %17 : vector<1x256xf32>
    %19 = math.rsqrt %18 : vector<1x256xf32>
    %20 = vector.broadcast %19 : vector<1x256xf32> to vector<4x256xf32>
    %21 = arith.mulf %16, %20 : vector<4x256xf32>
    %cst_7 = arith.constant 2.000000e-01 : f32
    %22 = vector.broadcast %cst_7 : f32 to vector<4x256xf32>
    %23 = arith.mulf %22, %21 : vector<4x256xf32>
    %24 = arith.maximumf %21, %23 : vector<4x256xf32>
    %25 = arith.truncf %24 : vector<4x256xf32> to vector<4x256xbf16>
    %c0_8 = arith.constant 0 : index
    %c0_9 = arith.constant 0 : index
    %c0_10 = arith.constant 0 : index
    %26 = vector.load %arg3[%c0_8, %c0_9, %c0_10] : memref<1x4x256xbf16, #tpu.memory_space<vmem>>, vector<1x4x256xbf16>
    %27 = vector.shape_cast %26 : vector<1x4x256xbf16> to vector<4x256xbf16>
    %28 = vector.shape_cast %25 : vector<4x256xbf16> to vector<1x4x256xbf16>
    tpu.vector_store %arg3[%c0_8, %c0_9, %c0_10], %28 {strides = array<i32>} : memref<1x4x256xbf16, #tpu.memory_space<vmem>>, vector<1x4x256xbf16>,
    return
  }
  func.func @transform_0(%arg0: i32, %arg1: i32) -> (i32, i32, i32) {
    %c0_i32 = arith.constant 0 : i32
    %c0_i32_0 = arith.constant 0 : i32
    return %arg0, %c0_i32, %arg1 : i32, i32, i32
  }
  func.func @transform_1(%arg0: i32, %arg1: i32) -> (i32, i32, i32) {
    %c0_i32 = arith.constant 0 : i32
    %c0_i32_0 = arith.constant 0 : i32
    return %arg0, %c0_i32, %arg1 : i32, i32, i32
  }
}

module attributes {stable_mosaic.version = 11 : i64} {
  func.func @_conv_mm_kernel(%arg0: i32, %arg1: memref<8x8192xbf16, #tpu.memory_space<vmem>>, %arg2: memref<8192x128xbf16, #tpu.memory_space<vmem>>, %arg3: memref<1x128xf32, #tpu.memory_space<vmem>>, %arg4: memref<8x128xf32, #tpu.memory_space<vmem>>) attributes {dimension_semantics = [#tpu.dimension_semantics<parallel>], iteration_bounds = array<i64: 1>, scalar_prefetch = 0 : i64, scratch_operands = 0 : i64, tpu.core_type = #tpu.core_type<tc>, window_params = [{transform_indices = @transform_0, window_bounds = array<i64: 8, 8192>}, {pipeline_mode = #tpu.pipeline_mode<synchronous>, transform_indices = @transform_1, window_bounds = array<i64: 8192, 128>}, {pipeline_mode = #tpu.pipeline_mode<synchronous>, transform_indices = @transform_2, window_bounds = array<i64: 1, 128>}, {transform_indices = @transform_3, window_bounds = array<i64: 8, 128>}]} {
    %c0 = arith.constant 0 : index
    %c0_0 = arith.constant 0 : index
    %0 = vector.load %arg1[%c0, %c0_0] : memref<8x8192xbf16, #tpu.memory_space<vmem>>, vector<8x8192xbf16>
    %c0_1 = arith.constant 0 : index
    %c0_2 = arith.constant 0 : index
    %1 = vector.load %arg2[%c0_1, %c0_2] : memref<8192x128xbf16, #tpu.memory_space<vmem>>, vector<8192x128xbf16>
    %cst = arith.constant dense<0.000000e+00> : vector<8x128xf32>
    %2 = tpu.matmul %0, %1, %cst {dimension_numbers = #tpu.dot_dimension_numbers<[1], [0], [0], [1], [0, 0, 1, 1], [], []>} : vector<8x8192xbf16>, vector<8192x128xbf16>, vector<8x128xf32> -> vector<8x128xf32>
    %c0_3 = arith.constant 0 : index
    %c0_4 = arith.constant 0 : index
    %3 = vector.load %arg3[%c0_3, %c0_4] : memref<1x128xf32, #tpu.memory_space<vmem>>, vector<1x128xf32>
    %4 = vector.broadcast %3 : vector<1x128xf32> to vector<8x128xf32>
    %5 = arith.addf %2, %4 : vector<8x128xf32>
    %c0_5 = arith.constant 0 : index
    %c0_6 = arith.constant 0 : index
    %6 = vector.load %arg4[%c0_5, %c0_6] : memref<8x128xf32, #tpu.memory_space<vmem>>, vector<8x128xf32>
    tpu.vector_store %arg4[%c0_5, %c0_6], %5 {strides = array<i32>} : memref<8x128xf32, #tpu.memory_space<vmem>>, vector<8x128xf32>,
    return
  }
  func.func @transform_0(%arg0: i32) -> (i32, i32) {
    %c0_i32 = arith.constant 0 : i32
    %c0_i32_0 = arith.constant 0 : i32
    return %arg0, %c0_i32 : i32, i32
  }
  func.func @transform_1(%arg0: i32) -> (i32, i32) {
    %c0_i32 = arith.constant 0 : i32
    %c0_i32_0 = arith.constant 0 : i32
    %c0_i32_1 = arith.constant 0 : i32
    return %c0_i32, %c0_i32_0 : i32, i32
  }
  func.func @transform_2(%arg0: i32) -> (i32, i32) {
    %c0_i32 = arith.constant 0 : i32
    %c0_i32_0 = arith.constant 0 : i32
    %c0_i32_1 = arith.constant 0 : i32
    return %c0_i32, %c0_i32_0 : i32, i32
  }
  func.func @transform_3(%arg0: i32) -> (i32, i32) {
    %c0_i32 = arith.constant 0 : i32
    %c0_i32_0 = arith.constant 0 : i32
    return %arg0, %c0_i32 : i32, i32
  }
}

</mosaic_0001>

<bundles_post_ra>
// kernel: discriminator_local.8
= control target key start
LH: loop header
LB: loop body
LE: loop exit
PB: predicated region body
PF: predicated region fallthrough
CT: control target
= control target key end

     0   :  { %9 = vsyncpa [#allocation3], 0  ;;  %s2767_s15 = smov 0   ;;  %s2769_s16 = smov 0   ;;  %s3322_s0 = inlined_call_operand.vmem [shape: bf16[2,16,17,12], index: 0, kind: input, shape index: {}]   ;;  %s3323_s1 = inlined_call_operand.vmem [shape: bf16[2,1,17,12], index: 1, kind: input, shape index: {}]   ;;  %s3324_s2 = inlined_call_operand.vmem [shape: bf16[4,12,64], index: 2, kind: input, shape index: {}]   ;;  %s3325_s3 = inlined_call_operand.hbm [shape: f32[1,64], index: 3, kind: input, shape index: {}]   ;;  %s3326_s4 = inlined_call_operand.vmem [shape: bf16[2,16,16,64], index: 4, kind: output, shape index: {}]  }
   0x1   :  { %s2771_s17 = smov 0  }
   0x2 LB: > { %s2136_s18 = sadd.s32 4294967295, %s2739_s17   ;;  %s27_s19 = sadd.s32 1, %s2735_s16  ;;  %s2739_s17 = sphi %s2771_s17, %s15_s17   ;;  %s2735_s16 = sphi %s2769_s16, %s3338_s16   ;;  %s2731_s15 = sphi %s2767_s15, %s3337_s15  }
   0x3   : > { %p29_p0 = scmp.ge.s32.totalorder %s27_s19, 2  ;;  %p2138_p1 = scmp.ge.s32.totalorder %s2739_s17, 1 }
   0x4   : > { %p158_p2 = scmp.lt.s32.totalorder %s2739_s17, 3  ;;  %p2792_p4 = scmp.eq.s32.totalorder %s2136_s18, 0 }
   0x5   : > { %s3340_s19 = smov (%p29_p0, %s27_s19), 0  ;;  %s2741_s22 = smov [#allocation2]  }
   0x6   : > { %p2788_p3 = pnand %p2138_p1, %p158_p2  ;;  %s174_s23 = sshll.u32 %s2741_s22, 4  ;;  %s175_s23 = int_to_ptr.vmem [resolvable:$true] %s174_s23 }
   0x7   : > { %s3331_s21 = scalar_select %p2792_p4, 1, 0 }
   0x8   : > { %s3330_s20 = scalar_select %p2788_p3, 1, 0 }
   0x9   : > { %p2633_p5 = pneg %p2788_p3  ;;  %s2685_s27 = scalar_lea.hbm %s3325_s3, 16 }
   0xa   : > { %p2686_p7 = scmp.ne.s32.totalorder %s3325_s3, %s2685_s27  ;;  %p2692_p11 = scmp.lt.u32.totalorder %s2685_s27, %s3325_s3 }
   0xb   : > { %p2800_p6 = pnand %p2792_p4, %p2633_p5 }
   0xd   : > { %p2687_p8 = pneg %p2800_p6 }
   0xf   : > { %p2688_p9 = pnand %p2687_p8, %p2686_p7 }
  0x11   : > { %p2689_p10 = pneg %p2688_p9 }
  0x13   : > { %p2694_p12 = pnand %p2692_p11, %p2689_p10 }
  0x15   : > { %2697 = shalt.err (!%p2694_p12)
}
  0x16   : > { %s2698_s6 = scalar_lea.vmem %s175_s23, 16  ;;  %s2705_s7 = scalar_lea.vmem %s175_s23, 32 }
  0x17   : > { %p2699_p13 = scmp.ne.s32.totalorder %s175_s23, %s2698_s6  ;;  %p2706_p2 = scmp.lt.s32.totalorder %s175_s23, %s175_s23 }
  0x18   : > { %p2707_p5 = scmp.lt.s32.totalorder %s2705_s7, %s2698_s6 }
  0x19   : > { %p2701_p0 = pnand %p2699_p13, %p2687_p8 }
  0x1a   : > { %p2708_p4 = por %p2707_p5, %p2706_p2 }
  0x1b   : > { %p2702_p1 = pneg %p2701_p0 }
  0x1d   : > { %p2709_p3 = pnand %p2708_p4, %p2702_p1 }
  0x1f   : > { %2712 = shalt.err (!%p2709_p3)
}
  0x20   : > { %2636 = dma.hbm_to_vmem [thread:$0]  (!%p2800_p6), %s3325_s3, 16, %s175_s23, [#allocation3]  }
  0x21   : > { %p3333_p7 = scmp.ne.s32.totalorder %s3330_s20, 0 }
  0x22   : > { %p3334_p9 = scmp.ne.s32.totalorder (!%p3333_p7), %s3331_s21, 0 }
  0x23   : > { %213 = sbr.rel (%p3333_p7) target bundleno = 417 (0x1a1), region = 36 }
  0x2a   : > { %2726 = dma.done.wait (%p3334_p9), [#allocation3], 16  }
  0x2b   : > { %2728 = vsyncadd (%p3334_p9), [#allocation3], 4294967280  ;;  %p259_p8 = scmp.lt.s32.totalorder %s2731_s15, 1  ;;  %vm835_vm0 = vcmask 1045504   ;;  %vm786_vm1 = vcmask 97280   ;;  %vm1974_vm5 = vcmask 519168  }
  0x2c   : > { %vm343_vm2 = vsmask.f32 3328  ;;  %vm344_vm3 = vsmask.f32 7440  ;;  %v2664_v0 = vld [vmem:[%s3324_s2 + $0x10] sm:$0x3f]  }
  0x2d   : > { %s3342_s15 = smov (!%p259_p8, %s2731_s15), 1  ;;  %2625 = vmatprep.subr.msk.bf16.mxu0 %vm835_vm0, %v2664_v0  ;;  %v1314_v4 = vsel %vm835_vm0, %v2664_v0, 0  ;;  %v2667_v21 = vld [vmem:[%s3324_s2 + $0x8] sm:$0x3f]   ;;  %vm2876_vm4 = vmor %vm343_vm2, %vm344_vm3  ;;  %v2668_v43 = vld [vmem:[%s3324_s2] sm:$0x3f]  }
  0x2e   : > { %s2627_s10 = smul.u32 192, %s3342_s15  ;;  %2460 = vmatpush3.bf16.msra.mxu0 %v1314_v4  ;;  %2623 = vmatprep.subr.msk.bf16.mxu1 %vm835_vm0, %v2667_v21  ;;  %v837_v29 = vsel %vm835_vm0, %v2667_v21, 0  ;;  %v2669_v51 = vld [vmem:[%s3324_s2 + $0x18] sm:$0x3f]   ;;  %v1134_v53 = vsel %vm835_vm0, %v2668_v43, 0  ;;  %s2290_s30 = sshll.u32 %s3342_s15, 7 }
  0x2f   : > { %2392 = vmatpush3.bf16.msra.mxu1 %v837_v29  ;;  %2626 = vmatprep.subr.msk.bf16.mxu0 %vm835_vm0, %v2669_v51  ;;  %v1548_v62 = vsel %vm835_vm0, %v2669_v51, 0  ;;  %s2628_s26 = smul.u32 12, %s3342_s15  ;;  %s3219_s7 = scalar_lea.vmem %s3326_s4, %s2290_s30 }
  0x30   : > { %s2834_s13 = scalar_lea.vmem %s3322_s0, %s2627_s10  ;;  %2624 = vmatprep.subr.msk.bf16.mxu1 %vm835_vm0, %v2668_v43 }
  0x31   : > { %v293_v1 = vld [vmem:[%s2834_s13 + $0xc] sm:$0xf]  ;;  %v294_v2 = vld [vmem:[%s2834_s13 + $0x10] sm:$0xf]  ;;  %v296_v3 = vld [vmem:[%s2834_s13 + $0x18] sm:$0xf]  ;;  %s3091_s29 = scalar_lea.vmem %s3323_s1, %s2628_s26 }
  0x32   : > { %v371_v5 = vshrl.u32 %v293_v1, 16  ;;  %v374_v6 = vshll.u32 %v293_v1, 16  ;;  %v380_v7 = vshll.u32 %v294_v2, 16  ;;  %v297_v8 = vld [vmem:[%s2834_s13 + $0x1c] sm:$0xf]  ;;  %v384_v9 = vshrl.u32 %v294_v2, 16 }
  0x33   : > { %v2845_v10 = vcombine.low %v293_v1, %v294_v2  ;;  %v395_v11 = vshrl.u32 %v296_v3, 16  ;;  %v398_v12 = vshll.u32 %v296_v3, 16  ;;  %v404_v16 = vshll.u32 %v297_v8, 16  ;;  %v2859_v25 = vld [vmem:[%s2834_s13] sm:$0xf] }
  0x34   : > { %v373_v13 = vrot.slane %v371_v5, 4  ;;  %v376_v14 = vrot.slane %v374_v6, 5  ;;  %v2847_v15 = vrot.slane %v380_v7, 5  ;;  %v386_v17 = vrot.slane %v384_v9, 4  ;;  %v2862_v26 = vld [vmem:[%s2834_s13 + $0x4] sm:$0xf] }
  0x35   : > { %2461 = vmatprep.mubr.msk.bf16.mxu0 %vm786_vm1, %v2845_v10  ;;  %v397_v18 = vrot.slane %v395_v11, 4  ;;  %v400_v19 = vrot.slane %v398_v12, 5  ;;  %v408_v20 = vshrl.u32 %v297_v8, 16  ;;  %v2854_v23 = vrot.slane %v404_v16, 5  ;;  %v292_v30 = vld [vmem:[%s2834_s13 + $0x8] sm:$0x1] }
  0x36   : > { %v377_v22 = vor.u32 %v376_v14, %v373_v13  ;;  %v2856_v24 = vcombine.low %v296_v3, %v297_v8  ;;  %v387_v27 = vor.u32 %v386_v17, %v2847_v15  ;;  %v347_v31 = vshrl.u32 %v2859_v25, 16  ;;  %v295_v52 = vld [vmem:[%s2834_s13 + $0x14] sm:$0x1]  ;;  %v299_v56 = vld [vmem:[%s2834_s13 + $0x24] sm:$0xf] }
  0x37   : > { %v410_v28 = vrot.slane %v408_v20, 4  ;;  %v350_v32 = vshll.u32 %v2859_v25, 16  ;;  %v356_v33 = vshll.u32 %v2862_v26, 16  ;;  %v360_v34 = vshrl.u32 %v2862_v26, 16  ;;  %v300_v57 = vld [vmem:[%s2834_s13 + $0x28] sm:$0xf] }
  0x38   : > { %2462 = vmatmul.mubr.msk.bf16.vlgmr.msra.gmra.mrb[0].mxu0 %vm786_vm1, %v2856_v24  ;;  %v378_v35 = vrot.slane %v377_v22, 4  ;;  %v349_v36 = vrot.slane %v347_v31, 4  ;;  %v366_v37 = vshll.u32 %v292_v30, 16  ;;  %v401_v38 = vor.u32 %v400_v19, %v397_v18  ;;  %v302_v4 = vld [vmem:[%s2834_s13 + $0x30] sm:$0xf] }
  0x39   : > { %v352_v40 = vrot.slane %v350_v32, 5  ;;  %v358_v41 = vrot.slane %v356_v33, 5  ;;  %v362_v42 = vrot.slane %v360_v34, 4  ;;  %v388_v44 = vrot.slane %v387_v27, 4  ;;  %2494 = vmatpush3.bf16.msra.mxu0 %v1548_v62  ;;  %v303_v9 = vld [vmem:[%s2834_s13 + $0x34] sm:$0xf] }
  0x3a   : > { %v2883_v45 = vrot.slane %v401_v38, 4  ;;  %v411_v46 = vor.u32 %v410_v28, %v2854_v23  ;;  %v2182_v47 = vcombine.low %v2859_v25, %v2862_v26  ;;  %v368_v50 = vrot.slane %v366_v37, 5  ;;  %v298_v11 = vld [vmem:[%s2834_s13 + $0x20] sm:$0x1]  ;;  %v301_v20 = vld [vmem:[%s2834_s13 + $0x2c] sm:$0x1] }
  0x3b   : > { %v353_v48 = vor.u32 %v352_v40, %v349_v36  ;;  %v363_v49 = vor.u32 %v362_v42, %v358_v41  ;;  %v383_v54 = vsel %vm2876_vm4, %v378_v35, %v2847_v15  ;;  %v390_v55 = vshll.u32 %v295_v52, 16  ;;  %v305_v28 = vld [vmem:[%s2834_s13 + $0x3c] sm:$0xf]  ;;  %v306_v33 = vld [vmem:[%s2834_s13 + $0x40] sm:$0xf] }
  0x3c   : > { %v407_v58 = vsel %vm2876_vm4, %v2883_v45, %v2854_v23  ;;  %v412_v59 = vrot.slane %v411_v46, 4  ;;  %v419_v63 = vshrl.u32 %v299_v56, 16  ;;  %v422_v1 = vshll.u32 %v299_v56, 16  ;;  %v308_v52 = vld [vmem:[%s2834_s13 + $0x48] sm:$0xf] }
  0x3d   : > { %v354_v60 = vrot.slane %v353_v48, 4  ;;  %v364_v61 = vrot.slane %v363_v49, 4  ;;  %v392_v0 = vrot.slane %v390_v55, 5  ;;  %v428_v2 = vshll.u32 %v300_v57, 16 }
  0x3e   : > { %v432_v3 = vshrl.u32 %v300_v57, 16  ;;  %v421_v7 = vrot.slane %v419_v63, 4  ;;  %v2910_v8 = vcombine.low %v299_v56, %v300_v57  ;;  %v424_v14 = vrot.slane %v422_v1, 5 }
  0x3f   : > { %v359_v5 = vsel %vm2876_vm4, %v354_v60, %v358_v41  ;;  %v369_v6 = vsel %vm2876_vm4, %v364_v61, %v368_v50  ;;  %v393_v13 = vsel %vm2876_vm4, %v388_v44, %v392_v0  ;;  %v430_v15 = vrot.slane %v428_v2, 5 }
  0x40   : > { %v2149_v12 = vcombine.low %v359_v5, %v369_v6  ;;  %v2916_v16 = vcombine.low %v383_v54, %v393_v13  ;;  %v434_v17 = vrot.slane %v432_v3, 4  ;;  %2465 = vmatprep.mubr.msk.bf16.mxu0 %vm786_vm1, %v2910_v8  ;;  %v443_v18 = vshrl.u32 %v302_v4, 16  ;;  %v307_v3 = vld [vmem:[%s2834_s13 + $0x44] sm:$0x1] }
  0x41   : > { %v446_v19 = vshll.u32 %v302_v4, 16  ;;  %v452_v21 = vshll.u32 %v303_v9, 16  ;;  %v456_v22 = vshrl.u32 %v303_v9, 16  ;;  %v2922_v23 = vcombine.low %v302_v4, %v303_v9  ;;  %v311_v4 = vld [vmem:[%s2834_s13 + $0x54] sm:$0xf] }
  0x42   : > { %2393 = vmatprep.mubr.msk.bf16.mxu1 %vm786_vm1, %v2149_v12  ;;  %v414_v27 = vshll.u32 %v298_v11, 16  ;;  %v445_v29 = vrot.slane %v443_v18, 4  ;;  %v425_v31 = vor.u32 %v424_v14, %v421_v7  ;;  %v435_v32 = vor.u32 %v434_v17, %v430_v15  ;;  %v312_v11 = vld [vmem:[%s2834_s13 + $0x58] sm:$0xf] }
  0x43   : > { %2394 = vmatmul.mubr.msk.bf16.vlgmr.msra.gmra.mrb[0].mxu1 %vm786_vm1, %v2916_v16  ;;  %v448_v30 = vrot.slane %v446_v19, 5  ;;  %v454_v34 = vrot.slane %v452_v21, 5  ;;  %v458_v35 = vrot.slane %v456_v22, 4  ;;  %2466 = vmatmul.mubr.msk.bf16.gmra.mrb[4].mxu0 %vm786_vm1, %v2922_v23  ;;  %v438_v37 = vshll.u32 %v301_v20, 16 }
  0x44   : > { %2426 = vmatpush3.bf16.msra.mxu1 %v1134_v53  ;;  %v416_v36 = vrot.slane %v414_v27, 5  ;;  %v426_v38 = vrot.slane %v425_v31, 4  ;;  %v436_v40 = vrot.slane %v435_v32, 4  ;;  %v467_v41 = vshrl.u32 %v305_v28, 16  ;;  %v309_v53 = vld [vmem:[%s2834_s13 + $0x4c] sm:$0xf] }
  0x45   : > { %v470_v42 = vshll.u32 %v305_v28, 16  ;;  %v440_v44 = vrot.slane %v438_v37, 5  ;;  %v476_v45 = vshll.u32 %v306_v33, 16  ;;  %v480_v46 = vshrl.u32 %v306_v33, 16 }
  0x46   : > { %v417_v43 = vsel %vm2876_vm4, %v412_v59, %v416_v36  ;;  %v431_v49 = vsel %vm2876_vm4, %v426_v38, %v430_v15  ;;  %v469_v50 = vrot.slane %v467_v41, 4  ;;  %v2940_v57 = vcombine.low %v305_v28, %v306_v33  ;;  %v304_v59 = vld [vmem:[%s2834_s13 + $0x38] sm:$0x1]  ;;  %v314_v38 = vld [vmem:[%s2834_s13 + $0x60] sm:$0xf] }
  0x47   : > { %v2932_v48 = vcombine.low %v407_v58, %v417_v43  ;;  %v472_v51 = vrot.slane %v470_v42, 5  ;;  %v441_v54 = vsel %vm2876_vm4, %v436_v40, %v440_v44  ;;  %v478_v55 = vrot.slane %v476_v45, 5  ;;  %v315_v40 = vld [vmem:[%s2834_s13 + $0x64] sm:$0xf] }
  0x48   : > { %v482_v56 = vrot.slane %v480_v46, 4  ;;  %v2945_v58 = vcombine.low %v431_v49, %v441_v54  ;;  %v491_v60 = vshrl.u32 %v308_v52, 16  ;;  %v494_v61 = vshll.u32 %v308_v52, 16  ;;  %2469 = vmatprep.mubr.msk.bf16.mxu0 %vm786_vm1, %v2940_v57 }
  0x49   : > { %2397 = vmatprep.mubr.msk.bf16.mxu1 %vm786_vm1, %v2932_v48  ;;  %v500_v62 = vshll.u32 %v309_v53, 16  ;;  %v504_v63 = vshrl.u32 %v309_v53, 16  ;;  %v2949_v0 = vcombine.low %v308_v52, %v309_v53  ;;  %v449_v1 = vor.u32 %v448_v30, %v445_v29 }
  0x4a   : > { %v459_v2 = vor.u32 %v458_v35, %v454_v34  ;;  %v493_v5 = vrot.slane %v491_v60, 4  ;;  %v496_v6 = vrot.slane %v494_v61, 5  ;;  %v462_v9 = vshll.u32 %v304_v59, 16 }
  0x4b   : > { %2398 = vmatmul.mubr.msk.bf16.gmra.mrb[4].mxu1 %vm786_vm1, %v2945_v58  ;;  %v2955_v7 = vrot.slane %v500_v62, 5  ;;  %v506_v12 = vrot.slane %v504_v63, 4  ;;  %2470 = vmatmul.mubr.msk.bf16.gmra.mrb[8].mxu0 %vm786_vm1, %v2949_v0  ;;  %v450_v13 = vrot.slane %v449_v1, 4  ;;  %v473_v15 = vor.u32 %v472_v51, %v469_v50  ;;  %v310_v50 = vld [vmem:[%s2834_s13 + $0x50] sm:$0x1] }
  0x4c   : > { %v460_v14 = vrot.slane %v459_v2, 4  ;;  %v464_v17 = vrot.slane %v462_v9, 5  ;;  %v483_v18 = vor.u32 %v482_v56, %v478_v55  ;;  %v486_v19 = vshll.u32 %v307_v3, 16  ;;  %v317_v56 = vld [vmem:[%s2834_s13 + $0x6c] sm:$0xf] }
  0x4d   : > { %v515_v20 = vshrl.u32 %v311_v4, 16  ;;  %v455_v21 = vsel %vm2876_vm4, %v450_v13, %v454_v34  ;;  %v474_v22 = vrot.slane %v473_v15, 4  ;;  %v518_v27 = vshll.u32 %v311_v4, 16 }
  0x4e   : > { %v524_v28 = vshll.u32 %v312_v11, 16  ;;  %v465_v29 = vsel %vm2876_vm4, %v460_v14, %v464_v17  ;;  %v484_v30 = vrot.slane %v483_v18, 4  ;;  %v488_v31 = vrot.slane %v486_v19, 5 }
  0x4f   : > { %v517_v32 = vrot.slane %v515_v20, 4  ;;  %v2964_v33 = vcombine.low %v455_v21, %v465_v29  ;;  %v479_v35 = vsel %vm2876_vm4, %v474_v22, %v478_v55  ;;  %v520_v36 = vrot.slane %v518_v27, 5  ;;  %v313_v55 = vld [vmem:[%s2834_s13 + $0x5c] sm:$0x1]  ;;  %v320_v29 = vld [vmem:[%s2834_s13 + $0x78] sm:$0xf] }
  0x50   : > { %v526_v37 = vrot.slane %v524_v28, 5  ;;  %v489_v34 = vsel %vm2876_vm4, %v484_v30, %v488_v31  ;;  %v528_v41 = vshrl.u32 %v312_v11, 16  ;;  %v2972_v42 = vcombine.low %v311_v4, %v312_v11  ;;  %v318_v4 = vld [vmem:[%s2834_s13 + $0x70] sm:$0xf]  ;;  %v321_v30 = vld [vmem:[%s2834_s13 + $0x7c] sm:$0xf] }
  0x51   : > { %v539_v43 = vshrl.u32 %v314_v38, 16  ;;  %2401 = vmatprep.mubr.msk.bf16.mxu1 %vm786_vm1, %v2964_v33  ;;  %v2976_v44 = vcombine.low %v479_v35, %v489_v34  ;;  %v542_v45 = vshll.u32 %v314_v38, 16  ;;  %v548_v46 = vshll.u32 %v315_v40, 16 }
  0x52   : > { %v552_v49 = vshrl.u32 %v315_v40, 16  ;;  %v530_v51 = vrot.slane %v528_v41, 4  ;;  %2473 = vmatprep.mubr.msk.bf16.mxu0 %vm786_vm1, %v2972_v42  ;;  %v2981_v53 = vcombine.low %v314_v38, %v315_v40  ;;  %v497_v54 = vor.u32 %v496_v6, %v493_v5 }
  0x53   : > { %v541_v52 = vrot.slane %v539_v43, 4  ;;  %2402 = vmatmul.mubr.msk.bf16.gmra.mrb[8].mxu1 %vm786_vm1, %v2976_v44  ;;  %v544_v59 = vrot.slane %v542_v45, 5  ;;  %v2987_v60 = vrot.slane %v548_v46, 5  ;;  %v507_v62 = vor.u32 %v506_v12, %v2955_v7 }
  0x54   : > { %v554_v61 = vrot.slane %v552_v49, 4  ;;  %2474 = vmatmul.mubr.msk.bf16.gmra.mrb[12].mxu0 %vm786_vm1, %v2981_v53  ;;  %v498_v63 = vrot.slane %v497_v54, 4  ;;  %v510_v1 = vshll.u32 %v310_v50, 16  ;;  %v521_v2 = vor.u32 %v520_v36, %v517_v32  ;;  %v316_v36 = vld [vmem:[%s2834_s13 + $0x68] sm:$0x1] }
  0x55   : > { %v531_v3 = vor.u32 %v530_v51, %v526_v37  ;;  %v508_v5 = vrot.slane %v507_v62, 4  ;;  %v534_v6 = vshll.u32 %v313_v55, 16  ;;  %v563_v9 = vshrl.u32 %v317_v56, 16  ;;  %v319_v49 = vld [vmem:[%s2834_s13 + $0x74] sm:$0x1] }
  0x56   : > { %v566_v11 = vshll.u32 %v317_v56, 16  ;;  %v503_v13 = vsel %vm2876_vm4, %v498_v63, %v2955_v7  ;;  %v512_v14 = vrot.slane %v510_v1, 5  ;;  %v522_v12 = vrot.slane %v521_v2, 4  ;;  %v323_v50 = vld [vmem:[%s2834_s13 + $0x84] sm:$0xf] }
  0x57   : > { %v532_v15 = vrot.slane %v531_v3, 4  ;;  %v536_v17 = vrot.slane %v534_v6, 5  ;;  %v565_v18 = vrot.slane %v563_v9, 4  ;;  %v572_v20 = vshll.u32 %v318_v4, 16  ;;  %v324_v3 = vld [vmem:[%s2834_s13 + $0x88] sm:$0xf] }
  0x58   : > { %v568_v19 = vrot.slane %v566_v11, 5  ;;  %v513_v21 = vsel %vm2876_vm4, %v508_v5, %v512_v14  ;;  %v527_v22 = vsel %vm2876_vm4, %v522_v12, %v526_v37  ;;  %v576_v27 = vshrl.u32 %v318_v4, 16 }
  0x59   : > { %v3000_v28 = vcombine.low %v317_v56, %v318_v4  ;;  %v3004_v7 = vcombine.low %v503_v13, %v513_v21  ;;  %v537_v31 = vsel %vm2876_vm4, %v532_v15, %v536_v17  ;;  %v574_v32 = vrot.slane %v572_v20, 5  ;;  %v326_v21 = vld [vmem:[%s2834_s13 + $0x90] sm:$0xf] }
  0x5a   : > { %v587_v35 = vshrl.u32 %v320_v29, 16  ;;  %v3009_v38 = vcombine.low %v527_v22, %v537_v31  ;;  %v578_v40 = vrot.slane %v576_v27, 4  ;;  %v590_v37 = vshll.u32 %v320_v29, 16  ;;  %v327_v22 = vld [vmem:[%s2834_s13 + $0x94] sm:$0xf] }
  0x5b   : > { %2477 = vmatprep.mubr.msk.bf16.mxu0 %vm786_vm1, %v3000_v28  ;;  %v596_v34 = vshll.u32 %v321_v30, 16  ;;  %2405 = vmatprep.mubr.msk.bf16.mxu1 %vm786_vm1, %v3004_v7  ;;  %v600_v43 = vshrl.u32 %v321_v30, 16  ;;  %v3015_v45 = vcombine.low %v320_v29, %v321_v30  ;;  %v545_v46 = vor.u32 %v544_v59, %v541_v52  ;;  %v322_v31 = vld [vmem:[%s2834_s13 + $0x80] sm:$0x1] }
  0x5c   : > { %v589_v41 = vrot.slane %v587_v35, 4  ;;  %2406 = vmatmul.mubr.msk.bf16.gmra.mrb[12].mxu1 %vm786_vm1, %v3009_v38  ;;  %v592_v51 = vrot.slane %v590_v37, 5  ;;  %v555_v55 = vor.u32 %v554_v61, %v2987_v60  ;;  %v558_v56 = vshll.u32 %v316_v36, 16 }
  0x5d   : > { %v3021_v54 = vrot.slane %v596_v34, 5  ;;  %v602_v62 = vrot.slane %v600_v43, 4  ;;  %2478 = vmatmul.mubr.msk.bf16.gmra.mrb[16].mxu0 %vm786_vm1, %v3015_v45  ;;  %v546_v63 = vrot.slane %v545_v46, 4  ;;  %v569_v1 = vor.u32 %v568_v19, %v565_v18 }
  0x5e   : > { %v579_v2 = vor.u32 %v578_v40, %v574_v32  ;;  %v556_v52 = vrot.slane %v555_v55, 4  ;;  %v560_v59 = vrot.slane %v558_v56, 5  ;;  %v582_v4 = vshll.u32 %v319_v49, 16  ;;  %v325_v49 = vld [vmem:[%s2834_s13 + $0x8c] sm:$0x1] }
  0x5f   : > { %v611_v5 = vshrl.u32 %v323_v50, 16  ;;  %v551_v6 = vsel %vm2876_vm4, %v546_v63, %v2987_v60  ;;  %v570_v61 = vrot.slane %v569_v1, 4  ;;  %v614_v11 = vshll.u32 %v323_v50, 16 }
  0x60   : > { %v580_v9 = vrot.slane %v579_v2, 4  ;;  %v561_v13 = vsel %vm2876_vm4, %v556_v52, %v560_v59  ;;  %v584_v14 = vrot.slane %v582_v4, 5  ;;  %v620_v15 = vshll.u32 %v324_v3, 16 }
  0x61   : > { %v613_v12 = vrot.slane %v611_v5, 4  ;;  %v3032_v17 = vcombine.low %v551_v6, %v561_v13  ;;  %v575_v18 = vsel %vm2876_vm4, %v570_v61, %v574_v32  ;;  %v616_v19 = vrot.slane %v614_v11, 5 }
  0x62   : > { %v624_v20 = vshrl.u32 %v324_v3, 16  ;;  %v585_v60 = vsel %vm2876_vm4, %v580_v9, %v584_v14  ;;  %v622_v27 = vrot.slane %v620_v15, 5  ;;  %v3040_v29 = vcombine.low %v323_v50, %v324_v3  ;;  %v329_v50 = vld [vmem:[%s2834_s13 + $0x9c] sm:$0xf] }
  0x63   : > { %v635_v30 = vshrl.u32 %v326_v21, 16  ;;  %2409 = vmatprep.mubr.msk.bf16.mxu1 %vm786_vm1, %v3032_v17  ;;  %v3045_v35 = vcombine.low %v575_v18, %v585_v60  ;;  %v638_v36 = vshll.u32 %v326_v21, 16  ;;  %v644_v40 = vshll.u32 %v327_v22, 16 }
  0x64   : > { %v626_v32 = vrot.slane %v624_v20, 4  ;;  %2481 = vmatprep.mubr.msk.bf16.mxu0 %vm786_vm1, %v3040_v29  ;;  %v648_v34 = vshrl.u32 %v327_v22, 16  ;;  %v3049_v43 = vcombine.low %v326_v21, %v327_v22  ;;  %v593_v46 = vor.u32 %v592_v51, %v589_v41  ;;  %v330_v41 = vld [vmem:[%s2834_s13 + $0xa0] sm:$0xf]  ;;  %v332_v22 = vld [vmem:[%s2834_s13 + $0xa8] sm:$0xf] }
  0x65   : > { %v637_v37 = vrot.slane %v635_v30, 4  ;;  %2410 = vmatmul.mubr.msk.bf16.gmra.mrb[16].mxu1 %vm786_vm1, %v3045_v35  ;;  %v640_v55 = vrot.slane %v638_v36, 5  ;;  %v3055_v56 = vrot.slane %v644_v40, 5  ;;  %v603_v63 = vor.u32 %v602_v62, %v3021_v54  ;;  %v328_v36 = vld [vmem:[%s2834_s13 + $0x98] sm:$0x1] }
  0x66   : > { %v606_v1 = vshll.u32 %v322_v31, 16  ;;  %v650_v2 = vrot.slane %v648_v34, 4  ;;  %2482 = vmatmul.mubr.msk.bf16.gmra.mrb[20].mxu0 %vm786_vm1, %v3049_v43  ;;  %v594_v3 = vrot.slane %v593_v46, 4  ;;  %v617_v52 = vor.u32 %v616_v19, %v613_v12 }
  0x67   : > { %v627_v59 = vor.u32 %v626_v32, %v622_v27  ;;  %v604_v51 = vrot.slane %v603_v63, 4  ;;  %v630_v5 = vshll.u32 %v325_v49, 16  ;;  %v659_v6 = vshrl.u32 %v329_v50, 16 }
  0x68   : > { %v608_v4 = vrot.slane %v606_v1, 5  ;;  %v599_v62 = vsel %vm2876_vm4, %v594_v3, %v3021_v54  ;;  %v618_v61 = vrot.slane %v617_v52, 4  ;;  %v662_v11 = vshll.u32 %v329_v50, 16  ;;  %v333_v54 = vld [vmem:[%s2834_s13 + $0xac] sm:$0xf] }
  0x69   : > { %v628_v9 = vrot.slane %v627_v59, 4  ;;  %v632_v14 = vrot.slane %v630_v5, 5  ;;  %v661_v12 = vrot.slane %v659_v6, 4  ;;  %v668_v15 = vshll.u32 %v330_v41, 16  ;;  %v331_v3 = vld [vmem:[%s2834_s13 + $0xa4] sm:$0x1] }
  0x6a   : > { %v609_v13 = vsel %vm2876_vm4, %v604_v51, %v608_v4  ;;  %v623_v19 = vsel %vm2876_vm4, %v618_v61, %v622_v27  ;;  %v664_v20 = vrot.slane %v662_v11, 5  ;;  %v672_v21 = vshrl.u32 %v330_v41, 16  ;;  %v335_v52 = vld [vmem:[%s2834_s13 + $0xb4] sm:$0xf] }
  0x6b   : > { %v3067_v18 = vcombine.low %v599_v62, %v609_v13  ;;  %v633_v60 = vsel %vm2876_vm4, %v628_v9, %v632_v14  ;;  %v670_v30 = vrot.slane %v668_v15, 5  ;;  %v3075_v31 = vcombine.low %v329_v50, %v330_v41  ;;  %v336_v62 = vld [vmem:[%s2834_s13 + $0xb8] sm:$0xf]  ;;  %v3100_v14 = vld [vmem:[%s3091_s29] sm:$0xf] }
  0x6c   : > { %v683_v32 = vshrl.u32 %v332_v22, 16  ;;  %v3080_v40 = vcombine.low %v623_v19, %v633_v60  ;;  %v674_v27 = vrot.slane %v672_v21, 4  ;;  %v686_v34 = vshll.u32 %v332_v22, 16 }
  0x6d   : > { %2413 = vmatprep.mubr.msk.bf16.mxu1 %vm786_vm1, %v3067_v18  ;;  %v692_v46 = vshll.u32 %v333_v54, 16  ;;  %2485 = vmatprep.mubr.msk.bf16.mxu0 %vm786_vm1, %v3075_v31  ;;  %v696_v63 = vshrl.u32 %v333_v54, 16  ;;  %v3084_v1 = vcombine.low %v332_v22, %v333_v54  ;;  %v641_v50 = vor.u32 %v640_v55, %v637_v37  ;;  %v3106_v22 = vld [vmem:[%s3091_s29 + $0x4] sm:$0xf] }
  0x6e   : > { %v685_v49 = vrot.slane %v683_v32, 4  ;;  %2414 = vmatmul.mubr.msk.bf16.gmra.mrb[20].mxu1 %vm786_vm1, %v3080_v40  ;;  %v688_v59 = vrot.slane %v686_v34, 5  ;;  %v651_v51 = vor.u32 %v650_v2, %v3055_v56  ;;  %v654_v4 = vshll.u32 %v328_v36, 16 }
  0x6f   : > { %v694_v41 = vrot.slane %v692_v46, 5  ;;  %v698_v5 = vrot.slane %v696_v63, 4  ;;  %2486 = vmatmul.mubr.msk.bf16.gmra.mrb[24].mxu0 %vm786_vm1, %v3084_v1  ;;  %v642_v37 = vrot.slane %v641_v50, 4  ;;  %v665_v55 = vor.u32 %v664_v20, %v661_v12  ;;  %v334_v50 = vld [vmem:[%s2834_s13 + $0xb0] sm:$0x1] }
  0x70   : > { %v675_v6 = vor.u32 %v674_v27, %v670_v30  ;;  %v652_v61 = vrot.slane %v651_v51, 4  ;;  %v656_v9 = vrot.slane %v654_v4, 5  ;;  %v678_v11 = vshll.u32 %v331_v3, 16 }
  0x71   : > { %v707_v13 = vshrl.u32 %v335_v52, 16  ;;  %v647_v2 = vsel %vm2876_vm4, %v642_v37, %v3055_v56  ;;  %v666_v15 = vrot.slane %v665_v55, 4  ;;  %v710_v21 = vshll.u32 %v335_v52, 16  ;;  %v337_v55 = vld [vmem:[%s2834_s13 + $0xbc] sm:$0x1] }
  0x72   : > { %v676_v19 = vrot.slane %v675_v6, 4  ;;  %v657_v12 = vsel %vm2876_vm4, %v652_v61, %v656_v9  ;;  %v680_v20 = vrot.slane %v678_v11, 5  ;;  %v716_v60 = vshll.u32 %v336_v62, 16 }
  0x73   : > { %v709_v54 = vrot.slane %v707_v13, 4  ;;  %v3110_v32 = vcombine.low %v647_v2, %v657_v12  ;;  %v671_v36 = vsel %vm2876_vm4, %v666_v15, %v670_v30  ;;  %v712_v27 = vrot.slane %v710_v21, 5 }
  0x74   : > { %v720_v56 = vshrl.u32 %v336_v62, 16  ;;  %v681_v34 = vsel %vm2876_vm4, %v676_v19, %v680_v20  ;;  %v3116_v46 = vcombine.low %v335_v52, %v336_v62  ;;  %v2217_v63 = vcombine.low %v3100_v14, %v3106_v22 }
  0x75   : > { %2417 = vmatprep.mubr.msk.bf16.mxu1 %vm786_vm1, %v3110_v32  ;;  %v2162_v3 = vcombine.low %v671_v36, %v681_v34  ;;  %v718_v51 = vrot.slane %v716_v60, 5  ;;  %v689_v30 = vor.u32 %v688_v59, %v685_v49  ;;  %v699_v37 = vor.u32 %v698_v5, %v694_v41 }
  0x76   : > { %v722_v4 = vrot.slane %v720_v56, 4  ;;  %2489 = vmatprep.mubr.msk.bf16.mxu0 %vm786_vm1, %v3116_v46  ;;  %v702_v52 = vshll.u32 %v334_v50, 16  ;;  %v713_v6 = vor.u32 %v712_v27, %v709_v54  ;;  %v726_v2 = vshll.u32 %v337_v55, 16 }
  0x77   : > { %2418 = vmatmul.mubr.msk.bf16.gmra.mrb[24].mxu1 %vm786_vm1, %v2162_v3  ;;  %2490 = vmatmul.mubr.msk.bf16.gmra.mrb[28].mxu0 %vm786_vm1, %v2217_v63  ;;  %v690_v62 = vrot.slane %v689_v30, 4  ;;  %v700_v61 = vrot.slane %v699_v37, 4  ;;  %v1519_v25 = vshll.u32 %v3106_v22, 16  ;;  %v1523_v26 = vshrl.u32 %v3106_v22, 16 }
  0x78   : > { %2495 = vmatprep.mubr.msk.bf16.mxu0 %vm786_vm1, %v2916_v16  ;;  %v704_v9 = vrot.slane %v702_v52, 5  ;;  %v714_v11 = vrot.slane %v713_v6, 4  ;;  %v723_v13 = vor.u32 %v722_v4, %v718_v51  ;;  %v728_v19 = vrot.slane %v726_v2, 5 }
  0x79   : > { %v695_v49 = vsel %vm2876_vm4, %v690_v62, %v694_v41 }
  0x7a   : > { %v705_v59 = vsel %vm2876_vm4, %v700_v61, %v704_v9  ;;  %v719_v5 = vsel %vm2876_vm4, %v714_v11, %v718_v51  ;;  %v724_v15 = vrot.slane %v723_v13, 4 }
  0x7b   : > { %v2163_v21 = vcombine.low %v695_v49, %v705_v59 }
  0x7c   : > { %v729_v12 = vsel %vm2876_vm4, %v724_v15, %v728_v19 }
  0x7d   : > { %2421 = vmatprep.mubr.msk.bf16.mxu1 %vm786_vm1, %v2163_v21  ;;  %v2164_v16 = vcombine.low %v719_v5, %v729_v12 }
  0x7f   : > { %2496 = vmatmul.mubr.msk.bf16.vlgmr.msra.gmra.mrb[0].mxu0 %vm786_vm1, %v2932_v48  ;;  %2422 = vmatmul.mubr.msk.bf16.gmra.mrb[28].mxu1 %vm786_vm1, %v2164_v16  ;;  %v1525_v48 = vrot.slane %v1523_v26, 4 }
  0x80   : > { %2499 = vmatprep.mubr.msk.bf16.mxu0 %vm786_vm1, %v2945_v58  ;;  %2427 = vmatprep.mubr.msk.bf16.mxu1 %vm786_vm1, %v2182_v47 }
  0x87   : > { %2500 = vmatmul.mubr.msk.bf16.gmra.mrb[4].mxu0 %vm786_vm1, %v2964_v33  ;;  %2428 = vmatmul.mubr.msk.bf16.vlgmr.msra.gmra.mrb[0].mxu1 %vm786_vm1, %v2845_v10  ;;  %v1510_v10 = vshrl.u32 %v3100_v14, 16 }
  0x88   : > { %2503 = vmatprep.mubr.msk.bf16.mxu0 %vm786_vm1, %v2976_v44  ;;  %2431 = vmatprep.mubr.msk.bf16.mxu1 %vm786_vm1, %v2856_v24  ;;  %v1513_v24 = vshll.u32 %v3100_v14, 16 }
  0x89   : > { %v1512_v47 = vrot.slane %v1510_v10, 4 }
  0x8f   : > { %2504 = vmatmul.mubr.msk.bf16.gmra.mrb[8].mxu0 %vm786_vm1, %v3004_v7  ;;  %2432 = vmatmul.mubr.msk.bf16.gmra.mrb[4].mxu1 %vm786_vm1, %v2910_v8  ;;  %v1515_v8 = vrot.slane %v1513_v24, 5 }
  0x90   : > { %2507 = vmatprep.mubr.msk.bf16.mxu0 %vm786_vm1, %v3009_v38  ;;  %2435 = vmatprep.mubr.msk.bf16.mxu1 %vm786_vm1, %v2922_v23  ;;  %v1521_v23 = vrot.slane %v1519_v25, 5 }
  0x91   : > { %v1516_v58 = vor.u32 %v1515_v8, %v1512_v47 }
  0x97   : > { %2508 = vmatmul.mubr.msk.bf16.gmra.mrb[12].mxu0 %vm786_vm1, %v3032_v17  ;;  %2436 = vmatmul.mubr.msk.bf16.gmra.mrb[8].mxu1 %vm786_vm1, %v2940_v57  ;;  %v340_v57 = vld [vmem:[%s3091_s29 + $0x8] sm:$0x1] }
  0x98   : > { %2511 = vmatprep.mubr.msk.bf16.mxu0 %vm786_vm1, %v3045_v35  ;;  %2439 = vmatprep.mubr.msk.bf16.mxu1 %vm786_vm1, %v2949_v0  ;;  %v1526_v0 = vor.u32 %v1525_v48, %v1521_v23  ;;  %v1529_v33 = vshll.u32 %v340_v57, 16 }
  0x9a   : > { %v1527_v44 = vrot.slane %v1526_v0, 4 }
  0x9f   : > { %2512 = vmatmul.mubr.msk.bf16.gmra.mrb[16].mxu0 %vm786_vm1, %v3067_v18  ;;  %2440 = vmatmul.mubr.msk.bf16.gmra.mrb[12].mxu1 %vm786_vm1, %v2972_v42  ;;  %v1517_v42 = vrot.slane %v1516_v58, 4 }
  0xa0   : > { %2515 = vmatprep.mubr.msk.bf16.mxu0 %vm786_vm1, %v3080_v40  ;;  %2443 = vmatprep.mubr.msk.bf16.mxu1 %vm786_vm1, %v2981_v53  ;;  %v1531_v53 = vrot.slane %v1529_v33, 5 }
  0xa2   : > { %v1532_v7 = vsel %vm2876_vm4, %v1527_v44, %v1531_v53 }
  0xa7   : > { %2516 = vmatmul.mubr.msk.bf16.gmra.mrb[20].mxu0 %vm786_vm1, %v3110_v32  ;;  %2444 = vmatmul.mubr.msk.bf16.gmra.mrb[16].mxu1 %vm786_vm1, %v3000_v28  ;;  %v1522_v28 = vsel %vm2876_vm4, %v1517_v42, %v1521_v23 }
  0xa8   : > { %2519 = vmatprep.mubr.msk.bf16.mxu0 %vm786_vm1, %v2162_v3  ;;  %2447 = vmatprep.mubr.msk.bf16.mxu1 %vm786_vm1, %v3015_v45  ;;  %v2237_v38 = vcombine.low %v1522_v28, %v1532_v7 }
  0xaf   : > { %2520 = vmatmul.mubr.msk.bf16.gmra.mrb[24].mxu0 %vm786_vm1, %v2163_v21  ;;  %2448 = vmatmul.mubr.msk.bf16.gmra.mrb[20].mxu1 %vm786_vm1, %v3040_v29 }
  0xb0   : > { %2523 = vmatprep.mubr.msk.bf16.mxu0 %vm786_vm1, %v2164_v16  ;;  %2451 = vmatprep.mubr.msk.bf16.mxu1 %vm786_vm1, %v3049_v43  ;;  %v3209_v43 = vld [vmem:[#allocation2] ss:$0 sm:$0xff] }
  0xb7   : > { %2524 = vmatmul.mubr.msk.bf16.gmra.mrb[28].mxu0 %vm786_vm1, %v2237_v38  ;;  %2452 = vmatmul.mubr.msk.bf16.gmra.mrb[24].mxu1 %vm786_vm1, %v3075_v31 }
  0xb8   : > { %2455 = vmatprep.mubr.msk.bf16.mxu1 %vm786_vm1, %v3084_v1 }
  0xbf   : > { %2456 = vmatmul.mubr.msk.bf16.gmra.mrb[28].mxu1 %vm786_vm1, %v3116_v46 }
 0x152   : > { %v2497_v45 = vpop.f32.mrb[0].mxu0 }
 0x153   : > { %v1584_v17 = vpop.f32.mrb[1].mxu0 }
 0x154   : > { %v2498_v29 = vpop.f32.mrb[2].mxu0 }
 0x155   : > { %v1587_v39 = vpop.f32.mrb[3].mxu0 }
 0x15a   : > { %v2501_v35 = vpop.f32.mrb[4].mxu0  ;;  %v2429_v18 = vpop.f32.mrb[0].mxu1 }
 0x15b   : > { %v1600_v40 = vpop.f32.mrb[5].mxu0  ;;  %v2527_v41 = vadd.f32 %v2497_v45, %v2429_v18  ;;  %v1170_v14 = vpop.f32.mrb[1].mxu1 }
 0x15c   : > { %v2502_v22 = vpop.f32.mrb[6].mxu0  ;;  %v2528_v31 = vadd.f32 %v1584_v17, %v1170_v14  ;;  %v2430_v20 = vpop.f32.mrb[2].mxu1 }
 0x15d   : > { %v1603_v54 = vpop.f32.mrb[7].mxu0  ;;  %v1752_v1 = vadd.f32 %v2527_v41, %v3209_v43  ;;  %v2529_v60 = vadd.f32 %v2498_v29, %v2430_v20  ;;  %v1173_v32 = vpop.f32.mrb[3].mxu1 }
 0x15e   : > { %v1750_v36 = vadd.f32 %v2528_v31, %v3209_v43  ;;  %v2530_v27 = vadd.f32 %v1587_v39, %v1173_v32 }
 0x15f   : > { %v1784_v56 = vmul.f32 0.2, %v1752_v1  ;;  %v1753_v34 = vadd.f32 %v2529_v60, %v3209_v43 }
 0x160   : > { %v1782_v46 = vmul.f32 0.2, %v1750_v36  ;;  %v1751_v63 = vadd.f32 %v2530_v27, %v3209_v43 }
 0x161   : > { %v1816_v50 = vmax.f32 %v1752_v1, %v1784_v56  ;;  %v1785_v3 = vmul.f32 0.2, %v1753_v34 }
 0x162   : > { %v2505_v51 = vpop.f32.mrb[8].mxu0  ;;  %v1814_v4 = vmax.f32 %v1750_v36, %v1782_v46  ;;  %v1783_v30 = vmul.f32 0.2, %v1751_v63  ;;  %v2433_v37 = vpop.f32.mrb[4].mxu1 }
 0x163   : > { %v1616_v55 = vpop.f32.mrb[9].mxu0  ;;  %v2293_v52 = vpack.c.bf16 %v1816_v50, %v1816_v50  ;;  %v1817_v6 = vmax.f32 %v1753_v34, %v1785_v3  ;;  %v2531_v62 = vadd.f32 %v2501_v35, %v2433_v37  ;;  %v1186_v61 = vpop.f32.mrb[5].mxu1 }
 0x164   : > { %v2506_v9 = vpop.f32.mrb[10].mxu0  ;;  %v2291_v11 = vpack.c.bf16 %v1814_v4, %v1814_v4  ;;  %v1815_v13 = vmax.f32 %v1751_v63, %v1783_v30  ;;  %v2532_v2 = vadd.f32 %v1600_v40, %v1186_v61  ;;  %v2434_v49 = vpop.f32.mrb[6].mxu1 }
 0x165   : > { %v1619_v59 = vpop.f32.mrb[11].mxu0  ;;  %1977 = vst.msk [vmem:[%s3219_s7 + $0x8] sm:$0xf] %vm1974_vm5, %v2293_v52  ;;  %v2294_v5 = vpack.c.bf16 %v1817_v6, %v1817_v6  ;;  %v1756_v15 = vadd.f32 %v2531_v62, %v3209_v43  ;;  %v2533_v19 = vadd.f32 %v2502_v22, %v2434_v49  ;;  %v1189_v21 = vpop.f32.mrb[7].mxu1 }
 0x166   : > { %1975 = vst.msk [vmem:[%s3219_s7] sm:$0xf] %vm1974_vm5, %v2291_v11  ;;  %v2292_v12 = vpack.c.bf16 %v1815_v13, %v1815_v13  ;;  %v1754_v16 = vadd.f32 %v2532_v2, %v3209_v43  ;;  %v2534_v10 = vadd.f32 %v1603_v54, %v1189_v21 }
 0x167   : > { %1978 = vst.msk [vmem:[%s3219_s7 + $0xc] sm:$0xf] %vm1974_vm5, %v2294_v5  ;;  %v1788_v24 = vmul.f32 0.2, %v1756_v15  ;;  %v1757_v25 = vadd.f32 %v2533_v19, %v3209_v43 }
 0x168   : > { %1976 = vst.msk [vmem:[%s3219_s7 + $0x4] sm:$0xf] %vm1974_vm5, %v2292_v12  ;;  %v1786_v26 = vmul.f32 0.2, %v1754_v16  ;;  %v1755_v47 = vadd.f32 %v2534_v10, %v3209_v43 }
 0x169   : > { %v1820_v8 = vmax.f32 %v1756_v15, %v1788_v24  ;;  %v1789_v23 = vmul.f32 0.2, %v1757_v25 }
 0x16a   : > { %v2509_v48 = vpop.f32.mrb[12].mxu0  ;;  %v1818_v57 = vmax.f32 %v1754_v16, %v1786_v26  ;;  %v1787_v58 = vmul.f32 0.2, %v1755_v47  ;;  %v2437_v0 = vpop.f32.mrb[8].mxu1 }
 0x16b   : > { %v1632_v33 = vpop.f32.mrb[13].mxu0  ;;  %v2297_v42 = vpack.c.bf16 %v1820_v8, %v1820_v8  ;;  %v1821_v44 = vmax.f32 %v1757_v25, %v1789_v23  ;;  %v2535_v53 = vadd.f32 %v2505_v51, %v2437_v0  ;;  %v1202_v28 = vpop.f32.mrb[9].mxu1 }
 0x16c   : > { %v2510_v7 = vpop.f32.mrb[14].mxu0  ;;  %v2295_v38 = vpack.c.bf16 %v1818_v57, %v1818_v57  ;;  %v1819_v45 = vmax.f32 %v1755_v47, %v1787_v58  ;;  %v2536_v17 = vadd.f32 %v1616_v55, %v1202_v28  ;;  %v2438_v29 = vpop.f32.mrb[10].mxu1 }
 0x16d   : > { %v1635_v39 = vpop.f32.mrb[15].mxu0  ;;  %1981 = vst.msk [vmem:[%s3219_s7 + $0x18] sm:$0xf] %vm1974_vm5, %v2297_v42  ;;  %v2298_v35 = vpack.c.bf16 %v1821_v44, %v1821_v44  ;;  %v1760_v18 = vadd.f32 %v2535_v53, %v3209_v43  ;;  %v2537_v40 = vadd.f32 %v2506_v9, %v2438_v29  ;;  %v1205_v41 = vpop.f32.mrb[11].mxu1 }
 0x16e   : > { %1979 = vst.msk [vmem:[%s3219_s7 + $0x10] sm:$0xf] %vm1974_vm5, %v2295_v38  ;;  %v2296_v14 = vpack.c.bf16 %v1819_v45, %v1819_v45  ;;  %v1758_v22 = vadd.f32 %v2536_v17, %v3209_v43  ;;  %v2538_v31 = vadd.f32 %v1619_v59, %v1205_v41 }
 0x16f   : > { %1982 = vst.msk [vmem:[%s3219_s7 + $0x1c] sm:$0xf] %vm1974_vm5, %v2298_v35  ;;  %v1792_v20 = vmul.f32 0.2, %v1760_v18  ;;  %v1761_v54 = vadd.f32 %v2537_v40, %v3209_v43 }
 0x170   : > { %1980 = vst.msk [vmem:[%s3219_s7 + $0x14] sm:$0xf] %vm1974_vm5, %v2296_v14  ;;  %v1790_v1 = vmul.f32 0.2, %v1758_v22  ;;  %v1759_v60 = vadd.f32 %v2538_v31, %v3209_v43 }
 0x171   : > { %v1824_v32 = vmax.f32 %v1760_v18, %v1792_v20  ;;  %v1793_v36 = vmul.f32 0.2, %v1761_v54 }
 0x172   : > { %v2513_v27 = vpop.f32.mrb[16].mxu0  ;;  %v1822_v56 = vmax.f32 %v1758_v22, %v1790_v1  ;;  %v1791_v34 = vmul.f32 0.2, %v1759_v60  ;;  %v2441_v46 = vpop.f32.mrb[12].mxu1 }
 0x173   : > { %v1648_v63 = vpop.f32.mrb[17].mxu0  ;;  %v2301_v50 = vpack.c.bf16 %v1824_v32, %v1824_v32  ;;  %v1825_v3 = vmax.f32 %v1761_v54, %v1793_v36  ;;  %v2539_v51 = vadd.f32 %v2509_v48, %v2441_v46  ;;  %v1218_v4 = vpop.f32.mrb[13].mxu1 }
 0x174   : > { %v2514_v30 = vpop.f32.mrb[18].mxu0  ;;  %v2299_v37 = vpack.c.bf16 %v1822_v56, %v1822_v56  ;;  %v1823_v55 = vmax.f32 %v1759_v60, %v1791_v34  ;;  %v2540_v52 = vadd.f32 %v1632_v33, %v1218_v4  ;;  %v2442_v6 = vpop.f32.mrb[14].mxu1 }
 0x175   : > { %v1651_v62 = vpop.f32.mrb[19].mxu0  ;;  %1985 = vst.msk [vmem:[%s3219_s7 + $0x28] sm:$0xf] %vm1974_vm5, %v2301_v50  ;;  %v2302_v61 = vpack.c.bf16 %v1825_v3, %v1825_v3  ;;  %v1764_v9 = vadd.f32 %v2539_v51, %v3209_v43  ;;  %v2541_v11 = vadd.f32 %v2510_v7, %v2442_v6  ;;  %v1221_v13 = vpop.f32.mrb[15].mxu1 }
 0x176   : > { %1983 = vst.msk [vmem:[%s3219_s7 + $0x20] sm:$0xf] %vm1974_vm5, %v2299_v37  ;;  %v2300_v2 = vpack.c.bf16 %v1823_v55, %v1823_v55  ;;  %v1762_v49 = vadd.f32 %v2540_v52, %v3209_v43  ;;  %v2542_v59 = vadd.f32 %v1635_v39, %v1221_v13 }
 0x177   : > { %1986 = vst.msk [vmem:[%s3219_s7 + $0x2c] sm:$0xf] %vm1974_vm5, %v2302_v61  ;;  %v1796_v5 = vmul.f32 0.2, %v1764_v9  ;;  %v1765_v15 = vadd.f32 %v2541_v11, %v3209_v43 }
 0x178   : > { %1984 = vst.msk [vmem:[%s3219_s7 + $0x24] sm:$0xf] %vm1974_vm5, %v2300_v2  ;;  %v1794_v19 = vmul.f32 0.2, %v1762_v49  ;;  %v1763_v21 = vadd.f32 %v2542_v59, %v3209_v43 }
 0x179   : > { %v1828_v12 = vmax.f32 %v1764_v9, %v1796_v5  ;;  %v1797_v16 = vmul.f32 0.2, %v1765_v15 }
 0x17a   : > { %v2517_v10 = vpop.f32.mrb[20].mxu0  ;;  %v1826_v24 = vmax.f32 %v1762_v49, %v1794_v19  ;;  %v1795_v25 = vmul.f32 0.2, %v1763_v21  ;;  %v2445_v26 = vpop.f32.mrb[16].mxu1 }
 0x17b   : > { %v1664_v47 = vpop.f32.mrb[21].mxu0  ;;  %v2305_v8 = vpack.c.bf16 %v1828_v12, %v1828_v12  ;;  %v1829_v23 = vmax.f32 %v1765_v15, %v1797_v16  ;;  %v2543_v48 = vadd.f32 %v2513_v27, %v2445_v26  ;;  %v1234_v57 = vpop.f32.mrb[17].mxu1 }
 0x17c   : > { %v2518_v58 = vpop.f32.mrb[22].mxu0  ;;  %v2303_v0 = vpack.c.bf16 %v1826_v24, %v1826_v24  ;;  %v1827_v33 = vmax.f32 %v1763_v21, %v1795_v25  ;;  %v2544_v42 = vadd.f32 %v1648_v63, %v1234_v57  ;;  %v2446_v44 = vpop.f32.mrb[18].mxu1 }
 0x17d   : > { %v1667_v53 = vpop.f32.mrb[23].mxu0  ;;  %1989 = vst.msk [vmem:[%s3219_s7 + $0x38] sm:$0xf] %vm1974_vm5, %v2305_v8  ;;  %v2306_v28 = vpack.c.bf16 %v1829_v23, %v1829_v23  ;;  %v1768_v7 = vadd.f32 %v2543_v48, %v3209_v43  ;;  %v2545_v38 = vadd.f32 %v2514_v30, %v2446_v44  ;;  %v1237_v45 = vpop.f32.mrb[19].mxu1 }
 0x17e   : > { %1987 = vst.msk [vmem:[%s3219_s7 + $0x30] sm:$0xf] %vm1974_vm5, %v2303_v0  ;;  %v2304_v17 = vpack.c.bf16 %v1827_v33, %v1827_v33  ;;  %v1766_v29 = vadd.f32 %v2544_v42, %v3209_v43  ;;  %v2546_v39 = vadd.f32 %v1651_v62, %v1237_v45 }
 0x17f   : > { %1990 = vst.msk [vmem:[%s3219_s7 + $0x3c] sm:$0xf] %vm1974_vm5, %v2306_v28  ;;  %v1800_v35 = vmul.f32 0.2, %v1768_v7  ;;  %v1769_v18 = vadd.f32 %v2545_v38, %v3209_v43 }
 0x180   : > { %1988 = vst.msk [vmem:[%s3219_s7 + $0x34] sm:$0xf] %vm1974_vm5, %v2304_v17  ;;  %v1798_v40 = vmul.f32 0.2, %v1766_v29  ;;  %v1767_v41 = vadd.f32 %v2546_v39, %v3209_v43 }
 0x181   : > { %v1832_v14 = vmax.f32 %v1768_v7, %v1800_v35  ;;  %v1801_v22 = vmul.f32 0.2, %v1769_v18 }
 0x182   : > { %v2521_v31 = vpop.f32.mrb[24].mxu0  ;;  %v1830_v20 = vmax.f32 %v1766_v29, %v1798_v40  ;;  %v1799_v54 = vmul.f32 0.2, %v1767_v41  ;;  %v2449_v1 = vpop.f32.mrb[20].mxu1 }
 0x183   : > { %v1680_v60 = vpop.f32.mrb[25].mxu0  ;;  %v2309_v32 = vpack.c.bf16 %v1832_v14, %v1832_v14  ;;  %v1833_v36 = vmax.f32 %v1769_v18, %v1801_v22  ;;  %v2547_v27 = vadd.f32 %v2517_v10, %v2449_v1  ;;  %v1250_v56 = vpop.f32.mrb[21].mxu1 }
 0x184   : > { %v2522_v34 = vpop.f32.mrb[26].mxu0  ;;  %v2307_v46 = vpack.c.bf16 %v1830_v20, %v1830_v20  ;;  %v1831_v63 = vmax.f32 %v1767_v41, %v1799_v54  ;;  %v2548_v50 = vadd.f32 %v1664_v47, %v1250_v56  ;;  %v2450_v3 = vpop.f32.mrb[22].mxu1 }
 0x185   : > { %v1683_v51 = vpop.f32.mrb[27].mxu0  ;;  %1993 = vst.msk [vmem:[%s3219_s7 + $0x48] sm:$0xf] %vm1974_vm5, %v2309_v32  ;;  %v2310_v4 = vpack.c.bf16 %v1833_v36, %v1833_v36  ;;  %v1772_v30 = vadd.f32 %v2547_v27, %v3209_v43  ;;  %v2549_v37 = vadd.f32 %v2518_v58, %v2450_v3  ;;  %v1253_v55 = vpop.f32.mrb[23].mxu1 }
 0x186   : > { %1991 = vst.msk [vmem:[%s3219_s7 + $0x40] sm:$0xf] %vm1974_vm5, %v2307_v46  ;;  %v2308_v52 = vpack.c.bf16 %v1831_v63, %v1831_v63  ;;  %v1770_v6 = vadd.f32 %v2548_v50, %v3209_v43  ;;  %v2550_v62 = vadd.f32 %v1667_v53, %v1253_v55 }
 0x187   : > { %1994 = vst.msk [vmem:[%s3219_s7 + $0x4c] sm:$0xf] %vm1974_vm5, %v2310_v4  ;;  %v1804_v61 = vmul.f32 0.2, %v1772_v30  ;;  %v1773_v9 = vadd.f32 %v2549_v37, %v3209_v43 }
 0x188   : > { %1992 = vst.msk [vmem:[%s3219_s7 + $0x44] sm:$0xf] %vm1974_vm5, %v2308_v52  ;;  %v1802_v11 = vmul.f32 0.2, %v1770_v6  ;;  %v1771_v13 = vadd.f32 %v2550_v62, %v3209_v43 }
 0x189   : > { %v1836_v2 = vmax.f32 %v1772_v30, %v1804_v61  ;;  %v1805_v49 = vmul.f32 0.2, %v1773_v9 }
 0x18a   : > { %v2525_v59 = vpop.f32.mrb[28].mxu0  ;;  %v1834_v5 = vmax.f32 %v1770_v6, %v1802_v11  ;;  %v1803_v15 = vmul.f32 0.2, %v1771_v13  ;;  %v2453_v19 = vpop.f32.mrb[24].mxu1 }
 0x18b   : > { %v1696_v21 = vpop.f32.mrb[29].mxu0  ;;  %v2313_v12 = vpack.c.bf16 %v1836_v2, %v1836_v2  ;;  %v1837_v16 = vmax.f32 %v1773_v9, %v1805_v49  ;;  %v2551_v10 = vadd.f32 %v2521_v31, %v2453_v19  ;;  %v1266_v24 = vpop.f32.mrb[25].mxu1 }
 0x18c   : > { %v2526_v25 = vpop.f32.mrb[30].mxu0  ;;  %v2311_v26 = vpack.c.bf16 %v1834_v5, %v1834_v5  ;;  %v1835_v47 = vmax.f32 %v1771_v13, %v1803_v15  ;;  %v2552_v8 = vadd.f32 %v1680_v60, %v1266_v24  ;;  %v2454_v23 = vpop.f32.mrb[26].mxu1 }
 0x18d   : > { %v1699_v48 = vpop.f32.mrb[31].mxu0  ;;  %1997 = vst.msk [vmem:[%s3219_s7 + $0x58] sm:$0xf] %vm1974_vm5, %v2313_v12  ;;  %v2314_v57 = vpack.c.bf16 %v1837_v16, %v1837_v16  ;;  %v1776_v58 = vadd.f32 %v2551_v10, %v3209_v43  ;;  %v2553_v0 = vadd.f32 %v2522_v34, %v2454_v23  ;;  %v1269_v33 = vpop.f32.mrb[27].mxu1 }
 0x18e   : > { %1995 = vst.msk [vmem:[%s3219_s7 + $0x50] sm:$0xf] %vm1974_vm5, %v2311_v26  ;;  %v2312_v42 = vpack.c.bf16 %v1835_v47, %v1835_v47  ;;  %v1774_v44 = vadd.f32 %v2552_v8, %v3209_v43  ;;  %v2554_v53 = vadd.f32 %v1683_v51, %v1269_v33 }
 0x18f   : > { %1998 = vst.msk [vmem:[%s3219_s7 + $0x5c] sm:$0xf] %vm1974_vm5, %v2314_v57  ;;  %v1808_v28 = vmul.f32 0.2, %v1776_v58  ;;  %v1777_v7 = vadd.f32 %v2553_v0, %v3209_v43 }
 0x190   : > { %1996 = vst.msk [vmem:[%s3219_s7 + $0x54] sm:$0xf] %vm1974_vm5, %v2312_v42  ;;  %v1806_v38 = vmul.f32 0.2, %v1774_v44  ;;  %v1775_v45 = vadd.f32 %v2554_v53, %v3209_v43 }
 0x191   : > { %v1840_v17 = vmax.f32 %v1776_v58, %v1808_v28  ;;  %v1809_v29 = vmul.f32 0.2, %v1777_v7 }
 0x192   : > { %v1838_v39 = vmax.f32 %v1774_v44, %v1806_v38  ;;  %v1807_v35 = vmul.f32 0.2, %v1775_v45  ;;  %v2457_v18 = vpop.f32.mrb[28].mxu1 }
 0x193   : > { %v2317_v40 = vpack.c.bf16 %v1840_v17, %v1840_v17  ;;  %v1841_v41 = vmax.f32 %v1777_v7, %v1809_v29  ;;  %v2555_v14 = vadd.f32 %v2525_v59, %v2457_v18  ;;  %v1282_v22 = vpop.f32.mrb[29].mxu1 }
 0x194   : > { %v2315_v31 = vpack.c.bf16 %v1838_v39, %v1838_v39  ;;  %v1839_v20 = vmax.f32 %v1775_v45, %v1807_v35  ;;  %v2556_v54 = vadd.f32 %v1696_v21, %v1282_v22  ;;  %v2458_v1 = vpop.f32.mrb[30].mxu1 }
 0x195   : > { %2001 = vst.msk [vmem:[%s3219_s7 + $0x68] sm:$0xf] %vm1974_vm5, %v2317_v40  ;;  %v2318_v60 = vpack.c.bf16 %v1841_v41, %v1841_v41  ;;  %v1780_v32 = vadd.f32 %v2555_v14, %v3209_v43  ;;  %v2557_v36 = vadd.f32 %v2526_v25, %v2458_v1  ;;  %v1285_v27 = vpop.f32.mrb[31].mxu1 }
 0x196   : > { %1999 = vst.msk [vmem:[%s3219_s7 + $0x60] sm:$0xf] %vm1974_vm5, %v2315_v31  ;;  %v2316_v56 = vpack.c.bf16 %v1839_v20, %v1839_v20  ;;  %v1778_v34 = vadd.f32 %v2556_v54, %v3209_v43  ;;  %v2558_v46 = vadd.f32 %v1699_v48, %v1285_v27 }
 0x197   : > { %2002 = vst.msk [vmem:[%s3219_s7 + $0x6c] sm:$0xf] %vm1974_vm5, %v2318_v60  ;;  %v1812_v63 = vmul.f32 0.2, %v1780_v32  ;;  %v1781_v50 = vadd.f32 %v2557_v36, %v3209_v43 }
 0x198   : > { %2000 = vst.msk [vmem:[%s3219_s7 + $0x64] sm:$0xf] %vm1974_vm5, %v2316_v56  ;;  %v1810_v3 = vmul.f32 0.2, %v1778_v34  ;;  %v1779_v51 = vadd.f32 %v2558_v46, %v3209_v43 }
 0x199   : > { %v1844_v4 = vmax.f32 %v1780_v32, %v1812_v63  ;;  %v1813_v30 = vmul.f32 0.2, %v1781_v50 }
 0x19a   : > { %v1842_v37 = vmax.f32 %v1778_v34, %v1810_v3  ;;  %v1811_v55 = vmul.f32 0.2, %v1779_v51 }
 0x19b   : > { %v2321_v52 = vpack.c.bf16 %v1844_v4, %v1844_v4  ;;  %v1845_v6 = vmax.f32 %v1781_v50, %v1813_v30 }
 0x19c   : > { %v2319_v62 = vpack.c.bf16 %v1842_v37, %v1842_v37  ;;  %v1843_v61 = vmax.f32 %v1779_v51, %v1811_v55 }
 0x19d   : > { %2005 = vst.msk [vmem:[%s3219_s7 + $0x78] sm:$0xf] %vm1974_vm5, %v2321_v52  ;;  %v2322_v9 = vpack.c.bf16 %v1845_v6, %v1845_v6 }
 0x19e   : > { %2003 = vst.msk [vmem:[%s3219_s7 + $0x70] sm:$0xf] %vm1974_vm5, %v2319_v62  ;;  %v2320_v11 = vpack.c.bf16 %v1843_v61, %v1843_v61 }
 0x19f   : > { %2006 = vst.msk [vmem:[%s3219_s7 + $0x7c] sm:$0xf] %vm1974_vm5, %v2322_v9 }
 0x1a0   : > { %2004 = vst.msk [vmem:[%s3219_s7 + $0x74] sm:$0xf] %vm1974_vm5, %v2320_v11 }
 0x1a1 PF: > { %s15_s17 = sadd.s32 1, %s2739_s17   ;;  %s3337_s15 = smov %s2735_s16 }
 0x1a2   : > { %p12_p3 = scmp.ge.s32.totalorder %s15_s17, 4   ;;  %s3338_s16 = smov %s3340_s19 }
 0x1a4   :  { %14 = sbr.rel (!%p12_p3) target bundleno = 2 (0x2), region = 77 }
 0x1ab   :  { %2039 = vsyncpa [#allocation3], 1 }
 0x1ac   :  { %2041 = vsyncpa [#allocation3 + $0x1], 1 }

// kernel: discriminator_local.10
= control target key start
LH: loop header
LB: loop body
LE: loop exit
PB: predicated region body
PF: predicated region fallthrough
CT: control target
= control target key end

     0   :  { %s464_s6 = smov 0   ;;  %s466_s7 = smov 0   ;;  %s501_s0 = inlined_call_operand.vmem [shape: f32[2,64,128], index: 0, kind: input, shape index: {}]   ;;  %s502_s1 = inlined_call_operand.vmem [shape: bf16[2,64,128], index: 1, kind: output, shape index: {}]  }
   0x1   :  { %s468_s8 = smov 0  }
   0x2 LB: > { %s23_s9 = sadd.s32 1, %s448_s7  ;;  %p356_p0 = scmp.ge.s32.totalorder %s452_s8, 1  ;;  %s452_s8 = sphi %s468_s8, %s11_s8   ;;  %s448_s7 = sphi %s466_s7, %s504_s7   ;;  %s444_s6 = sphi %s464_s6, %s503_s6  }
   0x3   : > { %p25_p1 = scmp.ge.s32.totalorder %s23_s9, 2  ;;  %p106_p2 = scmp.lt.s32.totalorder %s452_s8, 3 }
   0x5   : > { %s506_s9 = smov (%p25_p1, %s23_s9), 0  ;;  %p107_p3 = pnand %p356_p0, %p106_p2 }
   0x6   : > { %p132_p4 = scmp.lt.s32.totalorder (!%p107_p3), %s444_s6, 1 }
   0x7   : > { %110 = sbr.rel (%p107_p3) target bundleno = 77 (0x4d), region = 24 }
   0xe   : > { %s508_s6 = smov (!%p132_p4, %s444_s6), 1 }
   0xf   : > { %s371_s10 = sshll.u32 %s508_s6, 6  ;;  %s372_s14 = sshll.u32 %s508_s6, 5 }
  0x10   : > { %s139_s13 = scalar_lea.vmem %s501_s0, %s371_s10  ;;  %s147_s17 = scalar_lea.vmem %s502_s1, %s372_s14 }
  0x11   : > { %v148_v0 = vld [vmem:[%s139_s13] sm:$0xff]  ;;  %v149_v1 = vld [vmem:[%s139_s13 + $0x8] sm:$0xff]  ;;  %v150_v2 = vld [vmem:[%s139_s13 + $0x10] sm:$0xff] }
  0x12   : > { %v151_v3 = vld [vmem:[%s139_s13 + $0x18] sm:$0xff]  ;;  %v156_v4 = vadd.f32 %v149_v1, %v148_v0  ;;  %v170_v5 = vmul.f32 %v148_v0, %v148_v0  ;;  %v171_v6 = vmul.f32 %v149_v1, %v149_v1  ;;  %v172_v7 = vmul.f32 %v150_v2, %v150_v2  ;;  %v152_v8 = vld [vmem:[%s139_s13 + $0x20] sm:$0xff]  ;;  %v153_v12 = vld [vmem:[%s139_s13 + $0x28] sm:$0xff] }
  0x13   : > { %v173_v10 = vmul.f32 %v151_v3, %v151_v3  ;;  %v174_v14 = vmul.f32 %v152_v8, %v152_v8  ;;  %v154_v16 = vld [vmem:[%s139_s13 + $0x30] sm:$0xff]  ;;  %v175_v18 = vmul.f32 %v153_v12, %v153_v12  ;;  %v155_v20 = vld [vmem:[%s139_s13 + $0x38] sm:$0xff] }
  0x14   : > { %v157_v9 = vadd.f32 %v156_v4, %v150_v2  ;;  %v178_v11 = vadd.f32 %v171_v6, %v170_v5  ;;  %v176_v22 = vmul.f32 %v154_v16, %v154_v16  ;;  %v177_v25 = vmul.f32 %v155_v20, %v155_v20 }
  0x16   : > { %v158_v13 = vadd.f32 %v157_v9, %v151_v3  ;;  %v179_v15 = vadd.f32 %v178_v11, %v172_v7 }
  0x18   : > { %v159_v17 = vadd.f32 %v158_v13, %v152_v8  ;;  %v180_v19 = vadd.f32 %v179_v15, %v173_v10 }
  0x1a   : > { %v160_v21 = vadd.f32 %v159_v17, %v153_v12  ;;  %v181_v23 = vadd.f32 %v180_v19, %v174_v14 }
  0x1c   : > { %v161_v24 = vadd.f32 %v160_v21, %v154_v16  ;;  %v182_v26 = vadd.f32 %v181_v23, %v175_v18 }
  0x1e   : > { %v162_v27 = vadd.f32 %v161_v24, %v155_v20  ;;  %v183_v28 = vadd.f32 %v182_v26, %v176_v22 }
  0x20   : > { %v163_v29 = vrot.slane %v162_v27, 4  ;;  %v184_v30 = vadd.f32 %v183_v28, %v177_v25 }
  0x22   : > { %v164_v31 = vadd.f32 %v163_v29, %v162_v27  ;;  %v185_v32 = vrot.slane %v184_v30, 4 }
  0x24   : > { %v165_v33 = vrot.slane %v164_v31, 2  ;;  %v186_v34 = vadd.f32 %v185_v32, %v184_v30 }
  0x26   : > { %v166_v35 = vadd.f32 %v165_v33, %v164_v31  ;;  %v187_v36 = vrot.slane %v186_v34, 2 }
  0x28   : > { %v167_v37 = vrot.slane %v166_v35, 1  ;;  %v188_v38 = vadd.f32 %v187_v36, %v186_v34 }
  0x2a   : > { %v168_v39 = vadd.f32 %v167_v37, %v166_v35  ;;  %v189_v40 = vrot.slane %v188_v38, 1 }
  0x2c   : > { %v169_v41 = vmul.f32 0.015625, %v168_v39  ;;  %v190_v42 = vadd.f32 %v189_v40, %v188_v38 }
  0x2e   : > { %v191_v43 = vmul.f32 0.015625, %v190_v42  ;;  %v192_v44 = vmul.f32 %v169_v41, %v169_v41  ;;  %v195_v48 = vsub.f32 %v148_v0, %v169_v41  ;;  %v196_v49 = vsub.f32 %v149_v1, %v169_v41 }
  0x2f   : > { %v197_v50 = vsub.f32 %v150_v2, %v169_v41  ;;  %v198_v51 = vsub.f32 %v151_v3, %v169_v41  ;;  %v199_v52 = vsub.f32 %v152_v8, %v169_v41  ;;  %v200_v53 = vsub.f32 %v153_v12, %v169_v41 }
  0x30   : > { %v193_v45 = vsub.f32 %v191_v43, %v192_v44  ;;  %v201_v54 = vsub.f32 %v154_v16, %v169_v41  ;;  %v202_v55 = vsub.f32 %v155_v20, %v169_v41 }
  0x32   : > { %v194_v46 = vmax.f32 %v193_v45, 0.0 }
  0x34   : > { %v203_v47 = vadd.f32 1e-05, %v194_v46 }
  0x36   : > { %428 = vrsqrt.f32 %v203_v47 }
  0x40   : > { %v429_v56 = vpop.eup %428 }
  0x41   : > { %v205_v57 = vmul.f32 %v429_v56, %v195_v48  ;;  %v206_v58 = vmul.f32 %v429_v56, %v196_v49  ;;  %v207_v59 = vmul.f32 %v429_v56, %v197_v50  ;;  %v208_v60 = vmul.f32 %v429_v56, %v198_v51 }
  0x42   : > { %v209_v61 = vmul.f32 %v429_v56, %v199_v52  ;;  %v210_v62 = vmul.f32 %v429_v56, %v200_v53  ;;  %v211_v63 = vmul.f32 %v429_v56, %v201_v54  ;;  %v212_v4 = vmul.f32 %v429_v56, %v202_v55 }
  0x43   : > { %v213_v5 = vmul.f32 0.2, %v205_v57  ;;  %v214_v6 = vmul.f32 0.2, %v206_v58  ;;  %v215_v0 = vmul.f32 0.2, %v207_v59 }
  0x44   : > { %v216_v1 = vmul.f32 0.2, %v208_v60  ;;  %v217_v2 = vmul.f32 0.2, %v209_v61  ;;  %v218_v3 = vmul.f32 0.2, %v210_v62 }
  0x45   : > { %v221_v7 = vmax.f32 %v205_v57, %v213_v5  ;;  %v222_v8 = vmax.f32 %v206_v58, %v214_v6  ;;  %v223_v9 = vmax.f32 %v207_v59, %v215_v0  ;;  %v219_v10 = vmul.f32 0.2, %v211_v63 }
  0x46   : > { %v224_v11 = vmax.f32 %v208_v60, %v216_v1  ;;  %v225_v12 = vmax.f32 %v209_v61, %v217_v2  ;;  %v226_v13 = vmax.f32 %v210_v62, %v218_v3  ;;  %v220_v14 = vmul.f32 0.2, %v212_v4 }
  0x47   : > { %v384_v15 = vpack.c.bf16 %v222_v8, %v221_v7  ;;  %v227_v16 = vmax.f32 %v211_v63, %v219_v10 }
  0x48   : > { %v389_v17 = vpack.c.bf16 %v224_v11, %v223_v9  ;;  %v394_v18 = vpack.c.bf16 %v226_v13, %v225_v12  ;;  %v228_v19 = vmax.f32 %v212_v4, %v220_v14 }
  0x49   : > { %385 = vst [vmem:[%s147_s17] sm:$0xff] %v384_v15  }
  0x4a   : > { %401 = vst [vmem:[%s147_s17 + $0x8] sm:$0xff] %v389_v17   ;;  %402 = vst [vmem:[%s147_s17 + $0x10] sm:$0xff] %v394_v18   ;;  %v399_v20 = vpack.c.bf16 %v228_v19, %v227_v16 }
  0x4c   : > { %403 = vst [vmem:[%s147_s17 + $0x18] sm:$0xff] %v399_v20  }
  0x4d PF: > { %s11_s8 = sadd.s32 1, %s452_s8   ;;  %s503_s6 = smov %s448_s7 }
  0x4e   : > { %p8_p5 = scmp.ge.s32.totalorder %s11_s8, 4   ;;  %s504_s7 = smov %s506_s9 }
  0x50   :  { %10 = sbr.rel (!%p8_p5) target bundleno = 2 (0x2), region = 54 }

// kernel: discriminator_local.9
= control target key start
LH: loop header
LB: loop body
LE: loop exit
PB: predicated region body
PF: predicated region fallthrough
CT: control target
= control target key end

     0   :  { %s1976_s15 = smov 0   ;;  %s1978_s16 = smov 0   ;;  %s2372_s0 = inlined_call_operand.vmem [shape: bf16[2,8,9,256], index: 0, kind: input, shape index: {}]   ;;  %s2373_s1 = inlined_call_operand.vmem [shape: bf16[2,1,9,256], index: 1, kind: input, shape index: {}]   ;;  %s2374_s2 = inlined_call_operand.vmem [shape: bf16[4,256,128], index: 2, kind: input, shape index: {}]   ;;  %s2375_s3 = inlined_call_operand.vmem [shape: f32[1,128], index: 3, kind: input, shape index: {}]   ;;  %s2376_s4 = inlined_call_operand.vmem [shape: f32[2,8,8,128], index: 4, kind: output, shape index: {}]  }
   0x1   :  { %s1980_s17 = smov 0  }
   0x2 LB: > { %s26_s18 = sadd.s32 1, %s1945_s16  ;;  %p1460_p0 = scmp.ge.s32.totalorder %s1949_s17, 1  ;;  %s1949_s17 = sphi %s1980_s17, %s14_s17   ;;  %s1945_s16 = sphi %s1978_s16, %s2380_s16   ;;  %s1941_s15 = sphi %s1976_s15, %s2379_s15  }
   0x3   : > { %p28_p1 = scmp.ge.s32.totalorder %s26_s18, 2  ;;  %p200_p2 = scmp.lt.s32.totalorder %s1949_s17, 3 }
   0x5   : > { %s2382_s18 = smov (%p28_p1, %s26_s18), 0  ;;  %p201_p3 = pnand %p1460_p0, %p200_p2 }
   0x6   : > { %v1849_v0 = vld [vmem:[%s2374_s2 + $0xc0] sm:$0xff] (!%p201_p3)   ;;  %v1853_v4 = vld [vmem:[%s2374_s2 + $0xc8] sm:$0xff] (!%p201_p3)   ;;  %v1857_v8 = vld [vmem:[%s2374_s2 + $0xd0] sm:$0xff] (!%p201_p3)   ;;  %p245_p4 = scmp.lt.s32.totalorder (!%p201_p3), %s1941_s15, 1  ;;  %vm325_vm0 = vsmask.f32 (!%p201_p3), 3328 }
   0x7   : > { %204 = sbr.rel (%p201_p3) target bundleno = 320 (0x140), region = 36  ;;  %v1850_v1 = vld [vmem:[%s2374_s2 + $0x40] sm:$0xff] (!%p201_p3)   ;;  %1665 = vmatprep.subr.bf16.mxu0 (!%p201_p3), %v1849_v0  ;;  %v1854_v5 = vld [vmem:[%s2374_s2 + $0x48] sm:$0xff] (!%p201_p3)   ;;  %v1858_v9 = vld [vmem:[%s2374_s2 + $0x50] sm:$0xff] (!%p201_p3)   ;;  %vm326_vm1 = vsmask.f32 (!%p201_p3), 7440 }
   0x8   : > { %v1851_v2 = vld [vmem:[%s2374_s2 + $0x80] sm:$0xff] (!%p201_p3)   ;;  %1705 = vmatprep.subr.bf16.mxu1 (!%p201_p3), %v1850_v1  ;;  %v1855_v6 = vld [vmem:[%s2374_s2 + $0x88] sm:$0xff] (!%p201_p3)   ;;  %v1859_v10 = vld [vmem:[%s2374_s2 + $0x90] sm:$0xff] (!%p201_p3)  }
   0x9   : > { %v1852_v3 = vld [vmem:[%s2374_s2] sm:$0xff] (!%p201_p3)   ;;  %1666 = vmatpush3.bf16.msra.mxu0 (!%p201_p3), %v1851_v2  ;;  %v1856_v7 = vld [vmem:[%s2374_s2 + $0x8] sm:$0xff] (!%p201_p3)   ;;  %v1860_v11 = vld [vmem:[%s2374_s2 + $0x10] sm:$0xff] (!%p201_p3)  }
   0xa   : > { %1706 = vmatpush3.bf16.msra.mxu1 (!%p201_p3), %v1852_v3  ;;  %1667 = vmatprep.subr.bf16.mxu0 (!%p201_p3), %v1853_v4  ;;  %v1861_v12 = vld [vmem:[%s2374_s2 + $0xd8] sm:$0xff] (!%p201_p3)   ;;  %v1865_v16 = vld [vmem:[%s2374_s2 + $0xe0] sm:$0xff] (!%p201_p3)   ;;  %v1869_v20 = vld [vmem:[%s2374_s2 + $0xe8] sm:$0xff] (!%p201_p3)  }
   0xb   : > { %1707 = vmatprep.subr.bf16.mxu1 (!%p201_p3), %v1854_v5  ;;  %v1862_v13 = vld [vmem:[%s2374_s2 + $0x58] sm:$0xff] (!%p201_p3)   ;;  %v1866_v17 = vld [vmem:[%s2374_s2 + $0x60] sm:$0xff] (!%p201_p3)   ;;  %v1870_v21 = vld [vmem:[%s2374_s2 + $0x68] sm:$0xff] (!%p201_p3)  }
   0xc   : > { %v1863_v14 = vld [vmem:[%s2374_s2 + $0x98] sm:$0xff] (!%p201_p3)   ;;  %v1867_v18 = vld [vmem:[%s2374_s2 + $0xa0] sm:$0xff] (!%p201_p3)   ;;  %v1871_v22 = vld [vmem:[%s2374_s2 + $0xa8] sm:$0xff] (!%p201_p3)  }
   0xd   : > { %1668 = vmatpush3.bf16.msra.mxu0 (!%p201_p3), %v1855_v6  ;;  %v1864_v15 = vld [vmem:[%s2374_s2 + $0x18] sm:$0xff] (!%p201_p3)   ;;  %v1868_v19 = vld [vmem:[%s2374_s2 + $0x20] sm:$0xff] (!%p201_p3)   ;;  %v1872_v23 = vld [vmem:[%s2374_s2 + $0x28] sm:$0xff] (!%p201_p3)  }
   0xe   : > { %1708 = vmatpush3.bf16.msra.mxu1 %v1856_v7  ;;  %1669 = vmatprep.subr.bf16.mxu0 %v1857_v8  ;;  %s2384_s15 = smov (!%p245_p4, %s1941_s15), 1  ;;  %v1873_v24 = vld [vmem:[%s2374_s2 + $0xf0] sm:$0xff]   ;;  %v1877_v28 = vld [vmem:[%s2374_s2 + $0xf8] sm:$0xff]   ;;  %v1883_v44 = vld [vmem:[%s2374_s2 + $0x140] sm:$0xff]  }
   0xf   : > { %1709 = vmatprep.subr.bf16.mxu1 %v1858_v9  ;;  %v1874_v25 = vld [vmem:[%s2374_s2 + $0x70] sm:$0xff]   ;;  %s1662_s29 = sshll.u32 %s2384_s15, 7  ;;  %v1878_v29 = vld [vmem:[%s2374_s2 + $0x78] sm:$0xff]   ;;  %v1884_v57 = vld [vmem:[%s2374_s2 + $0x1c0] sm:$0xff]   ;;  %s1663_s30 = sshll.u32 %s2384_s15, 4 }
  0x10   : > { %v1875_v26 = vld [vmem:[%s2374_s2 + $0xb0] sm:$0xff]   ;;  %s2094_s12 = scalar_lea.vmem %s2372_s0, %s1662_s29  ;;  %v1879_v30 = vld [vmem:[%s2374_s2 + $0xb8] sm:$0xff]   ;;  %vm2126_vm2 = vmor %vm325_vm0, %vm326_vm1  ;;  %s263_s20 = scalar_lea.vmem %s2373_s1, %s1663_s30 }
  0x11   : > { %1670 = vmatpush3.bf16.msra.mxu0 %v1859_v10  ;;  %v1876_v27 = vld [vmem:[%s2374_s2 + $0x30] sm:$0xff]   ;;  %v1880_v31 = vld [vmem:[%s2374_s2 + $0x38] sm:$0xff]   ;;  %v275_v32 = vld [vmem:[%s2094_s12] sm:$0xff]  ;;  %s1664_s25 = sshll.u32 %s2384_s15, 6 }
  0x12   : > { %1710 = vmatpush3.bf16.msra.mxu1 %v1860_v11  ;;  %1671 = vmatprep.subr.bf16.mxu0 %v1861_v12  ;;  %v276_v33 = vld [vmem:[%s2094_s12 + $0x8] sm:$0x11]  ;;  %v2105_v34 = vld [vmem:[%s2094_s12 + $0x10] sm:$0xff]  ;;  %v278_v35 = vld [vmem:[%s2094_s12 + $0x18] sm:$0x11]  ;;  %v329_v37 = vshrl.u32 %v275_v32, 16  ;;  %s2347_s29 = scalar_lea.vmem %s2376_s4, %s1664_s25 }
  0x13   : > { %1711 = vmatprep.subr.bf16.mxu1 %v1862_v13  ;;  %v2109_v36 = vld [vmem:[%s2094_s12 + $0x20] sm:$0xff]  ;;  %v1524_v38 = vcombine.high %v275_v32, %v2105_v34  ;;  %v1523_v39 = vcombine.low %v275_v32, %v2105_v34  ;;  %v280_v40 = vld [vmem:[%s2094_s12 + $0x28] sm:$0x11]  ;;  %v332_v41 = vshll.u32 %v275_v32, 16  ;;  %v338_v42 = vshll.u32 %v276_v33, 16  ;;  %v2154_v12 = vld [vmem:[%s2094_s12 + $0x30] sm:$0xff] }
  0x14   : > { %v343_v43 = vshrl.u32 %v2105_v34, 16  ;;  %v331_v45 = vrot.slane %v329_v37, 4  ;;  %v346_v46 = vshll.u32 %v2105_v34, 16  ;;  %v352_v47 = vshll.u32 %v278_v35, 16  ;;  %v1886_v0 = vld [vmem:[%s2374_s2 + $0x180] sm:$0xff]   ;;  %v1888_v4 = vld [vmem:[%s2374_s2 + $0x1c8] sm:$0xff]  }
  0x15   : > { %1672 = vmatpush3.bf16.msra.mxu0 %v1863_v14  ;;  %v357_v48 = vshrl.u32 %v2109_v36, 16  ;;  %834 = vmatprep.mubr.bf16.mxu1 %v1524_v38  ;;  %v334_v49 = vrot.slane %v332_v41, 5  ;;  %v360_v51 = vshll.u32 %v2109_v36, 16  ;;  %v340_v52 = vrot.slane %v338_v42, 5  ;;  %v1885_v3 = vld [vmem:[%s2374_s2 + $0x100] sm:$0xff]   ;;  %v1887_v6 = vld [vmem:[%s2374_s2 + $0x148] sm:$0xff]  }
  0x16   : > { %1712 = vmatpush3.bf16.msra.mxu1 %v1864_v15  ;;  %1673 = vmatprep.subr.bf16.mxu0 %v1865_v16  ;;  %v345_v50 = vrot.slane %v343_v43, 4  ;;  %v348_v53 = vrot.slane %v346_v46, 5  ;;  %v354_v60 = vrot.slane %v352_v47, 5  ;;  %v366_v61 = vshll.u32 %v280_v40, 16  ;;  %v1890_v11 = vld [vmem:[%s2374_s2 + $0x188] sm:$0xff]   ;;  %v1900_v33 = vld [vmem:[%s2374_s2 + $0x198] sm:$0xff]  }
  0x17   : > { %1713 = vmatprep.subr.bf16.mxu1 %v1866_v17  ;;  %v359_v54 = vrot.slane %v357_v48, 4  ;;  %v335_v55 = vor.u32 %v334_v49, %v331_v45  ;;  %v362_v56 = vrot.slane %v360_v51, 5  ;;  %v282_v13 = vld [vmem:[%s2094_s12 + $0x38] sm:$0x11]  ;;  %v371_v14 = vshrl.u32 %v2154_v12, 16  ;;  %v1889_v17 = vld [vmem:[%s2374_s2 + $0x108] sm:$0xff]  }
  0x18   : > { %v349_v59 = vor.u32 %v348_v53, %v345_v50  ;;  %v368_v8 = vrot.slane %v366_v61, 5  ;;  %v374_v15 = vshll.u32 %v2154_v12, 16  ;;  %v1526_v16 = vcombine.high %v2109_v36, %v2154_v12  ;;  %v2196_v35 = vld [vmem:[%s2094_s12 + $0x40] sm:$0xff]  ;;  %v284_v40 = vld [vmem:[%s2094_s12 + $0x48] sm:$0x11]  ;;  %v2207_v41 = vld [vmem:[%s2094_s12 + $0x50] sm:$0xff] }
  0x19   : > { %1674 = vmatpush3.bf16.msra.mxu0 %v1867_v18  ;;  %v336_v62 = vrot.slane %v335_v55, 4  ;;  %v363_v63 = vor.u32 %v362_v56, %v359_v54  ;;  %v380_v18 = vshll.u32 %v282_v13, 16  ;;  %v286_v42 = vld [vmem:[%s2094_s12 + $0x58] sm:$0x11]  ;;  %v385_v43 = vshrl.u32 %v2196_v35, 16  ;;  %v1904_v53 = vld [vmem:[%s2374_s2 + $0x1e0] sm:$0xff]  }
  0x1a   : > { %1714 = vmatpush3.bf16.msra.mxu1 %v1868_v19  ;;  %1675 = vmatprep.subr.bf16.mxu0 %v1869_v20  ;;  %v350_v1 = vrot.slane %v349_v59, 4  ;;  %v1525_v19 = vcombine.low %v2109_v36, %v2154_v12  ;;  %v373_v20 = vrot.slane %v371_v14, 4  ;;  %v394_v45 = vshll.u32 %v284_v40, 16  ;;  %v288_v13 = vld [vmem:[%s2094_s12 + $0x68] sm:$0x11]  ;;  %v2259_v14 = vld [vmem:[%s2094_s12 + $0x70] sm:$0xff] }
  0x1b   : > { %1715 = vmatprep.subr.bf16.mxu1 %v1870_v21  ;;  %v341_v2 = vsel %vm2126_vm2, %v336_v62, %v340_v52  ;;  %v364_v7 = vrot.slane %v363_v63, 4  ;;  %v376_v21 = vrot.slane %v374_v15, 5  ;;  %v399_v46 = vshrl.u32 %v2207_v41, 16  ;;  %v1903_v52 = vld [vmem:[%s2374_s2 + $0x160] sm:$0xff]   ;;  %v290_v15 = vld [vmem:[%s2094_s12 + $0x78] sm:$0x11] }
  0x1c   : > { %v2143_v5 = vsel %vm2126_vm2, %v350_v1, %v354_v60  ;;  %v402_v47 = vshll.u32 %v2207_v41, 16  ;;  %v387_v48 = vrot.slane %v385_v43, 4  ;;  %v408_v49 = vshll.u32 %v286_v42, 16  ;;  %v1905_v60 = vld [vmem:[%s2374_s2 + $0x120] sm:$0xff]   ;;  %v1916_v42 = vld [vmem:[%s2374_s2 + $0x1b0] sm:$0xff]  }
  0x1d   : > { %1676 = vmatpush3.bf16.msra.mxu0 %v1871_v22  ;;  %v1499_v9 = vcombine.low %v341_v2, %v2143_v5  ;;  %v1500_v10 = vcombine.high %v341_v2, %v2143_v5  ;;  %v1893_v22 = vld [vmem:[%s2374_s2 + $0x150] sm:$0xff]   ;;  %v1528_v50 = vcombine.high %v2196_v35, %v2207_v41  ;;  %v1527_v51 = vcombine.low %v2196_v35, %v2207_v41  ;;  %v1906_v63 = vld [vmem:[%s2374_s2 + $0x1a0] sm:$0xff]   ;;  %v1907_v2 = vld [vmem:[%s2374_s2 + $0x168] sm:$0xff]  }
  0x1e   : > { %1716 = vmatpush3.bf16.msra.mxu1 %v1872_v23  ;;  %1677 = vmatprep.subr.bf16.mxu0 %v1873_v24  ;;  %v1894_v23 = vld [vmem:[%s2374_s2 + $0x1d0] sm:$0xff]   ;;  %v382_v24 = vrot.slane %v380_v18, 5  ;;  %v396_v55 = vrot.slane %v394_v45, 5  ;;  %v401_v56 = vrot.slane %v399_v46, 4  ;;  %v410_v59 = vrot.slane %v408_v49, 5  ;;  %v1918_v46 = vld [vmem:[%s2374_s2 + $0x1f8] sm:$0xff]  }
  0x1f   : > { %1717 = vmatprep.subr.bf16.mxu1 %v1874_v25  ;;  %633 = vmatprep.mubr.bf16.mxu0 %v1500_v10  ;;  %v1896_v25 = vld [vmem:[%s2374_s2 + $0x190] sm:$0xff]   ;;  %v1910_v10 = vld [vmem:[%s2374_s2 + $0x1a8] sm:$0xff]   ;;  %v422_v18 = vshll.u32 %v288_v13, 16 }
  0x21   : > { %1678 = vmatpush3.bf16.msra.mxu0 %v1875_v26  ;;  %v377_v26 = vor.u32 %v376_v21, %v373_v20  ;;  %v427_v20 = vshrl.u32 %v2259_v14, 16  ;;  %v430_v21 = vshll.u32 %v2259_v14, 16 }
  0x22   : > { %1718 = vmatpush3.bf16.msra.mxu1 %v1876_v27  ;;  %1679 = vmatprep.subr.bf16.mxu0 %v1877_v28  ;;  %v1895_v27 = vld [vmem:[%s2374_s2 + $0x110] sm:$0xff]   ;;  %v2180_v28 = vsel %vm2126_vm2, %v364_v7, %v368_v8  ;;  %v1909_v7 = vld [vmem:[%s2374_s2 + $0x128] sm:$0xff]  }
  0x23   : > { %1719 = vmatprep.subr.bf16.mxu1 %v1878_v29  ;;  %v378_v29 = vrot.slane %v377_v26, 4 }
  0x25   : > { %1680 = vmatpush3.bf16.msra.mxu0 %v1879_v30  ;;  %v1898_v30 = vld [vmem:[%s2374_s2 + $0x1d8] sm:$0xff]   ;;  %v2190_v32 = vsel %vm2126_vm2, %v378_v29, %v382_v24  ;;  %v1913_v24 = vld [vmem:[%s2374_s2 + $0x170] sm:$0xff]  }
  0x26   : > { %1720 = vmatpush3.bf16.msra.mxu1 %v1880_v31  ;;  %1745 = vmatprep.subr.bf16.mxu0 %v1883_v44  ;;  %v1897_v31 = vld [vmem:[%s2374_s2 + $0x158] sm:$0xff]   ;;  %v1502_v37 = vcombine.high %v2180_v28, %v2190_v32  ;;  %v1501_v38 = vcombine.low %v2180_v28, %v2190_v32  ;;  %v388_v44 = vshll.u32 %v2196_v35, 16  ;;  %v1914_v29 = vld [vmem:[%s2374_s2 + $0x1f0] sm:$0xff]  }
  0x27   : > { %1785 = vmatprep.subr.bf16.mxu1 %v1884_v57  ;;  %v404_v57 = vrot.slane %v402_v47, 5 }
  0x28   : > { %634 = vmatmul.mubr.bf16.vlgmr.msra.gmra.mrb[0].mxu0 %v1499_v9  ;;  %v390_v54 = vrot.slane %v388_v44, 5  ;;  %v1917_v44 = vld [vmem:[%s2374_s2 + $0x178] sm:$0xff]  }
  0x29   : > { %835 = vmatmul.mubr.bf16.vlgmr.msra.gmra.mrb[0].mxu1 %v1523_v39  ;;  %1746 = vmatpush3.bf16.msra.mxu0 %v1885_v3  ;;  %v1899_v39 = vld [vmem:[%s2374_s2 + $0x118] sm:$0xff]   ;;  %v405_v62 = vor.u32 %v404_v57, %v401_v56  ;;  %v1908_v3 = vld [vmem:[%s2374_s2 + $0x1e8] sm:$0xff]  }
  0x2a   : > { %1786 = vmatpush3.bf16.msra.mxu1 %v1886_v0  ;;  %842 = vmatprep.mubr.bf16.mxu1 %v1526_v16  ;;  %v391_v61 = vor.u32 %v390_v54, %v387_v48  ;;  %v1919_v48 = vld [vmem:[%s2374_s2 + $0x138] sm:$0xff]   ;;  %v1580_v54 = vcombine.high %v2105_v34, %v2109_v36 }
  0x2b   : > { %1787 = vmatprep.subr.bf16.mxu1 %v1888_v4  ;;  %1747 = vmatprep.subr.bf16.mxu0 %v1887_v6  ;;  %v406_v1 = vrot.slane %v405_v62, 4 }
  0x2c   : > { %641 = vmatprep.mubr.bf16.mxu0 %v1502_v37  ;;  %v392_v0 = vrot.slane %v391_v61, 4  ;;  %v1915_v37 = vld [vmem:[%s2374_s2 + $0x130] sm:$0xff]  }
  0x2d   : > { %1748 = vmatpush3.bf16.msra.mxu0 %v1889_v17  ;;  %v2242_v6 = vsel %vm2126_vm2, %v406_v1, %v410_v59 }
  0x2e   : > { %1788 = vmatpush3.bf16.msra.mxu1 %v1890_v11  ;;  %1749 = vmatprep.subr.bf16.mxu0 %v1893_v22  ;;  %v2238_v4 = vsel %vm2126_vm2, %v392_v0, %v396_v55  ;;  %v2255_v11 = vld [vmem:[%s2094_s12 + $0x60] sm:$0xff]  ;;  %v436_v22 = vshll.u32 %v290_v15, 16  ;;  %v1582_v0 = vcombine.high %v2154_v12, %v2196_v35 }
  0x2f   : > { %1789 = vmatprep.subr.bf16.mxu1 %v1894_v23  ;;  %v1504_v8 = vcombine.high %v2238_v4, %v2242_v6  ;;  %v1503_v9 = vcombine.low %v2238_v4, %v2242_v6  ;;  %v413_v16 = vshrl.u32 %v2255_v11, 16  ;;  %v416_v17 = vshll.u32 %v2255_v11, 16  ;;  %v291_v55 = vld [vmem:[%s263_s20] sm:$0xff] }
  0x30   : > { %642 = vmatmul.mubr.bf16.gmra.mrb[4].mxu0 %v1501_v38  ;;  %v1530_v23 = vcombine.high %v2255_v11, %v2259_v14  ;;  %v438_v40 = vrot.slane %v436_v22, 5  ;;  %v1638_v56 = vcombine.high %v2190_v32, %v2238_v4  ;;  %v1089_v57 = vshrl.u32 %v291_v55, 16 }
  0x31   : > { %843 = vmatmul.mubr.bf16.gmra.mrb[4].mxu1 %v1525_v19  ;;  %1750 = vmatpush3.bf16.msra.mxu0 %v1895_v27  ;;  %v1636_v19 = vcombine.high %v2143_v5, %v2180_v28  ;;  %v418_v26 = vrot.slane %v416_v17, 5  ;;  %v1529_v27 = vcombine.low %v2255_v11, %v2259_v14  ;;  %v1092_v59 = vshll.u32 %v291_v55, 16 }
  0x32   : > { %1790 = vmatpush3.bf16.msra.mxu1 %v1896_v25  ;;  %1751 = vmatprep.subr.bf16.mxu0 %v1897_v31  ;;  %v415_v25 = vrot.slane %v413_v16, 4  ;;  %v429_v31 = vrot.slane %v427_v20, 4  ;;  %v1091_v61 = vrot.slane %v1089_v57, 4  ;;  %v1637_v1 = vcombine.low %v2190_v32, %v2238_v4 }
  0x33   : > { %1791 = vmatprep.subr.bf16.mxu1 %v1898_v30  ;;  %850 = vmatprep.mubr.bf16.mxu1 %v1528_v50  ;;  %v424_v30 = vrot.slane %v422_v18, 5  ;;  %v1920_v50 = vld [vmem:[%s2374_s2 + $0x1b8] sm:$0xff]   ;;  %v1094_v62 = vrot.slane %v1092_v59, 5  ;;  %v1583_v4 = vcombine.low %v2207_v41, %v2255_v11 }
  0x34   : > { %649 = vmatprep.mubr.bf16.mxu0 %v1504_v8  ;;  %v419_v38 = vor.u32 %v418_v26, %v415_v25 }
  0x35   : > { %1752 = vmatpush3.bf16.msra.mxu0 %v1899_v39 }
  0x36   : > { %1792 = vmatpush3.bf16.msra.mxu1 %v1900_v33  ;;  %1753 = vmatprep.subr.bf16.mxu0 %v1903_v52  ;;  %v432_v33 = vrot.slane %v430_v21, 5  ;;  %v420_v43 = vrot.slane %v419_v38, 4 }
  0x37   : > { %1793 = vmatprep.subr.bf16.mxu1 %v1904_v53 }
  0x38   : > { %650 = vmatmul.mubr.bf16.gmra.mrb[8].mxu0 %v1503_v9  ;;  %v433_v39 = vor.u32 %v432_v33, %v429_v31  ;;  %v425_v47 = vsel %vm2126_vm2, %v420_v43, %v424_v30 }
  0x39   : > { %851 = vmatmul.mubr.bf16.gmra.mrb[8].mxu1 %v1527_v51  ;;  %1754 = vmatpush3.bf16.msra.mxu0 %v1905_v60  ;;  %v1635_v51 = vcombine.low %v2143_v5, %v2180_v28  ;;  %v292_v60 = vld [vmem:[%s263_s20 + $0x8] sm:$0x11]  ;;  %v1095_v5 = vor.u32 %v1094_v62, %v1091_v61  ;;  %v1639_v9 = vcombine.low %v2242_v6, %v425_v47 }
  0x3a   : > { %1794 = vmatpush3.bf16.msra.mxu1 %v1906_v63  ;;  %1755 = vmatprep.subr.bf16.mxu0 %v1907_v2  ;;  %v434_v45 = vrot.slane %v433_v39, 4  ;;  %v1098_v28 = vshll.u32 %v292_v60, 16  ;;  %v1579_v63 = vcombine.low %v2105_v34, %v2109_v36  ;;  %v1640_v2 = vcombine.high %v2242_v6, %v425_v47 }
  0x3b   : > { %1795 = vmatprep.subr.bf16.mxu1 %v1908_v3  ;;  %858 = vmatprep.mubr.bf16.mxu1 %v1530_v23  ;;  %v1096_v3 = vrot.slane %v1095_v5, 4  ;;  %v1581_v34 = vcombine.low %v2154_v12, %v2196_v35  ;;  %v1584_v36 = vcombine.high %v2207_v41, %v2255_v11  ;;  %v1585_v12 = vcombine.low %v2259_v14, %v291_v55 }
  0x3c   : > { %v439_v49 = vsel %vm2126_vm2, %v434_v45, %v438_v40 }
  0x3d   : > { %1756 = vmatpush3.bf16.msra.mxu0 %v1909_v7  ;;  %v1506_v52 = vcombine.high %v425_v47, %v439_v49  ;;  %v1505_v53 = vcombine.low %v425_v47, %v439_v49  ;;  %v1100_v7 = vrot.slane %v1098_v28, 5 }
  0x3e   : > { %1796 = vmatpush3.bf16.msra.mxu1 %v1910_v10  ;;  %1757 = vmatprep.subr.bf16.mxu0 %v1913_v24  ;;  %v1586_v10 = vcombine.high %v2259_v14, %v291_v55 }
  0x3f   : > { %1797 = vmatprep.subr.bf16.mxu1 %v1914_v29  ;;  %657 = vmatprep.mubr.bf16.mxu0 %v1506_v52  ;;  %v1101_v8 = vsel %vm2126_vm2, %v1096_v3, %v1100_v7 }
  0x40   : > { %658 = vmatmul.mubr.bf16.gmra.mrb[12].mxu0 %v1505_v53  ;;  %v1642_v32 = vcombine.high %v439_v49, %v1101_v8  ;;  %v1641_v58 = vcombine.low %v439_v49, %v1101_v8 }
  0x41   : > { %859 = vmatmul.mubr.bf16.gmra.mrb[12].mxu1 %v1529_v27  ;;  %1758 = vmatpush3.bf16.msra.mxu0 %v1915_v37 }
  0x42   : > { %1281 = vmatprep.mubr.bf16.mxu1 %v1636_v19  ;;  %1798 = vmatpush3.bf16.msra.mxu1 %v1916_v42 }
  0x43   : > { %1759 = vmatprep.subr.bf16.mxu0 %v1917_v44  ;;  %1799 = vmatprep.subr.bf16.mxu1 %v1918_v46 }
  0x44   : > { %1047 = vmatprep.mubr.bf16.mxu0 %v1580_v54 }
  0x45   : > { %1760 = vmatpush3.bf16.msra.mxu0 %v1919_v48 }
  0x46   : > { %1800 = vmatpush3.bf16.msra.mxu1 %v1920_v50 }
  0x48   : > { %1048 = vmatmul.mubr.bf16.vlgmr.msra.gmra.mrb[16].mxu0 %v1579_v63 }
  0x49   : > { %1282 = vmatmul.mubr.bf16.vlgmr.msra.gmra.mrb[16].mxu1 %v1635_v51  ;;  %1055 = vmatprep.mubr.bf16.mxu0 %v1582_v0 }
  0x4a   : > { %1289 = vmatprep.mubr.bf16.mxu1 %v1638_v56 }
  0x50   : > { %1056 = vmatmul.mubr.bf16.gmra.mrb[20].mxu0 %v1581_v34 }
  0x51   : > { %1290 = vmatmul.mubr.bf16.gmra.mrb[20].mxu1 %v1637_v1  ;;  %1063 = vmatprep.mubr.bf16.mxu0 %v1584_v36 }
  0x52   : > { %1297 = vmatprep.mubr.bf16.mxu1 %v1640_v2 }
  0x58   : > { %1064 = vmatmul.mubr.bf16.gmra.mrb[24].mxu0 %v1583_v4 }
  0x59   : > { %1298 = vmatmul.mubr.bf16.gmra.mrb[24].mxu1 %v1639_v9  ;;  %1071 = vmatprep.mubr.bf16.mxu0 %v1586_v10 }
  0x5a   : > { %1305 = vmatprep.mubr.bf16.mxu1 %v1642_v32 }
  0x60   : > { %1072 = vmatmul.mubr.bf16.gmra.mrb[28].mxu0 %v1585_v12 }
  0x61   : > { %1306 = vmatmul.mubr.bf16.gmra.mrb[28].mxu1 %v1641_v58 }
  0xfb   : > { %v1681_v18 = vpop.f32.mrb[0].mxu0 }
  0xfc   : > { %v1721_v35 = vpop.f32.mrb[0].mxu1  ;;  %v1682_v19 = vpop.f32.mrb[1].mxu0 }
  0xfd   : > { %v1722_v13 = vpop.f32.mrb[1].mxu1  ;;  %v1683_v21 = vadd.f32 %v1682_v19, %v1681_v18  ;;  %v1684_v41 = vpop.f32.mrb[2].mxu0 }
  0xfe   : > { %v1723_v6 = vadd.f32 %v1722_v13, %v1721_v35  ;;  %v1724_v15 = vpop.f32.mrb[2].mxu1  ;;  %v1685_v22 = vpop.f32.mrb[3].mxu0 }
  0xff   : > { %v1725_v16 = vpop.f32.mrb[3].mxu1  ;;  %v1686_v26 = vadd.f32 %v1685_v22, %v1684_v41  ;;  %v1659_v41 = vld [vmem:[%s2375_s3] ss:$0 sm:$0xff] }
 0x100   : > { %v1726_v17 = vadd.f32 %v1725_v16, %v1724_v15  ;;  %v837_v25 = vadd.f32 %v1723_v6, %v1683_v21 }
 0x102   : > { %v840_v29 = vadd.f32 %v1726_v17, %v1686_v26 }
 0x103   : > { %v1687_v30 = vpop.f32.mrb[4].mxu0 }
 0x104   : > { %v1727_v20 = vpop.f32.mrb[4].mxu1  ;;  %v1688_v31 = vpop.f32.mrb[5].mxu0 }
 0x105   : > { %v1728_v11 = vpop.f32.mrb[5].mxu1  ;;  %v1689_v33 = vadd.f32 %v1688_v31, %v1687_v30  ;;  %v1690_v37 = vpop.f32.mrb[6].mxu0 }
 0x106   : > { %v1729_v23 = vadd.f32 %v1728_v11, %v1727_v20  ;;  %v1730_v24 = vpop.f32.mrb[6].mxu1  ;;  %v1691_v39 = vpop.f32.mrb[7].mxu0 }
 0x107   : > { %v1731_v27 = vpop.f32.mrb[7].mxu1  ;;  %v1692_v43 = vadd.f32 %v1691_v39, %v1690_v37 }
 0x108   : > { %v1732_v14 = vadd.f32 %v1731_v27, %v1730_v24  ;;  %v2328_v42 = vadd.f32 %v1729_v23, %v1689_v33 }
 0x10a   : > { %v2330_v47 = vadd.f32 %v1732_v14, %v1692_v43 }
 0x10b   : > { %v1693_v49 = vpop.f32.mrb[8].mxu0 }
 0x10c   : > { %v1733_v38 = vpop.f32.mrb[8].mxu1  ;;  %v1694_v50 = vpop.f32.mrb[9].mxu0 }
 0x10d   : > { %v1734_v40 = vpop.f32.mrb[9].mxu1  ;;  %v1695_v51 = vadd.f32 %v1694_v50, %v1693_v49  ;;  %v1696_v52 = vpop.f32.mrb[10].mxu0 }
 0x10e   : > { %v1735_v44 = vadd.f32 %v1734_v40, %v1733_v38  ;;  %v1736_v45 = vpop.f32.mrb[10].mxu1  ;;  %v1697_v54 = vpop.f32.mrb[11].mxu0 }
 0x10f   : > { %v1737_v46 = vpop.f32.mrb[11].mxu1  ;;  %v1698_v57 = vadd.f32 %v1697_v54, %v1696_v52 }
 0x110   : > { %v1738_v48 = vadd.f32 %v1737_v46, %v1736_v45  ;;  %v2332_v56 = vadd.f32 %v1735_v44, %v1695_v51 }
 0x112   : > { %v2334_v62 = vadd.f32 %v1738_v48, %v1698_v57 }
 0x113   : > { %v1699_v28 = vpop.f32.mrb[12].mxu0 }
 0x114   : > { %v1739_v53 = vpop.f32.mrb[12].mxu1  ;;  %v1700_v63 = vpop.f32.mrb[13].mxu0 }
 0x115   : > { %v1740_v55 = vpop.f32.mrb[13].mxu1  ;;  %v1701_v1 = vadd.f32 %v1700_v63, %v1699_v28  ;;  %v1702_v2 = vpop.f32.mrb[14].mxu0 }
 0x116   : > { %v1741_v59 = vadd.f32 %v1740_v55, %v1739_v53  ;;  %v1742_v60 = vpop.f32.mrb[14].mxu1  ;;  %v1703_v7 = vpop.f32.mrb[15].mxu0 }
 0x117   : > { %v1743_v61 = vpop.f32.mrb[15].mxu1  ;;  %v1704_v9 = vadd.f32 %v1703_v7, %v1702_v2 }
 0x118   : > { %v1744_v5 = vadd.f32 %v1743_v61, %v1742_v60  ;;  %v2336_v36 = vadd.f32 %v1741_v59, %v1701_v1 }
 0x11a   : > { %v2338_v10 = vadd.f32 %v1744_v5, %v1704_v9 }
 0x11b   : > { %v1761_v58 = vpop.f32.mrb[16].mxu0 }
 0x11c   : > { %v1801_v0 = vpop.f32.mrb[16].mxu1  ;;  %v1762_v12 = vpop.f32.mrb[17].mxu0 }
 0x11d   : > { %v1802_v3 = vpop.f32.mrb[17].mxu1  ;;  %v1763_v13 = vadd.f32 %v1762_v12, %v1761_v58  ;;  %v1764_v6 = vpop.f32.mrb[18].mxu0 }
 0x11e   : > { %v1803_v8 = vadd.f32 %v1802_v3, %v1801_v0  ;;  %v1804_v34 = vpop.f32.mrb[18].mxu1  ;;  %v1765_v16 = vpop.f32.mrb[19].mxu0 }
 0x11f   : > { %v1805_v32 = vpop.f32.mrb[19].mxu1  ;;  %v1080_v19 = vadd.f32 %v1763_v13, %v837_v25  ;;  %v1766_v20 = vadd.f32 %v1765_v16, %v1764_v6 }
 0x120   : > { %v1806_v4 = vadd.f32 %v1805_v32, %v1804_v34 }
 0x121   : > { %v1314_v22 = vadd.f32 %v1803_v8, %v1080_v19  ;;  %v1081_v23 = vadd.f32 %v1766_v20, %v840_v29 }
 0x123   : > { %v1329_v24 = vadd.f32 %v1659_v41, %v1314_v22  ;;  %v1315_v26 = vadd.f32 %v1806_v4, %v1081_v23  ;;  %v1767_v25 = vpop.f32.mrb[20].mxu0 }
 0x124   : > { %v1807_v35 = vpop.f32.mrb[20].mxu1  ;;  %v1768_v27 = vpop.f32.mrb[21].mxu0 }
 0x125   : > { %v1808_v15 = vpop.f32.mrb[21].mxu1  ;;  %1337 = vst [vmem:[%s2347_s29] sm:$0xff] %v1329_v24  ;;  %v1330_v30 = vadd.f32 %v1659_v41, %v1315_v26  ;;  %v1769_v31 = vadd.f32 %v1768_v27, %v1767_v25  ;;  %v1770_v33 = vpop.f32.mrb[22].mxu0 }
 0x126   : > { %v1809_v17 = vadd.f32 %v1808_v15, %v1807_v35  ;;  %v1810_v18 = vpop.f32.mrb[22].mxu1  ;;  %v1771_v38 = vpop.f32.mrb[23].mxu0 }
 0x127   : > { %v1811_v21 = vpop.f32.mrb[23].mxu1  ;;  %1338 = vst [vmem:[%s2347_s29 + $0x8] sm:$0xff] %v1330_v30  ;;  %v1082_v40 = vadd.f32 %v1769_v31, %v2328_v42  ;;  %v1772_v43 = vadd.f32 %v1771_v38, %v1770_v33 }
 0x128   : > { %v1812_v11 = vadd.f32 %v1811_v21, %v1810_v18 }
 0x129   : > { %v1316_v46 = vadd.f32 %v1809_v17, %v1082_v40  ;;  %v1083_v48 = vadd.f32 %v1772_v43, %v2330_v47 }
 0x12b   : > { %v1331_v49 = vadd.f32 %v1659_v41, %v1316_v46  ;;  %v1317_v50 = vadd.f32 %v1812_v11, %v1083_v48  ;;  %v1773_v51 = vpop.f32.mrb[24].mxu0 }
 0x12c   : > { %v1813_v14 = vpop.f32.mrb[24].mxu1  ;;  %v1774_v52 = vpop.f32.mrb[25].mxu0 }
 0x12d   : > { %v1814_v37 = vpop.f32.mrb[25].mxu1  ;;  %1339 = vst [vmem:[%s2347_s29 + $0x10] sm:$0xff] %v1331_v49  ;;  %v1332_v54 = vadd.f32 %v1659_v41, %v1317_v50  ;;  %v1775_v55 = vadd.f32 %v1774_v52, %v1773_v51  ;;  %v1776_v57 = vpop.f32.mrb[26].mxu0 }
 0x12e   : > { %v1815_v29 = vadd.f32 %v1814_v37, %v1813_v14  ;;  %v1816_v39 = vpop.f32.mrb[26].mxu1  ;;  %v1777_v60 = vpop.f32.mrb[27].mxu0 }
 0x12f   : > { %v1817_v44 = vpop.f32.mrb[27].mxu1  ;;  %1340 = vst [vmem:[%s2347_s29 + $0x18] sm:$0xff] %v1332_v54  ;;  %v1084_v5 = vadd.f32 %v1775_v55, %v2332_v56  ;;  %v1778_v28 = vadd.f32 %v1777_v60, %v1776_v57 }
 0x130   : > { %v1818_v45 = vadd.f32 %v1817_v44, %v1816_v39 }
 0x131   : > { %v1318_v0 = vadd.f32 %v1815_v29, %v1084_v5  ;;  %v1085_v1 = vadd.f32 %v1778_v28, %v2334_v62 }
 0x133   : > { %v1333_v2 = vadd.f32 %v1659_v41, %v1318_v0  ;;  %v1319_v3 = vadd.f32 %v1818_v45, %v1085_v1  ;;  %v1779_v7 = vpop.f32.mrb[28].mxu0 }
 0x134   : > { %v1819_v53 = vpop.f32.mrb[28].mxu1  ;;  %v1780_v8 = vpop.f32.mrb[29].mxu0 }
 0x135   : > { %v1820_v59 = vpop.f32.mrb[29].mxu1  ;;  %1341 = vst [vmem:[%s2347_s29 + $0x20] sm:$0xff] %v1333_v2  ;;  %v1334_v34 = vadd.f32 %v1659_v41, %v1319_v3  ;;  %v1781_v9 = vadd.f32 %v1780_v8, %v1779_v7  ;;  %v1782_v32 = vpop.f32.mrb[30].mxu0 }
 0x136   : > { %v1821_v42 = vadd.f32 %v1820_v59, %v1819_v53  ;;  %v1822_v61 = vpop.f32.mrb[30].mxu1  ;;  %v1783_v4 = vpop.f32.mrb[31].mxu0 }
 0x137   : > { %v1823_v47 = vpop.f32.mrb[31].mxu1  ;;  %1342 = vst [vmem:[%s2347_s29 + $0x28] sm:$0xff] %v1334_v34  ;;  %v1086_v56 = vadd.f32 %v1781_v9, %v2336_v36  ;;  %v1784_v58 = vadd.f32 %v1783_v4, %v1782_v32 }
 0x138   : > { %v1824_v63 = vadd.f32 %v1823_v47, %v1822_v61 }
 0x139   : > { %v1320_v12 = vadd.f32 %v1821_v42, %v1086_v56  ;;  %v1087_v35 = vadd.f32 %v1784_v58, %v2338_v10 }
 0x13b   : > { %v1335_v13 = vadd.f32 %v1659_v41, %v1320_v12  ;;  %v1321_v62 = vadd.f32 %v1824_v63, %v1087_v35 }
 0x13d   : > { %1343 = vst [vmem:[%s2347_s29 + $0x30] sm:$0xff] %v1335_v13  ;;  %v1336_v6 = vadd.f32 %v1659_v41, %v1321_v62 }
 0x13f   : > { %1344 = vst [vmem:[%s2347_s29 + $0x38] sm:$0xff] %v1336_v6 }
 0x140 PF: > { %s14_s17 = sadd.s32 1, %s1949_s17   ;;  %s2379_s15 = smov %s1945_s16 }
 0x141   : > { %p11_p5 = scmp.ge.s32.totalorder %s14_s17, 4   ;;  %s2380_s16 = smov %s2382_s18 }
 0x143   :  { %13 = sbr.rel (!%p11_p5) target bundleno = 2 (0x2), region = 72 }

// kernel: discriminator_local.12
= control target key start
LH: loop header
LB: loop body
LE: loop exit
PB: predicated region body
PF: predicated region fallthrough
CT: control target
= control target key end

     0   :  { %s402_s6 = smov 0   ;;  %s404_s7 = smov 0   ;;  %s439_s0 = inlined_call_operand.vmem [shape: f32[2,16,256], index: 0, kind: input, shape index: {}]   ;;  %s440_s1 = inlined_call_operand.vmem [shape: bf16[2,16,256], index: 1, kind: output, shape index: {}]  }
   0x1   :  { %s406_s8 = smov 0  }
   0x2 LB: > { %s23_s9 = sadd.s32 1, %s386_s7  ;;  %p327_p0 = scmp.ge.s32.totalorder %s390_s8, 1  ;;  %s390_s8 = sphi %s406_s8, %s11_s8   ;;  %s386_s7 = sphi %s404_s7, %s442_s7   ;;  %s382_s6 = sphi %s402_s6, %s441_s6  }
   0x3   : > { %p25_p1 = scmp.ge.s32.totalorder %s23_s9, 2  ;;  %p108_p2 = scmp.lt.s32.totalorder %s390_s8, 3 }
   0x5   : > { %s444_s9 = smov (%p25_p1, %s23_s9), 0  ;;  %p109_p3 = pnand %p327_p0, %p108_p2 }
   0x6   : > { %p137_p4 = scmp.lt.s32.totalorder (!%p109_p3), %s382_s6, 1 }
   0x7   : > { %112 = sbr.rel (%p109_p3) target bundleno = 63 (0x3f), region = 24 }
   0xe   : > { %s446_s6 = smov (!%p137_p4, %s382_s6), 1 }
   0xf   : > { %s336_s10 = sshll.u32 %s446_s6, 5  ;;  %s337_s14 = sshll.u32 %s446_s6, 4 }
  0x10   : > { %s144_s13 = scalar_lea.vmem %s439_s0, %s336_s10  ;;  %s154_s17 = scalar_lea.vmem %s440_s1, %s337_s14 }
  0x11   : > { %v156_v0 = vld [vmem:[%s144_s13] sm:$0xff]  ;;  %v157_v1 = vld [vmem:[%s144_s13 + $0x8] sm:$0xff]  ;;  %v158_v2 = vld [vmem:[%s144_s13 + $0x10] sm:$0xff] }
  0x12   : > { %v159_v3 = vld [vmem:[%s144_s13 + $0x18] sm:$0xff]  ;;  %v160_v4 = vadd.f32 %v158_v2, %v156_v0  ;;  %v176_v5 = vmul.f32 %v156_v0, %v156_v0  ;;  %v177_v6 = vmul.f32 %v157_v1, %v157_v1  ;;  %v178_v7 = vmul.f32 %v158_v2, %v158_v2 }
  0x13   : > { %v167_v8 = vadd.f32 %v159_v3, %v157_v1  ;;  %v179_v9 = vmul.f32 %v159_v3, %v159_v3 }
  0x14   : > { %v161_v10 = vrot.slane %v160_v4, 4  ;;  %v180_v11 = vadd.f32 %v178_v7, %v176_v5 }
  0x15   : > { %v168_v12 = vrot.slane %v167_v8, 4  ;;  %v187_v13 = vadd.f32 %v179_v9, %v177_v6 }
  0x16   : > { %v162_v14 = vadd.f32 %v161_v10, %v160_v4  ;;  %v181_v15 = vrot.slane %v180_v11, 4 }
  0x17   : > { %v169_v16 = vadd.f32 %v168_v12, %v167_v8  ;;  %v188_v17 = vrot.slane %v187_v13, 4 }
  0x18   : > { %v163_v18 = vrot.slane %v162_v14, 2  ;;  %v182_v19 = vadd.f32 %v181_v15, %v180_v11 }
  0x19   : > { %v170_v20 = vrot.slane %v169_v16, 2  ;;  %v189_v21 = vadd.f32 %v188_v17, %v187_v13 }
  0x1a   : > { %v164_v22 = vadd.f32 %v163_v18, %v162_v14  ;;  %v183_v23 = vrot.slane %v182_v19, 2 }
  0x1b   : > { %v171_v24 = vadd.f32 %v170_v20, %v169_v16  ;;  %v190_v25 = vrot.slane %v189_v21, 2 }
  0x1c   : > { %v165_v26 = vrot.slane %v164_v22, 1  ;;  %v184_v27 = vadd.f32 %v183_v23, %v182_v19 }
  0x1d   : > { %v172_v28 = vrot.slane %v171_v24, 1  ;;  %v191_v29 = vadd.f32 %v190_v25, %v189_v21 }
  0x1e   : > { %v166_v30 = vadd.f32 %v165_v26, %v164_v22  ;;  %v185_v31 = vrot.slane %v184_v27, 1 }
  0x1f   : > { %v173_v32 = vadd.f32 %v172_v28, %v171_v24  ;;  %v192_v33 = vrot.slane %v191_v29, 1 }
  0x20   : > { %v174_v34 = vmul.f32 0.0625, %v166_v30  ;;  %v186_v35 = vadd.f32 %v185_v31, %v184_v27 }
  0x21   : > { %v175_v36 = vmul.f32 0.0625, %v173_v32  ;;  %v193_v37 = vadd.f32 %v192_v33, %v191_v29 }
  0x22   : > { %v194_v38 = vmul.f32 0.0625, %v186_v35  ;;  %v196_v39 = vmul.f32 %v174_v34, %v174_v34  ;;  %v202_v48 = vsub.f32 %v156_v0, %v174_v34  ;;  %v204_v49 = vsub.f32 %v158_v2, %v174_v34 }
  0x23   : > { %v195_v40 = vmul.f32 0.0625, %v193_v37  ;;  %v197_v41 = vmul.f32 %v175_v36, %v175_v36  ;;  %v203_v50 = vsub.f32 %v157_v1, %v175_v36  ;;  %v205_v51 = vsub.f32 %v159_v3, %v175_v36 }
  0x24   : > { %v198_v42 = vsub.f32 %v194_v38, %v196_v39 }
  0x25   : > { %v199_v43 = vsub.f32 %v195_v40, %v197_v41 }
  0x26   : > { %v200_v44 = vmax.f32 %v198_v42, 0.0 }
  0x27   : > { %v201_v45 = vmax.f32 %v199_v43, 0.0 }
  0x28   : > { %v206_v46 = vadd.f32 1e-05, %v200_v44 }
  0x29   : > { %v207_v47 = vadd.f32 1e-05, %v201_v45 }
  0x2a   : > { %364 = vrsqrt.f32 %v206_v46 }
  0x2b   : > { %366 = vrsqrt.f32 %v207_v47 }
  0x34   : > { %v365_v52 = vpop.eup %364 }
  0x35   : > { %v367_v53 = vpop.eup %366  ;;  %v210_v54 = vmul.f32 %v365_v52, %v202_v48  ;;  %v212_v55 = vmul.f32 %v365_v52, %v204_v49 }
  0x36   : > { %v211_v56 = vmul.f32 %v367_v53, %v203_v50  ;;  %v213_v57 = vmul.f32 %v367_v53, %v205_v51 }
  0x37   : > { %v214_v58 = vmul.f32 0.2, %v210_v54  ;;  %v216_v59 = vmul.f32 0.2, %v212_v55 }
  0x38   : > { %v215_v60 = vmul.f32 0.2, %v211_v56  ;;  %v217_v61 = vmul.f32 0.2, %v213_v57 }
  0x39   : > { %v218_v62 = vmax.f32 %v210_v54, %v214_v58  ;;  %v220_v63 = vmax.f32 %v212_v55, %v216_v59 }
  0x3a   : > { %v219_v4 = vmax.f32 %v211_v56, %v215_v60  ;;  %v221_v5 = vmax.f32 %v213_v57, %v217_v61 }
  0x3c   : > { %v338_v0 = vpack.c.bf16 %v219_v4, %v218_v62  ;;  %v339_v1 = vpack.c.bf16 %v221_v5, %v220_v63 }
  0x3e   : > { %234 = vst [vmem:[%s154_s17] sm:$0xff] %v338_v0  ;;  %235 = vst [vmem:[%s154_s17 + $0x8] sm:$0xff] %v339_v1 }
  0x3f PF: > { %s11_s8 = sadd.s32 1, %s390_s8   ;;  %s441_s6 = smov %s386_s7 }
  0x40   : > { %p8_p5 = scmp.ge.s32.totalorder %s11_s8, 4   ;;  %s442_s7 = smov %s444_s9 }
  0x42   :  { %10 = sbr.rel (!%p8_p5) target bundleno = 2 (0x2), region = 54 }

// kernel: discriminator_local.11
= control target key start
LH: loop header
LB: loop body
LE: loop exit
PB: predicated region body
PF: predicated region fallthrough
CT: control target
= control target key end

     0   :  { %s3622_s15 = smov 0   ;;  %s3624_s16 = smov 0   ;;  %s4657_s0 = inlined_call_operand.vmem [shape: bf16[2,4,5,512], index: 0, kind: input, shape index: {}]   ;;  %s4658_s1 = inlined_call_operand.vmem [shape: bf16[2,1,5,512], index: 1, kind: input, shape index: {}]   ;;  %s4659_s2 = inlined_call_operand.vmem [shape: bf16[4,512,256], index: 2, kind: input, shape index: {}]   ;;  %s4660_s3 = inlined_call_operand.vmem [shape: f32[1,256], index: 3, kind: input, shape index: {}]   ;;  %s4661_s4 = inlined_call_operand.vmem [shape: f32[2,4,4,256], index: 4, kind: output, shape index: {}]  }
   0x1   :  { %s3626_s17 = smov 0  }
   0x2 LB: > { %s26_s18 = sadd.s32 1, %s3590_s16  ;;  %p2657_p0 = scmp.ge.s32.totalorder %s3594_s17, 1  ;;  %s3594_s17 = sphi %s3626_s17, %s14_s17   ;;  %s3590_s16 = sphi %s3624_s16, %s4669_s16   ;;  %s3586_s15 = sphi %s3622_s15, %s4668_s15  }
   0x3   : > { %p28_p1 = scmp.ge.s32.totalorder %s26_s18, 2  ;;  %p200_p2 = scmp.lt.s32.totalorder %s3594_s17, 3 }
   0x5   : > { %s4671_s18 = smov (%p28_p1, %s26_s18), 0  ;;  %p201_p3 = pnand %p2657_p0, %p200_p2 }
   0x6   : > { %v3188_v0 = vld [vmem:[%s4659_s2 + $0x204] ss:$8 sps:$4 sm:$0xff] (!%p201_p3)   ;;  %v3192_v2 = vld [vmem:[%s4659_s2 + $0x200] ss:$8 sps:$4 sm:$0xff] (!%p201_p3)   ;;  %v3194_v4 = vld [vmem:[%s4659_s2 + $0x214] ss:$8 sps:$4 sm:$0xff] (!%p201_p3)   ;;  %v557_v44 = vlaneseq (!%p201_p3) }
   0x7   : > { %204 = sbr.rel (%p201_p3) target bundleno = 486 (0x1e6), region = 36  ;;  %v3190_v1 = vld [vmem:[%s4659_s2 + $0x404] ss:$8 sps:$4 sm:$0xff] (!%p201_p3)   ;;  %910 = vmatprep.subr.bf16.mxu1 (!%p201_p3), %v3188_v0  ;;  %v3193_v3 = vld [vmem:[%s4659_s2 + $0x400] ss:$8 sps:$4 sm:$0xff] (!%p201_p3)   ;;  %p246_p4 = scmp.lt.s32.totalorder (!%p201_p3), %s3586_s15, 1 }
   0x8   : > { %1884 = vmatprep.subr.bf16.mxu0 (!%p201_p3), %v3190_v1  ;;  %911 = vmatpush1.bf16.msra.mxu1 (!%p201_p3), %v3192_v2  ;;  %v3196_v5 = vld [vmem:[%s4659_s2 + $0x414] ss:$8 sps:$4 sm:$0xff] (!%p201_p3)   ;;  %v3198_v6 = vld [vmem:[%s4659_s2 + $0x210] ss:$8 sps:$4 sm:$0xff] (!%p201_p3)   ;;  %v3200_v8 = vld [vmem:[%s4659_s2 + $0x224] ss:$8 sps:$4 sm:$0xff] (!%p201_p3)  }
   0x9   : > { %1885 = vmatpush1.bf16.msra.mxu0 (!%p201_p3), %v3193_v3  ;;  %912 = vmatprep.subr.bf16.mxu1 (!%p201_p3), %v3194_v4  ;;  %v3199_v7 = vld [vmem:[%s4659_s2 + $0x410] ss:$8 sps:$4 sm:$0xff] (!%p201_p3)   ;;  %v3202_v9 = vld [vmem:[%s4659_s2 + $0x424] ss:$8 sps:$4 sm:$0xff] (!%p201_p3)   ;;  %v3204_v10 = vld [vmem:[%s4659_s2 + $0x220] ss:$8 sps:$4 sm:$0xff] (!%p201_p3)  }
   0xa   : > { %1886 = vmatprep.subr.bf16.mxu0 (!%p201_p3), %v3196_v5  ;;  %v3205_v11 = vld [vmem:[%s4659_s2 + $0x420] ss:$8 sps:$4 sm:$0xff] (!%p201_p3)   ;;  %v3206_v12 = vld [vmem:[%s4659_s2 + $0x234] ss:$8 sps:$4 sm:$0xff] (!%p201_p3)   ;;  %v3210_v14 = vld [vmem:[%s4659_s2 + $0x230] ss:$8 sps:$4 sm:$0xff] (!%p201_p3)  }
   0xb   : > { %v3208_v13 = vld [vmem:[%s4659_s2 + $0x434] ss:$8 sps:$4 sm:$0xff] (!%p201_p3)   ;;  %v3211_v15 = vld [vmem:[%s4659_s2 + $0x430] ss:$8 sps:$4 sm:$0xff] (!%p201_p3)   ;;  %v3212_v16 = vld [vmem:[%s4659_s2 + $0x244] ss:$8 sps:$4 sm:$0xff] (!%p201_p3)  }
   0xc   : > { %913 = vmatpush1.bf16.msra.mxu1 (!%p201_p3), %v3198_v6  ;;  %v3214_v17 = vld [vmem:[%s4659_s2 + $0x444] ss:$8 sps:$4 sm:$0xff] (!%p201_p3)   ;;  %v3216_v18 = vld [vmem:[%s4659_s2 + $0x240] ss:$8 sps:$4 sm:$0xff] (!%p201_p3)   ;;  %v3218_v20 = vld [vmem:[%s4659_s2 + $0x254] ss:$8 sps:$4 sm:$0xff] (!%p201_p3)  }
   0xd   : > { %1887 = vmatpush1.bf16.msra.mxu0 (!%p201_p3), %v3199_v7  ;;  %914 = vmatprep.subr.bf16.mxu1 (!%p201_p3), %v3200_v8  ;;  %v3217_v19 = vld [vmem:[%s4659_s2 + $0x440] ss:$8 sps:$4 sm:$0xff] (!%p201_p3)   ;;  %v3220_v21 = vld [vmem:[%s4659_s2 + $0x454] ss:$8 sps:$4 sm:$0xff] (!%p201_p3)   ;;  %v3222_v22 = vld [vmem:[%s4659_s2 + $0x250] ss:$8 sps:$4 sm:$0xff] (!%p201_p3)  }
   0xe   : > { %1888 = vmatprep.subr.bf16.mxu0 %v3202_v9  ;;  %v3223_v23 = vld [vmem:[%s4659_s2 + $0x450] ss:$8 sps:$4 sm:$0xff]   ;;  %v3224_v24 = vld [vmem:[%s4659_s2 + $0x264] ss:$8 sps:$4 sm:$0xff]   ;;  %v3228_v26 = vld [vmem:[%s4659_s2 + $0x260] ss:$8 sps:$4 sm:$0xff]  }
   0xf   : > { %v3226_v25 = vld [vmem:[%s4659_s2 + $0x464] ss:$8 sps:$4 sm:$0xff]   ;;  %v3229_v27 = vld [vmem:[%s4659_s2 + $0x460] ss:$8 sps:$4 sm:$0xff]   ;;  %v3230_v28 = vld [vmem:[%s4659_s2 + $0x274] ss:$8 sps:$4 sm:$0xff]  }
  0x10   : > { %915 = vmatpush1.bf16.msra.mxu1 %v3204_v10  ;;  %v3232_v29 = vld [vmem:[%s4659_s2 + $0x474] ss:$8 sps:$4 sm:$0xff]   ;;  %v3234_v30 = vld [vmem:[%s4659_s2 + $0x270] ss:$8 sps:$4 sm:$0xff]   ;;  %v3236_v32 = vld [vmem:[%s4659_s2 + $0x284] ss:$8 sps:$4 sm:$0xff]  }
  0x11   : > { %1889 = vmatpush1.bf16.msra.mxu0 %v3205_v11  ;;  %916 = vmatprep.subr.bf16.mxu1 %v3206_v12  ;;  %v3235_v31 = vld [vmem:[%s4659_s2 + $0x470] ss:$8 sps:$4 sm:$0xff]   ;;  %v3238_v33 = vld [vmem:[%s4659_s2 + $0x484] ss:$8 sps:$4 sm:$0xff]   ;;  %v3240_v34 = vld [vmem:[%s4659_s2 + $0x280] ss:$8 sps:$4 sm:$0xff]  }
  0x12   : > { %1890 = vmatprep.subr.bf16.mxu0 %v3208_v13  ;;  %v3241_v35 = vld [vmem:[%s4659_s2 + $0x480] ss:$8 sps:$4 sm:$0xff]   ;;  %v3242_v36 = vld [vmem:[%s4659_s2 + $0x294] ss:$8 sps:$4 sm:$0xff]   ;;  %s4673_s15 = smov (!%p246_p4, %s3586_s15), 1  ;;  %v3796_v52 = vshrl.u32 %v557_v44, 7 }
  0x13   : > { %v3244_v37 = vld [vmem:[%s4659_s2 + $0x494] ss:$8 sps:$4 sm:$0xff]   ;;  %v3246_v38 = vld [vmem:[%s4659_s2 + $0x290] ss:$8 sps:$4 sm:$0xff]   ;;  %v3248_v40 = vld [vmem:[%s4659_s2 + $0x2a4] ss:$8 sps:$4 sm:$0xff]  }
  0x14   : > { %917 = vmatpush1.bf16.msra.mxu1 %v3210_v14  ;;  %v3247_v39 = vld [vmem:[%s4659_s2 + $0x490] ss:$8 sps:$4 sm:$0xff]   ;;  %v3250_v41 = vld [vmem:[%s4659_s2 + $0x4a4] ss:$8 sps:$4 sm:$0xff]   ;;  %s3132_s11 = sshll.u32 %s4673_s15, 6  ;;  %s3133_s7 = sshll.u32 %s4673_s15, 4 }
  0x15   : > { %1891 = vmatpush1.bf16.msra.mxu0 %v3211_v15  ;;  %918 = vmatprep.subr.bf16.mxu1 %v3212_v16  ;;  %vm422_vm0 = vsmask.f32 1280  ;;  %v3596_v42 = vmov 1983009808   ;;  %v3252_v45 = vld [vmem:[%s4659_s2 + $0x2a0] ss:$8 sps:$4 sm:$0xff]   ;;  %s3785_s24 = scalar_lea.vmem %s4657_s0, %s3132_s11  ;;  %s3873_s25 = scalar_lea.vmem %s4658_s1, %s3133_s7 }
  0x16   : > { %1892 = vmatprep.subr.bf16.mxu0 %v3214_v17  ;;  %v555_v43 = vunpack.c.l.s4 %v3596_v42  ;;  %v3253_v46 = vld [vmem:[%s4659_s2 + $0x4a0] ss:$8 sps:$4 sm:$0xff]   ;;  %vm423_vm1 = vsmask.f32 3336  ;;  %v3254_v47 = vld [vmem:[%s4659_s2 + $0x2b4] ss:$8 sps:$4 sm:$0xff]  }
  0x17   : > { %vm425_vm2 = vsmask.f32 5392  ;;  %v3256_v48 = vld [vmem:[%s4659_s2 + $0x4b4] ss:$8 sps:$4 sm:$0xff]   ;;  %vm427_vm3 = vsmask.f32 7448  ;;  %vm3829_vm4 = vmor %vm422_vm0, %vm423_vm1 }
  0x18   : > { %919 = vmatpush1.bf16.msra.mxu1 %v3216_v18  ;;  %v3258_v49 = vld [vmem:[%s4659_s2 + $0x2b0] ss:$8 sps:$4 sm:$0xff]   ;;  %v556_v51 = vunpack.c.0.s8 %v555_v43  ;;  %v3260_v53 = vld [vmem:[%s4659_s2 + $0x2c4] ss:$8 sps:$4 sm:$0xff]   ;;  %v3264_v60 = vld [vmem:[%s4659_s2 + $0x2c0] ss:$8 sps:$4 sm:$0xff]  }
  0x19   : > { %1893 = vmatpush1.bf16.msra.mxu0 %v3217_v19  ;;  %920 = vmatprep.subr.bf16.mxu1 %v3218_v20  ;;  %v3259_v50 = vld [vmem:[%s4659_s2 + $0x4b0] ss:$8 sps:$4 sm:$0xff]   ;;  %v3802_v54 = vld.sshfl [vmem:[%s3785_s24] sm:$0x5f pattern:$0x76325410]  ;;  %vm3864_vm5 = vmor %vm3829_vm4, %vm425_vm2 }
  0x1a   : > { %1894 = vmatprep.subr.bf16.mxu0 %v3220_v21  ;;  %v3805_v55 = vld.sshfl [vmem:[%s3785_s24 + $0x8] sm:$0x5f pattern:$0x76325410]  ;;  %v3834_v0 = vsub.s32 %v556_v51, %v3796_v52  ;;  %v3266_v1 = vld [vmem:[%s4659_s2 + $0x2d4] ss:$8 sps:$4 sm:$0xff]   ;;  %vm3899_vm6 = vmor %vm3864_vm5, %vm427_vm3 }
  0x1b   : > { %v3262_v56 = vld [vmem:[%s4659_s2 + $0x4c4] ss:$8 sps:$4 sm:$0xff]   ;;  %v3812_v57 = vld.sshfl [vmem:[%s3785_s24 + $0x10] sm:$0x5f pattern:$0x76325410]  ;;  %v308_v58 = vcombine.low %v3802_v54, %v3805_v55  ;;  %v418_v59 = vcombine.high %v3802_v54, %v3805_v55 }
  0x1c   : > { %921 = vmatpush1.bf16.msra.mxu1 %v3222_v22  ;;  %v3265_v61 = vld [vmem:[%s4659_s2 + $0x4c0] ss:$8 sps:$4 sm:$0xff]   ;;  %v3825_v62 = vld.sshfl [vmem:[%s3785_s24 + $0x18] sm:$0x5f pattern:$0x76325410] }
  0x1d   : > { %1895 = vmatpush1.bf16.msra.mxu0 %v3223_v23  ;;  %922 = vmatprep.subr.bf16.mxu1 %v3224_v24  ;;  %v3268_v2 = vld [vmem:[%s4659_s2 + $0x4d4] ss:$8 sps:$4 sm:$0xff]   ;;  %v3843_v3 = vld.sshfl [vmem:[%s3785_s24 + $0x20] sm:$0x5f pattern:$0x76325410]  ;;  %v323_v4 = vcombine.low %v3812_v57, %v3825_v62  ;;  %v419_v8 = vcombine.high %v3812_v57, %v3825_v62 }
  0x1e   : > { %1896 = vmatprep.subr.bf16.mxu0 %v3226_v25  ;;  %v430_v5 = vshrl.u32 %v308_v58, 16  ;;  %v433_v6 = vshll.u32 %v308_v58, 16  ;;  %v3848_v7 = vld.sshfl [vmem:[%s3785_s24 + $0x28] sm:$0x5f pattern:$0x76325410]  ;;  %v2934_v10 = vcombine.low %v3812_v57, %v3843_v3 }
  0x1f   : > { %v439_v9 = vshll.u32 %v418_v59, 16  ;;  %v3855_v11 = vld.sshfl [vmem:[%s3785_s24 + $0x30] sm:$0x5f pattern:$0x76325410]  ;;  %v338_v12 = vcombine.low %v3843_v3, %v3848_v7  ;;  %v420_v13 = vcombine.high %v3843_v3, %v3848_v7  ;;  %v444_v19 = vshrl.u32 %v323_v4, 16 }
  0x20   : > { %923 = vmatpush1.bf16.msra.mxu1 %v3228_v26  ;;  %v432_v15 = vrot.slane %v430_v5, 6  ;;  %v435_v16 = vrot.slane %v433_v6, 7  ;;  %v3876_v17 = vld.sshfl [vmem:[%s3785_s24 + $0x38] sm:$0x5f pattern:$0x76325410]  ;;  %v3879_v20 = vrot.slane %v2934_v10, %v3834_v0  ;;  %v2935_v21 = vcombine.low %v3825_v62, %v3848_v7 }
  0x21   : > { %1897 = vmatpush1.bf16.msra.mxu0 %v3229_v27  ;;  %924 = vmatprep.subr.bf16.mxu1 %v3230_v28  ;;  %v441_v18 = vrot.slane %v439_v9, 7  ;;  %v3270_v22 = vld [vmem:[%s4659_s2 + $0x2d0] ss:$8 sps:$4 sm:$0xff]   ;;  %v353_v24 = vcombine.low %v3855_v11, %v3876_v17  ;;  %v421_v25 = vcombine.high %v3855_v11, %v3876_v17  ;;  %v447_v27 = vshll.u32 %v323_v4, 16  ;;  %v3272_v28 = vld [vmem:[%s4659_s2 + $0x2e4] ss:$8 sps:$4 sm:$0xff]  }
  0x22   : > { %1898 = vmatprep.subr.bf16.mxu0 %v3232_v29  ;;  %v3271_v23 = vld [vmem:[%s4659_s2 + $0x4d0] ss:$8 sps:$4 sm:$0xff]   ;;  %v436_v26 = vor.u32 %v435_v16, %v432_v15  ;;  %v3278_v51 = vld [vmem:[%s4659_s2 + $0x2f4] ss:$8 sps:$4 sm:$0xff]   ;;  %s3134_s9 = sshll.u32 %s4673_s15, 5 }
  0x23   : > { %v475_v44 = vshll.u32 %v353_v24, 16  ;;  %v481_v58 = vshll.u32 %v421_v25, 16  ;;  %v3282_v9 = vld [vmem:[%s4659_s2 + $0x2f0] ss:$8 sps:$4 sm:$0xff]   ;;  %s274_s12 = scalar_lea.vmem %s4661_s4, %s3134_s9 }
  0x24   : > { %925 = vmatpush1.bf16.msra.mxu1 %v3234_v30  ;;  %v446_v30 = vrot.slane %v444_v19, 6  ;;  %v3283_v15 = vld [vmem:[%s4659_s2 + $0x4f0] ss:$8 sps:$4 sm:$0xff]  }
  0x25   : > { %1899 = vmatpush1.bf16.msra.mxu0 %v3235_v31  ;;  %926 = vmatprep.subr.bf16.mxu1 %v3236_v32  ;;  %v453_v31 = vshll.u32 %v419_v8, 16  ;;  %v458_v32 = vshrl.u32 %v338_v12, 16  ;;  %v483_v6 = vrot.slane %v481_v58, 7  ;;  %v3301_v58 = vld [vmem:[%s4659_s2 + $0x524] ss:$8 sps:$4 sm:$0xff]  }
  0x26   : > { %1900 = vmatprep.subr.bf16.mxu0 %v3238_v33  ;;  %v461_v33 = vshll.u32 %v338_v12, 16  ;;  %v3290_v29 = vld [vmem:[%s4659_s2 + $0x310] ss:$8 sps:$4 sm:$0xff]  }
  0x27   : > { %v460_v42 = vrot.slane %v458_v32, 6 }
  0x28   : > { %927 = vmatpush1.bf16.msra.mxu1 %v3240_v34  ;;  %v2868_v34 = vld.sshfl [vmem:[%s3873_s25] sm:$0x5f pattern:$0x76325410]  ;;  %v463_v43 = vrot.slane %v461_v33, 7 }
  0x29   : > { %1901 = vmatpush1.bf16.msra.mxu0 %v3241_v35  ;;  %928 = vmatprep.subr.bf16.mxu1 %v3242_v36  ;;  %v3274_v35 = vld [vmem:[%s4659_s2 + $0x4e4] ss:$8 sps:$4 sm:$0xff]   ;;  %v437_v36 = vrot.slane %v436_v26, 2  ;;  %v2936_v63 = vcombine.low %v3855_v11, %v2868_v34 }
  0x2a   : > { %1902 = vmatprep.subr.bf16.mxu0 %v3244_v37  ;;  %v449_v37 = vrot.slane %v447_v27, 7  ;;  %v3289_v27 = vld [vmem:[%s4659_s2 + $0x504] ss:$8 sps:$4 sm:$0xff]  }
  0x2b   : > { %v1548_v12 = vrot.slane %v2936_v63, %v3834_v0  ;;  %v3298_v63 = vld [vmem:[%s4659_s2 + $0x324] ss:$8 sps:$4 sm:$0xff]  }
  0x2c   : > { %929 = vmatpush1.bf16.msra.mxu1 %v3246_v38  ;;  %v467_v38 = vshll.u32 %v420_v13, 16 }
  0x2d   : > { %1903 = vmatpush1.bf16.msra.mxu0 %v3247_v39  ;;  %930 = vmatprep.subr.bf16.mxu1 %v3248_v40  ;;  %v472_v39 = vshrl.u32 %v353_v24, 16  ;;  %v3276_v40 = vld [vmem:[%s4659_s2 + $0x2e0] ss:$8 sps:$4 sm:$0xff]   ;;  %v1557_v24 = vcombine.high %v3879_v20, %v1548_v12 }
  0x2e   : > { %1904 = vmatprep.subr.bf16.mxu0 %v3250_v41  ;;  %v455_v41 = vrot.slane %v453_v31, 7  ;;  %v1556_v31 = vcombine.low %v3879_v20, %v1548_v12  ;;  %v3305_v12 = vld [vmem:[%s4659_s2 + $0x530] ss:$8 sps:$4 sm:$0xff]  }
  0x2f   : > { %1916 = vmatprep.mubr.bf16.mxu0 %v1557_v24  ;;  %v3317_v24 = vld [vmem:[%s4659_s2 + $0x550] ss:$8 sps:$4 sm:$0xff]  }
  0x30   : > { %931 = vmatpush1.bf16.msra.mxu1 %v3252_v45  ;;  %v442_v45 = vsel %vm3899_vm6, %v437_v36, %v441_v18  ;;  %v3965_v36 = vrot.slane %v2935_v21, %v3834_v0  ;;  %v3295_v21 = vld [vmem:[%s4659_s2 + $0x514] ss:$8 sps:$4 sm:$0xff]  }
  0x31   : > { %1905 = vmatpush1.bf16.msra.mxu0 %v3253_v46  ;;  %932 = vmatprep.subr.bf16.mxu1 %v3254_v47  ;;  %v450_v46 = vor.u32 %v449_v37, %v446_v30  ;;  %v469_v47 = vrot.slane %v467_v38, 7  ;;  %v3287_v37 = vld [vmem:[%s4659_s2 + $0x500] ss:$8 sps:$4 sm:$0xff]  }
  0x32   : > { %1906 = vmatprep.subr.bf16.mxu0 %v3256_v48  ;;  %v474_v48 = vrot.slane %v472_v39, 6  ;;  %v2800_v39 = vcombine.low %v3802_v54, %v3812_v57  ;;  %v3284_v54 = vld [vmem:[%s4659_s2 + $0x300] ss:$8 sps:$4 sm:$0xff]  }
  0x34   : > { %933 = vmatpush1.bf16.msra.mxu1 %v3258_v49  ;;  %v2869_v49 = vld.sshfl [vmem:[%s3873_s25 + $0x8] sm:$0x5f pattern:$0x76325410] }
  0x35   : > { %1907 = vmatpush1.bf16.msra.mxu0 %v3259_v50  ;;  %934 = vmatprep.subr.bf16.mxu1 %v3260_v53  ;;  %v3277_v50 = vld [vmem:[%s4659_s2 + $0x4e0] ss:$8 sps:$4 sm:$0xff]   ;;  %v464_v53 = vor.u32 %v463_v43, %v460_v42  ;;  %v1458_v59 = vcombine.low %v2868_v34, %v2869_v49 }
  0x36   : > { %1908 = vmatprep.subr.bf16.mxu0 %v3262_v56  ;;  %v477_v56 = vrot.slane %v475_v44, 7 }
  0x37   : > { %v465_v4 = vrot.slane %v464_v53, 2  ;;  %v1976_v8 = vshrl.u32 %v1458_v59, 16  ;;  %v1979_v13 = vshll.u32 %v1458_v59, 16 }
  0x38   : > { %935 = vmatpush1.bf16.msra.mxu1 %v3264_v60  ;;  %v3280_v60 = vld [vmem:[%s4659_s2 + $0x4f4] ss:$8 sps:$4 sm:$0xff]   ;;  %v478_v5 = vor.u32 %v477_v56, %v474_v48 }
  0x39   : > { %1909 = vmatpush1.bf16.msra.mxu0 %v3265_v61  ;;  %936 = vmatprep.subr.bf16.mxu1 %v3266_v1  ;;  %v451_v61 = vrot.slane %v450_v46, 2  ;;  %v1974_v1 = vcombine.high %v2868_v34, %v2869_v49  ;;  %v3937_v16 = vsel %vm3899_vm6, %v465_v4, %v469_v47  ;;  %v1978_v25 = vrot.slane %v1976_v8, 6  ;;  %v3292_v48 = vld [vmem:[%s4659_s2 + $0x314] ss:$8 sps:$4 sm:$0xff]   ;;  %v3296_v8 = vld [vmem:[%s4659_s2 + $0x320] ss:$8 sps:$4 sm:$0xff]  }
  0x3a   : > { %1910 = vmatprep.subr.bf16.mxu0 %v3268_v2  ;;  %v2937_v2 = vcombine.low %v3876_v17, %v2869_v49  ;;  %v479_v18 = vrot.slane %v478_v5, 2  ;;  %v1981_v26 = vrot.slane %v1979_v13, 7  ;;  %v3307_v4 = vld [vmem:[%s4659_s2 + $0x534] ss:$8 sps:$4 sm:$0xff]   ;;  %v3313_v13 = vld [vmem:[%s4659_s2 + $0x544] ss:$8 sps:$4 sm:$0xff]  }
  0x3b   : > { %v3929_v10 = vsel %vm3899_vm6, %v451_v61, %v455_v41  ;;  %v1985_v14 = vshll.u32 %v1974_v1, 16 }
  0x3c   : > { %937 = vmatpush1.bf16.msra.mxu1 %v3270_v22  ;;  %v550_v19 = vcombine.low %v442_v45, %v3929_v10  ;;  %v551_v22 = vcombine.high %v442_v45, %v3929_v10  ;;  %v1982_v34 = vor.u32 %v1981_v26, %v1978_v25  ;;  %v3971_v38 = vrot.slane %v2937_v2, %v3834_v0  ;;  %v3299_v2 = vld [vmem:[%s4659_s2 + $0x520] ss:$8 sps:$4 sm:$0xff]   ;;  %v3325_v25 = vld [vmem:[%s4659_s2 + $0x564] ss:$8 sps:$4 sm:$0xff]   ;;  %v3314_v26 = vld [vmem:[%s4659_s2 + $0x350] ss:$8 sps:$4 sm:$0xff]  }
  0x3d   : > { %1911 = vmatpush1.bf16.msra.mxu0 %v3271_v23  ;;  %938 = vmatprep.subr.bf16.mxu1 %v3272_v28  ;;  %v3286_v23 = vld [vmem:[%s4659_s2 + $0x304] ss:$8 sps:$4 sm:$0xff]   ;;  %v3950_v28 = vsel %vm3899_vm6, %v479_v18, %v483_v6  ;;  %v1987_v20 = vrot.slane %v1985_v14, 7  ;;  %v2054_v44 = vcombine.low %v3929_v10, %v3937_v16  ;;  %v3302_v14 = vld [vmem:[%s4659_s2 + $0x330] ss:$8 sps:$4 sm:$0xff]  }
  0x3e   : > { %1912 = vmatprep.subr.bf16.mxu0 %v3274_v35  ;;  %v560_v30 = vrot.slane %v550_v19, %v3834_v0  ;;  %v3955_v32 = vrot.slane %v551_v22, %v3834_v0  ;;  %v552_v33 = vcombine.low %v3937_v16, %v3950_v28  ;;  %v553_v35 = vcombine.high %v3937_v16, %v3950_v28  ;;  %v3311_v18 = vld [vmem:[%s4659_s2 + $0x540] ss:$8 sps:$4 sm:$0xff]   ;;  %v3319_v19 = vld [vmem:[%s4659_s2 + $0x554] ss:$8 sps:$4 sm:$0xff]  }
  0x3f   : > { %v1983_v43 = vrot.slane %v1982_v34, 2  ;;  %v1559_v57 = vcombine.high %v3965_v36, %v3971_v38  ;;  %v3308_v22 = vld [vmem:[%s4659_s2 + $0x340] ss:$8 sps:$4 sm:$0xff]   ;;  %v3328_v34 = vld [vmem:[%s4659_s2 + $0x374] ss:$8 sps:$4 sm:$0xff]  }
  0x40   : > { %939 = vmatpush1.bf16.msra.mxu1 %v3276_v40  ;;  %v2802_v40 = vcombine.low %v3843_v3, %v3855_v11  ;;  %v574_v41 = vrot.slane %v552_v33, %v3834_v0  ;;  %v3982_v42 = vrot.slane %v553_v35, %v3834_v0  ;;  %v1558_v3 = vcombine.low %v3965_v36, %v3971_v38  ;;  %v3320_v33 = vld [vmem:[%s4659_s2 + $0x360] ss:$8 sps:$4 sm:$0xff]   ;;  %v3329_v35 = vld [vmem:[%s4659_s2 + $0x570] ss:$8 sps:$4 sm:$0xff]   ;;  %v3397_v38 = vld [vmem:[%s4659_s2 + $0x624] ss:$8 sps:$4 sm:$0xff]  }
  0x41   : > { %1913 = vmatpush1.bf16.msra.mxu0 %v3277_v50  ;;  %940 = vmatprep.subr.bf16.mxu1 %v3278_v51  ;;  %v3994_v11 = vrot.slane %v2800_v39, %v3834_v0  ;;  %v3293_v51 = vld [vmem:[%s4659_s2 + $0x510] ss:$8 sps:$4 sm:$0xff]   ;;  %v4013_v56 = vsel %vm3899_vm6, %v1983_v43, %v1987_v20  ;;  %v3337_v20 = vld [vmem:[%s4659_s2 + $0x584] ss:$8 sps:$4 sm:$0xff]   ;;  %v3340_v43 = vld [vmem:[%s4659_s2 + $0x394] ss:$8 sps:$4 sm:$0xff]  }
  0x42   : > { %1914 = vmatprep.subr.bf16.mxu0 %v3280_v60  ;;  %v3997_v45 = vrot.slane %v2802_v40, %v3834_v0  ;;  %v583_v46 = vcombine.high %v560_v30, %v574_v41  ;;  %v582_v47 = vcombine.low %v560_v30, %v574_v41  ;;  %v585_v49 = vcombine.high %v3955_v32, %v3982_v42  ;;  %v3323_v30 = vld [vmem:[%s4659_s2 + $0x560] ss:$8 sps:$4 sm:$0xff]   ;;  %v3334_v39 = vld [vmem:[%s4659_s2 + $0x384] ss:$8 sps:$4 sm:$0xff]   ;;  %v3343_v41 = vld [vmem:[%s4659_s2 + $0x594] ss:$8 sps:$4 sm:$0xff]  }
  0x43   : > { %v584_v50 = vcombine.low %v3955_v32, %v3982_v42  ;;  %v2056_v59 = vcombine.low %v3950_v28, %v4013_v56  ;;  %v4021_v60 = vrot.slane %v2054_v44, %v3834_v0  ;;  %v3335_v40 = vld [vmem:[%s4659_s2 + $0x580] ss:$8 sps:$4 sm:$0xff]   ;;  %v3341_v44 = vld [vmem:[%s4659_s2 + $0x590] ss:$8 sps:$4 sm:$0xff]   ;;  %v3403_v42 = vld [vmem:[%s4659_s2 + $0x634] ss:$8 sps:$4 sm:$0xff]  }
  0x44   : > { %941 = vmatpush1.bf16.msra.mxu1 %v3282_v9  ;;  %v1029_v53 = vcombine.high %v3994_v11, %v3997_v45  ;;  %942 = vmatprep.mubr.bf16.mxu1 %v583_v46  ;;  %v1028_v61 = vcombine.low %v3994_v11, %v3997_v45  ;;  %v3304_v9 = vld [vmem:[%s4659_s2 + $0x334] ss:$8 sps:$4 sm:$0xff]   ;;  %v3346_v46 = vld [vmem:[%s4659_s2 + $0x3a4] ss:$8 sps:$4 sm:$0xff]   ;;  %v3395_v32 = vld [vmem:[%s4659_s2 + $0x620] ss:$8 sps:$4 sm:$0xff]  }
  0x45   : > { %1915 = vmatpush1.bf16.msra.mxu0 %v3283_v15  ;;  %953 = vmatprep.subr.bf16.mxu1 %v3286_v23  ;;  %v4032_v1 = vrot.slane %v2056_v59, %v3834_v0  ;;  %v3310_v15 = vld [vmem:[%s4659_s2 + $0x344] ss:$8 sps:$4 sm:$0xff]   ;;  %v3316_v23 = vld [vmem:[%s4659_s2 + $0x354] ss:$8 sps:$4 sm:$0xff]   ;;  %v3488_v45 = vld [vmem:[%s4659_s2 + $0x120] ss:$8 sps:$4 sm:$0xff]  }
  0x46   : > { %1927 = vmatprep.subr.bf16.mxu0 %v3289_v27  ;;  %v3322_v27 = vld [vmem:[%s4659_s2 + $0x364] ss:$8 sps:$4 sm:$0xff]   ;;  %v3499_v11 = vld [vmem:[%s4659_s2 + $0x734] ss:$8 sps:$4 sm:$0xff]  }
  0x47   : > { %943 = vmatmul.mubr.bf16.vlgmr.msra.gmra.mrb[0].mxu1 %v582_v47  ;;  %v2087_v5 = vcombine.high %v4021_v60, %v4032_v1  ;;  %v2086_v6 = vcombine.low %v4021_v60, %v4032_v1  ;;  %v3347_v47 = vld [vmem:[%s4659_s2 + $0x5a0] ss:$8 sps:$4 sm:$0xff]   ;;  %v3361_v59 = vld [vmem:[%s4659_s2 + $0x5c4] ss:$8 sps:$4 sm:$0xff]   ;;  %v3482_v60 = vld [vmem:[%s4659_s2 + $0x110] ss:$8 sps:$4 sm:$0xff]  }
  0x48   : > { %1917 = vmatmul.mubr.bf16.vlgmr.msra.gmra.mrb[0].mxu0 %v1556_v31  ;;  %954 = vmatpush1.bf16.msra.mxu1 %v3284_v54  ;;  %v3331_v31 = vld [vmem:[%s4659_s2 + $0x574] ss:$8 sps:$4 sm:$0xff]   ;;  %v3349_v54 = vld [vmem:[%s4659_s2 + $0x5a4] ss:$8 sps:$4 sm:$0xff]  }
  0x49   : > { %1928 = vmatpush1.bf16.msra.mxu0 %v3287_v37  ;;  %1959 = vmatprep.mubr.bf16.mxu0 %v1559_v57  ;;  %v3326_v37 = vld [vmem:[%s4659_s2 + $0x370] ss:$8 sps:$4 sm:$0xff]   ;;  %v3490_v1 = vld [vmem:[%s4659_s2 + $0x124] ss:$8 sps:$4 sm:$0xff]  }
  0x4a   : > { %1929 = vmatprep.subr.bf16.mxu0 %v3295_v21  ;;  %985 = vmatprep.mubr.bf16.mxu1 %v585_v49  ;;  %v3332_v21 = vld [vmem:[%s4659_s2 + $0x380] ss:$8 sps:$4 sm:$0xff]   ;;  %v3338_v57 = vld [vmem:[%s4659_s2 + $0x390] ss:$8 sps:$4 sm:$0xff]  }
  0x4b   : > { %955 = vmatprep.subr.bf16.mxu1 %v3292_v48  ;;  %v3355_v48 = vld [vmem:[%s4659_s2 + $0x5b4] ss:$8 sps:$4 sm:$0xff]   ;;  %v3344_v49 = vld [vmem:[%s4659_s2 + $0x3a0] ss:$8 sps:$4 sm:$0xff]  }
  0x4c   : > { %956 = vmatpush1.bf16.msra.mxu1 %v3290_v29  ;;  %v3350_v29 = vld [vmem:[%s4659_s2 + $0x3b0] ss:$8 sps:$4 sm:$0xff]  }
  0x4d   : > { %1930 = vmatpush1.bf16.msra.mxu0 %v3293_v51  ;;  %957 = vmatprep.subr.bf16.mxu1 %v3298_v63  ;;  %v3352_v51 = vld [vmem:[%s4659_s2 + $0x3b4] ss:$8 sps:$4 sm:$0xff]   ;;  %v3358_v63 = vld [vmem:[%s4659_s2 + $0x3c4] ss:$8 sps:$4 sm:$0xff]  }
  0x4e   : > { %1931 = vmatprep.subr.bf16.mxu0 %v3301_v58  ;;  %v3353_v58 = vld [vmem:[%s4659_s2 + $0x5b0] ss:$8 sps:$4 sm:$0xff]  }
  0x50   : > { %958 = vmatpush1.bf16.msra.mxu1 %v3296_v8  ;;  %v3356_v8 = vld [vmem:[%s4659_s2 + $0x3c0] ss:$8 sps:$4 sm:$0xff]  }
  0x51   : > { %1932 = vmatpush1.bf16.msra.mxu0 %v3299_v2  ;;  %959 = vmatprep.subr.bf16.mxu1 %v3304_v9  ;;  %v3359_v2 = vld [vmem:[%s4659_s2 + $0x5c0] ss:$8 sps:$4 sm:$0xff]   ;;  %v3364_v9 = vld [vmem:[%s4659_s2 + $0x3d4] ss:$8 sps:$4 sm:$0xff]  }
  0x52   : > { %1933 = vmatprep.subr.bf16.mxu0 %v3307_v4  ;;  %v3367_v4 = vld [vmem:[%s4659_s2 + $0x5d4] ss:$8 sps:$4 sm:$0xff]  }
  0x54   : > { %960 = vmatpush1.bf16.msra.mxu1 %v3302_v14  ;;  %v3362_v14 = vld [vmem:[%s4659_s2 + $0x3d0] ss:$8 sps:$4 sm:$0xff]  }
  0x55   : > { %1934 = vmatpush1.bf16.msra.mxu0 %v3305_v12  ;;  %961 = vmatprep.subr.bf16.mxu1 %v3310_v15  ;;  %v3365_v12 = vld [vmem:[%s4659_s2 + $0x5d0] ss:$8 sps:$4 sm:$0xff]   ;;  %v3370_v15 = vld [vmem:[%s4659_s2 + $0x3e4] ss:$8 sps:$4 sm:$0xff]  }
  0x56   : > { %1935 = vmatprep.subr.bf16.mxu0 %v3313_v13  ;;  %v3373_v13 = vld [vmem:[%s4659_s2 + $0x5e4] ss:$8 sps:$4 sm:$0xff]  }
  0x58   : > { %962 = vmatpush1.bf16.msra.mxu1 %v3308_v22  ;;  %v3368_v22 = vld [vmem:[%s4659_s2 + $0x3e0] ss:$8 sps:$4 sm:$0xff]  }
  0x59   : > { %1936 = vmatpush1.bf16.msra.mxu0 %v3311_v18  ;;  %963 = vmatprep.subr.bf16.mxu1 %v3316_v23  ;;  %v3371_v18 = vld [vmem:[%s4659_s2 + $0x5e0] ss:$8 sps:$4 sm:$0xff]   ;;  %v3376_v23 = vld [vmem:[%s4659_s2 + $0x3f4] ss:$8 sps:$4 sm:$0xff]  }
  0x5a   : > { %1937 = vmatprep.subr.bf16.mxu0 %v3319_v19  ;;  %v3379_v19 = vld [vmem:[%s4659_s2 + $0x5f4] ss:$8 sps:$4 sm:$0xff]  }
  0x5c   : > { %964 = vmatpush1.bf16.msra.mxu1 %v3314_v26  ;;  %v3374_v26 = vld [vmem:[%s4659_s2 + $0x3f0] ss:$8 sps:$4 sm:$0xff]  }
  0x5d   : > { %1938 = vmatpush1.bf16.msra.mxu0 %v3317_v24  ;;  %965 = vmatprep.subr.bf16.mxu1 %v3322_v27  ;;  %v3377_v24 = vld [vmem:[%s4659_s2 + $0x5f0] ss:$8 sps:$4 sm:$0xff]   ;;  %v3382_v27 = vld [vmem:[%s4659_s2 + $0x4] ss:$8 sps:$4 sm:$0xff]  }
  0x5e   : > { %1939 = vmatprep.subr.bf16.mxu0 %v3325_v25  ;;  %v3385_v25 = vld [vmem:[%s4659_s2 + $0x604] ss:$8 sps:$4 sm:$0xff]  }
  0x60   : > { %966 = vmatpush1.bf16.msra.mxu1 %v3320_v33  ;;  %v2055_v33 = vcombine.high %v3929_v10, %v3937_v16  ;;  %v3380_v16 = vld [vmem:[%s4659_s2] ss:$8 sps:$4 sm:$0xff]  }
  0x61   : > { %1940 = vmatpush1.bf16.msra.mxu0 %v3323_v30  ;;  %967 = vmatprep.subr.bf16.mxu1 %v3328_v34  ;;  %v2801_v30 = vcombine.low %v3805_v55, %v3825_v62  ;;  %v2057_v34 = vcombine.high %v3950_v28, %v4013_v56  ;;  %v3391_v55 = vld [vmem:[%s4659_s2 + $0x614] ss:$8 sps:$4 sm:$0xff]  }
  0x62   : > { %1941 = vmatprep.subr.bf16.mxu0 %v3331_v31  ;;  %v2803_v31 = vcombine.low %v3848_v7, %v3876_v17  ;;  %v4227_v17 = vrot.slane %v2055_v33, %v3834_v0  ;;  %v3388_v28 = vld [vmem:[%s4659_s2 + $0x14] ss:$8 sps:$4 sm:$0xff]   ;;  %v3455_v33 = vld [vmem:[%s4659_s2 + $0x6c0] ss:$8 sps:$4 sm:$0xff]  }
  0x63   : > { %v4221_v62 = vrot.slane %v2801_v30, %v3834_v0  ;;  %v4230_v10 = vrot.slane %v2057_v34, %v3834_v0  ;;  %v3446_v30 = vld [vmem:[%s4659_s2 + $0xb0] ss:$8 sps:$4 sm:$0xff]   ;;  %v3463_v34 = vld [vmem:[%s4659_s2 + $0x6d4] ss:$8 sps:$4 sm:$0xff]  }
  0x64   : > { %968 = vmatpush1.bf16.msra.mxu1 %v3326_v37  ;;  %v4224_v7 = vrot.slane %v2803_v31, %v3834_v0  ;;  %v3394_v37 = vld [vmem:[%s4659_s2 + $0x24] ss:$8 sps:$4 sm:$0xff]  }
  0x65   : > { %1942 = vmatpush1.bf16.msra.mxu0 %v3329_v35  ;;  %969 = vmatprep.subr.bf16.mxu1 %v3334_v39  ;;  %v3383_v35 = vld [vmem:[%s4659_s2 + $0x600] ss:$8 sps:$4 sm:$0xff]   ;;  %v2089_v56 = vcombine.high %v4227_v17, %v4230_v10  ;;  %v2088_v36 = vcombine.low %v4227_v17, %v4230_v10  ;;  %v3409_v39 = vld [vmem:[%s4659_s2 + $0x644] ss:$8 sps:$4 sm:$0xff]  }
  0x66   : > { %1943 = vmatprep.subr.bf16.mxu0 %v3337_v20  ;;  %v1030_v0 = vcombine.low %v4221_v62, %v4224_v7  ;;  %v3389_v20 = vld [vmem:[%s4659_s2 + $0x610] ss:$8 sps:$4 sm:$0xff]   ;;  %v3454_v31 = vld [vmem:[%s4659_s2 + $0xc4] ss:$8 sps:$4 sm:$0xff]  }
  0x68   : > { %970 = vmatpush1.bf16.msra.mxu1 %v3332_v21  ;;  %v3407_v21 = vld [vmem:[%s4659_s2 + $0x640] ss:$8 sps:$4 sm:$0xff]  }
  0x69   : > { %1944 = vmatpush1.bf16.msra.mxu0 %v3335_v40  ;;  %971 = vmatprep.subr.bf16.mxu1 %v3340_v43  ;;  %v3398_v40 = vld [vmem:[%s4659_s2 + $0x30] ss:$8 sps:$4 sm:$0xff]   ;;  %v3415_v43 = vld [vmem:[%s4659_s2 + $0x654] ss:$8 sps:$4 sm:$0xff]  }
  0x6a   : > { %1945 = vmatprep.subr.bf16.mxu0 %v3343_v41  ;;  %v3406_v41 = vld [vmem:[%s4659_s2 + $0x44] ss:$8 sps:$4 sm:$0xff]  }
  0x6c   : > { %972 = vmatpush1.bf16.msra.mxu1 %v3338_v57  ;;  %v3413_v57 = vld [vmem:[%s4659_s2 + $0x650] ss:$8 sps:$4 sm:$0xff]  }
  0x6d   : > { %1946 = vmatpush1.bf16.msra.mxu0 %v3341_v44  ;;  %973 = vmatprep.subr.bf16.mxu1 %v3346_v46  ;;  %v3404_v44 = vld [vmem:[%s4659_s2 + $0x40] ss:$8 sps:$4 sm:$0xff]   ;;  %v3421_v46 = vld [vmem:[%s4659_s2 + $0x664] ss:$8 sps:$4 sm:$0xff]  }
  0x6e   : > { %1947 = vmatprep.subr.bf16.mxu0 %v3349_v54  ;;  %v3412_v54 = vld [vmem:[%s4659_s2 + $0x54] ss:$8 sps:$4 sm:$0xff]  }
  0x70   : > { %974 = vmatpush1.bf16.msra.mxu1 %v3344_v49  ;;  %v3419_v49 = vld [vmem:[%s4659_s2 + $0x660] ss:$8 sps:$4 sm:$0xff]  }
  0x71   : > { %1948 = vmatpush1.bf16.msra.mxu0 %v3347_v47  ;;  %975 = vmatprep.subr.bf16.mxu1 %v3352_v51  ;;  %v3410_v47 = vld [vmem:[%s4659_s2 + $0x50] ss:$8 sps:$4 sm:$0xff]   ;;  %v3427_v51 = vld [vmem:[%s4659_s2 + $0x674] ss:$8 sps:$4 sm:$0xff]  }
  0x72   : > { %1949 = vmatprep.subr.bf16.mxu0 %v3355_v48  ;;  %v3418_v48 = vld [vmem:[%s4659_s2 + $0x64] ss:$8 sps:$4 sm:$0xff]  }
  0x74   : > { %976 = vmatpush1.bf16.msra.mxu1 %v3350_v29  ;;  %v3425_v29 = vld [vmem:[%s4659_s2 + $0x670] ss:$8 sps:$4 sm:$0xff]  }
  0x75   : > { %1950 = vmatpush1.bf16.msra.mxu0 %v3353_v58  ;;  %977 = vmatprep.subr.bf16.mxu1 %v3358_v63  ;;  %v3416_v58 = vld [vmem:[%s4659_s2 + $0x60] ss:$8 sps:$4 sm:$0xff]   ;;  %v3433_v63 = vld [vmem:[%s4659_s2 + $0x684] ss:$8 sps:$4 sm:$0xff]  }
  0x76   : > { %1951 = vmatprep.subr.bf16.mxu0 %v3361_v59  ;;  %v3424_v59 = vld [vmem:[%s4659_s2 + $0x74] ss:$8 sps:$4 sm:$0xff]  }
  0x78   : > { %978 = vmatpush1.bf16.msra.mxu1 %v3356_v8  ;;  %v3431_v8 = vld [vmem:[%s4659_s2 + $0x680] ss:$8 sps:$4 sm:$0xff]  }
  0x79   : > { %1952 = vmatpush1.bf16.msra.mxu0 %v3359_v2  ;;  %979 = vmatprep.subr.bf16.mxu1 %v3364_v9  ;;  %v3422_v2 = vld [vmem:[%s4659_s2 + $0x70] ss:$8 sps:$4 sm:$0xff]   ;;  %v3439_v9 = vld [vmem:[%s4659_s2 + $0x694] ss:$8 sps:$4 sm:$0xff]  }
  0x7a   : > { %1953 = vmatprep.subr.bf16.mxu0 %v3367_v4  ;;  %v3430_v4 = vld [vmem:[%s4659_s2 + $0x84] ss:$8 sps:$4 sm:$0xff]  }
  0x7c   : > { %980 = vmatpush1.bf16.msra.mxu1 %v3362_v14  ;;  %v3437_v14 = vld [vmem:[%s4659_s2 + $0x690] ss:$8 sps:$4 sm:$0xff]  }
  0x7d   : > { %1954 = vmatpush1.bf16.msra.mxu0 %v3365_v12  ;;  %981 = vmatprep.subr.bf16.mxu1 %v3370_v15  ;;  %v3428_v12 = vld [vmem:[%s4659_s2 + $0x80] ss:$8 sps:$4 sm:$0xff]   ;;  %v3445_v15 = vld [vmem:[%s4659_s2 + $0x6a4] ss:$8 sps:$4 sm:$0xff]  }
  0x7e   : > { %1955 = vmatprep.subr.bf16.mxu0 %v3373_v13  ;;  %v3436_v13 = vld [vmem:[%s4659_s2 + $0x94] ss:$8 sps:$4 sm:$0xff]  }
  0x80   : > { %982 = vmatpush1.bf16.msra.mxu1 %v3368_v22  ;;  %v3443_v22 = vld [vmem:[%s4659_s2 + $0x6a0] ss:$8 sps:$4 sm:$0xff]  }
  0x81   : > { %1956 = vmatpush1.bf16.msra.mxu0 %v3371_v18  ;;  %983 = vmatprep.subr.bf16.mxu1 %v3376_v23  ;;  %v3434_v18 = vld [vmem:[%s4659_s2 + $0x90] ss:$8 sps:$4 sm:$0xff]   ;;  %v3451_v23 = vld [vmem:[%s4659_s2 + $0x6b4] ss:$8 sps:$4 sm:$0xff]  }
  0x82   : > { %1957 = vmatprep.subr.bf16.mxu0 %v3379_v19  ;;  %v3442_v19 = vld [vmem:[%s4659_s2 + $0xa4] ss:$8 sps:$4 sm:$0xff]  }
  0x84   : > { %984 = vmatpush1.bf16.msra.mxu1 %v3374_v26  ;;  %v3449_v26 = vld [vmem:[%s4659_s2 + $0x6b0] ss:$8 sps:$4 sm:$0xff]  }
  0x85   : > { %1958 = vmatpush1.bf16.msra.mxu0 %v3377_v24  ;;  %1356 = vmatprep.subr.bf16.mxu1 %v3382_v27  ;;  %v3440_v24 = vld [vmem:[%s4659_s2 + $0xa0] ss:$8 sps:$4 sm:$0xff]   ;;  %v3457_v27 = vld [vmem:[%s4659_s2 + $0x6c4] ss:$8 sps:$4 sm:$0xff]  }
  0x86   : > { %2414 = vmatprep.subr.bf16.mxu0 %v3385_v25  ;;  %v3448_v25 = vld [vmem:[%s4659_s2 + $0xb4] ss:$8 sps:$4 sm:$0xff]  }
  0x87   : > { %986 = vmatmul.mubr.bf16.vlgmr.msra.gmra.mrb[0].mxu1 %v584_v50  ;;  %v3392_v50 = vld [vmem:[%s4659_s2 + $0x20] ss:$8 sps:$4 sm:$0xff]  }
  0x88   : > { %1960 = vmatmul.mubr.bf16.vlgmr.msra.gmra.mrb[0].mxu0 %v1558_v3  ;;  %v3386_v3 = vld [vmem:[%s4659_s2 + $0x10] ss:$8 sps:$4 sm:$0xff]   ;;  %1357 = vmatpush1.bf16.msra.mxu1 %v3380_v16 }
  0x89   : > { %2415 = vmatpush1.bf16.msra.mxu0 %v3383_v35  ;;  %2446 = vmatprep.mubr.bf16.mxu0 %v2087_v5  ;;  %v3401_v5 = vld [vmem:[%s4659_s2 + $0x630] ss:$8 sps:$4 sm:$0xff]   ;;  %v3452_v35 = vld [vmem:[%s4659_s2 + $0xc0] ss:$8 sps:$4 sm:$0xff]  }
  0x8a   : > { %2416 = vmatprep.subr.bf16.mxu0 %v3391_v55  ;;  %1388 = vmatprep.mubr.bf16.mxu1 %v1029_v53  ;;  %v3400_v53 = vld [vmem:[%s4659_s2 + $0x34] ss:$8 sps:$4 sm:$0xff]   ;;  %v3461_v16 = vld [vmem:[%s4659_s2 + $0x6d0] ss:$8 sps:$4 sm:$0xff]  }
  0x8b   : > { %1358 = vmatprep.subr.bf16.mxu1 %v3388_v28  ;;  %v3460_v55 = vld [vmem:[%s4659_s2 + $0xd4] ss:$8 sps:$4 sm:$0xff]   ;;  %v3469_v28 = vld [vmem:[%s4659_s2 + $0x6e4] ss:$8 sps:$4 sm:$0xff]  }
  0x8c   : > { %1359 = vmatpush1.bf16.msra.mxu1 %v3386_v3  ;;  %v3467_v3 = vld [vmem:[%s4659_s2 + $0x6e0] ss:$8 sps:$4 sm:$0xff]  }
  0x8d   : > { %2417 = vmatpush1.bf16.msra.mxu0 %v3389_v20  ;;  %1360 = vmatprep.subr.bf16.mxu1 %v3394_v37  ;;  %v3458_v20 = vld [vmem:[%s4659_s2 + $0xd0] ss:$8 sps:$4 sm:$0xff]   ;;  %v3475_v37 = vld [vmem:[%s4659_s2 + $0x6f4] ss:$8 sps:$4 sm:$0xff]  }
  0x8e   : > { %2418 = vmatprep.subr.bf16.mxu0 %v3397_v38  ;;  %v3466_v38 = vld [vmem:[%s4659_s2 + $0xe4] ss:$8 sps:$4 sm:$0xff]  }
  0x90   : > { %1361 = vmatpush1.bf16.msra.mxu1 %v3392_v50  ;;  %v3473_v50 = vld [vmem:[%s4659_s2 + $0x6f0] ss:$8 sps:$4 sm:$0xff]  }
  0x91   : > { %2419 = vmatpush1.bf16.msra.mxu0 %v3395_v32  ;;  %1362 = vmatprep.subr.bf16.mxu1 %v3400_v53  ;;  %v3464_v32 = vld [vmem:[%s4659_s2 + $0xe0] ss:$8 sps:$4 sm:$0xff]   ;;  %v3481_v53 = vld [vmem:[%s4659_s2 + $0x704] ss:$8 sps:$4 sm:$0xff]  }
  0x92   : > { %2420 = vmatprep.subr.bf16.mxu0 %v3403_v42  ;;  %v3472_v42 = vld [vmem:[%s4659_s2 + $0xf4] ss:$8 sps:$4 sm:$0xff]  }
  0x94   : > { %1363 = vmatpush1.bf16.msra.mxu1 %v3398_v40  ;;  %v3479_v40 = vld [vmem:[%s4659_s2 + $0x700] ss:$8 sps:$4 sm:$0xff]  }
  0x95   : > { %2421 = vmatpush1.bf16.msra.mxu0 %v3401_v5  ;;  %1364 = vmatprep.subr.bf16.mxu1 %v3406_v41  ;;  %v3470_v5 = vld [vmem:[%s4659_s2 + $0xf0] ss:$8 sps:$4 sm:$0xff]   ;;  %v3487_v41 = vld [vmem:[%s4659_s2 + $0x714] ss:$8 sps:$4 sm:$0xff]  }
  0x96   : > { %2422 = vmatprep.subr.bf16.mxu0 %v3409_v39  ;;  %v3478_v39 = vld [vmem:[%s4659_s2 + $0x104] ss:$8 sps:$4 sm:$0xff]  }
  0x98   : > { %1365 = vmatpush1.bf16.msra.mxu1 %v3404_v44  ;;  %v3484_v44 = vld [vmem:[%s4659_s2 + $0x114] ss:$8 sps:$4 sm:$0xff]  }
  0x99   : > { %2423 = vmatpush1.bf16.msra.mxu0 %v3407_v21  ;;  %1366 = vmatprep.subr.bf16.mxu1 %v3412_v54  ;;  %v3476_v21 = vld [vmem:[%s4659_s2 + $0x100] ss:$8 sps:$4 sm:$0xff]   ;;  %v3485_v54 = vld [vmem:[%s4659_s2 + $0x710] ss:$8 sps:$4 sm:$0xff]  }
  0x9a   : > { %2424 = vmatprep.subr.bf16.mxu0 %v3415_v43  ;;  %v1031_v43 = vcombine.high %v4221_v62, %v4224_v7 }
  0x9c   : > { %1367 = vmatpush1.bf16.msra.mxu1 %v3410_v47  ;;  %v3494_v47 = vld [vmem:[%s4659_s2 + $0x130] ss:$8 sps:$4 sm:$0xff]  }
  0x9d   : > { %2425 = vmatpush1.bf16.msra.mxu0 %v3413_v57  ;;  %1368 = vmatprep.subr.bf16.mxu1 %v3418_v48  ;;  %v3493_v57 = vld [vmem:[%s4659_s2 + $0x724] ss:$8 sps:$4 sm:$0xff]  }
  0x9e   : > { %2426 = vmatprep.subr.bf16.mxu0 %v3421_v46  ;;  %v3505_v46 = vld [vmem:[%s4659_s2 + $0x744] ss:$8 sps:$4 sm:$0xff]  }
  0x9f   : > { %v3502_v48 = vld [vmem:[%s4659_s2 + $0x144] ss:$8 sps:$4 sm:$0xff]  }
  0xa0   : > { %1369 = vmatpush1.bf16.msra.mxu1 %v3416_v58  ;;  %v3500_v58 = vld [vmem:[%s4659_s2 + $0x140] ss:$8 sps:$4 sm:$0xff]  }
  0xa1   : > { %2427 = vmatpush1.bf16.msra.mxu0 %v3419_v49  ;;  %1370 = vmatprep.subr.bf16.mxu1 %v3424_v59  ;;  %v3503_v49 = vld [vmem:[%s4659_s2 + $0x740] ss:$8 sps:$4 sm:$0xff]   ;;  %v3508_v59 = vld [vmem:[%s4659_s2 + $0x154] ss:$8 sps:$4 sm:$0xff]  }
  0xa2   : > { %2428 = vmatprep.subr.bf16.mxu0 %v3427_v51  ;;  %v3511_v51 = vld [vmem:[%s4659_s2 + $0x754] ss:$8 sps:$4 sm:$0xff]  }
  0xa4   : > { %1371 = vmatpush1.bf16.msra.mxu1 %v3422_v2  ;;  %v3506_v2 = vld [vmem:[%s4659_s2 + $0x150] ss:$8 sps:$4 sm:$0xff]  }
  0xa5   : > { %2429 = vmatpush1.bf16.msra.mxu0 %v3425_v29  ;;  %1372 = vmatprep.subr.bf16.mxu1 %v3430_v4  ;;  %v3509_v29 = vld [vmem:[%s4659_s2 + $0x750] ss:$8 sps:$4 sm:$0xff]   ;;  %v3514_v4 = vld [vmem:[%s4659_s2 + $0x164] ss:$8 sps:$4 sm:$0xff]  }
  0xa6   : > { %2430 = vmatprep.subr.bf16.mxu0 %v3433_v63  ;;  %v3517_v63 = vld [vmem:[%s4659_s2 + $0x764] ss:$8 sps:$4 sm:$0xff]  }
  0xa8   : > { %1373 = vmatpush1.bf16.msra.mxu1 %v3428_v12  ;;  %v3512_v12 = vld [vmem:[%s4659_s2 + $0x160] ss:$8 sps:$4 sm:$0xff]  }
  0xa9   : > { %2431 = vmatpush1.bf16.msra.mxu0 %v3431_v8  ;;  %1374 = vmatprep.subr.bf16.mxu1 %v3436_v13  ;;  %v3515_v8 = vld [vmem:[%s4659_s2 + $0x760] ss:$8 sps:$4 sm:$0xff]   ;;  %v3520_v13 = vld [vmem:[%s4659_s2 + $0x174] ss:$8 sps:$4 sm:$0xff]  }
  0xaa   : > { %2432 = vmatprep.subr.bf16.mxu0 %v3439_v9  ;;  %v3523_v9 = vld [vmem:[%s4659_s2 + $0x774] ss:$8 sps:$4 sm:$0xff]  }
  0xac   : > { %1375 = vmatpush1.bf16.msra.mxu1 %v3434_v18  ;;  %v3518_v18 = vld [vmem:[%s4659_s2 + $0x170] ss:$8 sps:$4 sm:$0xff]  }
  0xad   : > { %2433 = vmatpush1.bf16.msra.mxu0 %v3437_v14  ;;  %1376 = vmatprep.subr.bf16.mxu1 %v3442_v19  ;;  %v3521_v14 = vld [vmem:[%s4659_s2 + $0x770] ss:$8 sps:$4 sm:$0xff]   ;;  %v3526_v19 = vld [vmem:[%s4659_s2 + $0x184] ss:$8 sps:$4 sm:$0xff]  }
  0xae   : > { %2434 = vmatprep.subr.bf16.mxu0 %v3445_v15  ;;  %v3529_v15 = vld [vmem:[%s4659_s2 + $0x784] ss:$8 sps:$4 sm:$0xff]  }
  0xb0   : > { %1377 = vmatpush1.bf16.msra.mxu1 %v3440_v24  ;;  %v3524_v24 = vld [vmem:[%s4659_s2 + $0x180] ss:$8 sps:$4 sm:$0xff]  }
  0xb1   : > { %2435 = vmatpush1.bf16.msra.mxu0 %v3443_v22  ;;  %1378 = vmatprep.subr.bf16.mxu1 %v3448_v25  ;;  %v3527_v22 = vld [vmem:[%s4659_s2 + $0x780] ss:$8 sps:$4 sm:$0xff]   ;;  %v3532_v25 = vld [vmem:[%s4659_s2 + $0x194] ss:$8 sps:$4 sm:$0xff]  }
  0xb2   : > { %2436 = vmatprep.subr.bf16.mxu0 %v3451_v23  ;;  %v3535_v23 = vld [vmem:[%s4659_s2 + $0x794] ss:$8 sps:$4 sm:$0xff]  }
  0xb4   : > { %1379 = vmatpush1.bf16.msra.mxu1 %v3446_v30  ;;  %v3530_v30 = vld [vmem:[%s4659_s2 + $0x190] ss:$8 sps:$4 sm:$0xff]  }
  0xb5   : > { %2437 = vmatpush1.bf16.msra.mxu0 %v3449_v26  ;;  %1380 = vmatprep.subr.bf16.mxu1 %v3454_v31  ;;  %v3533_v26 = vld [vmem:[%s4659_s2 + $0x790] ss:$8 sps:$4 sm:$0xff]   ;;  %v3538_v31 = vld [vmem:[%s4659_s2 + $0x1a4] ss:$8 sps:$4 sm:$0xff]  }
  0xb6   : > { %2438 = vmatprep.subr.bf16.mxu0 %v3457_v27  ;;  %v3541_v27 = vld [vmem:[%s4659_s2 + $0x7a4] ss:$8 sps:$4 sm:$0xff]  }
  0xb8   : > { %1381 = vmatpush1.bf16.msra.mxu1 %v3452_v35  ;;  %v3536_v35 = vld [vmem:[%s4659_s2 + $0x1a0] ss:$8 sps:$4 sm:$0xff]  }
  0xb9   : > { %2439 = vmatpush1.bf16.msra.mxu0 %v3455_v33  ;;  %1382 = vmatprep.subr.bf16.mxu1 %v3460_v55  ;;  %v3539_v33 = vld [vmem:[%s4659_s2 + $0x7a0] ss:$8 sps:$4 sm:$0xff]   ;;  %v3544_v55 = vld [vmem:[%s4659_s2 + $0x1b4] ss:$8 sps:$4 sm:$0xff]  }
  0xba   : > { %2440 = vmatprep.subr.bf16.mxu0 %v3463_v34  ;;  %v3547_v34 = vld [vmem:[%s4659_s2 + $0x7b4] ss:$8 sps:$4 sm:$0xff]  }
  0xbc   : > { %1383 = vmatpush1.bf16.msra.mxu1 %v3458_v20  ;;  %v3542_v20 = vld [vmem:[%s4659_s2 + $0x1b0] ss:$8 sps:$4 sm:$0xff]  }
  0xbd   : > { %2441 = vmatpush1.bf16.msra.mxu0 %v3461_v16  ;;  %1384 = vmatprep.subr.bf16.mxu1 %v3466_v38  ;;  %v3545_v16 = vld [vmem:[%s4659_s2 + $0x7b0] ss:$8 sps:$4 sm:$0xff]   ;;  %v3550_v38 = vld [vmem:[%s4659_s2 + $0x1c4] ss:$8 sps:$4 sm:$0xff]  }
  0xbe   : > { %2442 = vmatprep.subr.bf16.mxu0 %v3469_v28  ;;  %v3553_v28 = vld [vmem:[%s4659_s2 + $0x7c4] ss:$8 sps:$4 sm:$0xff]  }
  0xc0   : > { %1385 = vmatpush1.bf16.msra.mxu1 %v3464_v32  ;;  %v3548_v32 = vld [vmem:[%s4659_s2 + $0x1c0] ss:$8 sps:$4 sm:$0xff]  }
  0xc1   : > { %2443 = vmatpush1.bf16.msra.mxu0 %v3467_v3  ;;  %1386 = vmatprep.subr.bf16.mxu1 %v3472_v42  ;;  %v3551_v3 = vld [vmem:[%s4659_s2 + $0x7c0] ss:$8 sps:$4 sm:$0xff]   ;;  %v3556_v42 = vld [vmem:[%s4659_s2 + $0x1d4] ss:$8 sps:$4 sm:$0xff]  }
  0xc2   : > { %2444 = vmatprep.subr.bf16.mxu0 %v3475_v37  ;;  %v3559_v37 = vld [vmem:[%s4659_s2 + $0x7d4] ss:$8 sps:$4 sm:$0xff]  }
  0xc4   : > { %1387 = vmatpush1.bf16.msra.mxu1 %v3470_v5  ;;  %v3554_v5 = vld [vmem:[%s4659_s2 + $0x1d0] ss:$8 sps:$4 sm:$0xff]  }
  0xc5   : > { %2445 = vmatpush1.bf16.msra.mxu0 %v3473_v50  ;;  %1399 = vmatprep.subr.bf16.mxu1 %v3478_v39  ;;  %v3557_v50 = vld [vmem:[%s4659_s2 + $0x7d0] ss:$8 sps:$4 sm:$0xff]   ;;  %v3562_v39 = vld [vmem:[%s4659_s2 + $0x1e4] ss:$8 sps:$4 sm:$0xff]  }
  0xc6   : > { %2457 = vmatprep.subr.bf16.mxu0 %v3481_v53  ;;  %v3565_v53 = vld [vmem:[%s4659_s2 + $0x7e4] ss:$8 sps:$4 sm:$0xff]  }
  0xc7   : > { %1389 = vmatmul.mubr.bf16.vlgmr.msra.gmra.mrb[0].mxu1 %v1028_v61  ;;  %v3496_v61 = vld [vmem:[%s4659_s2 + $0x134] ss:$8 sps:$4 sm:$0xff]  }
  0xc8   : > { %2447 = vmatmul.mubr.bf16.vlgmr.msra.gmra.mrb[0].mxu0 %v2086_v6  ;;  %1400 = vmatpush1.bf16.msra.mxu1 %v3476_v21  ;;  %v3491_v6 = vld [vmem:[%s4659_s2 + $0x720] ss:$8 sps:$4 sm:$0xff]  }
  0xc9   : > { %2458 = vmatpush1.bf16.msra.mxu0 %v3479_v40  ;;  %2489 = vmatprep.mubr.bf16.mxu0 %v2089_v56  ;;  %v3497_v56 = vld [vmem:[%s4659_s2 + $0x730] ss:$8 sps:$4 sm:$0xff]   ;;  %v3563_v40 = vld [vmem:[%s4659_s2 + $0x7e0] ss:$8 sps:$4 sm:$0xff]  }
  0xca   : > { %2459 = vmatprep.subr.bf16.mxu0 %v3487_v41  ;;  %1431 = vmatprep.mubr.bf16.mxu1 %v1031_v43  ;;  %v3571_v41 = vld [vmem:[%s4659_s2 + $0x7f4] ss:$8 sps:$4 sm:$0xff]   ;;  %v3560_v21 = vld [vmem:[%s4659_s2 + $0x1e0] ss:$8 sps:$4 sm:$0xff]  }
  0xcb   : > { %1401 = vmatprep.subr.bf16.mxu1 %v3484_v44  ;;  %v3568_v43 = vld [vmem:[%s4659_s2 + $0x1f4] ss:$8 sps:$4 sm:$0xff]   ;;  %v3569_v44 = vld [vmem:[%s4659_s2 + $0x7f0] ss:$8 sps:$4 sm:$0xff]  }
  0xcc   : > { %1402 = vmatpush1.bf16.msra.mxu1 %v3482_v60  ;;  %v2504_v60 = vld [vmem:[%s4660_s3] sm:$0x3] }
  0xcd   : > { %2460 = vmatpush1.bf16.msra.mxu0 %v3485_v54  ;;  %1403 = vmatprep.subr.bf16.mxu1 %v3490_v1  ;;  %v3566_v54 = vld [vmem:[%s4659_s2 + $0x1f0] ss:$8 sps:$4 sm:$0xff]   ;;  %v2512_v1 = vsub.s32 1, %v3796_v52 }
  0xce   : > { %2461 = vmatprep.subr.bf16.mxu0 %v3493_v57  ;;  %v2508_v57 = vsub.s32 0, %v3796_v52 }
  0xd0   : > { %1404 = vmatpush1.bf16.msra.mxu1 %v3488_v45  ;;  %v2509_v45 = vrot.slane %v2504_v60, %v2508_v57 }
  0xd1   : > { %2462 = vmatpush1.bf16.msra.mxu0 %v3491_v6  ;;  %1405 = vmatprep.subr.bf16.mxu1 %v3496_v61 }
  0xd2   : > { %2463 = vmatprep.subr.bf16.mxu0 %v3499_v11 }
  0xd4   : > { %1406 = vmatpush1.bf16.msra.mxu1 %v3494_v47 }
  0xd5   : > { %2464 = vmatpush1.bf16.msra.mxu0 %v3497_v56  ;;  %1407 = vmatprep.subr.bf16.mxu1 %v3502_v48 }
  0xd6   : > { %2465 = vmatprep.subr.bf16.mxu0 %v3505_v46  ;;  %v2513_v46 = vrot.slane %v2504_v60, %v2512_v1 }
  0xd8   : > { %1408 = vmatpush1.bf16.msra.mxu1 %v3500_v58 }
  0xd9   : > { %2466 = vmatpush1.bf16.msra.mxu0 %v3503_v49  ;;  %1409 = vmatprep.subr.bf16.mxu1 %v3508_v59 }
  0xda   : > { %2467 = vmatprep.subr.bf16.mxu0 %v3511_v51 }
  0xdc   : > { %1410 = vmatpush1.bf16.msra.mxu1 %v3506_v2 }
  0xdd   : > { %2468 = vmatpush1.bf16.msra.mxu0 %v3509_v29  ;;  %1411 = vmatprep.subr.bf16.mxu1 %v3514_v4 }
  0xde   : > { %2469 = vmatprep.subr.bf16.mxu0 %v3517_v63 }
  0xe0   : > { %1412 = vmatpush1.bf16.msra.mxu1 %v3512_v12 }
  0xe1   : > { %2470 = vmatpush1.bf16.msra.mxu0 %v3515_v8  ;;  %1413 = vmatprep.subr.bf16.mxu1 %v3520_v13 }
  0xe2   : > { %2471 = vmatprep.subr.bf16.mxu0 %v3523_v9 }
  0xe4   : > { %1414 = vmatpush1.bf16.msra.mxu1 %v3518_v18 }
  0xe5   : > { %2472 = vmatpush1.bf16.msra.mxu0 %v3521_v14  ;;  %1415 = vmatprep.subr.bf16.mxu1 %v3526_v19 }
  0xe6   : > { %2473 = vmatprep.subr.bf16.mxu0 %v3529_v15 }
  0xe8   : > { %1416 = vmatpush1.bf16.msra.mxu1 %v3524_v24 }
  0xe9   : > { %2474 = vmatpush1.bf16.msra.mxu0 %v3527_v22  ;;  %1417 = vmatprep.subr.bf16.mxu1 %v3532_v25 }
  0xea   : > { %2475 = vmatprep.subr.bf16.mxu0 %v3535_v23 }
  0xec   : > { %1418 = vmatpush1.bf16.msra.mxu1 %v3530_v30 }
  0xed   : > { %2476 = vmatpush1.bf16.msra.mxu0 %v3533_v26  ;;  %1419 = vmatprep.subr.bf16.mxu1 %v3538_v31 }
  0xee   : > { %2477 = vmatprep.subr.bf16.mxu0 %v3541_v27 }
  0xf0   : > { %1420 = vmatpush1.bf16.msra.mxu1 %v3536_v35 }
  0xf1   : > { %2478 = vmatpush1.bf16.msra.mxu0 %v3539_v33  ;;  %1421 = vmatprep.subr.bf16.mxu1 %v3544_v55 }
  0xf2   : > { %2479 = vmatprep.subr.bf16.mxu0 %v3547_v34 }
  0xf4   : > { %1422 = vmatpush1.bf16.msra.mxu1 %v3542_v20 }
  0xf5   : > { %2480 = vmatpush1.bf16.msra.mxu0 %v3545_v16  ;;  %1423 = vmatprep.subr.bf16.mxu1 %v3550_v38 }
  0xf6   : > { %2481 = vmatprep.subr.bf16.mxu0 %v3553_v28 }
  0xf8   : > { %1424 = vmatpush1.bf16.msra.mxu1 %v3548_v32 }
  0xf9   : > { %2482 = vmatpush1.bf16.msra.mxu0 %v3551_v3  ;;  %1425 = vmatprep.subr.bf16.mxu1 %v3556_v42 }
  0xfa   : > { %2483 = vmatprep.subr.bf16.mxu0 %v3559_v37 }
  0xfc   : > { %1426 = vmatpush1.bf16.msra.mxu1 %v3554_v5 }
  0xfd   : > { %2484 = vmatpush1.bf16.msra.mxu0 %v3557_v50  ;;  %1427 = vmatprep.subr.bf16.mxu1 %v3562_v39 }
  0xfe   : > { %2485 = vmatprep.subr.bf16.mxu0 %v3565_v53 }
 0x100   : > { %1428 = vmatpush1.bf16.msra.mxu1 %v3560_v21 }
 0x101   : > { %2486 = vmatpush1.bf16.msra.mxu0 %v3563_v40  ;;  %1429 = vmatprep.subr.bf16.mxu1 %v3568_v43 }
 0x102   : > { %2487 = vmatprep.subr.bf16.mxu0 %v3571_v41 }
 0x104   : > { %1430 = vmatpush1.bf16.msra.mxu1 %v3566_v54 }
 0x105   : > { %2488 = vmatpush1.bf16.msra.mxu0 %v3569_v44 }
 0x107   : > { %1432 = vmatmul.mubr.bf16.vlgmr.msra.gmra.mrb[0].mxu1 %v1030_v0 }
 0x108   : > { %2490 = vmatmul.mubr.bf16.vlgmr.msra.gmra.mrb[0].mxu0 %v2088_v36 }
 0x1da   : > { %v1433_v56 = vpop.f32.mrb[0].mxu1 }
 0x1db   : > { %v2491_v6 = vpop.f32.mrb[0].mxu0  ;;  %v1435_v36 = vpop.f32.mrb[1].mxu1 }
 0x1dc   : > { %v2493_v11 = vpop.f32.mrb[1].mxu0  ;;  %v3135_v10 = vadd.f32 %v2491_v6, %v1433_v56  ;;  %v1437_v7 = vpop.f32.mrb[2].mxu1 }
 0x1dd   : > { %v2495_v61 = vpop.f32.mrb[2].mxu0  ;;  %v3136_v62 = vadd.f32 %v2493_v11, %v1435_v36  ;;  %v1439_v48 = vpop.f32.mrb[3].mxu1 }
 0x1de   : > { %v2497_v17 = vpop.f32.mrb[3].mxu0  ;;  %v2516_v0 = vadd.f32 %v3135_v10, %v2509_v45  ;;  %v3137_v47 = vadd.f32 %v2495_v61, %v1437_v7 }
 0x1df   : > { %v2517_v49 = vadd.f32 %v3136_v62, %v2513_v46  ;;  %v3138_v51 = vadd.f32 %v2497_v17, %v1439_v48 }
 0x1e0   : > { %v2518_v52 = vadd.f32 %v3137_v47, %v2509_v45 }
 0x1e1   : > { %v2524_v58 = vcombine.low %v2516_v0, %v2517_v49  ;;  %v2525_v59 = vcombine.high %v2516_v0, %v2517_v49  ;;  %v2519_v29 = vadd.f32 %v3138_v51, %v2513_v46 }
 0x1e3   : > { %2532 = vst [vmem:[%s274_s12] sm:$0xff] %v2524_v58  ;;  %2533 = vst [vmem:[%s274_s12 + $0x8] sm:$0xff] %v2525_v59  ;;  %v2526_v63 = vcombine.low %v2518_v52, %v2519_v29  ;;  %v2527_v2 = vcombine.high %v2518_v52, %v2519_v29 }
 0x1e5   : > { %2534 = vst [vmem:[%s274_s12 + $0x10] sm:$0xff] %v2526_v63  ;;  %2535 = vst [vmem:[%s274_s12 + $0x18] sm:$0xff] %v2527_v2 }
 0x1e6 PF: > { %s14_s17 = sadd.s32 1, %s3594_s17   ;;  %s4668_s15 = smov %s3590_s16 }
 0x1e7   : > { %p11_p5 = scmp.ge.s32.totalorder %s14_s17, 4   ;;  %s4669_s16 = smov %s4671_s18 }
 0x1e9   :  { %13 = sbr.rel (!%p11_p5) target bundleno = 2 (0x2), region = 72 }

// kernel: discriminator_local.14
= control target key start
LH: loop header
LB: loop body
LE: loop exit
PB: predicated region body
PF: predicated region fallthrough
CT: control target
= control target key end

     0   :  { %s436_s6 = smov 0   ;;  %s438_s7 = smov 0   ;;  %s491_s0 = inlined_call_operand.vmem [shape: f32[2,4,512], index: 0, kind: input, shape index: {}]   ;;  %s492_s1 = inlined_call_operand.vmem [shape: bf16[2,4,512], index: 1, kind: output, shape index: {}]  }
   0x1   :  { %s440_s8 = smov 0   ;;  %s442_s9 = smov 0  }
   0x2   :  { %s444_s10 = smov 0  }
   0x3 LB: > { %s20_s11 = sadd.s32 1, %s416_s8  ;;  %s23_s12 = sadd.s32 1, %s420_s9  ;;  %s424_s10 = sphi %s444_s10, %s11_s10   ;;  %s420_s9 = sphi %s442_s9, %s496_s9   ;;  %s416_s8 = sphi %s440_s8, %s495_s8   ;;  %s412_s7 = sphi %s438_s7, %s494_s7   ;;  %s408_s6 = sphi %s436_s6, %s493_s6  }
   0x4   : > { %p21_p0 = scmp.ge.s32.totalorder %s20_s11, 2  ;;  %p330_p1 = scmp.ge.s32.totalorder %s424_s10, 1 }
   0x5   : > { %p108_p2 = scmp.lt.s32.totalorder %s424_s10, 5 }
   0x6   : > { %s498_s11 = smov (%p21_p0, %s20_s11), 0  ;;  %s500_s12 = smov (!%p21_p0, %s23_s12), %s420_s9 }
   0x7   : > { %p109_p3 = pnand %p330_p1, %p108_p2  ;;  %p25_p4 = scmp.ge.s32.totalorder %s500_s12, 2 }
   0x8   : > { %s331_s13 = sshll.u32 (!%p109_p3), %s408_s6, 1  ;;  %p137_p5 = scmp.lt.s32.totalorder (!%p109_p3), %s412_s7, 1  ;;  %vm160_vm0 = vcmask (!%p109_p3), 1043456  }
   0x9   : > { %s502_s12 = smov (%p25_p4, %s500_s12), 0  ;;  %112 = sbr.rel (%p109_p3) target bundleno = 71 (0x47), region = 24 }
   0xa   : > { %p139_p6 = scmp.lt.s32.totalorder (!%p109_p3), %s331_s13, 3 }
  0x10   : > { %s504_s7 = smov (!%p137_p5, %s412_s7), 1  ;;  %s506_s13 = smov (!%p139_p6, %s331_s13), 3 }
  0x11   : > { %s332_s14 = sshll.u32 %s504_s7, 2 }
  0x12   : > { %s466_s15 = sadd.s32 %s332_s14, %s506_s13 }
  0x13   : > { %s333_s16 = sshll.u32 %s466_s15, 2  ;;  %s336_s20 = sshll.u32 %s466_s15, 1 }
  0x14   : > { %s144_s19 = scalar_lea.vmem %s491_s0, %s333_s16  ;;  %s154_s23 = scalar_lea.vmem %s492_s1, %s336_s20 }
  0x15   : > { %v156_v0 = vld [vmem:[%s144_s19] sm:$0xff] }
  0x16   : > { %v158_v1 = vcombine.high %v156_v0, %v156_v0  ;;  %v161_v2 = vsel %vm160_vm0, %v156_v0, 0.0  ;;  %v177_v3 = vmul.f32 %v156_v0, %v156_v0 }
  0x17   : > { %v162_v4 = vrot.slane %v161_v2, 4 }
  0x18   : > { %v168_v5 = vsel %vm160_vm0, %v158_v1, 0.0  ;;  %v179_v6 = vcombine.high %v177_v3, %v177_v3  ;;  %v181_v7 = vsel %vm160_vm0, %v177_v3, 0.0 }
  0x19   : > { %v163_v8 = vadd.f32 %v162_v4, %v161_v2  ;;  %v169_v9 = vrot.slane %v168_v5, 4  ;;  %v182_v10 = vrot.slane %v181_v7, 4 }
  0x1a   : > { %v188_v11 = vsel %vm160_vm0, %v179_v6, 0.0 }
  0x1b   : > { %v164_v12 = vrot.slane %v163_v8, 2  ;;  %v170_v13 = vadd.f32 %v169_v9, %v168_v5  ;;  %v183_v14 = vadd.f32 %v182_v10, %v181_v7  ;;  %v189_v15 = vrot.slane %v188_v11, 4 }
  0x1d   : > { %v165_v16 = vadd.f32 %v164_v12, %v163_v8  ;;  %v171_v17 = vrot.slane %v170_v13, 2  ;;  %v184_v18 = vrot.slane %v183_v14, 2  ;;  %v190_v19 = vadd.f32 %v189_v15, %v188_v11 }
  0x1f   : > { %v166_v20 = vrot.slane %v165_v16, 1  ;;  %v172_v21 = vadd.f32 %v171_v17, %v170_v13  ;;  %v185_v22 = vadd.f32 %v184_v18, %v183_v14  ;;  %v191_v23 = vrot.slane %v190_v19, 2 }
  0x21   : > { %v167_v24 = vadd.f32 %v166_v20, %v165_v16  ;;  %v173_v25 = vrot.slane %v172_v21, 1  ;;  %v186_v26 = vrot.slane %v185_v22, 1  ;;  %v192_v27 = vadd.f32 %v191_v23, %v190_v19 }
  0x23   : > { %v174_v28 = vadd.f32 %v173_v25, %v172_v21  ;;  %v175_v29 = vmul.f32 0.25, %v167_v24  ;;  %v187_v30 = vadd.f32 %v186_v26, %v185_v22  ;;  %v193_v31 = vrot.slane %v192_v27, 1 }
  0x25   : > { %v176_v32 = vmul.f32 0.25, %v174_v28  ;;  %v194_v33 = vadd.f32 %v193_v31, %v192_v27  ;;  %v195_v34 = vmul.f32 0.25, %v187_v30  ;;  %v197_v35 = vmul.f32 %v175_v29, %v175_v29 }
  0x27   : > { %v196_v36 = vmul.f32 0.25, %v194_v33  ;;  %v198_v37 = vmul.f32 %v176_v32, %v176_v32  ;;  %v199_v38 = vsub.f32 %v195_v34, %v197_v35  ;;  %v205_v44 = vcombine.low %v175_v29, %v176_v32 }
  0x29   : > { %v200_v39 = vsub.f32 %v196_v36, %v198_v37  ;;  %v201_v40 = vmax.f32 %v199_v38, 0.0  ;;  %v207_v46 = vsub.f32 %v156_v0, %v205_v44 }
  0x2b   : > { %v202_v41 = vmax.f32 %v200_v39, 0.0  ;;  %v208_v42 = vadd.f32 1e-05, %v201_v40 }
  0x2d   : > { %v209_v43 = vadd.f32 1e-05, %v202_v41  ;;  %382 = vrsqrt.f32 %v208_v42 }
  0x2f   : > { %384 = vrsqrt.f32 %v209_v43 }
  0x37   : > { %v383_v45 = vpop.eup %382 }
  0x39   : > { %v385_v47 = vpop.eup %384 }
  0x3a   : > { %v214_v48 = vcombine.low %v383_v45, %v385_v47 }
  0x3c   : > { %v216_v49 = vmul.f32 %v214_v48, %v207_v46 }
  0x3e   : > { %v217_v50 = vmul.f32 0.2, %v216_v49 }
  0x40   : > { %v218_v51 = vmax.f32 %v216_v49, %v217_v50 }
  0x42   : > { %v220_v52 = vcombine.high %v218_v51, %v218_v51 }
  0x44   : > { %v337_v53 = vpack.c.bf16 %v220_v52, %v218_v51 }
  0x46   : > { %338 = vst.sshfl [vmem:[%s154_s23] sm:$0x33 pattern:$0x76325410] %v337_v53 }
  0x47 PF: > { %s11_s10 = sadd.s32 1, %s424_s10   ;;  %s493_s6 = smov %s416_s8 }
  0x48   : > { %p8_p7 = scmp.ge.s32.totalorder %s11_s10, 6   ;;  %s494_s7 = smov %s420_s9 }
  0x49   : > { %s495_s8 = smov %s498_s11  ;;  %s496_s9 = smov %s502_s12 }
  0x4a   :  { %10 = sbr.rel (!%p8_p7) target bundleno = 3 (0x3), region = 54 }

// kernel: discriminator_local.13
= control target key start
LH: loop header
LB: loop body
LE: loop exit
PB: predicated region body
PF: predicated region fallthrough
CT: control target
= control target key end

     0   :  { %s11687_s15 = smov 0   ;;  %s11689_s16 = smov 0   ;;  %s15160_s0 = inlined_call_operand.vmem [shape: bf16[2,2,3,1024], index: 0, kind: input, shape index: {}]   ;;  %s15161_s1 = inlined_call_operand.vmem [shape: bf16[2,1,3,1024], index: 1, kind: input, shape index: {}]   ;;  %s15162_s2 = inlined_call_operand.vmem [shape: bf16[4,1024,512], index: 2, kind: input, shape index: {}]   ;;  %s15163_s3 = inlined_call_operand.vmem [shape: f32[1,512], index: 3, kind: input, shape index: {}]   ;;  %s15164_s4 = inlined_call_operand.vmem [shape: f32[2,2,2,512], index: 4, kind: output, shape index: {}]  }
   0x1   :  { %s11691_s17 = smov 0  }
   0x2 LB: > { %s26_s18 = sadd.s32 1, %s11654_s16  ;;  %p8250_p0 = scmp.ge.s32.totalorder %s11658_s17, 1  ;;  %s11658_s17 = sphi %s11691_s17, %s14_s17   ;;  %s11654_s16 = sphi %s11689_s16, %s15168_s16   ;;  %s11650_s15 = sphi %s11687_s15, %s15167_s15  }
   0x3   : > { %p28_p1 = scmp.ge.s32.totalorder %s26_s18, 2  ;;  %p200_p2 = scmp.lt.s32.totalorder %s11658_s17, 3 }
   0x5   : > { %s15170_s18 = smov (%p28_p1, %s26_s18), 0  ;;  %p201_p3 = pnand %p8250_p0, %p200_p2 }
   0x6   : > { %v10093_v0 = vld [vmem:[%s15162_s2 + $0x804] ss:$16 sps:$4 sm:$0xff] (!%p201_p3)   ;;  %v10097_v2 = vld [vmem:[%s15162_s2 + $0x800] ss:$16 sps:$4 sm:$0xff] (!%p201_p3)   ;;  %p246_p4 = scmp.lt.s32.totalorder (!%p201_p3), %s11650_s15, 1  ;;  %v869_v42 = vlaneseq (!%p201_p3) }
   0x7   : > { %204 = sbr.rel (%p201_p3) target bundleno = 1259 (0x4eb), region = 36  ;;  %v10095_v1 = vld [vmem:[%s15162_s2 + $0xa04] ss:$16 sps:$4 sm:$0xff] (!%p201_p3)   ;;  %2202 = vmatprep.subr.bf16.mxu0 (!%p201_p3), %v10093_v0  ;;  %v10098_v3 = vld [vmem:[%s15162_s2 + $0xa00] ss:$16 sps:$4 sm:$0xff] (!%p201_p3)  }
   0x8   : > { %2243 = vmatprep.subr.bf16.mxu1 (!%p201_p3), %v10095_v1  ;;  %v10099_v4 = vld [vmem:[%s15162_s2 + $0x824] ss:$16 sps:$4 sm:$0xff] (!%p201_p3)   ;;  %2203 = vmatpush1.bf16.msra.mxu0 (!%p201_p3), %v10097_v2  ;;  %v10103_v6 = vld [vmem:[%s15162_s2 + $0x820] ss:$16 sps:$4 sm:$0xff] (!%p201_p3)   ;;  %vm574_vm0 = vsmask.f32 (!%p201_p3), 256 }
   0x9   : > { %2244 = vmatpush1.bf16.msra.mxu1 (!%p201_p3), %v10098_v3  ;;  %v10101_v5 = vld [vmem:[%s15162_s2 + $0xa24] ss:$16 sps:$4 sm:$0xff] (!%p201_p3)   ;;  %2204 = vmatprep.subr.bf16.mxu0 (!%p201_p3), %v10099_v4  ;;  %v10104_v7 = vld [vmem:[%s15162_s2 + $0xa20] ss:$16 sps:$4 sm:$0xff] (!%p201_p3)   ;;  %vm575_vm1 = vsmask.f32 (!%p201_p3), 1284 }
   0xa   : > { %2245 = vmatprep.subr.bf16.mxu1 (!%p201_p3), %v10101_v5  ;;  %v10105_v8 = vld [vmem:[%s15162_s2 + $0x844] ss:$16 sps:$4 sm:$0xff] (!%p201_p3)   ;;  %v10109_v10 = vld [vmem:[%s15162_s2 + $0x840] ss:$16 sps:$4 sm:$0xff] (!%p201_p3)   ;;  %vm577_vm2 = vsmask.f32 (!%p201_p3), 2312  ;;  %vm576_vm6 = vmor (!%p201_p3), %vm574_vm0, %vm575_vm1 }
   0xb   : > { %v10107_v9 = vld [vmem:[%s15162_s2 + $0xa44] ss:$16 sps:$4 sm:$0xff] (!%p201_p3)   ;;  %v10110_v11 = vld [vmem:[%s15162_s2 + $0xa40] ss:$16 sps:$4 sm:$0xff] (!%p201_p3)   ;;  %vm579_vm3 = vsmask.f32 (!%p201_p3), 3340  ;;  %vm578_vm8 = vmor (!%p201_p3), %vm576_vm6, %vm577_vm2 }
   0xc   : > { %2205 = vmatpush1.bf16.msra.mxu0 (!%p201_p3), %v10103_v6  ;;  %v10111_v12 = vld [vmem:[%s15162_s2 + $0x864] ss:$16 sps:$4 sm:$0xff] (!%p201_p3)   ;;  %v10115_v14 = vld [vmem:[%s15162_s2 + $0x860] ss:$16 sps:$4 sm:$0xff] (!%p201_p3)   ;;  %vm581_vm4 = vsmask.f32 (!%p201_p3), 4368  ;;  %vm580_vm9 = vmor (!%p201_p3), %vm578_vm8, %vm579_vm3 }
   0xd   : > { %2246 = vmatpush1.bf16.msra.mxu1 (!%p201_p3), %v10104_v7  ;;  %2206 = vmatprep.subr.bf16.mxu0 (!%p201_p3), %v10105_v8  ;;  %v10113_v13 = vld [vmem:[%s15162_s2 + $0xa64] ss:$16 sps:$4 sm:$0xff] (!%p201_p3)   ;;  %v10116_v15 = vld [vmem:[%s15162_s2 + $0xa60] ss:$16 sps:$4 sm:$0xff] (!%p201_p3)   ;;  %vm583_vm5 = vsmask.f32 (!%p201_p3), 5396  ;;  %vm582_vm10 = vmor (!%p201_p3), %vm580_vm9, %vm581_vm4 }
   0xe   : > { %2247 = vmatprep.subr.bf16.mxu1 %v10107_v9  ;;  %v10117_v16 = vld [vmem:[%s15162_s2 + $0x884] ss:$16 sps:$4 sm:$0xff]   ;;  %v10121_v18 = vld [vmem:[%s15162_s2 + $0x880] ss:$16 sps:$4 sm:$0xff]   ;;  %s15172_s15 = smov (!%p246_p4, %s11650_s15), 1  ;;  %v11855_v49 = vshrl.u32 %v869_v42, 7  ;;  %vm584_vm12 = vmor %vm582_vm10, %vm583_vm5 }
   0xf   : > { %v10119_v17 = vld [vmem:[%s15162_s2 + $0xa84] ss:$16 sps:$4 sm:$0xff]   ;;  %v10122_v19 = vld [vmem:[%s15162_s2 + $0xa80] ss:$16 sps:$4 sm:$0xff]   ;;  %s10064_s9 = sshll.u32 %s15172_s15, 5  ;;  %s10065_s7 = sshll.u32 %s15172_s15, 4 }
  0x10   : > { %2207 = vmatpush1.bf16.msra.mxu0 %v10109_v10  ;;  %v10123_v20 = vld [vmem:[%s15162_s2 + $0x8a4] ss:$16 sps:$4 sm:$0xff]   ;;  %v10127_v22 = vld [vmem:[%s15162_s2 + $0x8a0] ss:$16 sps:$4 sm:$0xff]   ;;  %s11850_s24 = scalar_lea.vmem %s15160_s0, %s10064_s9  ;;  %v11660_v46 = vmov 1966171168   ;;  %s13365_s25 = scalar_lea.vmem %s15161_s1, %s10065_s7 }
  0x11   : > { %2248 = vmatpush1.bf16.msra.mxu1 %v10110_v11  ;;  %2208 = vmatprep.subr.bf16.mxu0 %v10111_v12  ;;  %v10125_v21 = vld [vmem:[%s15162_s2 + $0xaa4] ss:$16 sps:$4 sm:$0xff]   ;;  %v10128_v23 = vld [vmem:[%s15162_s2 + $0xaa0] ss:$16 sps:$4 sm:$0xff]   ;;  %v867_v47 = vunpack.c.l.s4 %v11660_v46  ;;  %vm585_vm7 = vsmask.f32 6424  ;;  %s274_s28 = scalar_lea.vmem %s15164_s4, %s10065_s7 }
  0x12   : > { %2249 = vmatprep.subr.bf16.mxu1 %v10113_v13  ;;  %v10129_v24 = vld [vmem:[%s15162_s2 + $0x8c4] ss:$16 sps:$4 sm:$0xff]   ;;  %v10133_v26 = vld [vmem:[%s15162_s2 + $0x8c0] ss:$16 sps:$4 sm:$0xff]   ;;  %vm587_vm11 = vsmask.f32 7452  ;;  %vm586_vm13 = vmor %vm584_vm12, %vm585_vm7 }
  0x13   : > { %v10131_v25 = vld [vmem:[%s15162_s2 + $0xac4] ss:$16 sps:$4 sm:$0xff]   ;;  %v10134_v27 = vld [vmem:[%s15162_s2 + $0xac0] ss:$16 sps:$4 sm:$0xff]   ;;  %v868_v60 = vunpack.c.0.s8 %v867_v47  ;;  %vm11889_vm14 = vmor %vm586_vm13, %vm587_vm11 }
  0x14   : > { %2209 = vmatpush1.bf16.msra.mxu0 %v10115_v14  ;;  %v10135_v28 = vld [vmem:[%s15162_s2 + $0x8e4] ss:$16 sps:$4 sm:$0xff]   ;;  %v10139_v30 = vld [vmem:[%s15162_s2 + $0x8e0] ss:$16 sps:$4 sm:$0xff]   ;;  %v11232_v6 = vld [vmem:[%s15162_s2 + $0x17ac] ss:$16 sps:$4 sm:$0xff]  }
  0x15   : > { %2250 = vmatpush1.bf16.msra.mxu1 %v10116_v15  ;;  %2210 = vmatprep.subr.bf16.mxu0 %v10117_v16  ;;  %v10137_v29 = vld [vmem:[%s15162_s2 + $0xae4] ss:$16 sps:$4 sm:$0xff]   ;;  %v10140_v31 = vld [vmem:[%s15162_s2 + $0xae0] ss:$16 sps:$4 sm:$0xff]   ;;  %v11894_v7 = vsub.s32 %v868_v60, %v11855_v49 }
  0x16   : > { %2251 = vmatprep.subr.bf16.mxu1 %v10119_v17  ;;  %v10141_v32 = vld [vmem:[%s15162_s2 + $0x904] ss:$16 sps:$4 sm:$0xff]   ;;  %v10145_v34 = vld [vmem:[%s15162_s2 + $0x900] ss:$16 sps:$4 sm:$0xff]  }
  0x17   : > { %v10143_v33 = vld [vmem:[%s15162_s2 + $0xb04] ss:$16 sps:$4 sm:$0xff]   ;;  %v10146_v35 = vld [vmem:[%s15162_s2 + $0xb00] ss:$16 sps:$4 sm:$0xff]  }
  0x18   : > { %2211 = vmatpush1.bf16.msra.mxu0 %v10121_v18  ;;  %v10147_v36 = vld [vmem:[%s15162_s2 + $0x924] ss:$16 sps:$4 sm:$0xff]   ;;  %v10151_v38 = vld [vmem:[%s15162_s2 + $0x920] ss:$16 sps:$4 sm:$0xff]  }
  0x19   : > { %2252 = vmatpush1.bf16.msra.mxu1 %v10122_v19  ;;  %2212 = vmatprep.subr.bf16.mxu0 %v10123_v20  ;;  %v10149_v37 = vld [vmem:[%s15162_s2 + $0xb24] ss:$16 sps:$4 sm:$0xff]   ;;  %v10152_v39 = vld [vmem:[%s15162_s2 + $0xb20] ss:$16 sps:$4 sm:$0xff]  }
  0x1a   : > { %2253 = vmatprep.subr.bf16.mxu1 %v10125_v21  ;;  %v10153_v40 = vld [vmem:[%s15162_s2 + $0x944] ss:$16 sps:$4 sm:$0xff]   ;;  %v10157_v43 = vld [vmem:[%s15162_s2 + $0x940] ss:$16 sps:$4 sm:$0xff]  }
  0x1b   : > { %v10155_v41 = vld [vmem:[%s15162_s2 + $0xb44] ss:$16 sps:$4 sm:$0xff]   ;;  %v10158_v44 = vld [vmem:[%s15162_s2 + $0xb40] ss:$16 sps:$4 sm:$0xff]  }
  0x1c   : > { %2213 = vmatpush1.bf16.msra.mxu0 %v10127_v22  ;;  %v10159_v45 = vld [vmem:[%s15162_s2 + $0x964] ss:$16 sps:$4 sm:$0xff]   ;;  %v10163_v50 = vld [vmem:[%s15162_s2 + $0x960] ss:$16 sps:$4 sm:$0xff]  }
  0x1d   : > { %2254 = vmatpush1.bf16.msra.mxu1 %v10128_v23  ;;  %2214 = vmatprep.subr.bf16.mxu0 %v10129_v24  ;;  %v10161_v48 = vld [vmem:[%s15162_s2 + $0xb64] ss:$16 sps:$4 sm:$0xff]   ;;  %v10164_v51 = vld [vmem:[%s15162_s2 + $0xb60] ss:$16 sps:$4 sm:$0xff]  }
  0x1e   : > { %2255 = vmatprep.subr.bf16.mxu1 %v10131_v25  ;;  %v10165_v52 = vld [vmem:[%s15162_s2 + $0x984] ss:$16 sps:$4 sm:$0xff]   ;;  %v8258_v55 = vld.sshfl [vmem:[%s11850_s24 + $0x8] sm:$0xff pattern:$0x75316420] }
  0x1f   : > { %v10167_v53 = vld [vmem:[%s15162_s2 + $0xb84] ss:$16 sps:$4 sm:$0xff]   ;;  %v8260_v57 = vld.sshfl [vmem:[%s11850_s24 + $0x18] sm:$0xff pattern:$0x75316420] }
  0x20   : > { %2215 = vmatpush1.bf16.msra.mxu0 %v10133_v26  ;;  %v8257_v54 = vld.sshfl [vmem:[%s11850_s24] sm:$0xff pattern:$0x75316420]  ;;  %v8259_v56 = vld.sshfl [vmem:[%s11850_s24 + $0x10] sm:$0xff pattern:$0x75316420] }
  0x21   : > { %2256 = vmatpush1.bf16.msra.mxu1 %v10134_v27  ;;  %2216 = vmatprep.subr.bf16.mxu0 %v10135_v28  ;;  %v300_v58 = vcombine.low %v8257_v54, %v8258_v55  ;;  %v572_v59 = vcombine.high %v8257_v54, %v8258_v55  ;;  %v315_v61 = vcombine.low %v8259_v56, %v8260_v57  ;;  %v10169_v63 = vld [vmem:[%s15162_s2 + $0x980] ss:$16 sps:$4 sm:$0xff]   ;;  %v10171_v5 = vld [vmem:[%s15162_s2 + $0x9a4] ss:$16 sps:$4 sm:$0xff]  }
  0x22   : > { %2257 = vmatprep.subr.bf16.mxu1 %v10137_v29  ;;  %v573_v62 = vcombine.high %v8259_v56, %v8260_v57  ;;  %v10170_v4 = vld [vmem:[%s15162_s2 + $0xb80] ss:$16 sps:$4 sm:$0xff]   ;;  %v10173_v8 = vld [vmem:[%s15162_s2 + $0xba4] ss:$16 sps:$4 sm:$0xff]  }
  0x23   : > { %v590_v0 = vshrl.u32 %v300_v58, 16  ;;  %v595_v1 = vshll.u32 %v572_v59, 16  ;;  %v599_v2 = vshrl.u32 %v315_v61, 16  ;;  %v10175_v13 = vld [vmem:[%s15162_s2 + $0x9a0] ss:$16 sps:$4 sm:$0xff]  }
  0x24   : > { %2217 = vmatpush1.bf16.msra.mxu0 %v10139_v30  ;;  %v604_v3 = vshll.u32 %v573_v62, 16  ;;  %v10176_v14 = vld [vmem:[%s15162_s2 + $0xba0] ss:$16 sps:$4 sm:$0xff]   ;;  %v10177_v15 = vld [vmem:[%s15162_s2 + $0x9c4] ss:$16 sps:$4 sm:$0xff]  }
  0x25   : > { %2258 = vmatpush1.bf16.msra.mxu1 %v10140_v31  ;;  %2218 = vmatprep.subr.bf16.mxu0 %v10141_v32  ;;  %v597_v9 = vsel %vm11889_vm14, %v590_v0, %v595_v1  ;;  %v10179_v17 = vld [vmem:[%s15162_s2 + $0xbc4] ss:$16 sps:$4 sm:$0xff]   ;;  %v10181_v20 = vld [vmem:[%s15162_s2 + $0x9c0] ss:$16 sps:$4 sm:$0xff]  }
  0x26   : > { %2259 = vmatprep.subr.bf16.mxu1 %v10143_v33  ;;  %v11903_v10 = vsel %vm11889_vm14, %v599_v2, %v604_v3  ;;  %v10182_v21 = vld [vmem:[%s15162_s2 + $0xbc0] ss:$16 sps:$4 sm:$0xff]   ;;  %v10183_v22 = vld [vmem:[%s15162_s2 + $0x9e4] ss:$16 sps:$4 sm:$0xff]  }
  0x27   : > { %v864_v11 = vcombine.low %v597_v9, %v11903_v10  ;;  %v865_v12 = vcombine.high %v597_v9, %v11903_v10  ;;  %v10185_v24 = vld [vmem:[%s15162_s2 + $0xbe4] ss:$16 sps:$4 sm:$0xff]   ;;  %v10187_v27 = vld [vmem:[%s15162_s2 + $0x9e0] ss:$16 sps:$4 sm:$0xff]  }
  0x28   : > { %2219 = vmatpush1.bf16.msra.mxu0 %v10145_v34  ;;  %v10188_v29 = vld [vmem:[%s15162_s2 + $0xbe0] ss:$16 sps:$4 sm:$0xff]   ;;  %v10191_v30 = vld [vmem:[%s15162_s2 + $0xc04] ss:$16 sps:$4 sm:$0xff]  }
  0x29   : > { %2260 = vmatpush1.bf16.msra.mxu1 %v10146_v35  ;;  %2220 = vmatprep.subr.bf16.mxu0 %v10147_v36  ;;  %v872_v16 = vrot.slane %v864_v11, %v11894_v7  ;;  %v11921_v19 = vrot.slane %v865_v12, %v11894_v7  ;;  %v10194_v31 = vld [vmem:[%s15162_s2 + $0xe04] ss:$16 sps:$4 sm:$0xff]   ;;  %v10189_v34 = vld [vmem:[%s15162_s2 + $0xc00] ss:$16 sps:$4 sm:$0xff]  }
  0x2a   : > { %2261 = vmatprep.subr.bf16.mxu1 %v10149_v37  ;;  %v10192_v35 = vld [vmem:[%s15162_s2 + $0xe00] ss:$16 sps:$4 sm:$0xff]   ;;  %v10197_v36 = vld [vmem:[%s15162_s2 + $0xc24] ss:$16 sps:$4 sm:$0xff]  }
  0x2b   : > { %v880_v18 = vcombine.high %v872_v16, %v872_v16  ;;  %v881_v26 = vcombine.high %v11921_v19, %v11921_v19  ;;  %v11949_v28 = vrot.slane %v872_v16, %v11894_v7  ;;  %v10200_v37 = vld [vmem:[%s15162_s2 + $0xe24] ss:$16 sps:$4 sm:$0xff]   ;;  %v10207_v47 = vld [vmem:[%s15162_s2 + $0xc60] ss:$16 sps:$4 sm:$0xff]  }
  0x2c   : > { %2221 = vmatpush1.bf16.msra.mxu0 %v10151_v38  ;;  %v10206_v42 = vld [vmem:[%s15162_s2 + $0xe44] ss:$16 sps:$4 sm:$0xff]   ;;  %v10219_v56 = vld [vmem:[%s15162_s2 + $0xca0] ss:$16 sps:$4 sm:$0xff]  }
  0x2d   : > { %2262 = vmatpush1.bf16.msra.mxu1 %v10152_v39  ;;  %2222 = vmatprep.subr.bf16.mxu0 %v10153_v40  ;;  %v11933_v23 = vrot.slane %v880_v18, %v11894_v7  ;;  %v11962_v32 = vrot.slane %v881_v26, %v11894_v7  ;;  %v11966_v33 = vcombine.high %v11949_v28, %v11949_v28  ;;  %v10195_v39 = vld [vmem:[%s15162_s2 + $0xc20] ss:$16 sps:$4 sm:$0xff]   ;;  %v10212_v46 = vld [vmem:[%s15162_s2 + $0xe64] ss:$16 sps:$4 sm:$0xff]  }
  0x2e   : > { %2263 = vmatprep.subr.bf16.mxu1 %v10155_v41  ;;  %v10198_v40 = vld [vmem:[%s15162_s2 + $0xe20] ss:$16 sps:$4 sm:$0xff]   ;;  %v10203_v41 = vld [vmem:[%s15162_s2 + $0xc44] ss:$16 sps:$4 sm:$0xff]  }
  0x2f   : > { %2234 = vmatprep.mubr.bf16.mxu0 %v11933_v23  ;;  %v11941_v25 = vcombine.high %v11933_v23, %v11933_v23  ;;  %v11982_v38 = vcombine.high %v11962_v32, %v11962_v32  ;;  %v10221_v54 = vld [vmem:[%s15162_s2 + $0xca4] ss:$16 sps:$4 sm:$0xff]   ;;  %v10222_v57 = vld [vmem:[%s15162_s2 + $0xea0] ss:$16 sps:$4 sm:$0xff]  }
  0x30   : > { %2223 = vmatpush1.bf16.msra.mxu0 %v10157_v43  ;;  %v10201_v43 = vld [vmem:[%s15162_s2 + $0xc40] ss:$16 sps:$4 sm:$0xff]   ;;  %v10224_v55 = vld [vmem:[%s15162_s2 + $0xea4] ss:$16 sps:$4 sm:$0xff]  }
  0x31   : > { %2264 = vmatpush1.bf16.msra.mxu1 %v10158_v44  ;;  %2224 = vmatprep.subr.bf16.mxu0 %v10159_v45  ;;  %v10204_v44 = vld [vmem:[%s15162_s2 + $0xe40] ss:$16 sps:$4 sm:$0xff]   ;;  %v10209_v45 = vld [vmem:[%s15162_s2 + $0xc64] ss:$16 sps:$4 sm:$0xff]  }
  0x32   : > { %2265 = vmatprep.subr.bf16.mxu1 %v10161_v48  ;;  %2275 = vmatprep.mubr.bf16.mxu1 %v11941_v25  ;;  %v10210_v48 = vld [vmem:[%s15162_s2 + $0xe60] ss:$16 sps:$4 sm:$0xff]   ;;  %v10227_v58 = vld [vmem:[%s15162_s2 + $0xcc4] ss:$16 sps:$4 sm:$0xff]  }
  0x33   : > { %v10230_v59 = vld [vmem:[%s15162_s2 + $0xec4] ss:$16 sps:$4 sm:$0xff]   ;;  %v10225_v60 = vld [vmem:[%s15162_s2 + $0xcc0] ss:$16 sps:$4 sm:$0xff]  }
  0x34   : > { %2225 = vmatpush1.bf16.msra.mxu0 %v10163_v50  ;;  %v10215_v50 = vld [vmem:[%s15162_s2 + $0xc84] ss:$16 sps:$4 sm:$0xff]   ;;  %v10228_v61 = vld [vmem:[%s15162_s2 + $0xec0] ss:$16 sps:$4 sm:$0xff]  }
  0x35   : > { %2266 = vmatpush1.bf16.msra.mxu1 %v10164_v51  ;;  %2226 = vmatprep.subr.bf16.mxu0 %v10165_v52  ;;  %v10218_v51 = vld [vmem:[%s15162_s2 + $0xe84] ss:$16 sps:$4 sm:$0xff]   ;;  %v10213_v52 = vld [vmem:[%s15162_s2 + $0xc80] ss:$16 sps:$4 sm:$0xff]  }
  0x36   : > { %2267 = vmatprep.subr.bf16.mxu1 %v10167_v53  ;;  %v10216_v53 = vld [vmem:[%s15162_s2 + $0xe80] ss:$16 sps:$4 sm:$0xff]   ;;  %v10233_v62 = vld [vmem:[%s15162_s2 + $0xce4] ss:$16 sps:$4 sm:$0xff]  }
  0x37   : > { %v10231_v0 = vld [vmem:[%s15162_s2 + $0xce0] ss:$16 sps:$4 sm:$0xff]   ;;  %v10239_v2 = vld [vmem:[%s15162_s2 + $0xd04] ss:$16 sps:$4 sm:$0xff]  }
  0x38   : > { %2227 = vmatpush1.bf16.msra.mxu0 %v10169_v63  ;;  %v10236_v63 = vld [vmem:[%s15162_s2 + $0xee4] ss:$16 sps:$4 sm:$0xff]   ;;  %v10234_v1 = vld [vmem:[%s15162_s2 + $0xee0] ss:$16 sps:$4 sm:$0xff]  }
  0x39   : > { %2268 = vmatpush1.bf16.msra.mxu1 %v10170_v4  ;;  %2228 = vmatprep.subr.bf16.mxu0 %v10171_v5  ;;  %v10242_v3 = vld [vmem:[%s15162_s2 + $0xf04] ss:$16 sps:$4 sm:$0xff]   ;;  %v10237_v4 = vld [vmem:[%s15162_s2 + $0xd00] ss:$16 sps:$4 sm:$0xff]  }
  0x3a   : > { %2269 = vmatprep.subr.bf16.mxu1 %v10173_v8  ;;  %v10240_v5 = vld [vmem:[%s15162_s2 + $0xf00] ss:$16 sps:$4 sm:$0xff]   ;;  %v10245_v8 = vld [vmem:[%s15162_s2 + $0xd24] ss:$16 sps:$4 sm:$0xff]  }
  0x3b   : > { %v10248_v9 = vld [vmem:[%s15162_s2 + $0xf24] ss:$16 sps:$4 sm:$0xff]   ;;  %v10243_v11 = vld [vmem:[%s15162_s2 + $0xd20] ss:$16 sps:$4 sm:$0xff]  }
  0x3c   : > { %2229 = vmatpush1.bf16.msra.mxu0 %v10175_v13  ;;  %v10246_v12 = vld [vmem:[%s15162_s2 + $0xf20] ss:$16 sps:$4 sm:$0xff]   ;;  %v10251_v13 = vld [vmem:[%s15162_s2 + $0xd44] ss:$16 sps:$4 sm:$0xff]  }
  0x3d   : > { %2270 = vmatpush1.bf16.msra.mxu1 %v10176_v14  ;;  %2230 = vmatprep.subr.bf16.mxu0 %v10177_v15  ;;  %v10254_v14 = vld [vmem:[%s15162_s2 + $0xf44] ss:$16 sps:$4 sm:$0xff]   ;;  %v10249_v15 = vld [vmem:[%s15162_s2 + $0xd40] ss:$16 sps:$4 sm:$0xff]  }
  0x3e   : > { %2271 = vmatprep.subr.bf16.mxu1 %v10179_v17  ;;  %v10252_v16 = vld [vmem:[%s15162_s2 + $0xf40] ss:$16 sps:$4 sm:$0xff]   ;;  %v10257_v17 = vld [vmem:[%s15162_s2 + $0xd64] ss:$16 sps:$4 sm:$0xff]  }
  0x3f   : > { %v10260_v18 = vld [vmem:[%s15162_s2 + $0xf64] ss:$16 sps:$4 sm:$0xff]   ;;  %v10261_v26 = vld [vmem:[%s15162_s2 + $0xd80] ss:$16 sps:$4 sm:$0xff]  }
  0x40   : > { %2231 = vmatpush1.bf16.msra.mxu0 %v10181_v20  ;;  %v10255_v20 = vld [vmem:[%s15162_s2 + $0xd60] ss:$16 sps:$4 sm:$0xff]  }
  0x41   : > { %2272 = vmatpush1.bf16.msra.mxu1 %v10182_v21  ;;  %2232 = vmatprep.subr.bf16.mxu0 %v10183_v22  ;;  %v10258_v21 = vld [vmem:[%s15162_s2 + $0xf60] ss:$16 sps:$4 sm:$0xff]   ;;  %v10263_v22 = vld [vmem:[%s15162_s2 + $0xd84] ss:$16 sps:$4 sm:$0xff]  }
  0x42   : > { %2273 = vmatprep.subr.bf16.mxu1 %v10185_v24  ;;  %v10266_v24 = vld [vmem:[%s15162_s2 + $0xf84] ss:$16 sps:$4 sm:$0xff]  }
  0x44   : > { %2233 = vmatpush1.bf16.msra.mxu0 %v10187_v27  ;;  %v10264_v27 = vld [vmem:[%s15162_s2 + $0xf80] ss:$16 sps:$4 sm:$0xff]  }
  0x45   : > { %2274 = vmatpush1.bf16.msra.mxu1 %v10188_v29  ;;  %2284 = vmatprep.subr.bf16.mxu0 %v10191_v30  ;;  %v10269_v29 = vld [vmem:[%s15162_s2 + $0xda4] ss:$16 sps:$4 sm:$0xff]  }
  0x46   : > { %2325 = vmatprep.subr.bf16.mxu1 %v10194_v31  ;;  %v10272_v30 = vld [vmem:[%s15162_s2 + $0xfa4] ss:$16 sps:$4 sm:$0xff]   ;;  %v10267_v31 = vld [vmem:[%s15162_s2 + $0xda0] ss:$16 sps:$4 sm:$0xff]  }
  0x47   : > { %2235 = vmatmul.mubr.bf16.vlgmr.msra.gmra.mrb[0].mxu0 %v11949_v28 }
  0x48   : > { %2276 = vmatmul.mubr.bf16.vlgmr.msra.gmra.mrb[0].mxu1 %v11966_v33  ;;  %2285 = vmatpush1.bf16.msra.mxu0 %v10189_v34  ;;  %v10270_v34 = vld [vmem:[%s15162_s2 + $0xfa0] ss:$16 sps:$4 sm:$0xff]  }
  0x49   : > { %2326 = vmatpush1.bf16.msra.mxu1 %v10192_v35  ;;  %2286 = vmatprep.subr.bf16.mxu0 %v10197_v36  ;;  %v10275_v35 = vld [vmem:[%s15162_s2 + $0xdc4] ss:$16 sps:$4 sm:$0xff]  }
  0x4a   : > { %2327 = vmatprep.subr.bf16.mxu1 %v10200_v37  ;;  %2316 = vmatprep.mubr.bf16.mxu0 %v11962_v32  ;;  %v10278_v36 = vld [vmem:[%s15162_s2 + $0xfc4] ss:$16 sps:$4 sm:$0xff]   ;;  %v10273_v37 = vld [vmem:[%s15162_s2 + $0xdc0] ss:$16 sps:$4 sm:$0xff]  }
  0x4b   : > { %2357 = vmatprep.mubr.bf16.mxu1 %v11982_v38 }
  0x4c   : > { %2287 = vmatpush1.bf16.msra.mxu0 %v10195_v39  ;;  %v10276_v39 = vld [vmem:[%s15162_s2 + $0xfc0] ss:$16 sps:$4 sm:$0xff]  }
  0x4d   : > { %2328 = vmatpush1.bf16.msra.mxu1 %v10198_v40  ;;  %2288 = vmatprep.subr.bf16.mxu0 %v10203_v41  ;;  %v10281_v40 = vld [vmem:[%s15162_s2 + $0xde4] ss:$16 sps:$4 sm:$0xff]  }
  0x4e   : > { %2329 = vmatprep.subr.bf16.mxu1 %v10206_v42  ;;  %v10284_v41 = vld [vmem:[%s15162_s2 + $0xfe4] ss:$16 sps:$4 sm:$0xff]   ;;  %v10279_v42 = vld [vmem:[%s15162_s2 + $0xde0] ss:$16 sps:$4 sm:$0xff]  }
  0x50   : > { %2289 = vmatpush1.bf16.msra.mxu0 %v10201_v43  ;;  %v12161_v43 = vrot.slane %v11921_v19, %v11894_v7 }
  0x51   : > { %2330 = vmatpush1.bf16.msra.mxu1 %v10204_v44  ;;  %2290 = vmatprep.subr.bf16.mxu0 %v10209_v45  ;;  %v10282_v44 = vld [vmem:[%s15162_s2 + $0xfe0] ss:$16 sps:$4 sm:$0xff]   ;;  %v10287_v45 = vld [vmem:[%s15162_s2 + $0x80c] ss:$16 sps:$4 sm:$0xff]  }
  0x52   : > { %2331 = vmatprep.subr.bf16.mxu1 %v10212_v46  ;;  %v10290_v46 = vld [vmem:[%s15162_s2 + $0xa0c] ss:$16 sps:$4 sm:$0xff]   ;;  %v12174_v19 = vcombine.high %v12161_v43, %v12161_v43 }
  0x54   : > { %2291 = vmatpush1.bf16.msra.mxu0 %v10207_v47  ;;  %v10285_v47 = vld [vmem:[%s15162_s2 + $0x808] ss:$16 sps:$4 sm:$0xff]  }
  0x55   : > { %2332 = vmatpush1.bf16.msra.mxu1 %v10210_v48  ;;  %2292 = vmatprep.subr.bf16.mxu0 %v10215_v50  ;;  %v10288_v48 = vld [vmem:[%s15162_s2 + $0xa08] ss:$16 sps:$4 sm:$0xff]   ;;  %v10293_v50 = vld [vmem:[%s15162_s2 + $0x82c] ss:$16 sps:$4 sm:$0xff]  }
  0x56   : > { %2333 = vmatprep.subr.bf16.mxu1 %v10218_v51  ;;  %v10296_v51 = vld [vmem:[%s15162_s2 + $0xa2c] ss:$16 sps:$4 sm:$0xff]  }
  0x58   : > { %2293 = vmatpush1.bf16.msra.mxu0 %v10213_v52  ;;  %v10291_v52 = vld [vmem:[%s15162_s2 + $0x828] ss:$16 sps:$4 sm:$0xff]  }
  0x59   : > { %2334 = vmatpush1.bf16.msra.mxu1 %v10216_v53  ;;  %2294 = vmatprep.subr.bf16.mxu0 %v10221_v54  ;;  %v10294_v53 = vld [vmem:[%s15162_s2 + $0xa28] ss:$16 sps:$4 sm:$0xff]   ;;  %v10299_v54 = vld [vmem:[%s15162_s2 + $0x84c] ss:$16 sps:$4 sm:$0xff]  }
  0x5a   : > { %2335 = vmatprep.subr.bf16.mxu1 %v10224_v55  ;;  %v10302_v55 = vld [vmem:[%s15162_s2 + $0xa4c] ss:$16 sps:$4 sm:$0xff]  }
  0x5c   : > { %2295 = vmatpush1.bf16.msra.mxu0 %v10219_v56  ;;  %v10297_v56 = vld [vmem:[%s15162_s2 + $0x848] ss:$16 sps:$4 sm:$0xff]  }
  0x5d   : > { %2336 = vmatpush1.bf16.msra.mxu1 %v10222_v57  ;;  %2296 = vmatprep.subr.bf16.mxu0 %v10227_v58  ;;  %v10300_v57 = vld [vmem:[%s15162_s2 + $0xa48] ss:$16 sps:$4 sm:$0xff]   ;;  %v10305_v58 = vld [vmem:[%s15162_s2 + $0x86c] ss:$16 sps:$4 sm:$0xff]  }
  0x5e   : > { %2337 = vmatprep.subr.bf16.mxu1 %v10230_v59  ;;  %v10306_v59 = vld [vmem:[%s15162_s2 + $0xa68] ss:$16 sps:$4 sm:$0xff]  }
  0x60   : > { %2297 = vmatpush1.bf16.msra.mxu0 %v10225_v60  ;;  %v10311_v60 = vld [vmem:[%s15162_s2 + $0x88c] ss:$16 sps:$4 sm:$0xff]  }
  0x61   : > { %2338 = vmatpush1.bf16.msra.mxu1 %v10228_v61  ;;  %2298 = vmatprep.subr.bf16.mxu0 %v10233_v62  ;;  %v10314_v61 = vld [vmem:[%s15162_s2 + $0xa8c] ss:$16 sps:$4 sm:$0xff]   ;;  %v10309_v62 = vld [vmem:[%s15162_s2 + $0x888] ss:$16 sps:$4 sm:$0xff]  }
  0x62   : > { %2339 = vmatprep.subr.bf16.mxu1 %v10236_v63  ;;  %v10312_v63 = vld [vmem:[%s15162_s2 + $0xa88] ss:$16 sps:$4 sm:$0xff]  }
  0x64   : > { %2299 = vmatpush1.bf16.msra.mxu0 %v10231_v0  ;;  %v10317_v0 = vld [vmem:[%s15162_s2 + $0x8ac] ss:$16 sps:$4 sm:$0xff]  }
  0x65   : > { %2340 = vmatpush1.bf16.msra.mxu1 %v10234_v1  ;;  %2300 = vmatprep.subr.bf16.mxu0 %v10239_v2  ;;  %v10320_v1 = vld [vmem:[%s15162_s2 + $0xaac] ss:$16 sps:$4 sm:$0xff]   ;;  %v10315_v2 = vld [vmem:[%s15162_s2 + $0x8a8] ss:$16 sps:$4 sm:$0xff]  }
  0x66   : > { %2341 = vmatprep.subr.bf16.mxu1 %v10242_v3  ;;  %v10318_v3 = vld [vmem:[%s15162_s2 + $0xaa8] ss:$16 sps:$4 sm:$0xff]  }
  0x68   : > { %2301 = vmatpush1.bf16.msra.mxu0 %v10237_v4  ;;  %v10323_v4 = vld [vmem:[%s15162_s2 + $0x8cc] ss:$16 sps:$4 sm:$0xff]  }
  0x69   : > { %2342 = vmatpush1.bf16.msra.mxu1 %v10240_v5  ;;  %2302 = vmatprep.subr.bf16.mxu0 %v10245_v8  ;;  %v10326_v5 = vld [vmem:[%s15162_s2 + $0xacc] ss:$16 sps:$4 sm:$0xff]   ;;  %v10321_v8 = vld [vmem:[%s15162_s2 + $0x8c8] ss:$16 sps:$4 sm:$0xff]  }
  0x6a   : > { %2343 = vmatprep.subr.bf16.mxu1 %v10248_v9  ;;  %v10324_v9 = vld [vmem:[%s15162_s2 + $0xac8] ss:$16 sps:$4 sm:$0xff]  }
  0x6c   : > { %2303 = vmatpush1.bf16.msra.mxu0 %v10243_v11  ;;  %v10329_v11 = vld [vmem:[%s15162_s2 + $0x8ec] ss:$16 sps:$4 sm:$0xff]  }
  0x6d   : > { %2344 = vmatpush1.bf16.msra.mxu1 %v10246_v12  ;;  %2304 = vmatprep.subr.bf16.mxu0 %v10251_v13  ;;  %v10332_v12 = vld [vmem:[%s15162_s2 + $0xaec] ss:$16 sps:$4 sm:$0xff]   ;;  %v10327_v13 = vld [vmem:[%s15162_s2 + $0x8e8] ss:$16 sps:$4 sm:$0xff]  }
  0x6e   : > { %2345 = vmatprep.subr.bf16.mxu1 %v10254_v14  ;;  %v10330_v14 = vld [vmem:[%s15162_s2 + $0xae8] ss:$16 sps:$4 sm:$0xff]  }
  0x70   : > { %2305 = vmatpush1.bf16.msra.mxu0 %v10249_v15  ;;  %v10335_v15 = vld [vmem:[%s15162_s2 + $0x90c] ss:$16 sps:$4 sm:$0xff]  }
  0x71   : > { %2346 = vmatpush1.bf16.msra.mxu1 %v10252_v16  ;;  %2306 = vmatprep.subr.bf16.mxu0 %v10257_v17  ;;  %v10338_v16 = vld [vmem:[%s15162_s2 + $0xb0c] ss:$16 sps:$4 sm:$0xff]   ;;  %v10333_v17 = vld [vmem:[%s15162_s2 + $0x908] ss:$16 sps:$4 sm:$0xff]  }
  0x72   : > { %2347 = vmatprep.subr.bf16.mxu1 %v10260_v18  ;;  %v10336_v18 = vld [vmem:[%s15162_s2 + $0xb08] ss:$16 sps:$4 sm:$0xff]  }
  0x74   : > { %2307 = vmatpush1.bf16.msra.mxu0 %v10255_v20  ;;  %v10341_v20 = vld [vmem:[%s15162_s2 + $0x92c] ss:$16 sps:$4 sm:$0xff]  }
  0x75   : > { %2348 = vmatpush1.bf16.msra.mxu1 %v10258_v21  ;;  %2308 = vmatprep.subr.bf16.mxu0 %v10263_v22  ;;  %v10344_v21 = vld [vmem:[%s15162_s2 + $0xb2c] ss:$16 sps:$4 sm:$0xff]   ;;  %v10339_v22 = vld [vmem:[%s15162_s2 + $0x928] ss:$16 sps:$4 sm:$0xff]  }
  0x76   : > { %2349 = vmatprep.subr.bf16.mxu1 %v10266_v24  ;;  %v10342_v24 = vld [vmem:[%s15162_s2 + $0xb28] ss:$16 sps:$4 sm:$0xff]  }
  0x78   : > { %2309 = vmatpush1.bf16.msra.mxu0 %v10261_v26  ;;  %v10347_v26 = vld [vmem:[%s15162_s2 + $0x94c] ss:$16 sps:$4 sm:$0xff]  }
  0x79   : > { %2350 = vmatpush1.bf16.msra.mxu1 %v10264_v27  ;;  %2310 = vmatprep.subr.bf16.mxu0 %v10269_v29  ;;  %v10350_v27 = vld [vmem:[%s15162_s2 + $0xb4c] ss:$16 sps:$4 sm:$0xff]   ;;  %v10345_v29 = vld [vmem:[%s15162_s2 + $0x948] ss:$16 sps:$4 sm:$0xff]  }
  0x7a   : > { %2351 = vmatprep.subr.bf16.mxu1 %v10272_v30  ;;  %v10348_v30 = vld [vmem:[%s15162_s2 + $0xb48] ss:$16 sps:$4 sm:$0xff]  }
  0x7c   : > { %2311 = vmatpush1.bf16.msra.mxu0 %v10267_v31  ;;  %v10353_v31 = vld [vmem:[%s15162_s2 + $0x96c] ss:$16 sps:$4 sm:$0xff]  }
  0x7d   : > { %2352 = vmatpush1.bf16.msra.mxu1 %v10270_v34  ;;  %2312 = vmatprep.subr.bf16.mxu0 %v10275_v35  ;;  %v10356_v34 = vld [vmem:[%s15162_s2 + $0xb6c] ss:$16 sps:$4 sm:$0xff]   ;;  %v10351_v35 = vld [vmem:[%s15162_s2 + $0x968] ss:$16 sps:$4 sm:$0xff]  }
  0x7e   : > { %2353 = vmatprep.subr.bf16.mxu1 %v10278_v36  ;;  %v10354_v36 = vld [vmem:[%s15162_s2 + $0xb68] ss:$16 sps:$4 sm:$0xff]  }
  0x80   : > { %2313 = vmatpush1.bf16.msra.mxu0 %v10273_v37  ;;  %v10359_v37 = vld [vmem:[%s15162_s2 + $0x98c] ss:$16 sps:$4 sm:$0xff]  }
  0x81   : > { %2354 = vmatpush1.bf16.msra.mxu1 %v10276_v39  ;;  %2314 = vmatprep.subr.bf16.mxu0 %v10281_v40  ;;  %v10362_v39 = vld [vmem:[%s15162_s2 + $0xb8c] ss:$16 sps:$4 sm:$0xff]   ;;  %v10357_v40 = vld [vmem:[%s15162_s2 + $0x988] ss:$16 sps:$4 sm:$0xff]  }
  0x82   : > { %2355 = vmatprep.subr.bf16.mxu1 %v10284_v41  ;;  %v10360_v41 = vld [vmem:[%s15162_s2 + $0xb88] ss:$16 sps:$4 sm:$0xff]  }
  0x84   : > { %2315 = vmatpush1.bf16.msra.mxu0 %v10279_v42  ;;  %v10365_v42 = vld [vmem:[%s15162_s2 + $0x9ac] ss:$16 sps:$4 sm:$0xff]  }
  0x85   : > { %2356 = vmatpush1.bf16.msra.mxu1 %v10282_v44  ;;  %2366 = vmatprep.subr.bf16.mxu0 %v10287_v45  ;;  %v10368_v44 = vld [vmem:[%s15162_s2 + $0xbac] ss:$16 sps:$4 sm:$0xff]   ;;  %v10363_v45 = vld [vmem:[%s15162_s2 + $0x9a8] ss:$16 sps:$4 sm:$0xff]  }
  0x86   : > { %2407 = vmatprep.subr.bf16.mxu1 %v10290_v46  ;;  %v10366_v46 = vld [vmem:[%s15162_s2 + $0xba8] ss:$16 sps:$4 sm:$0xff]  }
  0x87   : > { %2317 = vmatmul.mubr.bf16.vlgmr.msra.gmra.mrb[4].mxu0 %v12161_v43 }
  0x88   : > { %2358 = vmatmul.mubr.bf16.vlgmr.msra.gmra.mrb[4].mxu1 %v12174_v19  ;;  %2367 = vmatpush1.bf16.msra.mxu0 %v10285_v47  ;;  %v10371_v47 = vld [vmem:[%s15162_s2 + $0x9cc] ss:$16 sps:$4 sm:$0xff]  }
  0x89   : > { %2408 = vmatpush1.bf16.msra.mxu1 %v10288_v48  ;;  %2368 = vmatprep.subr.bf16.mxu0 %v10293_v50  ;;  %v10374_v48 = vld [vmem:[%s15162_s2 + $0xbcc] ss:$16 sps:$4 sm:$0xff]   ;;  %v10369_v50 = vld [vmem:[%s15162_s2 + $0x9c8] ss:$16 sps:$4 sm:$0xff]  }
  0x8a   : > { %2409 = vmatprep.subr.bf16.mxu1 %v10296_v51  ;;  %2398 = vmatprep.mubr.bf16.mxu0 %v11933_v23  ;;  %v10308_v23 = vld [vmem:[%s15162_s2 + $0xa6c] ss:$16 sps:$4 sm:$0xff]   ;;  %v10372_v51 = vld [vmem:[%s15162_s2 + $0xbc8] ss:$16 sps:$4 sm:$0xff]  }
  0x8b   : > { %2439 = vmatprep.mubr.bf16.mxu1 %v11941_v25  ;;  %v10303_v25 = vld [vmem:[%s15162_s2 + $0x868] ss:$16 sps:$4 sm:$0xff]  }
  0x8c   : > { %2369 = vmatpush1.bf16.msra.mxu0 %v10291_v52  ;;  %v10377_v52 = vld [vmem:[%s15162_s2 + $0x9ec] ss:$16 sps:$4 sm:$0xff]  }
  0x8d   : > { %2410 = vmatpush1.bf16.msra.mxu1 %v10294_v53  ;;  %2370 = vmatprep.subr.bf16.mxu0 %v10299_v54  ;;  %v10380_v53 = vld [vmem:[%s15162_s2 + $0xbec] ss:$16 sps:$4 sm:$0xff]   ;;  %v10375_v54 = vld [vmem:[%s15162_s2 + $0x9e8] ss:$16 sps:$4 sm:$0xff]  }
  0x8e   : > { %2411 = vmatprep.subr.bf16.mxu1 %v10302_v55  ;;  %v10378_v55 = vld [vmem:[%s15162_s2 + $0xbe8] ss:$16 sps:$4 sm:$0xff]  }
  0x90   : > { %2371 = vmatpush1.bf16.msra.mxu0 %v10297_v56  ;;  %v10383_v56 = vld [vmem:[%s15162_s2 + $0xc0c] ss:$16 sps:$4 sm:$0xff]  }
  0x91   : > { %2412 = vmatpush1.bf16.msra.mxu1 %v10300_v57  ;;  %2372 = vmatprep.subr.bf16.mxu0 %v10305_v58  ;;  %v10386_v57 = vld [vmem:[%s15162_s2 + $0xe0c] ss:$16 sps:$4 sm:$0xff]   ;;  %v10381_v58 = vld [vmem:[%s15162_s2 + $0xc08] ss:$16 sps:$4 sm:$0xff]  }
  0x92   : > { %2413 = vmatprep.subr.bf16.mxu1 %v10308_v23  ;;  %v10384_v23 = vld [vmem:[%s15162_s2 + $0xe08] ss:$16 sps:$4 sm:$0xff]  }
  0x94   : > { %2373 = vmatpush1.bf16.msra.mxu0 %v10303_v25  ;;  %v10389_v25 = vld [vmem:[%s15162_s2 + $0xc2c] ss:$16 sps:$4 sm:$0xff]  }
  0x95   : > { %2414 = vmatpush1.bf16.msra.mxu1 %v10306_v59  ;;  %2374 = vmatprep.subr.bf16.mxu0 %v10311_v60  ;;  %v10392_v59 = vld [vmem:[%s15162_s2 + $0xe2c] ss:$16 sps:$4 sm:$0xff]   ;;  %v10387_v60 = vld [vmem:[%s15162_s2 + $0xc28] ss:$16 sps:$4 sm:$0xff]  }
  0x96   : > { %2415 = vmatprep.subr.bf16.mxu1 %v10314_v61  ;;  %v10390_v61 = vld [vmem:[%s15162_s2 + $0xe28] ss:$16 sps:$4 sm:$0xff]  }
  0x98   : > { %2375 = vmatpush1.bf16.msra.mxu0 %v10309_v62  ;;  %v10395_v62 = vld [vmem:[%s15162_s2 + $0xc4c] ss:$16 sps:$4 sm:$0xff]  }
  0x99   : > { %2416 = vmatpush1.bf16.msra.mxu1 %v10312_v63  ;;  %2376 = vmatprep.subr.bf16.mxu0 %v10317_v0  ;;  %v10396_v63 = vld [vmem:[%s15162_s2 + $0xe48] ss:$16 sps:$4 sm:$0xff]   ;;  %v10401_v0 = vld [vmem:[%s15162_s2 + $0xc6c] ss:$16 sps:$4 sm:$0xff]  }
  0x9a   : > { %2417 = vmatprep.subr.bf16.mxu1 %v10320_v1  ;;  %v10402_v1 = vld [vmem:[%s15162_s2 + $0xe68] ss:$16 sps:$4 sm:$0xff]  }
  0x9c   : > { %2377 = vmatpush1.bf16.msra.mxu0 %v10315_v2  ;;  %v10407_v2 = vld [vmem:[%s15162_s2 + $0xc8c] ss:$16 sps:$4 sm:$0xff]  }
  0x9d   : > { %2418 = vmatpush1.bf16.msra.mxu1 %v10318_v3  ;;  %2378 = vmatprep.subr.bf16.mxu0 %v10323_v4  ;;  %v10410_v3 = vld [vmem:[%s15162_s2 + $0xe8c] ss:$16 sps:$4 sm:$0xff]   ;;  %v10405_v4 = vld [vmem:[%s15162_s2 + $0xc88] ss:$16 sps:$4 sm:$0xff]  }
  0x9e   : > { %2419 = vmatprep.subr.bf16.mxu1 %v10326_v5  ;;  %v10408_v5 = vld [vmem:[%s15162_s2 + $0xe88] ss:$16 sps:$4 sm:$0xff]  }
  0xa0   : > { %2379 = vmatpush1.bf16.msra.mxu0 %v10321_v8  ;;  %v10413_v8 = vld [vmem:[%s15162_s2 + $0xcac] ss:$16 sps:$4 sm:$0xff]  }
  0xa1   : > { %2420 = vmatpush1.bf16.msra.mxu1 %v10324_v9  ;;  %2380 = vmatprep.subr.bf16.mxu0 %v10329_v11  ;;  %v10416_v9 = vld [vmem:[%s15162_s2 + $0xeac] ss:$16 sps:$4 sm:$0xff]   ;;  %v10411_v11 = vld [vmem:[%s15162_s2 + $0xca8] ss:$16 sps:$4 sm:$0xff]  }
  0xa2   : > { %2421 = vmatprep.subr.bf16.mxu1 %v10332_v12  ;;  %v10414_v12 = vld [vmem:[%s15162_s2 + $0xea8] ss:$16 sps:$4 sm:$0xff]  }
  0xa4   : > { %2381 = vmatpush1.bf16.msra.mxu0 %v10327_v13  ;;  %v10419_v13 = vld [vmem:[%s15162_s2 + $0xccc] ss:$16 sps:$4 sm:$0xff]  }
  0xa5   : > { %2422 = vmatpush1.bf16.msra.mxu1 %v10330_v14  ;;  %2382 = vmatprep.subr.bf16.mxu0 %v10335_v15  ;;  %v10422_v14 = vld [vmem:[%s15162_s2 + $0xecc] ss:$16 sps:$4 sm:$0xff]   ;;  %v10417_v15 = vld [vmem:[%s15162_s2 + $0xcc8] ss:$16 sps:$4 sm:$0xff]  }
  0xa6   : > { %2423 = vmatprep.subr.bf16.mxu1 %v10338_v16  ;;  %v10420_v16 = vld [vmem:[%s15162_s2 + $0xec8] ss:$16 sps:$4 sm:$0xff]  }
  0xa8   : > { %2383 = vmatpush1.bf16.msra.mxu0 %v10333_v17  ;;  %v10425_v17 = vld [vmem:[%s15162_s2 + $0xcec] ss:$16 sps:$4 sm:$0xff]  }
  0xa9   : > { %2424 = vmatpush1.bf16.msra.mxu1 %v10336_v18  ;;  %2384 = vmatprep.subr.bf16.mxu0 %v10341_v20  ;;  %v10428_v18 = vld [vmem:[%s15162_s2 + $0xeec] ss:$16 sps:$4 sm:$0xff]   ;;  %v10423_v20 = vld [vmem:[%s15162_s2 + $0xce8] ss:$16 sps:$4 sm:$0xff]  }
  0xaa   : > { %2425 = vmatprep.subr.bf16.mxu1 %v10344_v21  ;;  %v10426_v21 = vld [vmem:[%s15162_s2 + $0xee8] ss:$16 sps:$4 sm:$0xff]  }
  0xac   : > { %2385 = vmatpush1.bf16.msra.mxu0 %v10339_v22  ;;  %v10431_v22 = vld [vmem:[%s15162_s2 + $0xd0c] ss:$16 sps:$4 sm:$0xff]  }
  0xad   : > { %2426 = vmatpush1.bf16.msra.mxu1 %v10342_v24  ;;  %2386 = vmatprep.subr.bf16.mxu0 %v10347_v26  ;;  %v10434_v24 = vld [vmem:[%s15162_s2 + $0xf0c] ss:$16 sps:$4 sm:$0xff]   ;;  %v10429_v26 = vld [vmem:[%s15162_s2 + $0xd08] ss:$16 sps:$4 sm:$0xff]  }
  0xae   : > { %2427 = vmatprep.subr.bf16.mxu1 %v10350_v27  ;;  %v10432_v27 = vld [vmem:[%s15162_s2 + $0xf08] ss:$16 sps:$4 sm:$0xff]  }
  0xb0   : > { %2387 = vmatpush1.bf16.msra.mxu0 %v10345_v29  ;;  %v10437_v29 = vld [vmem:[%s15162_s2 + $0xd2c] ss:$16 sps:$4 sm:$0xff]  }
  0xb1   : > { %2428 = vmatpush1.bf16.msra.mxu1 %v10348_v30  ;;  %2388 = vmatprep.subr.bf16.mxu0 %v10353_v31  ;;  %v10440_v30 = vld [vmem:[%s15162_s2 + $0xf2c] ss:$16 sps:$4 sm:$0xff]   ;;  %v10435_v31 = vld [vmem:[%s15162_s2 + $0xd28] ss:$16 sps:$4 sm:$0xff]  }
  0xb2   : > { %2429 = vmatprep.subr.bf16.mxu1 %v10356_v34  ;;  %v10438_v34 = vld [vmem:[%s15162_s2 + $0xf28] ss:$16 sps:$4 sm:$0xff]  }
  0xb4   : > { %2389 = vmatpush1.bf16.msra.mxu0 %v10351_v35  ;;  %v10443_v35 = vld [vmem:[%s15162_s2 + $0xd4c] ss:$16 sps:$4 sm:$0xff]  }
  0xb5   : > { %2430 = vmatpush1.bf16.msra.mxu1 %v10354_v36  ;;  %2390 = vmatprep.subr.bf16.mxu0 %v10359_v37  ;;  %v10446_v36 = vld [vmem:[%s15162_s2 + $0xf4c] ss:$16 sps:$4 sm:$0xff]   ;;  %v10441_v37 = vld [vmem:[%s15162_s2 + $0xd48] ss:$16 sps:$4 sm:$0xff]  }
  0xb6   : > { %2431 = vmatprep.subr.bf16.mxu1 %v10362_v39  ;;  %v10444_v39 = vld [vmem:[%s15162_s2 + $0xf48] ss:$16 sps:$4 sm:$0xff]  }
  0xb8   : > { %2391 = vmatpush1.bf16.msra.mxu0 %v10357_v40  ;;  %v10449_v40 = vld [vmem:[%s15162_s2 + $0xd6c] ss:$16 sps:$4 sm:$0xff]  }
  0xb9   : > { %2432 = vmatpush1.bf16.msra.mxu1 %v10360_v41  ;;  %2392 = vmatprep.subr.bf16.mxu0 %v10365_v42  ;;  %v10452_v41 = vld [vmem:[%s15162_s2 + $0xf6c] ss:$16 sps:$4 sm:$0xff]   ;;  %v10447_v42 = vld [vmem:[%s15162_s2 + $0xd68] ss:$16 sps:$4 sm:$0xff]  }
  0xba   : > { %2433 = vmatprep.subr.bf16.mxu1 %v10368_v44  ;;  %v10450_v44 = vld [vmem:[%s15162_s2 + $0xf68] ss:$16 sps:$4 sm:$0xff]  }
  0xbc   : > { %2393 = vmatpush1.bf16.msra.mxu0 %v10363_v45  ;;  %v10455_v45 = vld [vmem:[%s15162_s2 + $0xd8c] ss:$16 sps:$4 sm:$0xff]  }
  0xbd   : > { %2434 = vmatpush1.bf16.msra.mxu1 %v10366_v46  ;;  %2394 = vmatprep.subr.bf16.mxu0 %v10371_v47  ;;  %v10458_v46 = vld [vmem:[%s15162_s2 + $0xf8c] ss:$16 sps:$4 sm:$0xff]   ;;  %v10453_v47 = vld [vmem:[%s15162_s2 + $0xd88] ss:$16 sps:$4 sm:$0xff]  }
  0xbe   : > { %2435 = vmatprep.subr.bf16.mxu1 %v10374_v48  ;;  %v10456_v48 = vld [vmem:[%s15162_s2 + $0xf88] ss:$16 sps:$4 sm:$0xff]  }
  0xc0   : > { %2395 = vmatpush1.bf16.msra.mxu0 %v10369_v50  ;;  %v10461_v50 = vld [vmem:[%s15162_s2 + $0xdac] ss:$16 sps:$4 sm:$0xff]  }
  0xc1   : > { %2436 = vmatpush1.bf16.msra.mxu1 %v10372_v51  ;;  %2396 = vmatprep.subr.bf16.mxu0 %v10377_v52  ;;  %v10464_v51 = vld [vmem:[%s15162_s2 + $0xfac] ss:$16 sps:$4 sm:$0xff]   ;;  %v11629_v52 = vld.sshfl [vmem:[%s11850_s24] sm:$0xff pattern:$0x75316420] }
  0xc2   : > { %2437 = vmatprep.subr.bf16.mxu1 %v10380_v53  ;;  %v11630_v53 = vld.sshfl [vmem:[%s11850_s24 + $0x10] sm:$0xff pattern:$0x75316420] }
  0xc4   : > { %2397 = vmatpush1.bf16.msra.mxu0 %v10375_v54  ;;  %v8775_v54 = vcombine.low %v11629_v52, %v11630_v53  ;;  %v10530_v52 = vld [vmem:[%s15162_s2 + $0x304] ss:$16 sps:$4 sm:$0xff]   ;;  %v10525_v53 = vld [vmem:[%s15162_s2 + $0x100] ss:$16 sps:$4 sm:$0xff]  }
  0xc5   : > { %2438 = vmatpush1.bf16.msra.mxu1 %v10378_v55  ;;  %2448 = vmatprep.subr.bf16.mxu0 %v10383_v56  ;;  %v10459_v55 = vld [vmem:[%s15162_s2 + $0xda8] ss:$16 sps:$4 sm:$0xff]  }
  0xc6   : > { %2489 = vmatprep.subr.bf16.mxu1 %v10386_v57  ;;  %v10462_v56 = vld [vmem:[%s15162_s2 + $0xfa8] ss:$16 sps:$4 sm:$0xff]   ;;  %v10467_v57 = vld [vmem:[%s15162_s2 + $0xdcc] ss:$16 sps:$4 sm:$0xff]  }
  0xc7   : > { %2399 = vmatmul.mubr.bf16.vlgmr.msra.gmra.mrb[8].mxu0 %v11949_v28  ;;  %v10398_v28 = vld [vmem:[%s15162_s2 + $0xe4c] ss:$16 sps:$4 sm:$0xff]  }
  0xc8   : > { %2440 = vmatmul.mubr.bf16.vlgmr.msra.gmra.mrb[8].mxu1 %v11966_v33  ;;  %2449 = vmatpush1.bf16.msra.mxu0 %v10381_v58  ;;  %v10393_v33 = vld [vmem:[%s15162_s2 + $0xc48] ss:$16 sps:$4 sm:$0xff]   ;;  %v10470_v58 = vld [vmem:[%s15162_s2 + $0xfcc] ss:$16 sps:$4 sm:$0xff]  }
  0xc9   : > { %2490 = vmatpush1.bf16.msra.mxu1 %v10384_v23  ;;  %2450 = vmatprep.subr.bf16.mxu0 %v10389_v25  ;;  %v12547_v23 = vrot.slane %v8775_v54, %v11894_v7  ;;  %v10465_v25 = vld [vmem:[%s15162_s2 + $0xdc8] ss:$16 sps:$4 sm:$0xff]   ;;  %v10528_v54 = vld [vmem:[%s15162_s2 + $0x300] ss:$16 sps:$4 sm:$0xff]  }
  0xca   : > { %2491 = vmatprep.subr.bf16.mxu1 %v10392_v59  ;;  %2480 = vmatprep.mubr.bf16.mxu0 %v11962_v32  ;;  %v10404_v32 = vld [vmem:[%s15162_s2 + $0xe6c] ss:$16 sps:$4 sm:$0xff]   ;;  %v10468_v59 = vld [vmem:[%s15162_s2 + $0xfc8] ss:$16 sps:$4 sm:$0xff]  }
  0xcb   : > { %2521 = vmatprep.mubr.bf16.mxu1 %v11982_v38  ;;  %v10399_v38 = vld [vmem:[%s15162_s2 + $0xc68] ss:$16 sps:$4 sm:$0xff]  }
  0xcc   : > { %2451 = vmatpush1.bf16.msra.mxu0 %v10387_v60  ;;  %v10473_v60 = vld [vmem:[%s15162_s2 + $0xdec] ss:$16 sps:$4 sm:$0xff]  }
  0xcd   : > { %2492 = vmatpush1.bf16.msra.mxu1 %v10390_v61  ;;  %2452 = vmatprep.subr.bf16.mxu0 %v10395_v62  ;;  %v10476_v61 = vld [vmem:[%s15162_s2 + $0xfec] ss:$16 sps:$4 sm:$0xff]   ;;  %v2546_v62 = vcombine.high %v12547_v23, %v12547_v23 }
  0xce   : > { %2493 = vmatprep.subr.bf16.mxu1 %v10398_v28  ;;  %v10471_v28 = vld [vmem:[%s15162_s2 + $0xde8] ss:$16 sps:$4 sm:$0xff]  }
  0xd0   : > { %2453 = vmatpush1.bf16.msra.mxu0 %v10393_v33  ;;  %v10474_v33 = vld [vmem:[%s15162_s2 + $0xfe8] ss:$16 sps:$4 sm:$0xff]  }
  0xd1   : > { %2494 = vmatpush1.bf16.msra.mxu1 %v10396_v63  ;;  %2454 = vmatprep.subr.bf16.mxu0 %v10401_v0  ;;  %v10479_v63 = vld [vmem:[%s15162_s2 + $0x4] ss:$16 sps:$4 sm:$0xff]  }
  0xd2   : > { %2495 = vmatprep.subr.bf16.mxu1 %v10404_v32  ;;  %v10482_v0 = vld [vmem:[%s15162_s2 + $0x204] ss:$16 sps:$4 sm:$0xff]   ;;  %v12576_v32 = vrot.slane %v2546_v62, %v11894_v7 }
  0xd3   : > { %v10545_v62 = vld [vmem:[%s15162_s2 + $0x164] ss:$16 sps:$4 sm:$0xff]  }
  0xd4   : > { %2455 = vmatpush1.bf16.msra.mxu0 %v10399_v38  ;;  %v10477_v38 = vld [vmem:[%s15162_s2] ss:$16 sps:$4 sm:$0xff]  }
  0xd5   : > { %2496 = vmatpush1.bf16.msra.mxu1 %v10402_v1  ;;  %2456 = vmatprep.subr.bf16.mxu0 %v10407_v2  ;;  %v10480_v1 = vld [vmem:[%s15162_s2 + $0x200] ss:$16 sps:$4 sm:$0xff]   ;;  %v10485_v2 = vld [vmem:[%s15162_s2 + $0x24] ss:$16 sps:$4 sm:$0xff]  }
  0xd6   : > { %2497 = vmatprep.subr.bf16.mxu1 %v10410_v3  ;;  %v10488_v3 = vld [vmem:[%s15162_s2 + $0x224] ss:$16 sps:$4 sm:$0xff]  }
  0xd8   : > { %2457 = vmatpush1.bf16.msra.mxu0 %v10405_v4  ;;  %v12592_v4 = vcombine.high %v12576_v32, %v12576_v32 }
  0xd9   : > { %2498 = vmatpush1.bf16.msra.mxu1 %v10408_v5  ;;  %2458 = vmatprep.subr.bf16.mxu0 %v10413_v8  ;;  %v10483_v5 = vld [vmem:[%s15162_s2 + $0x20] ss:$16 sps:$4 sm:$0xff]  }
  0xda   : > { %2499 = vmatprep.subr.bf16.mxu1 %v10416_v9  ;;  %v10486_v8 = vld [vmem:[%s15162_s2 + $0x220] ss:$16 sps:$4 sm:$0xff]   ;;  %v10491_v9 = vld [vmem:[%s15162_s2 + $0x44] ss:$16 sps:$4 sm:$0xff]  }
  0xdc   : > { %2459 = vmatpush1.bf16.msra.mxu0 %v10411_v11  ;;  %v10492_v11 = vld [vmem:[%s15162_s2 + $0x240] ss:$16 sps:$4 sm:$0xff]  }
  0xdd   : > { %2500 = vmatpush1.bf16.msra.mxu1 %v10414_v12  ;;  %2460 = vmatprep.subr.bf16.mxu0 %v10419_v13  ;;  %v10497_v12 = vld [vmem:[%s15162_s2 + $0x64] ss:$16 sps:$4 sm:$0xff]  }
  0xde   : > { %2501 = vmatprep.subr.bf16.mxu1 %v10422_v14  ;;  %v10500_v13 = vld [vmem:[%s15162_s2 + $0x264] ss:$16 sps:$4 sm:$0xff]   ;;  %v10495_v14 = vld [vmem:[%s15162_s2 + $0x60] ss:$16 sps:$4 sm:$0xff]  }
  0xe0   : > { %2461 = vmatpush1.bf16.msra.mxu0 %v10417_v15  ;;  %v10498_v15 = vld [vmem:[%s15162_s2 + $0x260] ss:$16 sps:$4 sm:$0xff]  }
  0xe1   : > { %2502 = vmatpush1.bf16.msra.mxu1 %v10420_v16  ;;  %2462 = vmatprep.subr.bf16.mxu0 %v10425_v17  ;;  %v10503_v16 = vld [vmem:[%s15162_s2 + $0x84] ss:$16 sps:$4 sm:$0xff]  }
  0xe2   : > { %2503 = vmatprep.subr.bf16.mxu1 %v10428_v18  ;;  %v10506_v17 = vld [vmem:[%s15162_s2 + $0x284] ss:$16 sps:$4 sm:$0xff]   ;;  %v10501_v18 = vld [vmem:[%s15162_s2 + $0x80] ss:$16 sps:$4 sm:$0xff]  }
  0xe4   : > { %2463 = vmatpush1.bf16.msra.mxu0 %v10423_v20  ;;  %v10504_v20 = vld [vmem:[%s15162_s2 + $0x280] ss:$16 sps:$4 sm:$0xff]  }
  0xe5   : > { %2504 = vmatpush1.bf16.msra.mxu1 %v10426_v21  ;;  %2464 = vmatprep.subr.bf16.mxu0 %v10431_v22  ;;  %v10509_v21 = vld [vmem:[%s15162_s2 + $0xa4] ss:$16 sps:$4 sm:$0xff]  }
  0xe6   : > { %2505 = vmatprep.subr.bf16.mxu1 %v10434_v24  ;;  %v10512_v22 = vld [vmem:[%s15162_s2 + $0x2a4] ss:$16 sps:$4 sm:$0xff]   ;;  %v10507_v24 = vld [vmem:[%s15162_s2 + $0xa0] ss:$16 sps:$4 sm:$0xff]  }
  0xe8   : > { %2465 = vmatpush1.bf16.msra.mxu0 %v10429_v26  ;;  %v10510_v26 = vld [vmem:[%s15162_s2 + $0x2a0] ss:$16 sps:$4 sm:$0xff]  }
  0xe9   : > { %2506 = vmatpush1.bf16.msra.mxu1 %v10432_v27  ;;  %2466 = vmatprep.subr.bf16.mxu0 %v10437_v29  ;;  %v10515_v27 = vld [vmem:[%s15162_s2 + $0xc4] ss:$16 sps:$4 sm:$0xff]  }
  0xea   : > { %2507 = vmatprep.subr.bf16.mxu1 %v10440_v30  ;;  %v10518_v29 = vld [vmem:[%s15162_s2 + $0x2c4] ss:$16 sps:$4 sm:$0xff]  }
  0xec   : > { %2467 = vmatpush1.bf16.msra.mxu0 %v10435_v31 }
  0xed   : > { %2508 = vmatpush1.bf16.msra.mxu1 %v10438_v34  ;;  %2468 = vmatprep.subr.bf16.mxu0 %v10443_v35  ;;  %v10513_v34 = vld [vmem:[%s15162_s2 + $0xc0] ss:$16 sps:$4 sm:$0xff]  }
  0xee   : > { %2509 = vmatprep.subr.bf16.mxu1 %v10446_v36  ;;  %v10516_v35 = vld [vmem:[%s15162_s2 + $0x2c0] ss:$16 sps:$4 sm:$0xff]  }
  0xf0   : > { %2469 = vmatpush1.bf16.msra.mxu0 %v10441_v37 }
  0xf1   : > { %2510 = vmatpush1.bf16.msra.mxu1 %v10444_v39  ;;  %2470 = vmatprep.subr.bf16.mxu0 %v10449_v40 }
  0xf2   : > { %2511 = vmatprep.subr.bf16.mxu1 %v10452_v41 }
  0xf4   : > { %2471 = vmatpush1.bf16.msra.mxu0 %v10447_v42 }
  0xf5   : > { %2512 = vmatpush1.bf16.msra.mxu1 %v10450_v44  ;;  %2472 = vmatprep.subr.bf16.mxu0 %v10455_v45 }
  0xf6   : > { %2513 = vmatprep.subr.bf16.mxu1 %v10458_v46  ;;  %v10521_v46 = vld [vmem:[%s15162_s2 + $0xe4] ss:$16 sps:$4 sm:$0xff]  }
  0xf8   : > { %2473 = vmatpush1.bf16.msra.mxu0 %v10453_v47  ;;  %v10524_v47 = vld [vmem:[%s15162_s2 + $0x2e4] ss:$16 sps:$4 sm:$0xff]  }
  0xf9   : > { %2514 = vmatpush1.bf16.msra.mxu1 %v10456_v48  ;;  %2474 = vmatprep.subr.bf16.mxu0 %v10461_v50  ;;  %v10519_v48 = vld [vmem:[%s15162_s2 + $0xe0] ss:$16 sps:$4 sm:$0xff]  }
  0xfa   : > { %2515 = vmatprep.subr.bf16.mxu1 %v10464_v51  ;;  %v10522_v50 = vld [vmem:[%s15162_s2 + $0x2e0] ss:$16 sps:$4 sm:$0xff]   ;;  %v10527_v51 = vld [vmem:[%s15162_s2 + $0x104] ss:$16 sps:$4 sm:$0xff]  }
  0xfc   : > { %2475 = vmatpush1.bf16.msra.mxu0 %v10459_v55  ;;  %v10533_v55 = vld [vmem:[%s15162_s2 + $0x124] ss:$16 sps:$4 sm:$0xff]  }
  0xfd   : > { %2516 = vmatpush1.bf16.msra.mxu1 %v10462_v56  ;;  %2476 = vmatprep.subr.bf16.mxu0 %v10467_v57  ;;  %v10536_v56 = vld [vmem:[%s15162_s2 + $0x324] ss:$16 sps:$4 sm:$0xff]   ;;  %v10531_v57 = vld [vmem:[%s15162_s2 + $0x120] ss:$16 sps:$4 sm:$0xff]  }
  0xfe   : > { %2517 = vmatprep.subr.bf16.mxu1 %v10470_v58  ;;  %v10534_v58 = vld [vmem:[%s15162_s2 + $0x320] ss:$16 sps:$4 sm:$0xff]  }
 0x100   : > { %2477 = vmatpush1.bf16.msra.mxu0 %v10465_v25  ;;  %v10539_v25 = vld [vmem:[%s15162_s2 + $0x144] ss:$16 sps:$4 sm:$0xff]  }
 0x101   : > { %2518 = vmatpush1.bf16.msra.mxu1 %v10468_v59  ;;  %2478 = vmatprep.subr.bf16.mxu0 %v10473_v60  ;;  %v10542_v59 = vld [vmem:[%s15162_s2 + $0x344] ss:$16 sps:$4 sm:$0xff]   ;;  %v10537_v60 = vld [vmem:[%s15162_s2 + $0x140] ss:$16 sps:$4 sm:$0xff]  }
 0x102   : > { %2519 = vmatprep.subr.bf16.mxu1 %v10476_v61  ;;  %v10540_v61 = vld [vmem:[%s15162_s2 + $0x340] ss:$16 sps:$4 sm:$0xff]  }
 0x104   : > { %2479 = vmatpush1.bf16.msra.mxu0 %v10471_v28  ;;  %v10548_v28 = vld [vmem:[%s15162_s2 + $0x364] ss:$16 sps:$4 sm:$0xff]  }
 0x105   : > { %2520 = vmatpush1.bf16.msra.mxu1 %v10474_v33  ;;  %3868 = vmatprep.subr.bf16.mxu0 %v10479_v63  ;;  %v10543_v33 = vld [vmem:[%s15162_s2 + $0x160] ss:$16 sps:$4 sm:$0xff]  }
 0x106   : > { %3909 = vmatprep.subr.bf16.mxu1 %v10482_v0  ;;  %v10546_v63 = vld [vmem:[%s15162_s2 + $0x360] ss:$16 sps:$4 sm:$0xff]   ;;  %v10551_v0 = vld [vmem:[%s15162_s2 + $0x184] ss:$16 sps:$4 sm:$0xff]  }
 0x107   : > { %2481 = vmatmul.mubr.bf16.vlgmr.msra.gmra.mrb[12].mxu0 %v12161_v43  ;;  %v10494_v43 = vld [vmem:[%s15162_s2 + $0x244] ss:$16 sps:$4 sm:$0xff]  }
 0x108   : > { %2522 = vmatmul.mubr.bf16.vlgmr.msra.gmra.mrb[12].mxu1 %v12174_v19  ;;  %3869 = vmatpush1.bf16.msra.mxu0 %v10477_v38  ;;  %v10489_v19 = vld [vmem:[%s15162_s2 + $0x40] ss:$16 sps:$4 sm:$0xff]   ;;  %v10554_v38 = vld [vmem:[%s15162_s2 + $0x384] ss:$16 sps:$4 sm:$0xff]  }
 0x109   : > { %3910 = vmatpush1.bf16.msra.mxu1 %v10480_v1  ;;  %3870 = vmatprep.subr.bf16.mxu0 %v10485_v2  ;;  %v10549_v1 = vld [vmem:[%s15162_s2 + $0x180] ss:$16 sps:$4 sm:$0xff]  }
 0x10a   : > { %3911 = vmatprep.subr.bf16.mxu1 %v10488_v3  ;;  %3900 = vmatprep.mubr.bf16.mxu0 %v12576_v32  ;;  %v10552_v2 = vld [vmem:[%s15162_s2 + $0x380] ss:$16 sps:$4 sm:$0xff]   ;;  %v10557_v3 = vld [vmem:[%s15162_s2 + $0x1a4] ss:$16 sps:$4 sm:$0xff]  }
 0x10b   : > { %3941 = vmatprep.mubr.bf16.mxu1 %v12592_v4 }
 0x10c   : > { %3871 = vmatpush1.bf16.msra.mxu0 %v10483_v5  ;;  %v10560_v5 = vld [vmem:[%s15162_s2 + $0x3a4] ss:$16 sps:$4 sm:$0xff]  }
 0x10d   : > { %3912 = vmatpush1.bf16.msra.mxu1 %v10486_v8  ;;  %3872 = vmatprep.subr.bf16.mxu0 %v10491_v9  ;;  %v11631_v8 = vld.sshfl [vmem:[%s11850_s24 + $0x8] sm:$0xff pattern:$0x75316420]  ;;  %v11632_v9 = vld.sshfl [vmem:[%s11850_s24 + $0x18] sm:$0xff pattern:$0x75316420] }
 0x10e   : > { %3913 = vmatprep.subr.bf16.mxu1 %v10494_v43  ;;  %v8776_v43 = vcombine.low %v11631_v8, %v11632_v9 }
 0x110   : > { %3873 = vmatpush1.bf16.msra.mxu0 %v10489_v19  ;;  %v10555_v19 = vld [vmem:[%s15162_s2 + $0x1a0] ss:$16 sps:$4 sm:$0xff]  }
 0x111   : > { %3914 = vmatpush1.bf16.msra.mxu1 %v10492_v11  ;;  %3874 = vmatprep.subr.bf16.mxu0 %v10497_v12  ;;  %v10558_v11 = vld [vmem:[%s15162_s2 + $0x3a0] ss:$16 sps:$4 sm:$0xff]   ;;  %v10563_v12 = vld [vmem:[%s15162_s2 + $0x1c4] ss:$16 sps:$4 sm:$0xff]  }
 0x112   : > { %3915 = vmatprep.subr.bf16.mxu1 %v10500_v13  ;;  %v10566_v13 = vld [vmem:[%s15162_s2 + $0x3c4] ss:$16 sps:$4 sm:$0xff]  }
 0x114   : > { %3875 = vmatpush1.bf16.msra.mxu0 %v10495_v14  ;;  %v12761_v14 = vrot.slane %v8776_v43, %v11894_v7  ;;  %v10617_v43 = vld [vmem:[%s15162_s2 + $0x4e4] ss:$16 sps:$4 sm:$0xff]  }
 0x115   : > { %3916 = vmatpush1.bf16.msra.mxu1 %v10498_v15  ;;  %3876 = vmatprep.subr.bf16.mxu0 %v10503_v16  ;;  %v10561_v15 = vld [vmem:[%s15162_s2 + $0x1c0] ss:$16 sps:$4 sm:$0xff]  }
 0x116   : > { %3917 = vmatprep.subr.bf16.mxu1 %v10506_v17  ;;  %v10564_v16 = vld [vmem:[%s15162_s2 + $0x3c0] ss:$16 sps:$4 sm:$0xff]   ;;  %v10569_v17 = vld [vmem:[%s15162_s2 + $0x1e4] ss:$16 sps:$4 sm:$0xff]  }
 0x118   : > { %3877 = vmatpush1.bf16.msra.mxu0 %v10501_v18  ;;  %v10572_v18 = vld [vmem:[%s15162_s2 + $0x3e4] ss:$16 sps:$4 sm:$0xff]  }
 0x119   : > { %3918 = vmatpush1.bf16.msra.mxu1 %v10504_v20  ;;  %3878 = vmatprep.subr.bf16.mxu0 %v10509_v21  ;;  %v2547_v20 = vcombine.high %v12761_v14, %v12761_v14  ;;  %v12779_v21 = vrot.slane %v12547_v23, %v11894_v7  ;;  %v10578_v23 = vld [vmem:[%s15162_s2 + $0x604] ss:$16 sps:$4 sm:$0xff]  }
 0x11a   : > { %3919 = vmatprep.subr.bf16.mxu1 %v10512_v22  ;;  %v2236_v30 = vpop.f32.mrb[0].mxu0  ;;  %v10567_v22 = vld [vmem:[%s15162_s2 + $0x1e0] ss:$16 sps:$4 sm:$0xff]  }
 0x11b   : > { %v2277_v31 = vpop.f32.mrb[0].mxu1  ;;  %v2238_v37 = vpop.f32.mrb[1].mxu0 }
 0x11c   : > { %v12664_v36 = vadd.f32 %v2277_v31, %v2236_v30  ;;  %v2279_v39 = vpop.f32.mrb[1].mxu1  ;;  %v2240_v41 = vpop.f32.mrb[2].mxu0  ;;  %3879 = vmatpush1.bf16.msra.mxu0 %v10507_v24  ;;  %v10570_v24 = vld [vmem:[%s15162_s2 + $0x3e0] ss:$16 sps:$4 sm:$0xff]   ;;  %v12800_v30 = vrot.slane %v2547_v20, %v11894_v7  ;;  %v12804_v31 = vcombine.high %v12779_v21, %v12779_v21 }
 0x11d   : > { %v12666_v40 = vadd.f32 %v2279_v39, %v2238_v37  ;;  %v2281_v42 = vpop.f32.mrb[2].mxu1  ;;  %3920 = vmatpush1.bf16.msra.mxu1 %v10510_v26  ;;  %v2241_v44 = vpop.f32.mrb[3].mxu0  ;;  %3880 = vmatprep.subr.bf16.mxu0 %v10515_v27  ;;  %v10575_v26 = vld [vmem:[%s15162_s2 + $0x404] ss:$16 sps:$4 sm:$0xff]   ;;  %v10573_v27 = vld [vmem:[%s15162_s2 + $0x400] ss:$16 sps:$4 sm:$0xff]  }
 0x11e   : > { %v2282_v45 = vpop.f32.mrb[3].mxu1  ;;  %3921 = vmatprep.subr.bf16.mxu1 %v10518_v29  ;;  %v10576_v29 = vld [vmem:[%s15162_s2 + $0x600] ss:$16 sps:$4 sm:$0xff]   ;;  %v12814_v37 = vcombine.high %v12800_v30, %v12800_v30  ;;  %v10587_v42 = vld [vmem:[%s15162_s2 + $0x444] ss:$16 sps:$4 sm:$0xff]  }
 0x11f   : > { %v10579_v39 = vld [vmem:[%s15162_s2 + $0x420] ss:$16 sps:$4 sm:$0xff]   ;;  %v10590_v44 = vld [vmem:[%s15162_s2 + $0x644] ss:$16 sps:$4 sm:$0xff]  }
 0x120   : > { %3881 = vmatpush1.bf16.msra.mxu0 %v10513_v34  ;;  %v10581_v34 = vld [vmem:[%s15162_s2 + $0x424] ss:$16 sps:$4 sm:$0xff]   ;;  %v10582_v41 = vld [vmem:[%s15162_s2 + $0x620] ss:$16 sps:$4 sm:$0xff]  }
 0x121   : > { %3922 = vmatpush1.bf16.msra.mxu1 %v10516_v35  ;;  %3882 = vmatprep.subr.bf16.mxu0 %v10521_v46  ;;  %v10584_v35 = vld [vmem:[%s15162_s2 + $0x624] ss:$16 sps:$4 sm:$0xff]   ;;  %v10585_v45 = vld [vmem:[%s15162_s2 + $0x440] ss:$16 sps:$4 sm:$0xff]  }
 0x122   : > { %3923 = vmatprep.subr.bf16.mxu1 %v10524_v47  ;;  %v10588_v46 = vld [vmem:[%s15162_s2 + $0x640] ss:$16 sps:$4 sm:$0xff]   ;;  %v10593_v47 = vld [vmem:[%s15162_s2 + $0x464] ss:$16 sps:$4 sm:$0xff]  }
 0x123   : > { %v10627_v20 = vld [vmem:[%s15162_s2 + $0x520] ss:$16 sps:$4 sm:$0xff]  }
 0x124   : > { %3883 = vmatpush1.bf16.msra.mxu0 %v10519_v48  ;;  %v10596_v48 = vld [vmem:[%s15162_s2 + $0x664] ss:$16 sps:$4 sm:$0xff]  }
 0x125   : > { %3924 = vmatpush1.bf16.msra.mxu1 %v10522_v50  ;;  %3884 = vmatprep.subr.bf16.mxu0 %v10527_v51  ;;  %v10591_v50 = vld [vmem:[%s15162_s2 + $0x460] ss:$16 sps:$4 sm:$0xff]  }
 0x126   : > { %3925 = vmatprep.subr.bf16.mxu1 %v10530_v52  ;;  %v10594_v51 = vld [vmem:[%s15162_s2 + $0x660] ss:$16 sps:$4 sm:$0xff]   ;;  %v10599_v52 = vld [vmem:[%s15162_s2 + $0x484] ss:$16 sps:$4 sm:$0xff]  }
 0x128   : > { %3885 = vmatpush1.bf16.msra.mxu0 %v10525_v53  ;;  %v10602_v53 = vld [vmem:[%s15162_s2 + $0x684] ss:$16 sps:$4 sm:$0xff]  }
 0x129   : > { %3926 = vmatpush1.bf16.msra.mxu1 %v10528_v54  ;;  %3886 = vmatprep.subr.bf16.mxu0 %v10533_v55  ;;  %v10597_v54 = vld [vmem:[%s15162_s2 + $0x480] ss:$16 sps:$4 sm:$0xff]  }
 0x12a   : > { %3927 = vmatprep.subr.bf16.mxu1 %v10536_v56  ;;  %v10600_v55 = vld [vmem:[%s15162_s2 + $0x680] ss:$16 sps:$4 sm:$0xff]   ;;  %v10605_v56 = vld [vmem:[%s15162_s2 + $0x4a4] ss:$16 sps:$4 sm:$0xff]  }
 0x12c   : > { %3887 = vmatpush1.bf16.msra.mxu0 %v10531_v57  ;;  %v10608_v57 = vld [vmem:[%s15162_s2 + $0x6a4] ss:$16 sps:$4 sm:$0xff]  }
 0x12d   : > { %3928 = vmatpush1.bf16.msra.mxu1 %v10534_v58  ;;  %3888 = vmatprep.subr.bf16.mxu0 %v10539_v25  ;;  %v10603_v58 = vld [vmem:[%s15162_s2 + $0x4a0] ss:$16 sps:$4 sm:$0xff]  }
 0x12e   : > { %3929 = vmatprep.subr.bf16.mxu1 %v10542_v59  ;;  %v10606_v25 = vld [vmem:[%s15162_s2 + $0x6a0] ss:$16 sps:$4 sm:$0xff]   ;;  %v10611_v59 = vld [vmem:[%s15162_s2 + $0x4c4] ss:$16 sps:$4 sm:$0xff]  }
 0x130   : > { %3889 = vmatpush1.bf16.msra.mxu0 %v10537_v60  ;;  %v10614_v60 = vld [vmem:[%s15162_s2 + $0x6c4] ss:$16 sps:$4 sm:$0xff]  }
 0x131   : > { %3930 = vmatpush1.bf16.msra.mxu1 %v10540_v61  ;;  %3890 = vmatprep.subr.bf16.mxu0 %v10545_v62 }
 0x132   : > { %3931 = vmatprep.subr.bf16.mxu1 %v10548_v28  ;;  %v10609_v28 = vld [vmem:[%s15162_s2 + $0x4c0] ss:$16 sps:$4 sm:$0xff]  }
 0x134   : > { %3891 = vmatpush1.bf16.msra.mxu0 %v10543_v33  ;;  %v10612_v33 = vld [vmem:[%s15162_s2 + $0x6c0] ss:$16 sps:$4 sm:$0xff]  }
 0x135   : > { %3932 = vmatpush1.bf16.msra.mxu1 %v10546_v63  ;;  %3892 = vmatprep.subr.bf16.mxu0 %v10551_v0 }
 0x136   : > { %3933 = vmatprep.subr.bf16.mxu1 %v10554_v38 }
 0x138   : > { %3893 = vmatpush1.bf16.msra.mxu0 %v10549_v1 }
 0x139   : > { %3934 = vmatpush1.bf16.msra.mxu1 %v10552_v2  ;;  %3894 = vmatprep.subr.bf16.mxu0 %v10557_v3 }
 0x13a   : > { %3935 = vmatprep.subr.bf16.mxu1 %v10560_v5 }
 0x13c   : > { %3895 = vmatpush1.bf16.msra.mxu0 %v10555_v19 }
 0x13d   : > { %3936 = vmatpush1.bf16.msra.mxu1 %v10558_v11  ;;  %3896 = vmatprep.subr.bf16.mxu0 %v10563_v12  ;;  %v10618_v11 = vld [vmem:[%s15162_s2 + $0x6e0] ss:$16 sps:$4 sm:$0xff]   ;;  %v10623_v12 = vld [vmem:[%s15162_s2 + $0x504] ss:$16 sps:$4 sm:$0xff]  }
 0x13e   : > { %3937 = vmatprep.subr.bf16.mxu1 %v10566_v13  ;;  %v10626_v13 = vld [vmem:[%s15162_s2 + $0x704] ss:$16 sps:$4 sm:$0xff]  }
 0x140   : > { %3897 = vmatpush1.bf16.msra.mxu0 %v10561_v15  ;;  %v10621_v15 = vld [vmem:[%s15162_s2 + $0x500] ss:$16 sps:$4 sm:$0xff]  }
 0x141   : > { %3938 = vmatpush1.bf16.msra.mxu1 %v10564_v16  ;;  %3898 = vmatprep.subr.bf16.mxu0 %v10569_v17  ;;  %v10624_v16 = vld [vmem:[%s15162_s2 + $0x700] ss:$16 sps:$4 sm:$0xff]   ;;  %v10629_v17 = vld [vmem:[%s15162_s2 + $0x524] ss:$16 sps:$4 sm:$0xff]  }
 0x142   : > { %3939 = vmatprep.subr.bf16.mxu1 %v10572_v18  ;;  %v10632_v18 = vld [vmem:[%s15162_s2 + $0x724] ss:$16 sps:$4 sm:$0xff]  }
 0x144   : > { %3899 = vmatpush1.bf16.msra.mxu0 %v10567_v22  ;;  %v10630_v22 = vld [vmem:[%s15162_s2 + $0x720] ss:$16 sps:$4 sm:$0xff]  }
 0x145   : > { %3940 = vmatpush1.bf16.msra.mxu1 %v10570_v24  ;;  %3950 = vmatprep.subr.bf16.mxu0 %v10575_v26  ;;  %v10635_v24 = vld [vmem:[%s15162_s2 + $0x544] ss:$16 sps:$4 sm:$0xff]  }
 0x146   : > { %3991 = vmatprep.subr.bf16.mxu1 %v10578_v23  ;;  %v10638_v26 = vld [vmem:[%s15162_s2 + $0x744] ss:$16 sps:$4 sm:$0xff]   ;;  %v10633_v23 = vld [vmem:[%s15162_s2 + $0x540] ss:$16 sps:$4 sm:$0xff]  }
 0x147   : > { %3901 = vmatmul.mubr.bf16.vlgmr.msra.gmra.mrb[16].mxu0 %v12779_v21 }
 0x148   : > { %3942 = vmatmul.mubr.bf16.vlgmr.msra.gmra.mrb[16].mxu1 %v12804_v31  ;;  %3951 = vmatpush1.bf16.msra.mxu0 %v10573_v27  ;;  %v10636_v27 = vld [vmem:[%s15162_s2 + $0x740] ss:$16 sps:$4 sm:$0xff]  }
 0x149   : > { %3992 = vmatpush1.bf16.msra.mxu1 %v10576_v29  ;;  %3952 = vmatprep.subr.bf16.mxu0 %v10581_v34  ;;  %v10641_v29 = vld [vmem:[%s15162_s2 + $0x564] ss:$16 sps:$4 sm:$0xff]  }
 0x14a   : > { %3993 = vmatprep.subr.bf16.mxu1 %v10584_v35  ;;  %3982 = vmatprep.mubr.bf16.mxu0 %v12800_v30  ;;  %v10644_v34 = vld [vmem:[%s15162_s2 + $0x764] ss:$16 sps:$4 sm:$0xff]   ;;  %v10639_v35 = vld [vmem:[%s15162_s2 + $0x560] ss:$16 sps:$4 sm:$0xff]  }
 0x14b   : > { %4023 = vmatprep.mubr.bf16.mxu1 %v12814_v37 }
 0x14c   : > { %3953 = vmatpush1.bf16.msra.mxu0 %v10579_v39  ;;  %v10642_v39 = vld [vmem:[%s15162_s2 + $0x760] ss:$16 sps:$4 sm:$0xff]  }
 0x14d   : > { %3994 = vmatpush1.bf16.msra.mxu1 %v10582_v41  ;;  %3954 = vmatprep.subr.bf16.mxu0 %v10587_v42  ;;  %v10647_v41 = vld [vmem:[%s15162_s2 + $0x584] ss:$16 sps:$4 sm:$0xff]  }
 0x14e   : > { %3995 = vmatprep.subr.bf16.mxu1 %v10590_v44  ;;  %v10650_v42 = vld [vmem:[%s15162_s2 + $0x784] ss:$16 sps:$4 sm:$0xff]   ;;  %v10645_v44 = vld [vmem:[%s15162_s2 + $0x580] ss:$16 sps:$4 sm:$0xff]  }
 0x150   : > { %3955 = vmatpush1.bf16.msra.mxu0 %v10585_v45  ;;  %v10648_v45 = vld [vmem:[%s15162_s2 + $0x780] ss:$16 sps:$4 sm:$0xff]  }
 0x151   : > { %3996 = vmatpush1.bf16.msra.mxu1 %v10588_v46  ;;  %3956 = vmatprep.subr.bf16.mxu0 %v10593_v47  ;;  %v10653_v46 = vld [vmem:[%s15162_s2 + $0x5a4] ss:$16 sps:$4 sm:$0xff]  }
 0x152   : > { %3997 = vmatprep.subr.bf16.mxu1 %v10596_v48  ;;  %v10656_v47 = vld [vmem:[%s15162_s2 + $0x7a4] ss:$16 sps:$4 sm:$0xff]   ;;  %v10651_v48 = vld [vmem:[%s15162_s2 + $0x5a0] ss:$16 sps:$4 sm:$0xff]  }
 0x154   : > { %3957 = vmatpush1.bf16.msra.mxu0 %v10591_v50  ;;  %v10654_v50 = vld [vmem:[%s15162_s2 + $0x7a0] ss:$16 sps:$4 sm:$0xff]  }
 0x155   : > { %3998 = vmatpush1.bf16.msra.mxu1 %v10594_v51  ;;  %3958 = vmatprep.subr.bf16.mxu0 %v10599_v52  ;;  %v10659_v51 = vld [vmem:[%s15162_s2 + $0x5c4] ss:$16 sps:$4 sm:$0xff]  }
 0x156   : > { %3999 = vmatprep.subr.bf16.mxu1 %v10602_v53  ;;  %v10662_v52 = vld [vmem:[%s15162_s2 + $0x7c4] ss:$16 sps:$4 sm:$0xff]   ;;  %v10657_v53 = vld [vmem:[%s15162_s2 + $0x5c0] ss:$16 sps:$4 sm:$0xff]  }
 0x158   : > { %3959 = vmatpush1.bf16.msra.mxu0 %v10597_v54  ;;  %v10660_v54 = vld [vmem:[%s15162_s2 + $0x7c0] ss:$16 sps:$4 sm:$0xff]  }
 0x159   : > { %4000 = vmatpush1.bf16.msra.mxu1 %v10600_v55  ;;  %3960 = vmatprep.subr.bf16.mxu0 %v10605_v56  ;;  %v10665_v55 = vld [vmem:[%s15162_s2 + $0x5e4] ss:$16 sps:$4 sm:$0xff]  }
 0x15a   : > { %4001 = vmatprep.subr.bf16.mxu1 %v10608_v57  ;;  %v2318_v61 = vpop.f32.mrb[4].mxu0  ;;  %v10668_v56 = vld [vmem:[%s15162_s2 + $0x7e4] ss:$16 sps:$4 sm:$0xff]   ;;  %v12996_v57 = vrot.slane %v12761_v14, %v11894_v7  ;;  %v10674_v14 = vld [vmem:[%s15162_s2 + $0x20c] ss:$16 sps:$4 sm:$0xff]  }
 0x15b   : > { %v2359_v62 = vpop.f32.mrb[4].mxu1  ;;  %v2319_v63 = vadd.f32 %v2318_v61, %v12664_v36  ;;  %v2320_v0 = vpop.f32.mrb[5].mxu0  ;;  %v10620_v36 = vld [vmem:[%s15162_s2 + $0x6e4] ss:$16 sps:$4 sm:$0xff]   ;;  %v10672_v61 = vld [vmem:[%s15162_s2 + $0x208] ss:$16 sps:$4 sm:$0xff]  }
 0x15c   : > { %v2361_v38 = vpop.f32.mrb[5].mxu1  ;;  %v2321_v1 = vadd.f32 %v2320_v0, %v12666_v40  ;;  %v2322_v2 = vpop.f32.mrb[6].mxu0  ;;  %3961 = vmatpush1.bf16.msra.mxu0 %v10603_v58  ;;  %v10615_v40 = vld [vmem:[%s15162_s2 + $0x4e0] ss:$16 sps:$4 sm:$0xff]   ;;  %v10678_v0 = vld [vmem:[%s15162_s2 + $0x228] ss:$16 sps:$4 sm:$0xff]  }
 0x15d   : > { %v2363_v3 = vpop.f32.mrb[6].mxu1  ;;  %4002 = vmatpush1.bf16.msra.mxu1 %v10606_v25  ;;  %v12888_v5 = vadd.f32 %v2359_v62, %v2319_v63  ;;  %v2323_v8 = vpop.f32.mrb[7].mxu0  ;;  %3962 = vmatprep.subr.bf16.mxu0 %v10611_v59  ;;  %v10663_v58 = vld [vmem:[%s15162_s2 + $0x5e0] ss:$16 sps:$4 sm:$0xff]   ;;  %v10671_v59 = vld [vmem:[%s15162_s2 + $0xc] ss:$16 sps:$4 sm:$0xff]   ;;  %v13018_v62 = vcombine.high %v12996_v57, %v12996_v57 }
 0x15e   : > { %v2364_v9 = vpop.f32.mrb[7].mxu1  ;;  %4003 = vmatprep.subr.bf16.mxu1 %v10614_v60  ;;  %v12896_v19 = vadd.f32 %v2361_v38, %v2321_v1  ;;  %v10666_v25 = vld [vmem:[%s15162_s2 + $0x7e0] ss:$16 sps:$4 sm:$0xff]   ;;  %v10669_v60 = vld [vmem:[%s15162_s2 + $0x8] ss:$16 sps:$4 sm:$0xff]  }
 0x15f   : > { %v10675_v63 = vld [vmem:[%s15162_s2 + $0x28] ss:$16 sps:$4 sm:$0xff]   ;;  %v10683_v38 = vld [vmem:[%s15162_s2 + $0x4c] ss:$16 sps:$4 sm:$0xff]  }
 0x160   : > { %3963 = vmatpush1.bf16.msra.mxu0 %v10609_v28  ;;  %v10677_v28 = vld [vmem:[%s15162_s2 + $0x2c] ss:$16 sps:$4 sm:$0xff]   ;;  %v10681_v2 = vld [vmem:[%s15162_s2 + $0x48] ss:$16 sps:$4 sm:$0xff]  }
 0x161   : > { %4004 = vmatpush1.bf16.msra.mxu1 %v10612_v33  ;;  %3964 = vmatprep.subr.bf16.mxu0 %v10617_v43  ;;  %v10680_v33 = vld [vmem:[%s15162_s2 + $0x22c] ss:$16 sps:$4 sm:$0xff]   ;;  %v10684_v3 = vld [vmem:[%s15162_s2 + $0x248] ss:$16 sps:$4 sm:$0xff]  }
 0x162   : > { %4005 = vmatprep.subr.bf16.mxu1 %v10620_v36  ;;  %v10686_v1 = vld [vmem:[%s15162_s2 + $0x24c] ss:$16 sps:$4 sm:$0xff]   ;;  %v10690_v9 = vld [vmem:[%s15162_s2 + $0x268] ss:$16 sps:$4 sm:$0xff]  }
 0x163   : > { %v10689_v8 = vld [vmem:[%s15162_s2 + $0x6c] ss:$16 sps:$4 sm:$0xff]  }
 0x164   : > { %3965 = vmatpush1.bf16.msra.mxu0 %v10615_v40  ;;  %v10695_v43 = vld [vmem:[%s15162_s2 + $0x8c] ss:$16 sps:$4 sm:$0xff]   ;;  %v10693_v40 = vld [vmem:[%s15162_s2 + $0x88] ss:$16 sps:$4 sm:$0xff]  }
 0x165   : > { %4006 = vmatpush1.bf16.msra.mxu1 %v10618_v11  ;;  %3966 = vmatprep.subr.bf16.mxu0 %v10623_v12  ;;  %v10698_v36 = vld [vmem:[%s15162_s2 + $0x28c] ss:$16 sps:$4 sm:$0xff]   ;;  %v10696_v11 = vld [vmem:[%s15162_s2 + $0x288] ss:$16 sps:$4 sm:$0xff]  }
 0x166   : > { %4007 = vmatprep.subr.bf16.mxu1 %v10626_v13  ;;  %v10701_v12 = vld [vmem:[%s15162_s2 + $0xac] ss:$16 sps:$4 sm:$0xff]  }
 0x167   : > { %v10704_v13 = vld [vmem:[%s15162_s2 + $0x2ac] ss:$16 sps:$4 sm:$0xff]  }
 0x168   : > { %3967 = vmatpush1.bf16.msra.mxu0 %v10621_v15  ;;  %v10699_v15 = vld [vmem:[%s15162_s2 + $0xa8] ss:$16 sps:$4 sm:$0xff]  }
 0x169   : > { %4008 = vmatpush1.bf16.msra.mxu1 %v10624_v16  ;;  %3968 = vmatprep.subr.bf16.mxu0 %v10629_v17  ;;  %v10702_v16 = vld [vmem:[%s15162_s2 + $0x2a8] ss:$16 sps:$4 sm:$0xff]   ;;  %v10707_v17 = vld [vmem:[%s15162_s2 + $0xcc] ss:$16 sps:$4 sm:$0xff]  }
 0x16a   : > { %4009 = vmatprep.subr.bf16.mxu1 %v10632_v18  ;;  %v10710_v18 = vld [vmem:[%s15162_s2 + $0x2cc] ss:$16 sps:$4 sm:$0xff]  }
 0x16c   : > { %3969 = vmatpush1.bf16.msra.mxu0 %v10627_v20 }
 0x16d   : > { %4010 = vmatpush1.bf16.msra.mxu1 %v10630_v22  ;;  %3970 = vmatprep.subr.bf16.mxu0 %v10635_v24  ;;  %v10705_v24 = vld [vmem:[%s15162_s2 + $0xc8] ss:$16 sps:$4 sm:$0xff]  }
 0x16e   : > { %4011 = vmatprep.subr.bf16.mxu1 %v10638_v26  ;;  %v10708_v26 = vld [vmem:[%s15162_s2 + $0x2c8] ss:$16 sps:$4 sm:$0xff]  }
 0x170   : > { %3971 = vmatpush1.bf16.msra.mxu0 %v10633_v23 }
 0x171   : > { %4012 = vmatpush1.bf16.msra.mxu1 %v10636_v27  ;;  %3972 = vmatprep.subr.bf16.mxu0 %v10641_v29 }
 0x172   : > { %4013 = vmatprep.subr.bf16.mxu1 %v10644_v34 }
 0x174   : > { %3973 = vmatpush1.bf16.msra.mxu0 %v10639_v35 }
 0x175   : > { %4014 = vmatpush1.bf16.msra.mxu1 %v10642_v39  ;;  %3974 = vmatprep.subr.bf16.mxu0 %v10647_v41 }
 0x176   : > { %4015 = vmatprep.subr.bf16.mxu1 %v10650_v42 }
 0x178   : > { %3975 = vmatpush1.bf16.msra.mxu0 %v10645_v44  ;;  %v10713_v44 = vld [vmem:[%s15162_s2 + $0xec] ss:$16 sps:$4 sm:$0xff]  }
 0x179   : > { %4016 = vmatpush1.bf16.msra.mxu1 %v10648_v45  ;;  %3976 = vmatprep.subr.bf16.mxu0 %v10653_v46  ;;  %v10716_v45 = vld [vmem:[%s15162_s2 + $0x2ec] ss:$16 sps:$4 sm:$0xff]   ;;  %v10711_v46 = vld [vmem:[%s15162_s2 + $0xe8] ss:$16 sps:$4 sm:$0xff]  }
 0x17a   : > { %4017 = vmatprep.subr.bf16.mxu1 %v10656_v47  ;;  %v10714_v47 = vld [vmem:[%s15162_s2 + $0x2e8] ss:$16 sps:$4 sm:$0xff]  }
 0x17c   : > { %3977 = vmatpush1.bf16.msra.mxu0 %v10651_v48  ;;  %v10719_v48 = vld [vmem:[%s15162_s2 + $0x10c] ss:$16 sps:$4 sm:$0xff]  }
 0x17d   : > { %4018 = vmatpush1.bf16.msra.mxu1 %v10654_v50  ;;  %3978 = vmatprep.subr.bf16.mxu0 %v10659_v51  ;;  %v10722_v50 = vld [vmem:[%s15162_s2 + $0x30c] ss:$16 sps:$4 sm:$0xff]   ;;  %v10717_v51 = vld [vmem:[%s15162_s2 + $0x108] ss:$16 sps:$4 sm:$0xff]  }
 0x17e   : > { %4019 = vmatprep.subr.bf16.mxu1 %v10662_v52  ;;  %v10720_v52 = vld [vmem:[%s15162_s2 + $0x308] ss:$16 sps:$4 sm:$0xff]  }
 0x180   : > { %3979 = vmatpush1.bf16.msra.mxu0 %v10657_v53  ;;  %v10725_v53 = vld [vmem:[%s15162_s2 + $0x12c] ss:$16 sps:$4 sm:$0xff]  }
 0x181   : > { %4020 = vmatpush1.bf16.msra.mxu1 %v10660_v54  ;;  %3980 = vmatprep.subr.bf16.mxu0 %v10665_v55  ;;  %v10728_v54 = vld [vmem:[%s15162_s2 + $0x32c] ss:$16 sps:$4 sm:$0xff]   ;;  %v10723_v55 = vld [vmem:[%s15162_s2 + $0x128] ss:$16 sps:$4 sm:$0xff]  }
 0x182   : > { %4021 = vmatprep.subr.bf16.mxu1 %v10668_v56  ;;  %v10726_v56 = vld [vmem:[%s15162_s2 + $0x328] ss:$16 sps:$4 sm:$0xff]  }
 0x184   : > { %3981 = vmatpush1.bf16.msra.mxu0 %v10663_v58  ;;  %v10731_v58 = vld [vmem:[%s15162_s2 + $0x14c] ss:$16 sps:$4 sm:$0xff]  }
 0x185   : > { %4022 = vmatpush1.bf16.msra.mxu1 %v10666_v25  ;;  %4032 = vmatprep.subr.bf16.mxu0 %v10671_v59  ;;  %v10734_v25 = vld [vmem:[%s15162_s2 + $0x34c] ss:$16 sps:$4 sm:$0xff]   ;;  %v10729_v59 = vld [vmem:[%s15162_s2 + $0x148] ss:$16 sps:$4 sm:$0xff]  }
 0x186   : > { %4073 = vmatprep.subr.bf16.mxu1 %v10674_v14  ;;  %v10732_v14 = vld [vmem:[%s15162_s2 + $0x348] ss:$16 sps:$4 sm:$0xff]  }
 0x187   : > { %3983 = vmatmul.mubr.bf16.vlgmr.msra.gmra.mrb[20].mxu0 %v12996_v57 }
 0x188   : > { %4024 = vmatmul.mubr.bf16.vlgmr.msra.gmra.mrb[20].mxu1 %v13018_v62  ;;  %4033 = vmatpush1.bf16.msra.mxu0 %v10669_v60  ;;  %v10737_v60 = vld [vmem:[%s15162_s2 + $0x16c] ss:$16 sps:$4 sm:$0xff]  }
 0x189   : > { %4074 = vmatpush1.bf16.msra.mxu1 %v10672_v61  ;;  %4034 = vmatprep.subr.bf16.mxu0 %v10677_v28  ;;  %v10740_v61 = vld [vmem:[%s15162_s2 + $0x36c] ss:$16 sps:$4 sm:$0xff]   ;;  %v10735_v28 = vld [vmem:[%s15162_s2 + $0x168] ss:$16 sps:$4 sm:$0xff]  }
 0x18a   : > { %4075 = vmatprep.subr.bf16.mxu1 %v10680_v33  ;;  %4064 = vmatprep.mubr.bf16.mxu0 %v12576_v32  ;;  %v10692_v32 = vld [vmem:[%s15162_s2 + $0x26c] ss:$16 sps:$4 sm:$0xff]   ;;  %v10738_v33 = vld [vmem:[%s15162_s2 + $0x368] ss:$16 sps:$4 sm:$0xff]  }
 0x18b   : > { %4105 = vmatprep.mubr.bf16.mxu1 %v12592_v4  ;;  %v10687_v4 = vld [vmem:[%s15162_s2 + $0x68] ss:$16 sps:$4 sm:$0xff]  }
 0x18c   : > { %4035 = vmatpush1.bf16.msra.mxu0 %v10675_v63  ;;  %v10743_v63 = vld [vmem:[%s15162_s2 + $0x18c] ss:$16 sps:$4 sm:$0xff]  }
 0x18d   : > { %4076 = vmatpush1.bf16.msra.mxu1 %v10678_v0  ;;  %4036 = vmatprep.subr.bf16.mxu0 %v10683_v38  ;;  %v10746_v0 = vld [vmem:[%s15162_s2 + $0x38c] ss:$16 sps:$4 sm:$0xff]   ;;  %v10741_v38 = vld [vmem:[%s15162_s2 + $0x188] ss:$16 sps:$4 sm:$0xff]  }
 0x18e   : > { %4077 = vmatprep.subr.bf16.mxu1 %v10686_v1  ;;  %v10744_v1 = vld [vmem:[%s15162_s2 + $0x388] ss:$16 sps:$4 sm:$0xff]  }
 0x190   : > { %4037 = vmatpush1.bf16.msra.mxu0 %v10681_v2  ;;  %v10749_v2 = vld [vmem:[%s15162_s2 + $0x1ac] ss:$16 sps:$4 sm:$0xff]  }
 0x191   : > { %4078 = vmatpush1.bf16.msra.mxu1 %v10684_v3  ;;  %4038 = vmatprep.subr.bf16.mxu0 %v10689_v8  ;;  %v10752_v3 = vld [vmem:[%s15162_s2 + $0x3ac] ss:$16 sps:$4 sm:$0xff]   ;;  %v10747_v8 = vld [vmem:[%s15162_s2 + $0x1a8] ss:$16 sps:$4 sm:$0xff]  }
 0x192   : > { %4079 = vmatprep.subr.bf16.mxu1 %v10692_v32  ;;  %v10750_v32 = vld [vmem:[%s15162_s2 + $0x3a8] ss:$16 sps:$4 sm:$0xff]  }
 0x194   : > { %4039 = vmatpush1.bf16.msra.mxu0 %v10687_v4  ;;  %v10755_v4 = vld [vmem:[%s15162_s2 + $0x1cc] ss:$16 sps:$4 sm:$0xff]  }
 0x195   : > { %4080 = vmatpush1.bf16.msra.mxu1 %v10690_v9  ;;  %4040 = vmatprep.subr.bf16.mxu0 %v10695_v43  ;;  %v10758_v9 = vld [vmem:[%s15162_s2 + $0x3cc] ss:$16 sps:$4 sm:$0xff]   ;;  %v10753_v43 = vld [vmem:[%s15162_s2 + $0x1c8] ss:$16 sps:$4 sm:$0xff]  }
 0x196   : > { %4081 = vmatprep.subr.bf16.mxu1 %v10698_v36  ;;  %v10756_v36 = vld [vmem:[%s15162_s2 + $0x3c8] ss:$16 sps:$4 sm:$0xff]  }
 0x198   : > { %4041 = vmatpush1.bf16.msra.mxu0 %v10693_v40  ;;  %v10761_v40 = vld [vmem:[%s15162_s2 + $0x1ec] ss:$16 sps:$4 sm:$0xff]  }
 0x199   : > { %4082 = vmatpush1.bf16.msra.mxu1 %v10696_v11  ;;  %4042 = vmatprep.subr.bf16.mxu0 %v10701_v12  ;;  %v10764_v11 = vld [vmem:[%s15162_s2 + $0x3ec] ss:$16 sps:$4 sm:$0xff]   ;;  %v10759_v12 = vld [vmem:[%s15162_s2 + $0x1e8] ss:$16 sps:$4 sm:$0xff]  }
 0x19a   : > { %4083 = vmatprep.subr.bf16.mxu1 %v10704_v13  ;;  %v2400_v20 = vpop.f32.mrb[8].mxu0  ;;  %v10762_v13 = vld [vmem:[%s15162_s2 + $0x3e8] ss:$16 sps:$4 sm:$0xff]  }
 0x19b   : > { %v2441_v22 = vpop.f32.mrb[8].mxu1  ;;  %v2402_v27 = vpop.f32.mrb[9].mxu0 }
 0x19c   : > { %v13096_v23 = vadd.f32 %v2441_v22, %v2400_v20  ;;  %v2443_v29 = vpop.f32.mrb[9].mxu1  ;;  %v2404_v35 = vpop.f32.mrb[10].mxu0  ;;  %4043 = vmatpush1.bf16.msra.mxu0 %v10699_v15  ;;  %v10767_v15 = vld [vmem:[%s15162_s2 + $0x40c] ss:$16 sps:$4 sm:$0xff]  }
 0x19d   : > { %v13098_v34 = vadd.f32 %v2443_v29, %v2402_v27  ;;  %v2445_v39 = vpop.f32.mrb[10].mxu1  ;;  %4084 = vmatpush1.bf16.msra.mxu1 %v10702_v16  ;;  %v2405_v41 = vpop.f32.mrb[11].mxu0  ;;  %4044 = vmatprep.subr.bf16.mxu0 %v10707_v17  ;;  %v10770_v16 = vld [vmem:[%s15162_s2 + $0x60c] ss:$16 sps:$4 sm:$0xff]   ;;  %v10765_v17 = vld [vmem:[%s15162_s2 + $0x408] ss:$16 sps:$4 sm:$0xff]  }
 0x19e   : > { %v2446_v42 = vpop.f32.mrb[11].mxu1  ;;  %4085 = vmatprep.subr.bf16.mxu1 %v10710_v18  ;;  %v10768_v18 = vld [vmem:[%s15162_s2 + $0x608] ss:$16 sps:$4 sm:$0xff]   ;;  %v10773_v20 = vld [vmem:[%s15162_s2 + $0x42c] ss:$16 sps:$4 sm:$0xff]  }
 0x19f   : > { %v10776_v22 = vld [vmem:[%s15162_s2 + $0x62c] ss:$16 sps:$4 sm:$0xff]   ;;  %v10780_v29 = vld [vmem:[%s15162_s2 + $0x648] ss:$16 sps:$4 sm:$0xff]  }
 0x1a0   : > { %4045 = vmatpush1.bf16.msra.mxu0 %v10705_v24  ;;  %v10771_v24 = vld [vmem:[%s15162_s2 + $0x428] ss:$16 sps:$4 sm:$0xff]   ;;  %v10779_v27 = vld [vmem:[%s15162_s2 + $0x44c] ss:$16 sps:$4 sm:$0xff]  }
 0x1a1   : > { %4086 = vmatpush1.bf16.msra.mxu1 %v10708_v26  ;;  %4046 = vmatprep.subr.bf16.mxu0 %v10713_v44  ;;  %v10774_v26 = vld [vmem:[%s15162_s2 + $0x628] ss:$16 sps:$4 sm:$0xff]   ;;  %v10785_v35 = vld [vmem:[%s15162_s2 + $0x46c] ss:$16 sps:$4 sm:$0xff]  }
 0x1a2   : > { %4087 = vmatprep.subr.bf16.mxu1 %v10716_v45  ;;  %v10786_v39 = vld [vmem:[%s15162_s2 + $0x668] ss:$16 sps:$4 sm:$0xff]   ;;  %v10791_v41 = vld [vmem:[%s15162_s2 + $0x48c] ss:$16 sps:$4 sm:$0xff]  }
 0x1a3   : > { %v10794_v42 = vld [vmem:[%s15162_s2 + $0x68c] ss:$16 sps:$4 sm:$0xff]   ;;  %v10789_v44 = vld [vmem:[%s15162_s2 + $0x488] ss:$16 sps:$4 sm:$0xff]  }
 0x1a4   : > { %4047 = vmatpush1.bf16.msra.mxu0 %v10711_v46  ;;  %v10792_v45 = vld [vmem:[%s15162_s2 + $0x688] ss:$16 sps:$4 sm:$0xff]   ;;  %v10797_v46 = vld [vmem:[%s15162_s2 + $0x4ac] ss:$16 sps:$4 sm:$0xff]  }
 0x1a5   : > { %4088 = vmatpush1.bf16.msra.mxu1 %v10714_v47  ;;  %4048 = vmatprep.subr.bf16.mxu0 %v10719_v48  ;;  %v10800_v47 = vld [vmem:[%s15162_s2 + $0x6ac] ss:$16 sps:$4 sm:$0xff]   ;;  %v10795_v48 = vld [vmem:[%s15162_s2 + $0x4a8] ss:$16 sps:$4 sm:$0xff]  }
 0x1a6   : > { %4089 = vmatprep.subr.bf16.mxu1 %v10722_v50  ;;  %v10798_v50 = vld [vmem:[%s15162_s2 + $0x6a8] ss:$16 sps:$4 sm:$0xff]  }
 0x1a8   : > { %4049 = vmatpush1.bf16.msra.mxu0 %v10717_v51  ;;  %v10803_v51 = vld [vmem:[%s15162_s2 + $0x4cc] ss:$16 sps:$4 sm:$0xff]  }
 0x1a9   : > { %4090 = vmatpush1.bf16.msra.mxu1 %v10720_v52  ;;  %4050 = vmatprep.subr.bf16.mxu0 %v10725_v53  ;;  %v10806_v52 = vld [vmem:[%s15162_s2 + $0x6cc] ss:$16 sps:$4 sm:$0xff]  }
 0x1aa   : > { %4091 = vmatprep.subr.bf16.mxu1 %v10728_v54 }
 0x1ac   : > { %4051 = vmatpush1.bf16.msra.mxu0 %v10723_v55  ;;  %v10801_v55 = vld [vmem:[%s15162_s2 + $0x4c8] ss:$16 sps:$4 sm:$0xff]  }
 0x1ad   : > { %4092 = vmatpush1.bf16.msra.mxu1 %v10726_v56  ;;  %4052 = vmatprep.subr.bf16.mxu0 %v10731_v58  ;;  %v10804_v56 = vld [vmem:[%s15162_s2 + $0x6c8] ss:$16 sps:$4 sm:$0xff]  }
 0x1ae   : > { %4093 = vmatprep.subr.bf16.mxu1 %v10734_v25 }
 0x1b0   : > { %4053 = vmatpush1.bf16.msra.mxu0 %v10729_v59 }
 0x1b1   : > { %4094 = vmatpush1.bf16.msra.mxu1 %v10732_v14  ;;  %4054 = vmatprep.subr.bf16.mxu0 %v10737_v60 }
 0x1b2   : > { %4095 = vmatprep.subr.bf16.mxu1 %v10740_v61 }
 0x1b4   : > { %4055 = vmatpush1.bf16.msra.mxu0 %v10735_v28 }
 0x1b5   : > { %4096 = vmatpush1.bf16.msra.mxu1 %v10738_v33  ;;  %4056 = vmatprep.subr.bf16.mxu0 %v10743_v63 }
 0x1b6   : > { %4097 = vmatprep.subr.bf16.mxu1 %v10746_v0  ;;  %v10809_v0 = vld [vmem:[%s15162_s2 + $0x4ec] ss:$16 sps:$4 sm:$0xff]  }
 0x1b8   : > { %4057 = vmatpush1.bf16.msra.mxu0 %v10741_v38 }
 0x1b9   : > { %4098 = vmatpush1.bf16.msra.mxu1 %v10744_v1  ;;  %4058 = vmatprep.subr.bf16.mxu0 %v10749_v2  ;;  %v10810_v1 = vld [vmem:[%s15162_s2 + $0x6e8] ss:$16 sps:$4 sm:$0xff]   ;;  %v10815_v2 = vld [vmem:[%s15162_s2 + $0x50c] ss:$16 sps:$4 sm:$0xff]  }
 0x1ba   : > { %4099 = vmatprep.subr.bf16.mxu1 %v10752_v3  ;;  %v10818_v3 = vld [vmem:[%s15162_s2 + $0x70c] ss:$16 sps:$4 sm:$0xff]  }
 0x1bc   : > { %4059 = vmatpush1.bf16.msra.mxu0 %v10747_v8  ;;  %v10813_v8 = vld [vmem:[%s15162_s2 + $0x508] ss:$16 sps:$4 sm:$0xff]  }
 0x1bd   : > { %4100 = vmatpush1.bf16.msra.mxu1 %v10750_v32  ;;  %4060 = vmatprep.subr.bf16.mxu0 %v10755_v4  ;;  %v10816_v32 = vld [vmem:[%s15162_s2 + $0x708] ss:$16 sps:$4 sm:$0xff]   ;;  %v10821_v4 = vld [vmem:[%s15162_s2 + $0x52c] ss:$16 sps:$4 sm:$0xff]  }
 0x1be   : > { %4101 = vmatprep.subr.bf16.mxu1 %v10758_v9  ;;  %v10824_v9 = vld [vmem:[%s15162_s2 + $0x72c] ss:$16 sps:$4 sm:$0xff]  }
 0x1c0   : > { %4061 = vmatpush1.bf16.msra.mxu0 %v10753_v43  ;;  %v10819_v43 = vld [vmem:[%s15162_s2 + $0x528] ss:$16 sps:$4 sm:$0xff]  }
 0x1c1   : > { %4102 = vmatpush1.bf16.msra.mxu1 %v10756_v36  ;;  %4062 = vmatprep.subr.bf16.mxu0 %v10761_v40  ;;  %v10822_v36 = vld [vmem:[%s15162_s2 + $0x728] ss:$16 sps:$4 sm:$0xff]   ;;  %v10827_v40 = vld [vmem:[%s15162_s2 + $0x54c] ss:$16 sps:$4 sm:$0xff]  }
 0x1c2   : > { %4103 = vmatprep.subr.bf16.mxu1 %v10764_v11  ;;  %v10830_v11 = vld [vmem:[%s15162_s2 + $0x74c] ss:$16 sps:$4 sm:$0xff]  }
 0x1c4   : > { %4063 = vmatpush1.bf16.msra.mxu0 %v10759_v12  ;;  %v10825_v12 = vld [vmem:[%s15162_s2 + $0x548] ss:$16 sps:$4 sm:$0xff]  }
 0x1c5   : > { %4104 = vmatpush1.bf16.msra.mxu1 %v10762_v13  ;;  %4114 = vmatprep.subr.bf16.mxu0 %v10767_v15  ;;  %v10828_v13 = vld [vmem:[%s15162_s2 + $0x748] ss:$16 sps:$4 sm:$0xff]   ;;  %v10833_v15 = vld [vmem:[%s15162_s2 + $0x56c] ss:$16 sps:$4 sm:$0xff]  }
 0x1c6   : > { %4155 = vmatprep.subr.bf16.mxu1 %v10770_v16  ;;  %v10836_v16 = vld [vmem:[%s15162_s2 + $0x76c] ss:$16 sps:$4 sm:$0xff]  }
 0x1c7   : > { %4065 = vmatmul.mubr.bf16.vlgmr.msra.gmra.mrb[24].mxu0 %v12779_v21  ;;  %v10782_v21 = vld [vmem:[%s15162_s2 + $0x64c] ss:$16 sps:$4 sm:$0xff]  }
 0x1c8   : > { %4106 = vmatmul.mubr.bf16.vlgmr.msra.gmra.mrb[24].mxu1 %v12804_v31  ;;  %4115 = vmatpush1.bf16.msra.mxu0 %v10765_v17  ;;  %v10777_v31 = vld [vmem:[%s15162_s2 + $0x448] ss:$16 sps:$4 sm:$0xff]  }
 0x1c9   : > { %4156 = vmatpush1.bf16.msra.mxu1 %v10768_v18  ;;  %4116 = vmatprep.subr.bf16.mxu0 %v10773_v20  ;;  %v10831_v17 = vld [vmem:[%s15162_s2 + $0x568] ss:$16 sps:$4 sm:$0xff]   ;;  %v10839_v20 = vld [vmem:[%s15162_s2 + $0x58c] ss:$16 sps:$4 sm:$0xff]  }
 0x1ca   : > { %4157 = vmatprep.subr.bf16.mxu1 %v10776_v22  ;;  %4146 = vmatprep.mubr.bf16.mxu0 %v12800_v30  ;;  %v10788_v30 = vld [vmem:[%s15162_s2 + $0x66c] ss:$16 sps:$4 sm:$0xff]   ;;  %v10834_v18 = vld [vmem:[%s15162_s2 + $0x768] ss:$16 sps:$4 sm:$0xff]  }
 0x1cb   : > { %4187 = vmatprep.mubr.bf16.mxu1 %v12814_v37  ;;  %v10783_v37 = vld [vmem:[%s15162_s2 + $0x468] ss:$16 sps:$4 sm:$0xff]   ;;  %v10842_v22 = vld [vmem:[%s15162_s2 + $0x78c] ss:$16 sps:$4 sm:$0xff]  }
 0x1cc   : > { %4117 = vmatpush1.bf16.msra.mxu0 %v10771_v24  ;;  %v9033_v24 = vld.sshfl [vmem:[%s13365_s25] sm:$0xff pattern:$0x75316420] }
 0x1cd   : > { %4158 = vmatpush1.bf16.msra.mxu1 %v10774_v26  ;;  %4118 = vmatprep.subr.bf16.mxu0 %v10779_v27  ;;  %v10837_v26 = vld [vmem:[%s15162_s2 + $0x588] ss:$16 sps:$4 sm:$0xff]  }
 0x1ce   : > { %4159 = vmatprep.subr.bf16.mxu1 %v10782_v21  ;;  %v10840_v27 = vld [vmem:[%s15162_s2 + $0x788] ss:$16 sps:$4 sm:$0xff]   ;;  %v10845_v21 = vld [vmem:[%s15162_s2 + $0x5ac] ss:$16 sps:$4 sm:$0xff]  }
 0x1d0   : > { %4119 = vmatpush1.bf16.msra.mxu0 %v10777_v31  ;;  %v10848_v31 = vld [vmem:[%s15162_s2 + $0x7ac] ss:$16 sps:$4 sm:$0xff]  }
 0x1d1   : > { %4160 = vmatpush1.bf16.msra.mxu1 %v10780_v29  ;;  %4120 = vmatprep.subr.bf16.mxu0 %v10785_v35  ;;  %v11633_v29 = vld.sshfl [vmem:[%s11850_s24 + $0x10] sm:$0xff pattern:$0x75316420] }
 0x1d2   : > { %4161 = vmatprep.subr.bf16.mxu1 %v10788_v30  ;;  %v9291_v35 = vcombine.low %v11633_v29, %v9033_v24  ;;  %v10843_v30 = vld [vmem:[%s15162_s2 + $0x5a8] ss:$16 sps:$4 sm:$0xff]  }
 0x1d4   : > { %4121 = vmatpush1.bf16.msra.mxu0 %v10783_v37  ;;  %v10846_v37 = vld [vmem:[%s15162_s2 + $0x7a8] ss:$16 sps:$4 sm:$0xff]  }
 0x1d5   : > { %4162 = vmatpush1.bf16.msra.mxu1 %v10786_v39  ;;  %4122 = vmatprep.subr.bf16.mxu0 %v10791_v41  ;;  %v10851_v39 = vld [vmem:[%s15162_s2 + $0x5cc] ss:$16 sps:$4 sm:$0xff]  }
 0x1d6   : > { %4163 = vmatprep.subr.bf16.mxu1 %v10794_v42  ;;  %v10854_v41 = vld [vmem:[%s15162_s2 + $0x7cc] ss:$16 sps:$4 sm:$0xff]   ;;  %v13403_v42 = vrot.slane %v9291_v35, %v11894_v7  ;;  %v10906_v35 = vld [vmem:[%s15162_s2 + $0x12e0] ss:$16 sps:$4 sm:$0xff]  }
 0x1d8   : > { %4123 = vmatpush1.bf16.msra.mxu0 %v10789_v44  ;;  %v10849_v44 = vld [vmem:[%s15162_s2 + $0x5c8] ss:$16 sps:$4 sm:$0xff]  }
 0x1d9   : > { %4164 = vmatpush1.bf16.msra.mxu1 %v10792_v45  ;;  %4124 = vmatprep.subr.bf16.mxu0 %v10797_v46  ;;  %v10852_v45 = vld [vmem:[%s15162_s2 + $0x7c8] ss:$16 sps:$4 sm:$0xff]   ;;  %v10857_v46 = vld [vmem:[%s15162_s2 + $0x5ec] ss:$16 sps:$4 sm:$0xff]  }
 0x1da   : > { %4165 = vmatprep.subr.bf16.mxu1 %v10800_v47  ;;  %v2482_v53 = vpop.f32.mrb[12].mxu0  ;;  %v10860_v47 = vld [vmem:[%s15162_s2 + $0x7ec] ss:$16 sps:$4 sm:$0xff]  }
 0x1db   : > { %v2523_v54 = vpop.f32.mrb[12].mxu1  ;;  %v2483_v58 = vadd.f32 %v2482_v53, %v13096_v23  ;;  %v2484_v25 = vpop.f32.mrb[13].mxu0  ;;  %v10812_v23 = vld [vmem:[%s15162_s2 + $0x6ec] ss:$16 sps:$4 sm:$0xff]   ;;  %v10866_v53 = vld [vmem:[%s15162_s2 + $0x1204] ss:$16 sps:$4 sm:$0xff]  }
 0x1dc   : > { %v2525_v59 = vpop.f32.mrb[13].mxu1  ;;  %v2485_v14 = vadd.f32 %v2484_v25, %v13098_v34  ;;  %v2486_v60 = vpop.f32.mrb[14].mxu0  ;;  %4125 = vmatpush1.bf16.msra.mxu0 %v10795_v48  ;;  %v10807_v34 = vld [vmem:[%s15162_s2 + $0x4e8] ss:$16 sps:$4 sm:$0xff]   ;;  %v4486_v48 = vcombine.high %v13403_v42, %v13403_v42  ;;  %v10872_v25 = vld [vmem:[%s15162_s2 + $0x1224] ss:$16 sps:$4 sm:$0xff]  }
 0x1dd   : > { %v2527_v61 = vpop.f32.mrb[14].mxu1  ;;  %4166 = vmatpush1.bf16.msra.mxu1 %v10798_v50  ;;  %v13298_v28 = vadd.f32 %v2523_v54, %v2483_v58  ;;  %v2487_v33 = vpop.f32.mrb[15].mxu0  ;;  %4126 = vmatprep.subr.bf16.mxu0 %v10803_v51  ;;  %v10855_v50 = vld [vmem:[%s15162_s2 + $0x5e8] ss:$16 sps:$4 sm:$0xff]   ;;  %v10861_v54 = vld [vmem:[%s15162_s2 + $0x1000] ss:$16 sps:$4 sm:$0xff]  }
 0x1de   : > { %v2528_v63 = vpop.f32.mrb[15].mxu1  ;;  %4167 = vmatprep.subr.bf16.mxu1 %v10806_v52  ;;  %v13306_v38 = vadd.f32 %v2525_v59, %v2485_v14  ;;  %v10858_v51 = vld [vmem:[%s15162_s2 + $0x7e8] ss:$16 sps:$4 sm:$0xff]   ;;  %v10863_v52 = vld [vmem:[%s15162_s2 + $0x1004] ss:$16 sps:$4 sm:$0xff]  }
 0x1df   : > { %v10869_v58 = vld [vmem:[%s15162_s2 + $0x1024] ss:$16 sps:$4 sm:$0xff]   ;;  %v10867_v14 = vld [vmem:[%s15162_s2 + $0x1020] ss:$16 sps:$4 sm:$0xff]  }
 0x1e0   : > { %4127 = vmatpush1.bf16.msra.mxu0 %v10801_v55  ;;  %v10864_v55 = vld [vmem:[%s15162_s2 + $0x1200] ss:$16 sps:$4 sm:$0xff]   ;;  %v10875_v61 = vld [vmem:[%s15162_s2 + $0x1044] ss:$16 sps:$4 sm:$0xff]  }
 0x1e1   : > { %4168 = vmatpush1.bf16.msra.mxu1 %v10804_v56  ;;  %4128 = vmatprep.subr.bf16.mxu0 %v10809_v0  ;;  %v13438_v56 = vrot.slane %v4486_v48, %v11894_v7  ;;  %v10870_v60 = vld [vmem:[%s15162_s2 + $0x1220] ss:$16 sps:$4 sm:$0xff]   ;;  %v10881_v63 = vld [vmem:[%s15162_s2 + $0x1064] ss:$16 sps:$4 sm:$0xff]  }
 0x1e2   : > { %4169 = vmatprep.subr.bf16.mxu1 %v10812_v23  ;;  %v10876_v33 = vld [vmem:[%s15162_s2 + $0x1240] ss:$16 sps:$4 sm:$0xff]   ;;  %v10884_v0 = vld [vmem:[%s15162_s2 + $0x1264] ss:$16 sps:$4 sm:$0xff]  }
 0x1e3   : > { %v13448_v59 = vcombine.high %v13438_v56, %v13438_v56  ;;  %v10879_v23 = vld [vmem:[%s15162_s2 + $0x1060] ss:$16 sps:$4 sm:$0xff]   ;;  %v10923_v48 = vld [vmem:[%s15162_s2 + $0x1144] ss:$16 sps:$4 sm:$0xff]  }
 0x1e4   : > { %4129 = vmatpush1.bf16.msra.mxu0 %v10807_v34  ;;  %v10882_v34 = vld [vmem:[%s15162_s2 + $0x1260] ss:$16 sps:$4 sm:$0xff]  }
 0x1e5   : > { %4170 = vmatpush1.bf16.msra.mxu1 %v10810_v1  ;;  %4130 = vmatprep.subr.bf16.mxu0 %v10815_v2  ;;  %v10887_v1 = vld [vmem:[%s15162_s2 + $0x1084] ss:$16 sps:$4 sm:$0xff]  }
 0x1e6   : > { %4171 = vmatprep.subr.bf16.mxu1 %v10818_v3  ;;  %v10890_v2 = vld [vmem:[%s15162_s2 + $0x1284] ss:$16 sps:$4 sm:$0xff]   ;;  %v10885_v3 = vld [vmem:[%s15162_s2 + $0x1080] ss:$16 sps:$4 sm:$0xff]  }
 0x1e8   : > { %4131 = vmatpush1.bf16.msra.mxu0 %v10813_v8  ;;  %v10888_v8 = vld [vmem:[%s15162_s2 + $0x1280] ss:$16 sps:$4 sm:$0xff]  }
 0x1e9   : > { %4172 = vmatpush1.bf16.msra.mxu1 %v10816_v32  ;;  %4132 = vmatprep.subr.bf16.mxu0 %v10821_v4  ;;  %v10893_v32 = vld [vmem:[%s15162_s2 + $0x10a4] ss:$16 sps:$4 sm:$0xff]  }
 0x1ea   : > { %4173 = vmatprep.subr.bf16.mxu1 %v10824_v9  ;;  %v10896_v4 = vld [vmem:[%s15162_s2 + $0x12a4] ss:$16 sps:$4 sm:$0xff]   ;;  %v10891_v9 = vld [vmem:[%s15162_s2 + $0x10a0] ss:$16 sps:$4 sm:$0xff]  }
 0x1ec   : > { %4133 = vmatpush1.bf16.msra.mxu0 %v10819_v43  ;;  %v10894_v43 = vld [vmem:[%s15162_s2 + $0x12a0] ss:$16 sps:$4 sm:$0xff]  }
 0x1ed   : > { %4174 = vmatpush1.bf16.msra.mxu1 %v10822_v36  ;;  %4134 = vmatprep.subr.bf16.mxu0 %v10827_v40  ;;  %v10899_v36 = vld [vmem:[%s15162_s2 + $0x10c4] ss:$16 sps:$4 sm:$0xff]  }
 0x1ee   : > { %4175 = vmatprep.subr.bf16.mxu1 %v10830_v11  ;;  %v10902_v40 = vld [vmem:[%s15162_s2 + $0x12c4] ss:$16 sps:$4 sm:$0xff]  }
 0x1f0   : > { %4135 = vmatpush1.bf16.msra.mxu0 %v10825_v12 }
 0x1f1   : > { %4176 = vmatpush1.bf16.msra.mxu1 %v10828_v13  ;;  %4136 = vmatprep.subr.bf16.mxu0 %v10833_v15  ;;  %v10897_v13 = vld [vmem:[%s15162_s2 + $0x10c0] ss:$16 sps:$4 sm:$0xff]  }
 0x1f2   : > { %4177 = vmatprep.subr.bf16.mxu1 %v10836_v16  ;;  %v10900_v15 = vld [vmem:[%s15162_s2 + $0x12c0] ss:$16 sps:$4 sm:$0xff]  }
 0x1f4   : > { %4137 = vmatpush1.bf16.msra.mxu0 %v10831_v17 }
 0x1f5   : > { %4178 = vmatpush1.bf16.msra.mxu1 %v10834_v18  ;;  %4138 = vmatprep.subr.bf16.mxu0 %v10839_v20 }
 0x1f6   : > { %4179 = vmatprep.subr.bf16.mxu1 %v10842_v22 }
 0x1f8   : > { %4139 = vmatpush1.bf16.msra.mxu0 %v10837_v26 }
 0x1f9   : > { %4180 = vmatpush1.bf16.msra.mxu1 %v10840_v27  ;;  %4140 = vmatprep.subr.bf16.mxu0 %v10845_v21 }
 0x1fa   : > { %4181 = vmatprep.subr.bf16.mxu1 %v10848_v31  ;;  %v10905_v31 = vld [vmem:[%s15162_s2 + $0x10e4] ss:$16 sps:$4 sm:$0xff]  }
 0x1fc   : > { %4141 = vmatpush1.bf16.msra.mxu0 %v10843_v30  ;;  %v10911_v30 = vld [vmem:[%s15162_s2 + $0x1104] ss:$16 sps:$4 sm:$0xff]  }
 0x1fd   : > { %4182 = vmatpush1.bf16.msra.mxu1 %v10846_v37  ;;  %4142 = vmatprep.subr.bf16.mxu0 %v10851_v39  ;;  %v10914_v37 = vld [vmem:[%s15162_s2 + $0x1304] ss:$16 sps:$4 sm:$0xff]   ;;  %v10909_v39 = vld [vmem:[%s15162_s2 + $0x1100] ss:$16 sps:$4 sm:$0xff]  }
 0x1fe   : > { %4183 = vmatprep.subr.bf16.mxu1 %v10854_v41  ;;  %v10912_v41 = vld [vmem:[%s15162_s2 + $0x1300] ss:$16 sps:$4 sm:$0xff]  }
 0x200   : > { %4143 = vmatpush1.bf16.msra.mxu0 %v10849_v44  ;;  %v10917_v44 = vld [vmem:[%s15162_s2 + $0x1124] ss:$16 sps:$4 sm:$0xff]  }
 0x201   : > { %4184 = vmatpush1.bf16.msra.mxu1 %v10852_v45  ;;  %4144 = vmatprep.subr.bf16.mxu0 %v10857_v46  ;;  %v10920_v45 = vld [vmem:[%s15162_s2 + $0x1324] ss:$16 sps:$4 sm:$0xff]   ;;  %v10915_v46 = vld [vmem:[%s15162_s2 + $0x1120] ss:$16 sps:$4 sm:$0xff]  }
 0x202   : > { %4185 = vmatprep.subr.bf16.mxu1 %v10860_v47  ;;  %v10918_v47 = vld [vmem:[%s15162_s2 + $0x1320] ss:$16 sps:$4 sm:$0xff]  }
 0x204   : > { %4145 = vmatpush1.bf16.msra.mxu0 %v10855_v50  ;;  %v10926_v50 = vld [vmem:[%s15162_s2 + $0x1344] ss:$16 sps:$4 sm:$0xff]  }
 0x205   : > { %4186 = vmatpush1.bf16.msra.mxu1 %v10858_v51  ;;  %5808 = vmatprep.subr.bf16.mxu0 %v10863_v52  ;;  %v10921_v51 = vld [vmem:[%s15162_s2 + $0x1140] ss:$16 sps:$4 sm:$0xff]  }
 0x206   : > { %5849 = vmatprep.subr.bf16.mxu1 %v10866_v53  ;;  %v10924_v52 = vld [vmem:[%s15162_s2 + $0x1340] ss:$16 sps:$4 sm:$0xff]   ;;  %v10929_v53 = vld [vmem:[%s15162_s2 + $0x1164] ss:$16 sps:$4 sm:$0xff]  }
 0x207   : > { %4147 = vmatmul.mubr.bf16.vlgmr.msra.gmra.mrb[28].mxu0 %v12996_v57  ;;  %v10878_v57 = vld [vmem:[%s15162_s2 + $0x1244] ss:$16 sps:$4 sm:$0xff]  }
 0x208   : > { %4188 = vmatmul.mubr.bf16.vlgmr.msra.gmra.mrb[28].mxu1 %v13018_v62  ;;  %5809 = vmatpush1.bf16.msra.mxu0 %v10861_v54  ;;  %v10873_v62 = vld [vmem:[%s15162_s2 + $0x1040] ss:$16 sps:$4 sm:$0xff]   ;;  %v10932_v54 = vld [vmem:[%s15162_s2 + $0x1364] ss:$16 sps:$4 sm:$0xff]  }
 0x209   : > { %5850 = vmatpush1.bf16.msra.mxu1 %v10864_v55  ;;  %5810 = vmatprep.subr.bf16.mxu0 %v10869_v58  ;;  %v10927_v55 = vld [vmem:[%s15162_s2 + $0x1160] ss:$16 sps:$4 sm:$0xff]  }
 0x20a   : > { %5851 = vmatprep.subr.bf16.mxu1 %v10872_v25  ;;  %5840 = vmatprep.mubr.bf16.mxu0 %v13438_v56  ;;  %v10930_v58 = vld [vmem:[%s15162_s2 + $0x1360] ss:$16 sps:$4 sm:$0xff]   ;;  %v10935_v25 = vld [vmem:[%s15162_s2 + $0x1184] ss:$16 sps:$4 sm:$0xff]  }
 0x20b   : > { %5881 = vmatprep.mubr.bf16.mxu1 %v13448_v59 }
 0x20c   : > { %5811 = vmatpush1.bf16.msra.mxu0 %v10867_v14  ;;  %v10938_v14 = vld [vmem:[%s15162_s2 + $0x1384] ss:$16 sps:$4 sm:$0xff]  }
 0x20d   : > { %5852 = vmatpush1.bf16.msra.mxu1 %v10870_v60  ;;  %5812 = vmatprep.subr.bf16.mxu0 %v10875_v61  ;;  %v13593_v60 = vld.sshfl [vmem:[%s13365_s25 + $0x8] sm:$0xff pattern:$0x75316420]  ;;  %v10933_v61 = vld [vmem:[%s15162_s2 + $0x1180] ss:$16 sps:$4 sm:$0xff]  }
 0x20e   : > { %5853 = vmatprep.subr.bf16.mxu1 %v10878_v57  ;;  %v10936_v57 = vld [vmem:[%s15162_s2 + $0x1380] ss:$16 sps:$4 sm:$0xff]  }
 0x210   : > { %5813 = vmatpush1.bf16.msra.mxu0 %v10873_v62  ;;  %v10941_v62 = vld [vmem:[%s15162_s2 + $0x11a4] ss:$16 sps:$4 sm:$0xff]  }
 0x211   : > { %5854 = vmatpush1.bf16.msra.mxu1 %v10876_v33  ;;  %5814 = vmatprep.subr.bf16.mxu0 %v10881_v63  ;;  %v10944_v33 = vld [vmem:[%s15162_s2 + $0x13a4] ss:$16 sps:$4 sm:$0xff]   ;;  %v11634_v63 = vld.sshfl [vmem:[%s11850_s24 + $0x18] sm:$0xff pattern:$0x75316420] }
 0x212   : > { %5855 = vmatprep.subr.bf16.mxu1 %v10884_v0  ;;  %v9292_v0 = vcombine.low %v11634_v63, %v13593_v60  ;;  %v10996_v63 = vld [vmem:[%s15162_s2 + $0x16c0] ss:$16 sps:$4 sm:$0xff]  }
 0x214   : > { %5815 = vmatpush1.bf16.msra.mxu0 %v10879_v23  ;;  %v10939_v23 = vld [vmem:[%s15162_s2 + $0x11a0] ss:$16 sps:$4 sm:$0xff]  }
 0x215   : > { %5856 = vmatpush1.bf16.msra.mxu1 %v10882_v34  ;;  %5816 = vmatprep.subr.bf16.mxu0 %v10887_v1  ;;  %v10942_v34 = vld [vmem:[%s15162_s2 + $0x13a0] ss:$16 sps:$4 sm:$0xff]   ;;  %v10947_v1 = vld [vmem:[%s15162_s2 + $0x11c4] ss:$16 sps:$4 sm:$0xff]  }
 0x216   : > { %5857 = vmatprep.subr.bf16.mxu1 %v10890_v2  ;;  %v10950_v2 = vld [vmem:[%s15162_s2 + $0x13c4] ss:$16 sps:$4 sm:$0xff]  }
 0x218   : > { %5817 = vmatpush1.bf16.msra.mxu0 %v10885_v3  ;;  %v13622_v3 = vrot.slane %v9292_v0, %v11894_v7 }
 0x219   : > { %5858 = vmatpush1.bf16.msra.mxu1 %v10888_v8  ;;  %5818 = vmatprep.subr.bf16.mxu0 %v10893_v32  ;;  %v10945_v8 = vld [vmem:[%s15162_s2 + $0x11c0] ss:$16 sps:$4 sm:$0xff]  }
 0x21a   : > { %5859 = vmatprep.subr.bf16.mxu1 %v10896_v4  ;;  %v3902_v11 = vpop.f32.mrb[16].mxu0  ;;  %v10948_v32 = vld [vmem:[%s15162_s2 + $0x13c0] ss:$16 sps:$4 sm:$0xff]   ;;  %v10953_v4 = vld [vmem:[%s15162_s2 + $0x11e4] ss:$16 sps:$4 sm:$0xff]  }
 0x21b   : > { %v3943_v12 = vpop.f32.mrb[16].mxu1  ;;  %v3903_v16 = vadd.f32 %v3902_v11, %v12888_v5  ;;  %v3904_v17 = vpop.f32.mrb[17].mxu0  ;;  %v10908_v5 = vld [vmem:[%s15162_s2 + $0x12e4] ss:$16 sps:$4 sm:$0xff]   ;;  %v10954_v11 = vld [vmem:[%s15162_s2 + $0x13e0] ss:$16 sps:$4 sm:$0xff]  }
 0x21c   : > { %v3945_v18 = vpop.f32.mrb[17].mxu1  ;;  %v3905_v20 = vadd.f32 %v3904_v17, %v12896_v19  ;;  %v3906_v22 = vpop.f32.mrb[18].mxu0  ;;  %5819 = vmatpush1.bf16.msra.mxu0 %v10891_v9  ;;  %v10903_v19 = vld [vmem:[%s15162_s2 + $0x10e0] ss:$16 sps:$4 sm:$0xff]   ;;  %v10956_v9 = vld [vmem:[%s15162_s2 + $0x13e4] ss:$16 sps:$4 sm:$0xff]  }
 0x21d   : > { %v3947_v24 = vpop.f32.mrb[18].mxu1  ;;  %5860 = vmatpush1.bf16.msra.mxu1 %v10894_v43  ;;  %v13522_v26 = vadd.f32 %v3943_v12, %v3903_v16  ;;  %v3907_v27 = vpop.f32.mrb[19].mxu0  ;;  %5820 = vmatprep.subr.bf16.mxu0 %v10899_v36  ;;  %v4487_v43 = vcombine.high %v13622_v3, %v13622_v3  ;;  %v13640_v36 = vrot.slane %v13403_v42, %v11894_v7  ;;  %v10959_v12 = vld [vmem:[%s15162_s2 + $0x1404] ss:$16 sps:$4 sm:$0xff]  }
 0x21e   : > { %v3948_v21 = vpop.f32.mrb[19].mxu1  ;;  %5861 = vmatprep.subr.bf16.mxu1 %v10902_v40  ;;  %v13530_v29 = vadd.f32 %v3945_v18, %v3905_v20  ;;  %v10951_v40 = vld [vmem:[%s15162_s2 + $0x11e0] ss:$16 sps:$4 sm:$0xff]   ;;  %v10962_v42 = vld [vmem:[%s15162_s2 + $0x1604] ss:$16 sps:$4 sm:$0xff]  }
 0x21f   : > { %v13661_v16 = vrot.slane %v4487_v43, %v11894_v7  ;;  %v13665_v17 = vcombine.high %v13640_v36, %v13640_v36  ;;  %v10965_v18 = vld [vmem:[%s15162_s2 + $0x1424] ss:$16 sps:$4 sm:$0xff]   ;;  %v10963_v24 = vld [vmem:[%s15162_s2 + $0x1420] ss:$16 sps:$4 sm:$0xff]  }
 0x220   : > { %5821 = vmatpush1.bf16.msra.mxu0 %v10897_v13  ;;  %v10957_v13 = vld [vmem:[%s15162_s2 + $0x1400] ss:$16 sps:$4 sm:$0xff]   ;;  %v10968_v20 = vld [vmem:[%s15162_s2 + $0x1624] ss:$16 sps:$4 sm:$0xff]  }
 0x221   : > { %5862 = vmatpush1.bf16.msra.mxu1 %v10900_v15  ;;  %5822 = vmatprep.subr.bf16.mxu0 %v10905_v31  ;;  %v10960_v15 = vld [vmem:[%s15162_s2 + $0x1600] ss:$16 sps:$4 sm:$0xff]   ;;  %v13675_v22 = vcombine.high %v13661_v16, %v13661_v16  ;;  %v10971_v21 = vld [vmem:[%s15162_s2 + $0x1444] ss:$16 sps:$4 sm:$0xff]  }
 0x222   : > { %5863 = vmatprep.subr.bf16.mxu1 %v10908_v5  ;;  %v10966_v27 = vld [vmem:[%s15162_s2 + $0x1620] ss:$16 sps:$4 sm:$0xff]   ;;  %v10974_v31 = vld [vmem:[%s15162_s2 + $0x1644] ss:$16 sps:$4 sm:$0xff]  }
 0x223   : > { %v10969_v5 = vld [vmem:[%s15162_s2 + $0x1440] ss:$16 sps:$4 sm:$0xff]  }
 0x224   : > { %5823 = vmatpush1.bf16.msra.mxu0 %v10903_v19  ;;  %v10972_v19 = vld [vmem:[%s15162_s2 + $0x1640] ss:$16 sps:$4 sm:$0xff]  }
 0x225   : > { %5864 = vmatpush1.bf16.msra.mxu1 %v10906_v35  ;;  %5824 = vmatprep.subr.bf16.mxu0 %v10911_v30  ;;  %v10977_v35 = vld [vmem:[%s15162_s2 + $0x1464] ss:$16 sps:$4 sm:$0xff]   ;;  %v11008_v43 = vld [vmem:[%s15162_s2 + $0x1700] ss:$16 sps:$4 sm:$0xff]  }
 0x226   : > { %5865 = vmatprep.subr.bf16.mxu1 %v10914_v37  ;;  %v10980_v30 = vld [vmem:[%s15162_s2 + $0x1664] ss:$16 sps:$4 sm:$0xff]   ;;  %v10975_v37 = vld [vmem:[%s15162_s2 + $0x1460] ss:$16 sps:$4 sm:$0xff]  }
 0x228   : > { %5825 = vmatpush1.bf16.msra.mxu0 %v10909_v39  ;;  %v10978_v39 = vld [vmem:[%s15162_s2 + $0x1660] ss:$16 sps:$4 sm:$0xff]  }
 0x229   : > { %5866 = vmatpush1.bf16.msra.mxu1 %v10912_v41  ;;  %5826 = vmatprep.subr.bf16.mxu0 %v10917_v44  ;;  %v10983_v41 = vld [vmem:[%s15162_s2 + $0x1484] ss:$16 sps:$4 sm:$0xff]  }
 0x22a   : > { %5867 = vmatprep.subr.bf16.mxu1 %v10920_v45  ;;  %v10986_v44 = vld [vmem:[%s15162_s2 + $0x1684] ss:$16 sps:$4 sm:$0xff]   ;;  %v10981_v45 = vld [vmem:[%s15162_s2 + $0x1480] ss:$16 sps:$4 sm:$0xff]  }
 0x22c   : > { %5827 = vmatpush1.bf16.msra.mxu0 %v10915_v46  ;;  %v10984_v46 = vld [vmem:[%s15162_s2 + $0x1680] ss:$16 sps:$4 sm:$0xff]  }
 0x22d   : > { %5868 = vmatpush1.bf16.msra.mxu1 %v10918_v47  ;;  %5828 = vmatprep.subr.bf16.mxu0 %v10923_v48  ;;  %v10989_v47 = vld [vmem:[%s15162_s2 + $0x14a4] ss:$16 sps:$4 sm:$0xff]  }
 0x22e   : > { %5869 = vmatprep.subr.bf16.mxu1 %v10926_v50  ;;  %v10992_v48 = vld [vmem:[%s15162_s2 + $0x16a4] ss:$16 sps:$4 sm:$0xff]   ;;  %v10987_v50 = vld [vmem:[%s15162_s2 + $0x14a0] ss:$16 sps:$4 sm:$0xff]  }
 0x230   : > { %5829 = vmatpush1.bf16.msra.mxu0 %v10921_v51  ;;  %v10990_v51 = vld [vmem:[%s15162_s2 + $0x16a0] ss:$16 sps:$4 sm:$0xff]  }
 0x231   : > { %5870 = vmatpush1.bf16.msra.mxu1 %v10924_v52  ;;  %5830 = vmatprep.subr.bf16.mxu0 %v10929_v53  ;;  %v10995_v52 = vld [vmem:[%s15162_s2 + $0x14c4] ss:$16 sps:$4 sm:$0xff]  }
 0x232   : > { %5871 = vmatprep.subr.bf16.mxu1 %v10932_v54  ;;  %v10998_v53 = vld [vmem:[%s15162_s2 + $0x16c4] ss:$16 sps:$4 sm:$0xff]  }
 0x234   : > { %5831 = vmatpush1.bf16.msra.mxu0 %v10927_v55 }
 0x235   : > { %5872 = vmatpush1.bf16.msra.mxu1 %v10930_v58  ;;  %5832 = vmatprep.subr.bf16.mxu0 %v10935_v25 }
 0x236   : > { %5873 = vmatprep.subr.bf16.mxu1 %v10938_v14 }
 0x238   : > { %5833 = vmatpush1.bf16.msra.mxu0 %v10933_v61 }
 0x239   : > { %5874 = vmatpush1.bf16.msra.mxu1 %v10936_v57  ;;  %5834 = vmatprep.subr.bf16.mxu0 %v10941_v62 }
 0x23a   : > { %5875 = vmatprep.subr.bf16.mxu1 %v10944_v33  ;;  %v10993_v33 = vld [vmem:[%s15162_s2 + $0x14c0] ss:$16 sps:$4 sm:$0xff]  }
 0x23c   : > { %5835 = vmatpush1.bf16.msra.mxu0 %v10939_v23 }
 0x23d   : > { %5876 = vmatpush1.bf16.msra.mxu1 %v10942_v34  ;;  %5836 = vmatprep.subr.bf16.mxu0 %v10947_v1  ;;  %v11004_v34 = vld [vmem:[%s15162_s2 + $0x16e4] ss:$16 sps:$4 sm:$0xff]  }
 0x23e   : > { %5877 = vmatprep.subr.bf16.mxu1 %v10950_v2  ;;  %v10999_v2 = vld [vmem:[%s15162_s2 + $0x14e0] ss:$16 sps:$4 sm:$0xff]  }
 0x240   : > { %5837 = vmatpush1.bf16.msra.mxu0 %v10945_v8  ;;  %v11002_v8 = vld [vmem:[%s15162_s2 + $0x16e0] ss:$16 sps:$4 sm:$0xff]  }
 0x241   : > { %5878 = vmatpush1.bf16.msra.mxu1 %v10948_v32  ;;  %5838 = vmatprep.subr.bf16.mxu0 %v10953_v4  ;;  %v11007_v32 = vld [vmem:[%s15162_s2 + $0x1504] ss:$16 sps:$4 sm:$0xff]  }
 0x242   : > { %5879 = vmatprep.subr.bf16.mxu1 %v10956_v9  ;;  %v11010_v4 = vld [vmem:[%s15162_s2 + $0x1704] ss:$16 sps:$4 sm:$0xff]   ;;  %v11005_v9 = vld [vmem:[%s15162_s2 + $0x1500] ss:$16 sps:$4 sm:$0xff]  }
 0x244   : > { %5839 = vmatpush1.bf16.msra.mxu0 %v10951_v40  ;;  %v11013_v40 = vld [vmem:[%s15162_s2 + $0x1524] ss:$16 sps:$4 sm:$0xff]  }
 0x245   : > { %5880 = vmatpush1.bf16.msra.mxu1 %v10954_v11  ;;  %5890 = vmatprep.subr.bf16.mxu0 %v10959_v12  ;;  %v11016_v11 = vld [vmem:[%s15162_s2 + $0x1724] ss:$16 sps:$4 sm:$0xff]   ;;  %v11011_v12 = vld [vmem:[%s15162_s2 + $0x1520] ss:$16 sps:$4 sm:$0xff]  }
 0x246   : > { %5931 = vmatprep.subr.bf16.mxu1 %v10962_v42  ;;  %v11014_v42 = vld [vmem:[%s15162_s2 + $0x1720] ss:$16 sps:$4 sm:$0xff]  }
 0x247   : > { %5841 = vmatmul.mubr.bf16.vlgmr.msra.gmra.mrb[32].mxu0 %v13640_v36 }
 0x248   : > { %5882 = vmatmul.mubr.bf16.vlgmr.msra.gmra.mrb[32].mxu1 %v13665_v17  ;;  %5891 = vmatpush1.bf16.msra.mxu0 %v10957_v13  ;;  %v11019_v13 = vld [vmem:[%s15162_s2 + $0x1544] ss:$16 sps:$4 sm:$0xff]  }
 0x249   : > { %5932 = vmatpush1.bf16.msra.mxu1 %v10960_v15  ;;  %5892 = vmatprep.subr.bf16.mxu0 %v10965_v18  ;;  %v11022_v15 = vld [vmem:[%s15162_s2 + $0x1744] ss:$16 sps:$4 sm:$0xff]   ;;  %v11017_v18 = vld [vmem:[%s15162_s2 + $0x1540] ss:$16 sps:$4 sm:$0xff]  }
 0x24a   : > { %5933 = vmatprep.subr.bf16.mxu1 %v10968_v20  ;;  %5922 = vmatprep.mubr.bf16.mxu0 %v13661_v16  ;;  %v11020_v20 = vld [vmem:[%s15162_s2 + $0x1740] ss:$16 sps:$4 sm:$0xff]  }
 0x24b   : > { %5963 = vmatprep.mubr.bf16.mxu1 %v13675_v22 }
 0x24c   : > { %5893 = vmatpush1.bf16.msra.mxu0 %v10963_v24  ;;  %v11025_v24 = vld [vmem:[%s15162_s2 + $0x1564] ss:$16 sps:$4 sm:$0xff]  }
 0x24d   : > { %5934 = vmatpush1.bf16.msra.mxu1 %v10966_v27  ;;  %5894 = vmatprep.subr.bf16.mxu0 %v10971_v21  ;;  %v11028_v27 = vld [vmem:[%s15162_s2 + $0x1764] ss:$16 sps:$4 sm:$0xff]   ;;  %v11023_v21 = vld [vmem:[%s15162_s2 + $0x1560] ss:$16 sps:$4 sm:$0xff]  }
 0x24e   : > { %5935 = vmatprep.subr.bf16.mxu1 %v10974_v31  ;;  %v11026_v31 = vld [vmem:[%s15162_s2 + $0x1760] ss:$16 sps:$4 sm:$0xff]  }
 0x250   : > { %5895 = vmatpush1.bf16.msra.mxu0 %v10969_v5  ;;  %v11031_v5 = vld [vmem:[%s15162_s2 + $0x1584] ss:$16 sps:$4 sm:$0xff]  }
 0x251   : > { %5936 = vmatpush1.bf16.msra.mxu1 %v10972_v19  ;;  %5896 = vmatprep.subr.bf16.mxu0 %v10977_v35  ;;  %v11034_v19 = vld [vmem:[%s15162_s2 + $0x1784] ss:$16 sps:$4 sm:$0xff]   ;;  %v11029_v35 = vld [vmem:[%s15162_s2 + $0x1580] ss:$16 sps:$4 sm:$0xff]  }
 0x252   : > { %5937 = vmatprep.subr.bf16.mxu1 %v10980_v30  ;;  %v11032_v30 = vld [vmem:[%s15162_s2 + $0x1780] ss:$16 sps:$4 sm:$0xff]  }
 0x254   : > { %5897 = vmatpush1.bf16.msra.mxu0 %v10975_v37  ;;  %v11037_v37 = vld [vmem:[%s15162_s2 + $0x15a4] ss:$16 sps:$4 sm:$0xff]  }
 0x255   : > { %5938 = vmatpush1.bf16.msra.mxu1 %v10978_v39  ;;  %5898 = vmatprep.subr.bf16.mxu0 %v10983_v41  ;;  %v11040_v39 = vld [vmem:[%s15162_s2 + $0x17a4] ss:$16 sps:$4 sm:$0xff]   ;;  %v11035_v41 = vld [vmem:[%s15162_s2 + $0x15a0] ss:$16 sps:$4 sm:$0xff]  }
 0x256   : > { %5939 = vmatprep.subr.bf16.mxu1 %v10986_v44  ;;  %v11038_v44 = vld [vmem:[%s15162_s2 + $0x17a0] ss:$16 sps:$4 sm:$0xff]  }
 0x258   : > { %5899 = vmatpush1.bf16.msra.mxu0 %v10981_v45  ;;  %v11043_v45 = vld [vmem:[%s15162_s2 + $0x15c4] ss:$16 sps:$4 sm:$0xff]  }
 0x259   : > { %5940 = vmatpush1.bf16.msra.mxu1 %v10984_v46  ;;  %5900 = vmatprep.subr.bf16.mxu0 %v10989_v47  ;;  %v11046_v46 = vld [vmem:[%s15162_s2 + $0x17c4] ss:$16 sps:$4 sm:$0xff]   ;;  %v11041_v47 = vld [vmem:[%s15162_s2 + $0x15c0] ss:$16 sps:$4 sm:$0xff]  }
 0x25a   : > { %5941 = vmatprep.subr.bf16.mxu1 %v10992_v48  ;;  %v3984_v54 = vpop.f32.mrb[20].mxu0  ;;  %v11044_v48 = vld [vmem:[%s15162_s2 + $0x17c0] ss:$16 sps:$4 sm:$0xff]  }
 0x25b   : > { %v4025_v55 = vpop.f32.mrb[20].mxu1  ;;  %v3985_v58 = vadd.f32 %v3984_v54, %v13522_v26  ;;  %v3986_v25 = vpop.f32.mrb[21].mxu0  ;;  %v11050_v54 = vld [vmem:[%s15162_s2 + $0x17e0] ss:$16 sps:$4 sm:$0xff]  }
 0x25c   : > { %v4027_v14 = vpop.f32.mrb[21].mxu1  ;;  %v3987_v61 = vadd.f32 %v3986_v25, %v13530_v29  ;;  %v3988_v57 = vpop.f32.mrb[22].mxu0  ;;  %5901 = vmatpush1.bf16.msra.mxu0 %v10987_v50  ;;  %v11001_v29 = vld [vmem:[%s15162_s2 + $0x14e4] ss:$16 sps:$4 sm:$0xff]   ;;  %v11053_v25 = vld [vmem:[%s15162_s2 + $0x1008] ss:$16 sps:$4 sm:$0xff]  }
 0x25d   : > { %v4029_v62 = vpop.f32.mrb[22].mxu1  ;;  %5942 = vmatpush1.bf16.msra.mxu1 %v10990_v51  ;;  %v13749_v0 = vadd.f32 %v4025_v55, %v3985_v58  ;;  %v3989_v23 = vpop.f32.mrb[23].mxu0  ;;  %5902 = vmatprep.subr.bf16.mxu0 %v10995_v52  ;;  %v11049_v50 = vld [vmem:[%s15162_s2 + $0x15e4] ss:$16 sps:$4 sm:$0xff]   ;;  %v13857_v52 = vrot.slane %v13622_v3, %v11894_v7  ;;  %v11055_v55 = vld [vmem:[%s15162_s2 + $0x100c] ss:$16 sps:$4 sm:$0xff]  }
 0x25e   : > { %v4030_v26 = vpop.f32.mrb[23].mxu1  ;;  %5943 = vmatprep.subr.bf16.mxu1 %v10998_v53  ;;  %v13757_v1 = vadd.f32 %v4027_v14, %v3987_v61  ;;  %v11052_v51 = vld [vmem:[%s15162_s2 + $0x17e4] ss:$16 sps:$4 sm:$0xff]   ;;  %v11047_v53 = vld [vmem:[%s15162_s2 + $0x15e0] ss:$16 sps:$4 sm:$0xff]  }
 0x25f   : > { %v11058_v3 = vld [vmem:[%s15162_s2 + $0x120c] ss:$16 sps:$4 sm:$0xff]   ;;  %v13873_v58 = vcombine.high %v13857_v52, %v13857_v52  ;;  %v11056_v14 = vld [vmem:[%s15162_s2 + $0x1208] ss:$16 sps:$4 sm:$0xff]  }
 0x260   : > { %5903 = vmatpush1.bf16.msra.mxu0 %v10993_v33  ;;  %v11061_v61 = vld [vmem:[%s15162_s2 + $0x102c] ss:$16 sps:$4 sm:$0xff]   ;;  %v11059_v62 = vld [vmem:[%s15162_s2 + $0x1028] ss:$16 sps:$4 sm:$0xff]  }
 0x261   : > { %5944 = vmatpush1.bf16.msra.mxu1 %v10996_v63  ;;  %5904 = vmatprep.subr.bf16.mxu0 %v11001_v29  ;;  %v11064_v57 = vld [vmem:[%s15162_s2 + $0x122c] ss:$16 sps:$4 sm:$0xff]   ;;  %v11062_v33 = vld [vmem:[%s15162_s2 + $0x1228] ss:$16 sps:$4 sm:$0xff]  }
 0x262   : > { %5945 = vmatprep.subr.bf16.mxu1 %v11004_v34  ;;  %v11067_v63 = vld [vmem:[%s15162_s2 + $0x104c] ss:$16 sps:$4 sm:$0xff]   ;;  %v11065_v26 = vld [vmem:[%s15162_s2 + $0x1048] ss:$16 sps:$4 sm:$0xff]  }
 0x263   : > { %v11070_v23 = vld [vmem:[%s15162_s2 + $0x124c] ss:$16 sps:$4 sm:$0xff]   ;;  %v11068_v29 = vld [vmem:[%s15162_s2 + $0x1248] ss:$16 sps:$4 sm:$0xff]  }
 0x264   : > { %5905 = vmatpush1.bf16.msra.mxu0 %v10999_v2  ;;  %v11073_v34 = vld [vmem:[%s15162_s2 + $0x106c] ss:$16 sps:$4 sm:$0xff]   ;;  %v11074_v2 = vld [vmem:[%s15162_s2 + $0x1268] ss:$16 sps:$4 sm:$0xff]  }
 0x265   : > { %5946 = vmatpush1.bf16.msra.mxu1 %v11002_v8  ;;  %5906 = vmatprep.subr.bf16.mxu0 %v11007_v32  ;;  %v11079_v8 = vld [vmem:[%s15162_s2 + $0x108c] ss:$16 sps:$4 sm:$0xff]  }
 0x266   : > { %5947 = vmatprep.subr.bf16.mxu1 %v11010_v4  ;;  %v11082_v32 = vld [vmem:[%s15162_s2 + $0x128c] ss:$16 sps:$4 sm:$0xff]   ;;  %v11077_v4 = vld [vmem:[%s15162_s2 + $0x1088] ss:$16 sps:$4 sm:$0xff]  }
 0x268   : > { %5907 = vmatpush1.bf16.msra.mxu0 %v11005_v9  ;;  %v11080_v9 = vld [vmem:[%s15162_s2 + $0x1288] ss:$16 sps:$4 sm:$0xff]  }
 0x269   : > { %5948 = vmatpush1.bf16.msra.mxu1 %v11008_v43  ;;  %5908 = vmatprep.subr.bf16.mxu0 %v11013_v40  ;;  %v11085_v43 = vld [vmem:[%s15162_s2 + $0x10ac] ss:$16 sps:$4 sm:$0xff]  }
 0x26a   : > { %5949 = vmatprep.subr.bf16.mxu1 %v11016_v11  ;;  %v11088_v40 = vld [vmem:[%s15162_s2 + $0x12ac] ss:$16 sps:$4 sm:$0xff]   ;;  %v11083_v11 = vld [vmem:[%s15162_s2 + $0x10a8] ss:$16 sps:$4 sm:$0xff]  }
 0x26c   : > { %5909 = vmatpush1.bf16.msra.mxu0 %v11011_v12  ;;  %v11086_v12 = vld [vmem:[%s15162_s2 + $0x12a8] ss:$16 sps:$4 sm:$0xff]  }
 0x26d   : > { %5950 = vmatpush1.bf16.msra.mxu1 %v11014_v42  ;;  %5910 = vmatprep.subr.bf16.mxu0 %v11019_v13  ;;  %v11091_v42 = vld [vmem:[%s15162_s2 + $0x10cc] ss:$16 sps:$4 sm:$0xff]  }
 0x26e   : > { %5951 = vmatprep.subr.bf16.mxu1 %v11022_v15  ;;  %v11094_v13 = vld [vmem:[%s15162_s2 + $0x12cc] ss:$16 sps:$4 sm:$0xff]  }
 0x270   : > { %5911 = vmatpush1.bf16.msra.mxu0 %v11017_v18 }
 0x271   : > { %5952 = vmatpush1.bf16.msra.mxu1 %v11020_v20  ;;  %5912 = vmatprep.subr.bf16.mxu0 %v11025_v24 }
 0x272   : > { %5953 = vmatprep.subr.bf16.mxu1 %v11028_v27 }
 0x274   : > { %5913 = vmatpush1.bf16.msra.mxu0 %v11023_v21 }
 0x275   : > { %5954 = vmatpush1.bf16.msra.mxu1 %v11026_v31  ;;  %5914 = vmatprep.subr.bf16.mxu0 %v11031_v5 }
 0x276   : > { %5955 = vmatprep.subr.bf16.mxu1 %v11034_v19  ;;  %v11089_v19 = vld [vmem:[%s15162_s2 + $0x10c8] ss:$16 sps:$4 sm:$0xff]  }
 0x278   : > { %5915 = vmatpush1.bf16.msra.mxu0 %v11029_v35  ;;  %v11092_v35 = vld [vmem:[%s15162_s2 + $0x12c8] ss:$16 sps:$4 sm:$0xff]  }
 0x279   : > { %5956 = vmatpush1.bf16.msra.mxu1 %v11032_v30  ;;  %5916 = vmatprep.subr.bf16.mxu0 %v11037_v37 }
 0x27a   : > { %5957 = vmatprep.subr.bf16.mxu1 %v11040_v39  ;;  %v11100_v39 = vld [vmem:[%s15162_s2 + $0x12ec] ss:$16 sps:$4 sm:$0xff]  }
 0x27c   : > { %5917 = vmatpush1.bf16.msra.mxu0 %v11035_v41 }
 0x27d   : > { %5958 = vmatpush1.bf16.msra.mxu1 %v11038_v44  ;;  %5918 = vmatprep.subr.bf16.mxu0 %v11043_v45  ;;  %v11095_v44 = vld [vmem:[%s15162_s2 + $0x10e8] ss:$16 sps:$4 sm:$0xff]  }
 0x27e   : > { %5959 = vmatprep.subr.bf16.mxu1 %v11046_v46  ;;  %v11098_v45 = vld [vmem:[%s15162_s2 + $0x12e8] ss:$16 sps:$4 sm:$0xff]   ;;  %v11103_v46 = vld [vmem:[%s15162_s2 + $0x110c] ss:$16 sps:$4 sm:$0xff]  }
 0x280   : > { %5919 = vmatpush1.bf16.msra.mxu0 %v11041_v47  ;;  %v11106_v47 = vld [vmem:[%s15162_s2 + $0x130c] ss:$16 sps:$4 sm:$0xff]  }
 0x281   : > { %5960 = vmatpush1.bf16.msra.mxu1 %v11044_v48  ;;  %5920 = vmatprep.subr.bf16.mxu0 %v11049_v50  ;;  %v11101_v48 = vld [vmem:[%s15162_s2 + $0x1108] ss:$16 sps:$4 sm:$0xff]  }
 0x282   : > { %5961 = vmatprep.subr.bf16.mxu1 %v11052_v51  ;;  %v11104_v50 = vld [vmem:[%s15162_s2 + $0x1308] ss:$16 sps:$4 sm:$0xff]   ;;  %v11109_v51 = vld [vmem:[%s15162_s2 + $0x112c] ss:$16 sps:$4 sm:$0xff]  }
 0x284   : > { %5921 = vmatpush1.bf16.msra.mxu0 %v11047_v53  ;;  %v11112_v53 = vld [vmem:[%s15162_s2 + $0x132c] ss:$16 sps:$4 sm:$0xff]  }
 0x285   : > { %5962 = vmatpush1.bf16.msra.mxu1 %v11050_v54  ;;  %5972 = vmatprep.subr.bf16.mxu0 %v11055_v55  ;;  %v11107_v54 = vld [vmem:[%s15162_s2 + $0x1128] ss:$16 sps:$4 sm:$0xff]  }
 0x286   : > { %6013 = vmatprep.subr.bf16.mxu1 %v11058_v3  ;;  %v11110_v55 = vld [vmem:[%s15162_s2 + $0x1328] ss:$16 sps:$4 sm:$0xff]   ;;  %v11115_v3 = vld [vmem:[%s15162_s2 + $0x114c] ss:$16 sps:$4 sm:$0xff]  }
 0x287   : > { %5923 = vmatmul.mubr.bf16.vlgmr.msra.gmra.mrb[36].mxu0 %v13857_v52 }
 0x288   : > { %5964 = vmatmul.mubr.bf16.vlgmr.msra.gmra.mrb[36].mxu1 %v13873_v58  ;;  %5973 = vmatpush1.bf16.msra.mxu0 %v11053_v25  ;;  %v11118_v25 = vld [vmem:[%s15162_s2 + $0x134c] ss:$16 sps:$4 sm:$0xff]  }
 0x289   : > { %6014 = vmatpush1.bf16.msra.mxu1 %v11056_v14  ;;  %5974 = vmatprep.subr.bf16.mxu0 %v11061_v61  ;;  %v11113_v14 = vld [vmem:[%s15162_s2 + $0x1148] ss:$16 sps:$4 sm:$0xff]  }
 0x28a   : > { %6015 = vmatprep.subr.bf16.mxu1 %v11064_v57  ;;  %6004 = vmatprep.mubr.bf16.mxu0 %v13438_v56  ;;  %v11076_v56 = vld [vmem:[%s15162_s2 + $0x126c] ss:$16 sps:$4 sm:$0xff]   ;;  %v11116_v61 = vld [vmem:[%s15162_s2 + $0x1348] ss:$16 sps:$4 sm:$0xff]  }
 0x28b   : > { %6045 = vmatprep.mubr.bf16.mxu1 %v13448_v59  ;;  %v11071_v59 = vld [vmem:[%s15162_s2 + $0x1068] ss:$16 sps:$4 sm:$0xff]   ;;  %v11121_v57 = vld [vmem:[%s15162_s2 + $0x116c] ss:$16 sps:$4 sm:$0xff]  }
 0x28c   : > { %5975 = vmatpush1.bf16.msra.mxu0 %v11059_v62  ;;  %v11124_v62 = vld [vmem:[%s15162_s2 + $0x136c] ss:$16 sps:$4 sm:$0xff]  }
 0x28d   : > { %6016 = vmatpush1.bf16.msra.mxu1 %v11062_v33  ;;  %5976 = vmatprep.subr.bf16.mxu0 %v11067_v63  ;;  %v11119_v33 = vld [vmem:[%s15162_s2 + $0x1168] ss:$16 sps:$4 sm:$0xff]  }
 0x28e   : > { %6017 = vmatprep.subr.bf16.mxu1 %v11070_v23  ;;  %v11122_v63 = vld [vmem:[%s15162_s2 + $0x1368] ss:$16 sps:$4 sm:$0xff]   ;;  %v11127_v23 = vld [vmem:[%s15162_s2 + $0x118c] ss:$16 sps:$4 sm:$0xff]  }
 0x290   : > { %5977 = vmatpush1.bf16.msra.mxu0 %v11065_v26  ;;  %v11130_v26 = vld [vmem:[%s15162_s2 + $0x138c] ss:$16 sps:$4 sm:$0xff]  }
 0x291   : > { %6018 = vmatpush1.bf16.msra.mxu1 %v11068_v29  ;;  %5978 = vmatprep.subr.bf16.mxu0 %v11073_v34  ;;  %v11125_v29 = vld [vmem:[%s15162_s2 + $0x1188] ss:$16 sps:$4 sm:$0xff]  }
 0x292   : > { %6019 = vmatprep.subr.bf16.mxu1 %v11076_v56  ;;  %v11128_v34 = vld [vmem:[%s15162_s2 + $0x1388] ss:$16 sps:$4 sm:$0xff]   ;;  %v11133_v56 = vld [vmem:[%s15162_s2 + $0x11ac] ss:$16 sps:$4 sm:$0xff]  }
 0x294   : > { %5979 = vmatpush1.bf16.msra.mxu0 %v11071_v59  ;;  %v11136_v59 = vld [vmem:[%s15162_s2 + $0x13ac] ss:$16 sps:$4 sm:$0xff]  }
 0x295   : > { %6020 = vmatpush1.bf16.msra.mxu1 %v11074_v2  ;;  %5980 = vmatprep.subr.bf16.mxu0 %v11079_v8  ;;  %v11131_v2 = vld [vmem:[%s15162_s2 + $0x11a8] ss:$16 sps:$4 sm:$0xff]  }
 0x296   : > { %6021 = vmatprep.subr.bf16.mxu1 %v11082_v32  ;;  %v11134_v8 = vld [vmem:[%s15162_s2 + $0x13a8] ss:$16 sps:$4 sm:$0xff]   ;;  %v11139_v32 = vld [vmem:[%s15162_s2 + $0x11cc] ss:$16 sps:$4 sm:$0xff]  }
 0x298   : > { %5981 = vmatpush1.bf16.msra.mxu0 %v11077_v4  ;;  %v11142_v4 = vld [vmem:[%s15162_s2 + $0x13cc] ss:$16 sps:$4 sm:$0xff]  }
 0x299   : > { %6022 = vmatpush1.bf16.msra.mxu1 %v11080_v9  ;;  %5982 = vmatprep.subr.bf16.mxu0 %v11085_v43  ;;  %v11137_v9 = vld [vmem:[%s15162_s2 + $0x11c8] ss:$16 sps:$4 sm:$0xff]  }
 0x29a   : > { %6023 = vmatprep.subr.bf16.mxu1 %v11088_v40  ;;  %v4066_v15 = vpop.f32.mrb[24].mxu0  ;;  %v11140_v43 = vld [vmem:[%s15162_s2 + $0x13c8] ss:$16 sps:$4 sm:$0xff]   ;;  %v11145_v40 = vld [vmem:[%s15162_s2 + $0x11ec] ss:$16 sps:$4 sm:$0xff]  }
 0x29b   : > { %v4107_v18 = vpop.f32.mrb[24].mxu1  ;;  %v4067_v20 = vadd.f32 %v4066_v15, %v13298_v28  ;;  %v4068_v24 = vpop.f32.mrb[25].mxu0  ;;  %v11154_v15 = vld [vmem:[%s15162_s2 + $0x160c] ss:$16 sps:$4 sm:$0xff]  }
 0x29c   : > { %v4109_v27 = vpop.f32.mrb[25].mxu1  ;;  %v4069_v21 = vadd.f32 %v4068_v24, %v13306_v38  ;;  %v4070_v31 = vpop.f32.mrb[26].mxu0  ;;  %5983 = vmatpush1.bf16.msra.mxu0 %v11083_v11  ;;  %v11097_v38 = vld [vmem:[%s15162_s2 + $0x10ec] ss:$16 sps:$4 sm:$0xff]  }
 0x29d   : > { %v4111_v5 = vpop.f32.mrb[26].mxu1  ;;  %6024 = vmatpush1.bf16.msra.mxu1 %v11086_v12  ;;  %v13959_v30 = vadd.f32 %v4107_v18, %v4067_v20  ;;  %v4071_v37 = vpop.f32.mrb[27].mxu0  ;;  %5984 = vmatprep.subr.bf16.mxu0 %v11091_v42  ;;  %v11148_v11 = vld [vmem:[%s15162_s2 + $0x13ec] ss:$16 sps:$4 sm:$0xff]   ;;  %v11143_v12 = vld [vmem:[%s15162_s2 + $0x11e8] ss:$16 sps:$4 sm:$0xff]  }
 0x29e   : > { %v4112_v28 = vpop.f32.mrb[27].mxu1  ;;  %6025 = vmatprep.subr.bf16.mxu1 %v11094_v13  ;;  %v13967_v41 = vadd.f32 %v4109_v27, %v4069_v21  ;;  %v11146_v42 = vld [vmem:[%s15162_s2 + $0x13e8] ss:$16 sps:$4 sm:$0xff]   ;;  %v11151_v13 = vld [vmem:[%s15162_s2 + $0x140c] ss:$16 sps:$4 sm:$0xff]  }
 0x29f   : > { %v11149_v18 = vld [vmem:[%s15162_s2 + $0x1408] ss:$16 sps:$4 sm:$0xff]   ;;  %v11157_v24 = vld [vmem:[%s15162_s2 + $0x142c] ss:$16 sps:$4 sm:$0xff]  }
 0x2a0   : > { %5985 = vmatpush1.bf16.msra.mxu0 %v11089_v19  ;;  %v11152_v20 = vld [vmem:[%s15162_s2 + $0x1608] ss:$16 sps:$4 sm:$0xff]   ;;  %v11160_v27 = vld [vmem:[%s15162_s2 + $0x162c] ss:$16 sps:$4 sm:$0xff]  }
 0x2a1   : > { %6026 = vmatpush1.bf16.msra.mxu1 %v11092_v35  ;;  %5986 = vmatprep.subr.bf16.mxu0 %v11097_v38  ;;  %v11155_v21 = vld [vmem:[%s15162_s2 + $0x1428] ss:$16 sps:$4 sm:$0xff]   ;;  %v11163_v5 = vld [vmem:[%s15162_s2 + $0x144c] ss:$16 sps:$4 sm:$0xff]  }
 0x2a2   : > { %6027 = vmatprep.subr.bf16.mxu1 %v11100_v39  ;;  %v11158_v31 = vld [vmem:[%s15162_s2 + $0x1628] ss:$16 sps:$4 sm:$0xff]   ;;  %v11169_v35 = vld [vmem:[%s15162_s2 + $0x146c] ss:$16 sps:$4 sm:$0xff]  }
 0x2a3   : > { %v11164_v19 = vld [vmem:[%s15162_s2 + $0x1648] ss:$16 sps:$4 sm:$0xff]   ;;  %v11175_v28 = vld [vmem:[%s15162_s2 + $0x148c] ss:$16 sps:$4 sm:$0xff]  }
 0x2a4   : > { %5987 = vmatpush1.bf16.msra.mxu0 %v11095_v44  ;;  %v11170_v37 = vld [vmem:[%s15162_s2 + $0x1668] ss:$16 sps:$4 sm:$0xff]   ;;  %v11178_v38 = vld [vmem:[%s15162_s2 + $0x168c] ss:$16 sps:$4 sm:$0xff]  }
 0x2a5   : > { %6028 = vmatpush1.bf16.msra.mxu1 %v11098_v45  ;;  %5988 = vmatprep.subr.bf16.mxu0 %v11103_v46  ;;  %v11173_v39 = vld [vmem:[%s15162_s2 + $0x1488] ss:$16 sps:$4 sm:$0xff]   ;;  %v11181_v45 = vld [vmem:[%s15162_s2 + $0x14ac] ss:$16 sps:$4 sm:$0xff]  }
 0x2a6   : > { %6029 = vmatprep.subr.bf16.mxu1 %v11106_v47  ;;  %v11176_v44 = vld [vmem:[%s15162_s2 + $0x1688] ss:$16 sps:$4 sm:$0xff]   ;;  %v11184_v46 = vld [vmem:[%s15162_s2 + $0x16ac] ss:$16 sps:$4 sm:$0xff]  }
 0x2a7   : > { %v11179_v47 = vld [vmem:[%s15162_s2 + $0x14a8] ss:$16 sps:$4 sm:$0xff]  }
 0x2a8   : > { %5989 = vmatpush1.bf16.msra.mxu0 %v11101_v48  ;;  %v11182_v48 = vld [vmem:[%s15162_s2 + $0x16a8] ss:$16 sps:$4 sm:$0xff]  }
 0x2a9   : > { %6030 = vmatpush1.bf16.msra.mxu1 %v11104_v50  ;;  %5990 = vmatprep.subr.bf16.mxu0 %v11109_v51  ;;  %v11187_v50 = vld [vmem:[%s15162_s2 + $0x14cc] ss:$16 sps:$4 sm:$0xff]  }
 0x2aa   : > { %6031 = vmatprep.subr.bf16.mxu1 %v11112_v53  ;;  %v11190_v51 = vld [vmem:[%s15162_s2 + $0x16cc] ss:$16 sps:$4 sm:$0xff]  }
 0x2ac   : > { %5991 = vmatpush1.bf16.msra.mxu0 %v11107_v54 }
 0x2ad   : > { %6032 = vmatpush1.bf16.msra.mxu1 %v11110_v55  ;;  %5992 = vmatprep.subr.bf16.mxu0 %v11115_v3 }
 0x2ae   : > { %6033 = vmatprep.subr.bf16.mxu1 %v11118_v25 }
 0x2b0   : > { %5993 = vmatpush1.bf16.msra.mxu0 %v11113_v14 }
 0x2b1   : > { %6034 = vmatpush1.bf16.msra.mxu1 %v11116_v61  ;;  %5994 = vmatprep.subr.bf16.mxu0 %v11121_v57 }
 0x2b2   : > { %6035 = vmatprep.subr.bf16.mxu1 %v11124_v62  ;;  %v11185_v62 = vld [vmem:[%s15162_s2 + $0x14c8] ss:$16 sps:$4 sm:$0xff]  }
 0x2b4   : > { %5995 = vmatpush1.bf16.msra.mxu0 %v11119_v33  ;;  %v11188_v33 = vld [vmem:[%s15162_s2 + $0x16c8] ss:$16 sps:$4 sm:$0xff]  }
 0x2b5   : > { %6036 = vmatpush1.bf16.msra.mxu1 %v11122_v63  ;;  %5996 = vmatprep.subr.bf16.mxu0 %v11127_v23 }
 0x2b6   : > { %6037 = vmatprep.subr.bf16.mxu1 %v11130_v26  ;;  %v11196_v26 = vld [vmem:[%s15162_s2 + $0x16ec] ss:$16 sps:$4 sm:$0xff]  }
 0x2b8   : > { %5997 = vmatpush1.bf16.msra.mxu0 %v11125_v29 }
 0x2b9   : > { %6038 = vmatpush1.bf16.msra.mxu1 %v11128_v34  ;;  %5998 = vmatprep.subr.bf16.mxu0 %v11133_v56  ;;  %v11191_v34 = vld [vmem:[%s15162_s2 + $0x14e8] ss:$16 sps:$4 sm:$0xff]  }
 0x2ba   : > { %6039 = vmatprep.subr.bf16.mxu1 %v11136_v59  ;;  %v11194_v56 = vld [vmem:[%s15162_s2 + $0x16e8] ss:$16 sps:$4 sm:$0xff]   ;;  %v11199_v59 = vld [vmem:[%s15162_s2 + $0x150c] ss:$16 sps:$4 sm:$0xff]  }
 0x2bc   : > { %5999 = vmatpush1.bf16.msra.mxu0 %v11131_v2  ;;  %v11202_v2 = vld [vmem:[%s15162_s2 + $0x170c] ss:$16 sps:$4 sm:$0xff]  }
 0x2bd   : > { %6040 = vmatpush1.bf16.msra.mxu1 %v11134_v8  ;;  %6000 = vmatprep.subr.bf16.mxu0 %v11139_v32  ;;  %v11197_v8 = vld [vmem:[%s15162_s2 + $0x1508] ss:$16 sps:$4 sm:$0xff]  }
 0x2be   : > { %6041 = vmatprep.subr.bf16.mxu1 %v11142_v4  ;;  %v11200_v32 = vld [vmem:[%s15162_s2 + $0x1708] ss:$16 sps:$4 sm:$0xff]   ;;  %v11205_v4 = vld [vmem:[%s15162_s2 + $0x152c] ss:$16 sps:$4 sm:$0xff]  }
 0x2c0   : > { %6001 = vmatpush1.bf16.msra.mxu0 %v11137_v9  ;;  %v11208_v9 = vld [vmem:[%s15162_s2 + $0x172c] ss:$16 sps:$4 sm:$0xff]  }
 0x2c1   : > { %6042 = vmatpush1.bf16.msra.mxu1 %v11140_v43  ;;  %6002 = vmatprep.subr.bf16.mxu0 %v11145_v40  ;;  %v11203_v43 = vld [vmem:[%s15162_s2 + $0x1528] ss:$16 sps:$4 sm:$0xff]  }
 0x2c2   : > { %6043 = vmatprep.subr.bf16.mxu1 %v11148_v11  ;;  %v11206_v40 = vld [vmem:[%s15162_s2 + $0x1728] ss:$16 sps:$4 sm:$0xff]   ;;  %v11211_v11 = vld [vmem:[%s15162_s2 + $0x154c] ss:$16 sps:$4 sm:$0xff]  }
 0x2c4   : > { %6003 = vmatpush1.bf16.msra.mxu0 %v11143_v12  ;;  %v11214_v12 = vld [vmem:[%s15162_s2 + $0x174c] ss:$16 sps:$4 sm:$0xff]  }
 0x2c5   : > { %6044 = vmatpush1.bf16.msra.mxu1 %v11146_v42  ;;  %6054 = vmatprep.subr.bf16.mxu0 %v11151_v13  ;;  %v11635_v42 = vld.sshfl [vmem:[%s13365_s25] sm:$0xff pattern:$0x75316420] }
 0x2c6   : > { %6095 = vmatprep.subr.bf16.mxu1 %v11154_v15  ;;  %v4212_v13 = vcombine.low %v11635_v42, %v13593_v60  ;;  %v6140_v15 = vcombine.high %v11635_v42, %v13593_v60  ;;  %v11220_v60 = vld [vmem:[%s15162_s2 + $0x176c] ss:$16 sps:$4 sm:$0xff]   ;;  %v11283_v42 = vld [vmem:[%s15162_s2 + $0x18c4] ss:$16 sps:$4 sm:$0xff]  }
 0x2c7   : > { %6005 = vmatmul.mubr.bf16.vlgmr.msra.gmra.mrb[40].mxu0 %v13640_v36  ;;  %v11166_v36 = vld [vmem:[%s15162_s2 + $0x164c] ss:$16 sps:$4 sm:$0xff]  }
 0x2c8   : > { %6046 = vmatmul.mubr.bf16.vlgmr.msra.gmra.mrb[40].mxu1 %v13665_v17  ;;  %6055 = vmatpush1.bf16.msra.mxu0 %v11149_v18  ;;  %v11161_v17 = vld [vmem:[%s15162_s2 + $0x1448] ss:$16 sps:$4 sm:$0xff]  }
 0x2c9   : > { %6096 = vmatpush1.bf16.msra.mxu1 %v11152_v20  ;;  %6056 = vmatprep.subr.bf16.mxu0 %v11157_v24  ;;  %v11209_v18 = vld [vmem:[%s15162_s2 + $0x1548] ss:$16 sps:$4 sm:$0xff]   ;;  %v11217_v24 = vld [vmem:[%s15162_s2 + $0x156c] ss:$16 sps:$4 sm:$0xff]  }
 0x2ca   : > { %6097 = vmatprep.subr.bf16.mxu1 %v11160_v27  ;;  %6086 = vmatprep.mubr.bf16.mxu0 %v13661_v16  ;;  %v11172_v16 = vld [vmem:[%s15162_s2 + $0x166c] ss:$16 sps:$4 sm:$0xff]   ;;  %v11212_v20 = vld [vmem:[%s15162_s2 + $0x1748] ss:$16 sps:$4 sm:$0xff]   ;;  %v6142_v27 = vshrl.u32 %v4212_v13, 16 }
 0x2cb   : > { %6127 = vmatprep.mubr.bf16.mxu1 %v13675_v22  ;;  %v11167_v22 = vld [vmem:[%s15162_s2 + $0x1468] ss:$16 sps:$4 sm:$0xff]   ;;  %v11286_v13 = vld [vmem:[%s15162_s2 + $0x1ac4] ss:$16 sps:$4 sm:$0xff]  }
 0x2cc   : > { %6057 = vmatpush1.bf16.msra.mxu0 %v11155_v21  ;;  %v6147_v21 = vshll.u32 %v6140_v15, 16 }
 0x2cd   : > { %6098 = vmatpush1.bf16.msra.mxu1 %v11158_v31  ;;  %6058 = vmatprep.subr.bf16.mxu0 %v11163_v5  ;;  %v11215_v31 = vld [vmem:[%s15162_s2 + $0x1568] ss:$16 sps:$4 sm:$0xff]  }
 0x2ce   : > { %6099 = vmatprep.subr.bf16.mxu1 %v11166_v36  ;;  %v11218_v5 = vld [vmem:[%s15162_s2 + $0x1768] ss:$16 sps:$4 sm:$0xff]   ;;  %v11223_v36 = vld [vmem:[%s15162_s2 + $0x158c] ss:$16 sps:$4 sm:$0xff]  }
 0x2d0   : > { %6059 = vmatpush1.bf16.msra.mxu0 %v11161_v17  ;;  %v11226_v17 = vld [vmem:[%s15162_s2 + $0x178c] ss:$16 sps:$4 sm:$0xff]  }
 0x2d1   : > { %6100 = vmatpush1.bf16.msra.mxu1 %v11164_v19  ;;  %6060 = vmatprep.subr.bf16.mxu0 %v11169_v35  ;;  %v14236_v19 = vsel %vm11889_vm14, %v6142_v27, %v6147_v21  ;;  %v11221_v35 = vld [vmem:[%s15162_s2 + $0x1588] ss:$16 sps:$4 sm:$0xff]  }
 0x2d2   : > { %6101 = vmatprep.subr.bf16.mxu1 %v11172_v16  ;;  %v11224_v16 = vld [vmem:[%s15162_s2 + $0x1788] ss:$16 sps:$4 sm:$0xff]  }
 0x2d4   : > { %6061 = vmatpush1.bf16.msra.mxu0 %v11167_v22  ;;  %v11229_v22 = vld [vmem:[%s15162_s2 + $0x15ac] ss:$16 sps:$4 sm:$0xff]  }
 0x2d5   : > { %6102 = vmatpush1.bf16.msra.mxu1 %v11170_v37  ;;  %6062 = vmatprep.subr.bf16.mxu0 %v11175_v28  ;;  %v6407_v37 = vcombine.low %v11903_v10, %v14236_v19  ;;  %v11227_v28 = vld [vmem:[%s15162_s2 + $0x15a8] ss:$16 sps:$4 sm:$0xff]  }
 0x2d6   : > { %6103 = vmatprep.subr.bf16.mxu1 %v11178_v38  ;;  %v11230_v38 = vld [vmem:[%s15162_s2 + $0x17a8] ss:$16 sps:$4 sm:$0xff]  }
 0x2d8   : > { %6063 = vmatpush1.bf16.msra.mxu0 %v11173_v39  ;;  %v11235_v39 = vld [vmem:[%s15162_s2 + $0x15cc] ss:$16 sps:$4 sm:$0xff]  }
 0x2d9   : > { %6104 = vmatpush1.bf16.msra.mxu1 %v11176_v44  ;;  %6064 = vmatprep.subr.bf16.mxu0 %v11181_v45  ;;  %v11238_v44 = vld [vmem:[%s15162_s2 + $0x17cc] ss:$16 sps:$4 sm:$0xff]   ;;  %v14265_v45 = vrot.slane %v6407_v37, %v11894_v7  ;;  %v11290_v37 = vld [vmem:[%s15162_s2 + $0x1ae0] ss:$16 sps:$4 sm:$0xff]  }
 0x2da   : > { %6105 = vmatprep.subr.bf16.mxu1 %v11184_v46  ;;  %v4148_v53 = vpop.f32.mrb[28].mxu0  ;;  %v11233_v46 = vld [vmem:[%s15162_s2 + $0x15c8] ss:$16 sps:$4 sm:$0xff]  }
 0x2db   : > { %v4189_v54 = vpop.f32.mrb[28].mxu1  ;;  %v4149_v55 = vadd.f32 %v4148_v53, %v13959_v30  ;;  %v4150_v3 = vpop.f32.mrb[29].mxu0  ;;  %v11239_v53 = vld [vmem:[%s15162_s2 + $0x15e8] ss:$16 sps:$4 sm:$0xff]  }
 0x2dc   : > { %v4191_v25 = vpop.f32.mrb[29].mxu1  ;;  %v4151_v14 = vadd.f32 %v4150_v3, %v13967_v41  ;;  %v4152_v61 = vpop.f32.mrb[30].mxu0  ;;  %6065 = vmatpush1.bf16.msra.mxu0 %v11179_v47  ;;  %v11193_v41 = vld [vmem:[%s15162_s2 + $0x14ec] ss:$16 sps:$4 sm:$0xff]   ;;  %v11236_v47 = vld [vmem:[%s15162_s2 + $0x17c8] ss:$16 sps:$4 sm:$0xff]  }
 0x2dd   : > { %v4193_v57 = vpop.f32.mrb[30].mxu1  ;;  %6106 = vmatpush1.bf16.msra.mxu1 %v11182_v48  ;;  %v14161_v63 = vadd.f32 %v4189_v54, %v4149_v55  ;;  %v4153_v23 = vpop.f32.mrb[31].mxu0  ;;  %6066 = vmatprep.subr.bf16.mxu0 %v11187_v50  ;;  %v11241_v48 = vld [vmem:[%s15162_s2 + $0x15ec] ss:$16 sps:$4 sm:$0xff]   ;;  %v11242_v54 = vld [vmem:[%s15162_s2 + $0x17e8] ss:$16 sps:$4 sm:$0xff]  }
 0x2de   : > { %v4194_v30 = vpop.f32.mrb[31].mxu1  ;;  %6107 = vmatprep.subr.bf16.mxu1 %v11190_v51  ;;  %v14169_v29 = vadd.f32 %v4191_v25, %v4151_v14  ;;  %v11244_v50 = vld [vmem:[%s15162_s2 + $0x17ec] ss:$16 sps:$4 sm:$0xff]   ;;  %v6423_v51 = vcombine.high %v14265_v45, %v14265_v45  ;;  %v11247_v55 = vld [vmem:[%s15162_s2 + $0x1804] ss:$16 sps:$4 sm:$0xff]  }
 0x2df   : > { %v11250_v3 = vld [vmem:[%s15162_s2 + $0x1a04] ss:$16 sps:$4 sm:$0xff]   ;;  %v11245_v14 = vld [vmem:[%s15162_s2 + $0x1800] ss:$16 sps:$4 sm:$0xff]  }
 0x2e0   : > { %6067 = vmatpush1.bf16.msra.mxu0 %v11185_v62  ;;  %v14294_v25 = vrot.slane %v6423_v51, %v11894_v7  ;;  %v11248_v61 = vld [vmem:[%s15162_s2 + $0x1a00] ss:$16 sps:$4 sm:$0xff]   ;;  %v11253_v57 = vld [vmem:[%s15162_s2 + $0x1824] ss:$16 sps:$4 sm:$0xff]  }
 0x2e1   : > { %6108 = vmatpush1.bf16.msra.mxu1 %v11188_v33  ;;  %6068 = vmatprep.subr.bf16.mxu0 %v11193_v41  ;;  %v11256_v62 = vld [vmem:[%s15162_s2 + $0x1a24] ss:$16 sps:$4 sm:$0xff]   ;;  %v11251_v23 = vld [vmem:[%s15162_s2 + $0x1820] ss:$16 sps:$4 sm:$0xff]  }
 0x2e2   : > { %6109 = vmatprep.subr.bf16.mxu1 %v11196_v26  ;;  %v14310_v33 = vcombine.high %v14294_v25, %v14294_v25  ;;  %v11254_v30 = vld [vmem:[%s15162_s2 + $0x1a20] ss:$16 sps:$4 sm:$0xff]   ;;  %v11259_v41 = vld [vmem:[%s15162_s2 + $0x1844] ss:$16 sps:$4 sm:$0xff]  }
 0x2e3   : > { %v11260_v26 = vld [vmem:[%s15162_s2 + $0x1a40] ss:$16 sps:$4 sm:$0xff]   ;;  %v11307_v51 = vld [vmem:[%s15162_s2 + $0x1944] ss:$16 sps:$4 sm:$0xff]  }
 0x2e4   : > { %6069 = vmatpush1.bf16.msra.mxu0 %v11191_v34  ;;  %v11265_v34 = vld [vmem:[%s15162_s2 + $0x1864] ss:$16 sps:$4 sm:$0xff]  }
 0x2e5   : > { %6110 = vmatpush1.bf16.msra.mxu1 %v11194_v56  ;;  %6070 = vmatprep.subr.bf16.mxu0 %v11199_v59  ;;  %v11268_v56 = vld [vmem:[%s15162_s2 + $0x1a64] ss:$16 sps:$4 sm:$0xff]   ;;  %v11263_v59 = vld [vmem:[%s15162_s2 + $0x1860] ss:$16 sps:$4 sm:$0xff]  }
 0x2e6   : > { %6111 = vmatprep.subr.bf16.mxu1 %v11202_v2  ;;  %v11266_v2 = vld [vmem:[%s15162_s2 + $0x1a60] ss:$16 sps:$4 sm:$0xff]  }
 0x2e8   : > { %6071 = vmatpush1.bf16.msra.mxu0 %v11197_v8  ;;  %v11271_v8 = vld [vmem:[%s15162_s2 + $0x1884] ss:$16 sps:$4 sm:$0xff]  }
 0x2e9   : > { %6112 = vmatpush1.bf16.msra.mxu1 %v11200_v32  ;;  %6072 = vmatprep.subr.bf16.mxu0 %v11205_v4  ;;  %v11274_v32 = vld [vmem:[%s15162_s2 + $0x1a84] ss:$16 sps:$4 sm:$0xff]   ;;  %v11269_v4 = vld [vmem:[%s15162_s2 + $0x1880] ss:$16 sps:$4 sm:$0xff]  }
 0x2ea   : > { %6113 = vmatprep.subr.bf16.mxu1 %v11208_v9  ;;  %v11272_v9 = vld [vmem:[%s15162_s2 + $0x1a80] ss:$16 sps:$4 sm:$0xff]  }
 0x2ec   : > { %6073 = vmatpush1.bf16.msra.mxu0 %v11203_v43  ;;  %v11277_v43 = vld [vmem:[%s15162_s2 + $0x18a4] ss:$16 sps:$4 sm:$0xff]  }
 0x2ed   : > { %6114 = vmatpush1.bf16.msra.mxu1 %v11206_v40  ;;  %6074 = vmatprep.subr.bf16.mxu0 %v11211_v11  ;;  %v11280_v40 = vld [vmem:[%s15162_s2 + $0x1aa4] ss:$16 sps:$4 sm:$0xff]   ;;  %v11275_v11 = vld [vmem:[%s15162_s2 + $0x18a0] ss:$16 sps:$4 sm:$0xff]  }
 0x2ee   : > { %6115 = vmatprep.subr.bf16.mxu1 %v11214_v12  ;;  %v11278_v12 = vld [vmem:[%s15162_s2 + $0x1aa0] ss:$16 sps:$4 sm:$0xff]  }
 0x2f0   : > { %6075 = vmatpush1.bf16.msra.mxu0 %v11209_v18 }
 0x2f1   : > { %6116 = vmatpush1.bf16.msra.mxu1 %v11212_v20  ;;  %6076 = vmatprep.subr.bf16.mxu0 %v11217_v24 }
 0x2f2   : > { %6117 = vmatprep.subr.bf16.mxu1 %v11220_v60 }
 0x2f4   : > { %6077 = vmatpush1.bf16.msra.mxu0 %v11215_v31 }
 0x2f5   : > { %6118 = vmatpush1.bf16.msra.mxu1 %v11218_v5  ;;  %6078 = vmatprep.subr.bf16.mxu0 %v11223_v36  ;;  %v11281_v5 = vld [vmem:[%s15162_s2 + $0x18c0] ss:$16 sps:$4 sm:$0xff]  }
 0x2f6   : > { %6119 = vmatprep.subr.bf16.mxu1 %v11226_v17  ;;  %v11284_v36 = vld [vmem:[%s15162_s2 + $0x1ac0] ss:$16 sps:$4 sm:$0xff]  }
 0x2f8   : > { %6079 = vmatpush1.bf16.msra.mxu0 %v11221_v35 }
 0x2f9   : > { %6120 = vmatpush1.bf16.msra.mxu1 %v11224_v16  ;;  %6080 = vmatprep.subr.bf16.mxu0 %v11229_v22  ;;  %v11289_v16 = vld [vmem:[%s15162_s2 + $0x18e4] ss:$16 sps:$4 sm:$0xff]  }
 0x2fa   : > { %6121 = vmatprep.subr.bf16.mxu1 %v11232_v6  ;;  %v11292_v22 = vld [vmem:[%s15162_s2 + $0x1ae4] ss:$16 sps:$4 sm:$0xff]   ;;  %v11287_v6 = vld [vmem:[%s15162_s2 + $0x18e0] ss:$16 sps:$4 sm:$0xff]  }
 0x2fc   : > { %6081 = vmatpush1.bf16.msra.mxu0 %v11227_v28  ;;  %v11295_v28 = vld [vmem:[%s15162_s2 + $0x1904] ss:$16 sps:$4 sm:$0xff]  }
 0x2fd   : > { %6122 = vmatpush1.bf16.msra.mxu1 %v11230_v38  ;;  %6082 = vmatprep.subr.bf16.mxu0 %v11235_v39  ;;  %v11298_v38 = vld [vmem:[%s15162_s2 + $0x1b04] ss:$16 sps:$4 sm:$0xff]   ;;  %v11293_v39 = vld [vmem:[%s15162_s2 + $0x1900] ss:$16 sps:$4 sm:$0xff]  }
 0x2fe   : > { %6123 = vmatprep.subr.bf16.mxu1 %v11238_v44  ;;  %v11296_v44 = vld [vmem:[%s15162_s2 + $0x1b00] ss:$16 sps:$4 sm:$0xff]  }
 0x300   : > { %6083 = vmatpush1.bf16.msra.mxu0 %v11233_v46  ;;  %v11301_v46 = vld [vmem:[%s15162_s2 + $0x1924] ss:$16 sps:$4 sm:$0xff]  }
 0x301   : > { %6124 = vmatpush1.bf16.msra.mxu1 %v11236_v47  ;;  %6084 = vmatprep.subr.bf16.mxu0 %v11241_v48  ;;  %v11304_v47 = vld [vmem:[%s15162_s2 + $0x1b24] ss:$16 sps:$4 sm:$0xff]   ;;  %v11299_v48 = vld [vmem:[%s15162_s2 + $0x1920] ss:$16 sps:$4 sm:$0xff]  }
 0x302   : > { %6125 = vmatprep.subr.bf16.mxu1 %v11244_v50  ;;  %v11302_v50 = vld [vmem:[%s15162_s2 + $0x1b20] ss:$16 sps:$4 sm:$0xff]  }
 0x304   : > { %6085 = vmatpush1.bf16.msra.mxu0 %v11239_v53  ;;  %v11310_v53 = vld [vmem:[%s15162_s2 + $0x1b44] ss:$16 sps:$4 sm:$0xff]  }
 0x305   : > { %6126 = vmatpush1.bf16.msra.mxu1 %v11242_v54  ;;  %7745 = vmatprep.subr.bf16.mxu0 %v11247_v55  ;;  %v11305_v54 = vld [vmem:[%s15162_s2 + $0x1940] ss:$16 sps:$4 sm:$0xff]  }
 0x306   : > { %7786 = vmatprep.subr.bf16.mxu1 %v11250_v3  ;;  %v11308_v55 = vld [vmem:[%s15162_s2 + $0x1b40] ss:$16 sps:$4 sm:$0xff]   ;;  %v11313_v3 = vld [vmem:[%s15162_s2 + $0x1964] ss:$16 sps:$4 sm:$0xff]  }
 0x307   : > { %6087 = vmatmul.mubr.bf16.vlgmr.msra.gmra.mrb[44].mxu0 %v13857_v52  ;;  %v11262_v52 = vld [vmem:[%s15162_s2 + $0x1a44] ss:$16 sps:$4 sm:$0xff]  }
 0x308   : > { %6128 = vmatmul.mubr.bf16.vlgmr.msra.gmra.mrb[44].mxu1 %v13873_v58  ;;  %7746 = vmatpush1.bf16.msra.mxu0 %v11245_v14  ;;  %v11257_v58 = vld [vmem:[%s15162_s2 + $0x1840] ss:$16 sps:$4 sm:$0xff]   ;;  %v11316_v14 = vld [vmem:[%s15162_s2 + $0x1b64] ss:$16 sps:$4 sm:$0xff]  }
 0x309   : > { %7787 = vmatpush1.bf16.msra.mxu1 %v11248_v61  ;;  %7747 = vmatprep.subr.bf16.mxu0 %v11253_v57  ;;  %v11311_v61 = vld [vmem:[%s15162_s2 + $0x1960] ss:$16 sps:$4 sm:$0xff]  }
 0x30a   : > { %7788 = vmatprep.subr.bf16.mxu1 %v11256_v62  ;;  %7777 = vmatprep.mubr.bf16.mxu0 %v14294_v25  ;;  %v11314_v57 = vld [vmem:[%s15162_s2 + $0x1b60] ss:$16 sps:$4 sm:$0xff]   ;;  %v11319_v62 = vld [vmem:[%s15162_s2 + $0x1984] ss:$16 sps:$4 sm:$0xff]  }
 0x30b   : > { %7818 = vmatprep.mubr.bf16.mxu1 %v14310_v33 }
 0x30c   : > { %7748 = vmatpush1.bf16.msra.mxu0 %v11251_v23  ;;  %v11322_v23 = vld [vmem:[%s15162_s2 + $0x1b84] ss:$16 sps:$4 sm:$0xff]  }
 0x30d   : > { %7789 = vmatpush1.bf16.msra.mxu1 %v11254_v30  ;;  %7749 = vmatprep.subr.bf16.mxu0 %v11259_v41  ;;  %v11317_v30 = vld [vmem:[%s15162_s2 + $0x1980] ss:$16 sps:$4 sm:$0xff]  }
 0x30e   : > { %7790 = vmatprep.subr.bf16.mxu1 %v11262_v52  ;;  %v11320_v41 = vld [vmem:[%s15162_s2 + $0x1b80] ss:$16 sps:$4 sm:$0xff]   ;;  %v11325_v52 = vld [vmem:[%s15162_s2 + $0x19a4] ss:$16 sps:$4 sm:$0xff]  }
 0x310   : > { %7750 = vmatpush1.bf16.msra.mxu0 %v11257_v58  ;;  %v11328_v58 = vld [vmem:[%s15162_s2 + $0x1ba4] ss:$16 sps:$4 sm:$0xff]  }
 0x311   : > { %7791 = vmatpush1.bf16.msra.mxu1 %v11260_v26  ;;  %7751 = vmatprep.subr.bf16.mxu0 %v11265_v34  ;;  %v6408_v26 = vcombine.high %v11903_v10, %v14236_v19  ;;  %v11323_v34 = vld [vmem:[%s15162_s2 + $0x19a0] ss:$16 sps:$4 sm:$0xff]   ;;  %v11334_v10 = vld [vmem:[%s15162_s2 + $0x1bc4] ss:$16 sps:$4 sm:$0xff]  }
 0x312   : > { %7792 = vmatprep.subr.bf16.mxu1 %v11268_v56  ;;  %v11326_v56 = vld [vmem:[%s15162_s2 + $0x1ba0] ss:$16 sps:$4 sm:$0xff]  }
 0x313   : > { %v14479_v19 = vrot.slane %v6408_v26, %v11894_v7 }
 0x314   : > { %7752 = vmatpush1.bf16.msra.mxu0 %v11263_v59  ;;  %v11331_v59 = vld [vmem:[%s15162_s2 + $0x19c4] ss:$16 sps:$4 sm:$0xff]  }
 0x315   : > { %7793 = vmatpush1.bf16.msra.mxu1 %v11266_v2  ;;  %7753 = vmatprep.subr.bf16.mxu0 %v11271_v8  ;;  %v11329_v2 = vld [vmem:[%s15162_s2 + $0x19c0] ss:$16 sps:$4 sm:$0xff]  }
 0x316   : > { %7794 = vmatprep.subr.bf16.mxu1 %v11274_v32  ;;  %v11332_v8 = vld [vmem:[%s15162_s2 + $0x1bc0] ss:$16 sps:$4 sm:$0xff]   ;;  %v11337_v32 = vld [vmem:[%s15162_s2 + $0x19e4] ss:$16 sps:$4 sm:$0xff]  }
 0x318   : > { %7754 = vmatpush1.bf16.msra.mxu0 %v11269_v4  ;;  %v11340_v4 = vld [vmem:[%s15162_s2 + $0x1be4] ss:$16 sps:$4 sm:$0xff]  }
 0x319   : > { %7795 = vmatpush1.bf16.msra.mxu1 %v11272_v9  ;;  %7755 = vmatprep.subr.bf16.mxu0 %v11277_v43  ;;  %v6424_v9 = vcombine.high %v14479_v19, %v14479_v19  ;;  %v14497_v43 = vrot.slane %v14265_v45, %v11894_v7  ;;  %v11346_v45 = vld [vmem:[%s15162_s2 + $0x1e04] ss:$16 sps:$4 sm:$0xff]  }
 0x31a   : > { %7796 = vmatprep.subr.bf16.mxu1 %v11280_v40  ;;  %v5842_v15 = vpop.f32.mrb[32].mxu0  ;;  %v11335_v40 = vld [vmem:[%s15162_s2 + $0x19e0] ss:$16 sps:$4 sm:$0xff]  }
 0x31b   : > { %v5883_v18 = vpop.f32.mrb[32].mxu1  ;;  %v5844_v24 = vpop.f32.mrb[33].mxu0 }
 0x31c   : > { %v14376_v20 = vadd.f32 %v5883_v18, %v5842_v15  ;;  %v5885_v60 = vpop.f32.mrb[33].mxu1  ;;  %v5846_v21 = vpop.f32.mrb[34].mxu0  ;;  %7756 = vmatpush1.bf16.msra.mxu0 %v11275_v11  ;;  %v11338_v11 = vld [vmem:[%s15162_s2 + $0x1be0] ss:$16 sps:$4 sm:$0xff]  }
 0x31d   : > { %v14378_v27 = vadd.f32 %v5885_v60, %v5844_v24  ;;  %v5887_v31 = vpop.f32.mrb[34].mxu1  ;;  %7797 = vmatpush1.bf16.msra.mxu1 %v11278_v12  ;;  %v5847_v17 = vpop.f32.mrb[35].mxu0  ;;  %7757 = vmatprep.subr.bf16.mxu0 %v11283_v42  ;;  %v11343_v12 = vld [vmem:[%s15162_s2 + $0x1c04] ss:$16 sps:$4 sm:$0xff]   ;;  %v14512_v42 = vrot.slane %v6424_v9, %v11894_v7  ;;  %v11341_v15 = vld [vmem:[%s15162_s2 + $0x1c00] ss:$16 sps:$4 sm:$0xff]  }
 0x31e   : > { %v5888_v35 = vpop.f32.mrb[35].mxu1  ;;  %7798 = vmatprep.subr.bf16.mxu1 %v11286_v13  ;;  %v14516_v13 = vcombine.high %v14497_v43, %v14497_v43  ;;  %v11344_v18 = vld [vmem:[%s15162_s2 + $0x1e00] ss:$16 sps:$4 sm:$0xff]   ;;  %v11349_v24 = vld [vmem:[%s15162_s2 + $0x1c24] ss:$16 sps:$4 sm:$0xff]  }
 0x31f   : > { %v11352_v60 = vld [vmem:[%s15162_s2 + $0x1e24] ss:$16 sps:$4 sm:$0xff]   ;;  %v14532_v21 = vcombine.high %v14512_v42, %v14512_v42  ;;  %v11347_v31 = vld [vmem:[%s15162_s2 + $0x1c20] ss:$16 sps:$4 sm:$0xff]  }
 0x320   : > { %7758 = vmatpush1.bf16.msra.mxu0 %v11281_v5  ;;  %v11350_v5 = vld [vmem:[%s15162_s2 + $0x1e20] ss:$16 sps:$4 sm:$0xff]   ;;  %v11358_v17 = vld [vmem:[%s15162_s2 + $0x1e44] ss:$16 sps:$4 sm:$0xff]  }
 0x321   : > { %7799 = vmatpush1.bf16.msra.mxu1 %v11284_v36  ;;  %7759 = vmatprep.subr.bf16.mxu0 %v11289_v16  ;;  %v11355_v36 = vld [vmem:[%s15162_s2 + $0x1c44] ss:$16 sps:$4 sm:$0xff]   ;;  %v11353_v35 = vld [vmem:[%s15162_s2 + $0x1c40] ss:$16 sps:$4 sm:$0xff]  }
 0x322   : > { %7800 = vmatprep.subr.bf16.mxu1 %v11292_v22  ;;  %v11356_v16 = vld [vmem:[%s15162_s2 + $0x1e40] ss:$16 sps:$4 sm:$0xff]   ;;  %v11361_v22 = vld [vmem:[%s15162_s2 + $0x1c64] ss:$16 sps:$4 sm:$0xff]  }
 0x323   : > { %v11397_v9 = vld [vmem:[%s15162_s2 + $0x1d24] ss:$16 sps:$4 sm:$0xff]  }
 0x324   : > { %7760 = vmatpush1.bf16.msra.mxu0 %v11287_v6  ;;  %v11364_v6 = vld [vmem:[%s15162_s2 + $0x1e64] ss:$16 sps:$4 sm:$0xff]  }
 0x325   : > { %7801 = vmatpush1.bf16.msra.mxu1 %v11290_v37  ;;  %7761 = vmatprep.subr.bf16.mxu0 %v11295_v28  ;;  %v11359_v37 = vld [vmem:[%s15162_s2 + $0x1c60] ss:$16 sps:$4 sm:$0xff]  }
 0x326   : > { %7802 = vmatprep.subr.bf16.mxu1 %v11298_v38  ;;  %v11362_v28 = vld [vmem:[%s15162_s2 + $0x1e60] ss:$16 sps:$4 sm:$0xff]   ;;  %v11367_v38 = vld [vmem:[%s15162_s2 + $0x1c84] ss:$16 sps:$4 sm:$0xff]  }
 0x328   : > { %7762 = vmatpush1.bf16.msra.mxu0 %v11293_v39  ;;  %v11370_v39 = vld [vmem:[%s15162_s2 + $0x1e84] ss:$16 sps:$4 sm:$0xff]  }
 0x329   : > { %7803 = vmatpush1.bf16.msra.mxu1 %v11296_v44  ;;  %7763 = vmatprep.subr.bf16.mxu0 %v11301_v46  ;;  %v11365_v44 = vld [vmem:[%s15162_s2 + $0x1c80] ss:$16 sps:$4 sm:$0xff]  }
 0x32a   : > { %7804 = vmatprep.subr.bf16.mxu1 %v11304_v47  ;;  %v11368_v46 = vld [vmem:[%s15162_s2 + $0x1e80] ss:$16 sps:$4 sm:$0xff]   ;;  %v11373_v47 = vld [vmem:[%s15162_s2 + $0x1ca4] ss:$16 sps:$4 sm:$0xff]  }
 0x32c   : > { %7764 = vmatpush1.bf16.msra.mxu0 %v11299_v48  ;;  %v11376_v48 = vld [vmem:[%s15162_s2 + $0x1ea4] ss:$16 sps:$4 sm:$0xff]  }
 0x32d   : > { %7805 = vmatpush1.bf16.msra.mxu1 %v11302_v50  ;;  %7765 = vmatprep.subr.bf16.mxu0 %v11307_v51  ;;  %v11371_v50 = vld [vmem:[%s15162_s2 + $0x1ca0] ss:$16 sps:$4 sm:$0xff]  }
 0x32e   : > { %7806 = vmatprep.subr.bf16.mxu1 %v11310_v53  ;;  %v11374_v51 = vld [vmem:[%s15162_s2 + $0x1ea0] ss:$16 sps:$4 sm:$0xff]   ;;  %v11379_v53 = vld [vmem:[%s15162_s2 + $0x1cc4] ss:$16 sps:$4 sm:$0xff]  }
 0x330   : > { %7766 = vmatpush1.bf16.msra.mxu0 %v11305_v54  ;;  %v11382_v54 = vld [vmem:[%s15162_s2 + $0x1ec4] ss:$16 sps:$4 sm:$0xff]  }
 0x331   : > { %7807 = vmatpush1.bf16.msra.mxu1 %v11308_v55  ;;  %7767 = vmatprep.subr.bf16.mxu0 %v11313_v3 }
 0x332   : > { %7808 = vmatprep.subr.bf16.mxu1 %v11316_v14 }
 0x334   : > { %7768 = vmatpush1.bf16.msra.mxu0 %v11311_v61 }
 0x335   : > { %7809 = vmatpush1.bf16.msra.mxu1 %v11314_v57  ;;  %7769 = vmatprep.subr.bf16.mxu0 %v11319_v62 }
 0x336   : > { %7810 = vmatprep.subr.bf16.mxu1 %v11322_v23 }
 0x338   : > { %7770 = vmatpush1.bf16.msra.mxu0 %v11317_v30 }
 0x339   : > { %7811 = vmatpush1.bf16.msra.mxu1 %v11320_v41  ;;  %7771 = vmatprep.subr.bf16.mxu0 %v11325_v52  ;;  %v11377_v41 = vld [vmem:[%s15162_s2 + $0x1cc0] ss:$16 sps:$4 sm:$0xff]  }
 0x33a   : > { %7812 = vmatprep.subr.bf16.mxu1 %v11328_v58  ;;  %v11380_v52 = vld [vmem:[%s15162_s2 + $0x1ec0] ss:$16 sps:$4 sm:$0xff]  }
 0x33c   : > { %7772 = vmatpush1.bf16.msra.mxu0 %v11323_v34 }
 0x33d   : > { %7813 = vmatpush1.bf16.msra.mxu1 %v11326_v56  ;;  %7773 = vmatprep.subr.bf16.mxu0 %v11331_v59 }
 0x33e   : > { %7814 = vmatprep.subr.bf16.mxu1 %v11334_v10 }
 0x340   : > { %7774 = vmatpush1.bf16.msra.mxu0 %v11329_v2  ;;  %v11383_v2 = vld [vmem:[%s15162_s2 + $0x1ce0] ss:$16 sps:$4 sm:$0xff]  }
 0x341   : > { %7815 = vmatpush1.bf16.msra.mxu1 %v11332_v8  ;;  %7775 = vmatprep.subr.bf16.mxu0 %v11337_v32  ;;  %v11386_v8 = vld [vmem:[%s15162_s2 + $0x1ee0] ss:$16 sps:$4 sm:$0xff]  }
 0x342   : > { %7816 = vmatprep.subr.bf16.mxu1 %v11340_v4  ;;  %v11389_v32 = vld [vmem:[%s15162_s2 + $0x1d00] ss:$16 sps:$4 sm:$0xff]  }
 0x343   : > { %v11392_v4 = vld [vmem:[%s15162_s2 + $0x1f00] ss:$16 sps:$4 sm:$0xff]  }
 0x344   : > { %7776 = vmatpush1.bf16.msra.mxu0 %v11335_v40  ;;  %v11400_v40 = vld [vmem:[%s15162_s2 + $0x1f24] ss:$16 sps:$4 sm:$0xff]  }
 0x345   : > { %7817 = vmatpush1.bf16.msra.mxu1 %v11338_v11  ;;  %7827 = vmatprep.subr.bf16.mxu0 %v11343_v12  ;;  %v11395_v11 = vld [vmem:[%s15162_s2 + $0x1d20] ss:$16 sps:$4 sm:$0xff]  }
 0x346   : > { %7868 = vmatprep.subr.bf16.mxu1 %v11346_v45  ;;  %v11398_v12 = vld [vmem:[%s15162_s2 + $0x1f20] ss:$16 sps:$4 sm:$0xff]   ;;  %v11403_v45 = vld [vmem:[%s15162_s2 + $0x1d44] ss:$16 sps:$4 sm:$0xff]  }
 0x347   : > { %7778 = vmatmul.mubr.bf16.vlgmr.msra.gmra.mrb[48].mxu0 %v14497_v43 }
 0x348   : > { %7819 = vmatmul.mubr.bf16.vlgmr.msra.gmra.mrb[48].mxu1 %v14516_v13  ;;  %7828 = vmatpush1.bf16.msra.mxu0 %v11341_v15  ;;  %v11406_v15 = vld [vmem:[%s15162_s2 + $0x1f44] ss:$16 sps:$4 sm:$0xff]  }
 0x349   : > { %7869 = vmatpush1.bf16.msra.mxu1 %v11344_v18  ;;  %7829 = vmatprep.subr.bf16.mxu0 %v11349_v24  ;;  %v11401_v18 = vld [vmem:[%s15162_s2 + $0x1d40] ss:$16 sps:$4 sm:$0xff]  }
 0x34a   : > { %7870 = vmatprep.subr.bf16.mxu1 %v11352_v60  ;;  %7859 = vmatprep.mubr.bf16.mxu0 %v14512_v42  ;;  %v11404_v24 = vld [vmem:[%s15162_s2 + $0x1f40] ss:$16 sps:$4 sm:$0xff]   ;;  %v11409_v60 = vld [vmem:[%s15162_s2 + $0x1d64] ss:$16 sps:$4 sm:$0xff]  }
 0x34b   : > { %7900 = vmatprep.mubr.bf16.mxu1 %v14532_v21 }
 0x34c   : > { %7830 = vmatpush1.bf16.msra.mxu0 %v11347_v31  ;;  %v11412_v31 = vld [vmem:[%s15162_s2 + $0x1f64] ss:$16 sps:$4 sm:$0xff]  }
 0x34d   : > { %7871 = vmatpush1.bf16.msra.mxu1 %v11350_v5  ;;  %7831 = vmatprep.subr.bf16.mxu0 %v11355_v36  ;;  %v11407_v5 = vld [vmem:[%s15162_s2 + $0x1d60] ss:$16 sps:$4 sm:$0xff]  }
 0x34e   : > { %7872 = vmatprep.subr.bf16.mxu1 %v11358_v17  ;;  %v11410_v36 = vld [vmem:[%s15162_s2 + $0x1f60] ss:$16 sps:$4 sm:$0xff]   ;;  %v11415_v17 = vld [vmem:[%s15162_s2 + $0x1d84] ss:$16 sps:$4 sm:$0xff]  }
 0x350   : > { %7832 = vmatpush1.bf16.msra.mxu0 %v11353_v35  ;;  %v11418_v35 = vld [vmem:[%s15162_s2 + $0x1f84] ss:$16 sps:$4 sm:$0xff]  }
 0x351   : > { %7873 = vmatpush1.bf16.msra.mxu1 %v11356_v16  ;;  %7833 = vmatprep.subr.bf16.mxu0 %v11361_v22  ;;  %v11413_v16 = vld [vmem:[%s15162_s2 + $0x1d80] ss:$16 sps:$4 sm:$0xff]  }
 0x352   : > { %7874 = vmatprep.subr.bf16.mxu1 %v11364_v6  ;;  %v11416_v22 = vld [vmem:[%s15162_s2 + $0x1f80] ss:$16 sps:$4 sm:$0xff]   ;;  %v11421_v6 = vld [vmem:[%s15162_s2 + $0x1da4] ss:$16 sps:$4 sm:$0xff]  }
 0x354   : > { %7834 = vmatpush1.bf16.msra.mxu0 %v11359_v37  ;;  %v11424_v37 = vld [vmem:[%s15162_s2 + $0x1fa4] ss:$16 sps:$4 sm:$0xff]  }
 0x355   : > { %7875 = vmatpush1.bf16.msra.mxu1 %v11362_v28  ;;  %7835 = vmatprep.subr.bf16.mxu0 %v11367_v38  ;;  %v11419_v28 = vld [vmem:[%s15162_s2 + $0x1da0] ss:$16 sps:$4 sm:$0xff]  }
 0x356   : > { %7876 = vmatprep.subr.bf16.mxu1 %v11370_v39  ;;  %v11422_v38 = vld [vmem:[%s15162_s2 + $0x1fa0] ss:$16 sps:$4 sm:$0xff]   ;;  %v11427_v39 = vld [vmem:[%s15162_s2 + $0x1dc4] ss:$16 sps:$4 sm:$0xff]  }
 0x358   : > { %7836 = vmatpush1.bf16.msra.mxu0 %v11365_v44  ;;  %v11430_v44 = vld [vmem:[%s15162_s2 + $0x1fc4] ss:$16 sps:$4 sm:$0xff]  }
 0x359   : > { %7877 = vmatpush1.bf16.msra.mxu1 %v11368_v46  ;;  %7837 = vmatprep.subr.bf16.mxu0 %v11373_v47  ;;  %v11425_v46 = vld [vmem:[%s15162_s2 + $0x1dc0] ss:$16 sps:$4 sm:$0xff]  }
 0x35a   : > { %7878 = vmatprep.subr.bf16.mxu1 %v11376_v48  ;;  %v5924_v55 = vpop.f32.mrb[36].mxu0  ;;  %v11428_v47 = vld [vmem:[%s15162_s2 + $0x1fc0] ss:$16 sps:$4 sm:$0xff]   ;;  %v11433_v48 = vld [vmem:[%s15162_s2 + $0x1de4] ss:$16 sps:$4 sm:$0xff]  }
 0x35b   : > { %v5965_v3 = vpop.f32.mrb[36].mxu1  ;;  %v5925_v14 = vadd.f32 %v5924_v55, %v14376_v20  ;;  %v5926_v61 = vpop.f32.mrb[37].mxu0  ;;  %v11385_v20 = vld [vmem:[%s15162_s2 + $0x1ce4] ss:$16 sps:$4 sm:$0xff]   ;;  %v11439_v55 = vld [vmem:[%s15162_s2 + $0x180c] ss:$16 sps:$4 sm:$0xff]  }
 0x35c   : > { %v5967_v57 = vpop.f32.mrb[37].mxu1  ;;  %v5927_v62 = vadd.f32 %v5926_v61, %v14378_v27  ;;  %v5928_v23 = vpop.f32.mrb[38].mxu0  ;;  %7838 = vmatpush1.bf16.msra.mxu0 %v11371_v50  ;;  %v11388_v27 = vld [vmem:[%s15162_s2 + $0x1ee4] ss:$16 sps:$4 sm:$0xff]   ;;  %v11445_v61 = vld [vmem:[%s15162_s2 + $0x182c] ss:$16 sps:$4 sm:$0xff]  }
 0x35d   : > { %v5969_v30 = vpop.f32.mrb[38].mxu1  ;;  %7879 = vmatpush1.bf16.msra.mxu1 %v11374_v51  ;;  %v5966_v58 = vadd.f32 %v5965_v3, %v5925_v14  ;;  %v5929_v26 = vpop.f32.mrb[39].mxu0  ;;  %7839 = vmatprep.subr.bf16.mxu0 %v11379_v53  ;;  %v11436_v50 = vld [vmem:[%s15162_s2 + $0x1fe4] ss:$16 sps:$4 sm:$0xff]   ;;  %v14716_v51 = vrot.slane %v14479_v19, %v11894_v7  ;;  %v11431_v53 = vld [vmem:[%s15162_s2 + $0x1de0] ss:$16 sps:$4 sm:$0xff]  }
 0x35e   : > { %v5970_v34 = vpop.f32.mrb[39].mxu1  ;;  %7880 = vmatprep.subr.bf16.mxu1 %v11382_v54  ;;  %v5968_v56 = vadd.f32 %v5967_v57, %v5927_v62  ;;  %v11434_v54 = vld [vmem:[%s15162_s2 + $0x1fe0] ss:$16 sps:$4 sm:$0xff]   ;;  %v11442_v7 = vld [vmem:[%s15162_s2 + $0x1a0c] ss:$16 sps:$4 sm:$0xff]  }
 0x35f   : > { %v14613_v59 = vadd.f32 %v5966_v58, %v13749_v0  ;;  %v11391_v0 = vld [vmem:[%s15162_s2 + $0x1d04] ss:$16 sps:$4 sm:$0xff]   ;;  %v14732_v19 = vcombine.high %v14716_v51, %v14716_v51  ;;  %v11437_v3 = vld [vmem:[%s15162_s2 + $0x1808] ss:$16 sps:$4 sm:$0xff]   ;;  %v11448_v57 = vld [vmem:[%s15162_s2 + $0x1a2c] ss:$16 sps:$4 sm:$0xff]  }
 0x360   : > { %v14616_v10 = vadd.f32 %v5968_v56, %v13757_v1  ;;  %7840 = vmatpush1.bf16.msra.mxu0 %v11377_v41  ;;  %v11394_v1 = vld [vmem:[%s15162_s2 + $0x1f04] ss:$16 sps:$4 sm:$0xff]   ;;  %v11440_v14 = vld [vmem:[%s15162_s2 + $0x1a08] ss:$16 sps:$4 sm:$0xff]   ;;  %v11451_v30 = vld [vmem:[%s15162_s2 + $0x184c] ss:$16 sps:$4 sm:$0xff]  }
 0x361   : > { %7881 = vmatpush1.bf16.msra.mxu1 %v11380_v52  ;;  %7841 = vmatprep.subr.bf16.mxu0 %v11385_v20  ;;  %v11443_v62 = vld [vmem:[%s15162_s2 + $0x1828] ss:$16 sps:$4 sm:$0xff]   ;;  %v11454_v41 = vld [vmem:[%s15162_s2 + $0x1a4c] ss:$16 sps:$4 sm:$0xff]  }
 0x362   : > { %7882 = vmatprep.subr.bf16.mxu1 %v11388_v27  ;;  %v11446_v23 = vld [vmem:[%s15162_s2 + $0x1a28] ss:$16 sps:$4 sm:$0xff]   ;;  %v11457_v26 = vld [vmem:[%s15162_s2 + $0x186c] ss:$16 sps:$4 sm:$0xff]  }
 0x363   : > { %v11449_v52 = vld [vmem:[%s15162_s2 + $0x1848] ss:$16 sps:$4 sm:$0xff]   ;;  %v11463_v20 = vld [vmem:[%s15162_s2 + $0x188c] ss:$16 sps:$4 sm:$0xff]  }
 0x364   : > { %7842 = vmatpush1.bf16.msra.mxu0 %v11383_v2  ;;  %v11452_v58 = vld [vmem:[%s15162_s2 + $0x1a48] ss:$16 sps:$4 sm:$0xff]   ;;  %v11466_v27 = vld [vmem:[%s15162_s2 + $0x1a8c] ss:$16 sps:$4 sm:$0xff]  }
 0x365   : > { %7883 = vmatpush1.bf16.msra.mxu1 %v11386_v8  ;;  %7843 = vmatprep.subr.bf16.mxu0 %v11391_v0  ;;  %v11458_v34 = vld [vmem:[%s15162_s2 + $0x1a68] ss:$16 sps:$4 sm:$0xff]   ;;  %v11469_v8 = vld [vmem:[%s15162_s2 + $0x18ac] ss:$16 sps:$4 sm:$0xff]  }
 0x366   : > { %7884 = vmatprep.subr.bf16.mxu1 %v11394_v1  ;;  %v11461_v56 = vld [vmem:[%s15162_s2 + $0x1888] ss:$16 sps:$4 sm:$0xff]   ;;  %v11472_v0 = vld [vmem:[%s15162_s2 + $0x1aac] ss:$16 sps:$4 sm:$0xff]  }
 0x367   : > { %v11464_v2 = vld [vmem:[%s15162_s2 + $0x1a88] ss:$16 sps:$4 sm:$0xff]  }
 0x368   : > { %7844 = vmatpush1.bf16.msra.mxu0 %v11389_v32  ;;  %v11467_v1 = vld [vmem:[%s15162_s2 + $0x18a8] ss:$16 sps:$4 sm:$0xff]  }
 0x369   : > { %7885 = vmatpush1.bf16.msra.mxu1 %v11392_v4  ;;  %7845 = vmatprep.subr.bf16.mxu0 %v11397_v9  ;;  %v11470_v32 = vld [vmem:[%s15162_s2 + $0x1aa8] ss:$16 sps:$4 sm:$0xff]   ;;  %v11475_v4 = vld [vmem:[%s15162_s2 + $0x18cc] ss:$16 sps:$4 sm:$0xff]  }
 0x36a   : > { %7886 = vmatprep.subr.bf16.mxu1 %v11400_v40  ;;  %v11478_v9 = vld [vmem:[%s15162_s2 + $0x1acc] ss:$16 sps:$4 sm:$0xff]  }
 0x36c   : > { %7846 = vmatpush1.bf16.msra.mxu0 %v11395_v11 }
 0x36d   : > { %7887 = vmatpush1.bf16.msra.mxu1 %v11398_v12  ;;  %7847 = vmatprep.subr.bf16.mxu0 %v11403_v45 }
 0x36e   : > { %7888 = vmatprep.subr.bf16.mxu1 %v11406_v15 }
 0x370   : > { %7848 = vmatpush1.bf16.msra.mxu0 %v11401_v18 }
 0x371   : > { %7889 = vmatpush1.bf16.msra.mxu1 %v11404_v24  ;;  %7849 = vmatprep.subr.bf16.mxu0 %v11409_v60 }
 0x372   : > { %7890 = vmatprep.subr.bf16.mxu1 %v11412_v31  ;;  %v11473_v31 = vld [vmem:[%s15162_s2 + $0x18c8] ss:$16 sps:$4 sm:$0xff]  }
 0x374   : > { %7850 = vmatpush1.bf16.msra.mxu0 %v11407_v5  ;;  %v11476_v5 = vld [vmem:[%s15162_s2 + $0x1ac8] ss:$16 sps:$4 sm:$0xff]  }
 0x375   : > { %7891 = vmatpush1.bf16.msra.mxu1 %v11410_v36  ;;  %7851 = vmatprep.subr.bf16.mxu0 %v11415_v17 }
 0x376   : > { %7892 = vmatprep.subr.bf16.mxu1 %v11418_v35  ;;  %v11481_v35 = vld [vmem:[%s15162_s2 + $0x18ec] ss:$16 sps:$4 sm:$0xff]  }
 0x378   : > { %7852 = vmatpush1.bf16.msra.mxu0 %v11413_v16  ;;  %v11484_v16 = vld [vmem:[%s15162_s2 + $0x1aec] ss:$16 sps:$4 sm:$0xff]  }
 0x379   : > { %7893 = vmatpush1.bf16.msra.mxu1 %v11416_v22  ;;  %7853 = vmatprep.subr.bf16.mxu0 %v11421_v6  ;;  %v11479_v22 = vld [vmem:[%s15162_s2 + $0x18e8] ss:$16 sps:$4 sm:$0xff]  }
 0x37a   : > { %7894 = vmatprep.subr.bf16.mxu1 %v11424_v37  ;;  %v11482_v6 = vld [vmem:[%s15162_s2 + $0x1ae8] ss:$16 sps:$4 sm:$0xff]   ;;  %v11487_v37 = vld [vmem:[%s15162_s2 + $0x190c] ss:$16 sps:$4 sm:$0xff]  }
 0x37c   : > { %7854 = vmatpush1.bf16.msra.mxu0 %v11419_v28  ;;  %v11490_v28 = vld [vmem:[%s15162_s2 + $0x1b0c] ss:$16 sps:$4 sm:$0xff]  }
 0x37d   : > { %7895 = vmatpush1.bf16.msra.mxu1 %v11422_v38  ;;  %7855 = vmatprep.subr.bf16.mxu0 %v11427_v39  ;;  %v11485_v38 = vld [vmem:[%s15162_s2 + $0x1908] ss:$16 sps:$4 sm:$0xff]  }
 0x37e   : > { %7896 = vmatprep.subr.bf16.mxu1 %v11430_v44  ;;  %v11488_v39 = vld [vmem:[%s15162_s2 + $0x1b08] ss:$16 sps:$4 sm:$0xff]   ;;  %v11493_v44 = vld [vmem:[%s15162_s2 + $0x192c] ss:$16 sps:$4 sm:$0xff]  }
 0x380   : > { %7856 = vmatpush1.bf16.msra.mxu0 %v11425_v46  ;;  %v11496_v46 = vld [vmem:[%s15162_s2 + $0x1b2c] ss:$16 sps:$4 sm:$0xff]  }
 0x381   : > { %7897 = vmatpush1.bf16.msra.mxu1 %v11428_v47  ;;  %7857 = vmatprep.subr.bf16.mxu0 %v11433_v48  ;;  %v11491_v47 = vld [vmem:[%s15162_s2 + $0x1928] ss:$16 sps:$4 sm:$0xff]  }
 0x382   : > { %7898 = vmatprep.subr.bf16.mxu1 %v11436_v50  ;;  %v11494_v48 = vld [vmem:[%s15162_s2 + $0x1b28] ss:$16 sps:$4 sm:$0xff]   ;;  %v11499_v50 = vld [vmem:[%s15162_s2 + $0x194c] ss:$16 sps:$4 sm:$0xff]  }
 0x384   : > { %7858 = vmatpush1.bf16.msra.mxu0 %v11431_v53  ;;  %v11502_v53 = vld [vmem:[%s15162_s2 + $0x1b4c] ss:$16 sps:$4 sm:$0xff]  }
 0x385   : > { %7899 = vmatpush1.bf16.msra.mxu1 %v11434_v54  ;;  %7909 = vmatprep.subr.bf16.mxu0 %v11439_v55  ;;  %v11497_v54 = vld [vmem:[%s15162_s2 + $0x1948] ss:$16 sps:$4 sm:$0xff]  }
 0x386   : > { %7950 = vmatprep.subr.bf16.mxu1 %v11442_v7  ;;  %v11500_v55 = vld [vmem:[%s15162_s2 + $0x1b48] ss:$16 sps:$4 sm:$0xff]   ;;  %v11505_v7 = vld [vmem:[%s15162_s2 + $0x196c] ss:$16 sps:$4 sm:$0xff]  }
 0x387   : > { %7860 = vmatmul.mubr.bf16.vlgmr.msra.gmra.mrb[52].mxu0 %v14716_v51 }
 0x388   : > { %7901 = vmatmul.mubr.bf16.vlgmr.msra.gmra.mrb[52].mxu1 %v14732_v19  ;;  %7910 = vmatpush1.bf16.msra.mxu0 %v11437_v3  ;;  %v11508_v3 = vld [vmem:[%s15162_s2 + $0x1b6c] ss:$16 sps:$4 sm:$0xff]  }
 0x389   : > { %7951 = vmatpush1.bf16.msra.mxu1 %v11440_v14  ;;  %7911 = vmatprep.subr.bf16.mxu0 %v11445_v61  ;;  %v11503_v14 = vld [vmem:[%s15162_s2 + $0x1968] ss:$16 sps:$4 sm:$0xff]  }
 0x38a   : > { %7952 = vmatprep.subr.bf16.mxu1 %v11448_v57  ;;  %7941 = vmatprep.mubr.bf16.mxu0 %v14294_v25  ;;  %v11460_v25 = vld [vmem:[%s15162_s2 + $0x1a6c] ss:$16 sps:$4 sm:$0xff]   ;;  %v11506_v61 = vld [vmem:[%s15162_s2 + $0x1b68] ss:$16 sps:$4 sm:$0xff]  }
 0x38b   : > { %7982 = vmatprep.mubr.bf16.mxu1 %v14310_v33  ;;  %v11455_v33 = vld [vmem:[%s15162_s2 + $0x1868] ss:$16 sps:$4 sm:$0xff]   ;;  %v11511_v57 = vld [vmem:[%s15162_s2 + $0x198c] ss:$16 sps:$4 sm:$0xff]  }
 0x38c   : > { %7912 = vmatpush1.bf16.msra.mxu0 %v11443_v62  ;;  %v11514_v62 = vld [vmem:[%s15162_s2 + $0x1b8c] ss:$16 sps:$4 sm:$0xff]  }
 0x38d   : > { %7953 = vmatpush1.bf16.msra.mxu1 %v11446_v23  ;;  %7913 = vmatprep.subr.bf16.mxu0 %v11451_v30  ;;  %v11509_v23 = vld [vmem:[%s15162_s2 + $0x1988] ss:$16 sps:$4 sm:$0xff]  }
 0x38e   : > { %7954 = vmatprep.subr.bf16.mxu1 %v11454_v41  ;;  %v11512_v30 = vld [vmem:[%s15162_s2 + $0x1b88] ss:$16 sps:$4 sm:$0xff]   ;;  %v11517_v41 = vld [vmem:[%s15162_s2 + $0x19ac] ss:$16 sps:$4 sm:$0xff]  }
 0x390   : > { %7914 = vmatpush1.bf16.msra.mxu0 %v11449_v52  ;;  %v11520_v52 = vld [vmem:[%s15162_s2 + $0x1bac] ss:$16 sps:$4 sm:$0xff]  }
 0x391   : > { %7955 = vmatpush1.bf16.msra.mxu1 %v11452_v58  ;;  %7915 = vmatprep.subr.bf16.mxu0 %v11457_v26  ;;  %v11515_v58 = vld [vmem:[%s15162_s2 + $0x19a8] ss:$16 sps:$4 sm:$0xff]  }
 0x392   : > { %7956 = vmatprep.subr.bf16.mxu1 %v11460_v25  ;;  %v11518_v26 = vld [vmem:[%s15162_s2 + $0x1ba8] ss:$16 sps:$4 sm:$0xff]   ;;  %v11523_v25 = vld [vmem:[%s15162_s2 + $0x19cc] ss:$16 sps:$4 sm:$0xff]  }
 0x394   : > { %7916 = vmatpush1.bf16.msra.mxu0 %v11455_v33  ;;  %v11526_v33 = vld [vmem:[%s15162_s2 + $0x1bcc] ss:$16 sps:$4 sm:$0xff]  }
 0x395   : > { %7957 = vmatpush1.bf16.msra.mxu1 %v11458_v34  ;;  %7917 = vmatprep.subr.bf16.mxu0 %v11463_v20  ;;  %v11521_v34 = vld [vmem:[%s15162_s2 + $0x19c8] ss:$16 sps:$4 sm:$0xff]  }
 0x396   : > { %7958 = vmatprep.subr.bf16.mxu1 %v11466_v27  ;;  %v11524_v20 = vld [vmem:[%s15162_s2 + $0x1bc8] ss:$16 sps:$4 sm:$0xff]   ;;  %v11529_v27 = vld [vmem:[%s15162_s2 + $0x19ec] ss:$16 sps:$4 sm:$0xff]  }
 0x398   : > { %7918 = vmatpush1.bf16.msra.mxu0 %v11461_v56  ;;  %v11532_v56 = vld [vmem:[%s15162_s2 + $0x1bec] ss:$16 sps:$4 sm:$0xff]  }
 0x399   : > { %7959 = vmatpush1.bf16.msra.mxu1 %v11464_v2  ;;  %7919 = vmatprep.subr.bf16.mxu0 %v11469_v8  ;;  %v11527_v2 = vld [vmem:[%s15162_s2 + $0x19e8] ss:$16 sps:$4 sm:$0xff]  }
 0x39a   : > { %7960 = vmatprep.subr.bf16.mxu1 %v11472_v0  ;;  %v6006_v40 = vpop.f32.mrb[40].mxu0  ;;  %v11530_v8 = vld [vmem:[%s15162_s2 + $0x1be8] ss:$16 sps:$4 sm:$0xff]   ;;  %v11535_v0 = vld [vmem:[%s15162_s2 + $0x1c0c] ss:$16 sps:$4 sm:$0xff]  }
 0x39b   : > { %v6047_v11 = vpop.f32.mrb[40].mxu1  ;;  %v6008_v45 = vpop.f32.mrb[41].mxu0 }
 0x39c   : > { %v14810_v12 = vadd.f32 %v6047_v11, %v6006_v40  ;;  %v6049_v15 = vpop.f32.mrb[41].mxu1  ;;  %v6010_v24 = vpop.f32.mrb[42].mxu0  ;;  %7920 = vmatpush1.bf16.msra.mxu0 %v11467_v1  ;;  %v11538_v1 = vld [vmem:[%s15162_s2 + $0x1e0c] ss:$16 sps:$4 sm:$0xff]   ;;  %v11539_v11 = vld [vmem:[%s15162_s2 + $0x1c28] ss:$16 sps:$4 sm:$0xff]  }
 0x39d   : > { %v14812_v18 = vadd.f32 %v6049_v15, %v6008_v45  ;;  %v6051_v60 = vpop.f32.mrb[42].mxu1  ;;  %7961 = vmatpush1.bf16.msra.mxu1 %v11470_v32  ;;  %v6011_v36 = vpop.f32.mrb[43].mxu0  ;;  %7921 = vmatprep.subr.bf16.mxu0 %v11475_v4  ;;  %v11533_v32 = vld [vmem:[%s15162_s2 + $0x1c08] ss:$16 sps:$4 sm:$0xff]   ;;  %v11544_v40 = vld [vmem:[%s15162_s2 + $0x1e2c] ss:$16 sps:$4 sm:$0xff]  }
 0x39e   : > { %v6052_v17 = vpop.f32.mrb[43].mxu1  ;;  %7962 = vmatprep.subr.bf16.mxu1 %v11478_v9  ;;  %v11536_v4 = vld [vmem:[%s15162_s2 + $0x1e08] ss:$16 sps:$4 sm:$0xff]   ;;  %v11541_v9 = vld [vmem:[%s15162_s2 + $0x1c2c] ss:$16 sps:$4 sm:$0xff]  }
 0x39f   : > { %v11542_v45 = vld [vmem:[%s15162_s2 + $0x1e28] ss:$16 sps:$4 sm:$0xff]   ;;  %v11547_v15 = vld [vmem:[%s15162_s2 + $0x1c4c] ss:$16 sps:$4 sm:$0xff]  }
 0x3a0   : > { %7922 = vmatpush1.bf16.msra.mxu0 %v11473_v31  ;;  %v11548_v24 = vld [vmem:[%s15162_s2 + $0x1e48] ss:$16 sps:$4 sm:$0xff]   ;;  %v11553_v60 = vld [vmem:[%s15162_s2 + $0x1c6c] ss:$16 sps:$4 sm:$0xff]  }
 0x3a1   : > { %7963 = vmatpush1.bf16.msra.mxu1 %v11476_v5  ;;  %7923 = vmatprep.subr.bf16.mxu0 %v11481_v35  ;;  %v11554_v31 = vld [vmem:[%s15162_s2 + $0x1e68] ss:$16 sps:$4 sm:$0xff]   ;;  %v11559_v5 = vld [vmem:[%s15162_s2 + $0x1c8c] ss:$16 sps:$4 sm:$0xff]  }
 0x3a2   : > { %7964 = vmatprep.subr.bf16.mxu1 %v11484_v16  ;;  %v11562_v36 = vld [vmem:[%s15162_s2 + $0x1e8c] ss:$16 sps:$4 sm:$0xff]   ;;  %v11557_v17 = vld [vmem:[%s15162_s2 + $0x1c88] ss:$16 sps:$4 sm:$0xff]  }
 0x3a3   : > { %v11560_v35 = vld [vmem:[%s15162_s2 + $0x1e88] ss:$16 sps:$4 sm:$0xff]   ;;  %v11565_v16 = vld [vmem:[%s15162_s2 + $0x1cac] ss:$16 sps:$4 sm:$0xff]  }
 0x3a4   : > { %7924 = vmatpush1.bf16.msra.mxu0 %v11479_v22  ;;  %v11568_v22 = vld [vmem:[%s15162_s2 + $0x1eac] ss:$16 sps:$4 sm:$0xff]  }
 0x3a5   : > { %7965 = vmatpush1.bf16.msra.mxu1 %v11482_v6  ;;  %7925 = vmatprep.subr.bf16.mxu0 %v11487_v37  ;;  %v11563_v6 = vld [vmem:[%s15162_s2 + $0x1ca8] ss:$16 sps:$4 sm:$0xff]  }
 0x3a6   : > { %7966 = vmatprep.subr.bf16.mxu1 %v11490_v28  ;;  %v11566_v37 = vld [vmem:[%s15162_s2 + $0x1ea8] ss:$16 sps:$4 sm:$0xff]   ;;  %v11571_v28 = vld [vmem:[%s15162_s2 + $0x1ccc] ss:$16 sps:$4 sm:$0xff]  }
 0x3a8   : > { %7926 = vmatpush1.bf16.msra.mxu0 %v11485_v38  ;;  %v11574_v38 = vld [vmem:[%s15162_s2 + $0x1ecc] ss:$16 sps:$4 sm:$0xff]  }
 0x3a9   : > { %7967 = vmatpush1.bf16.msra.mxu1 %v11488_v39  ;;  %7927 = vmatprep.subr.bf16.mxu0 %v11493_v44 }
 0x3aa   : > { %7968 = vmatprep.subr.bf16.mxu1 %v11496_v46 }
 0x3ac   : > { %7928 = vmatpush1.bf16.msra.mxu0 %v11491_v47 }
 0x3ad   : > { %7969 = vmatpush1.bf16.msra.mxu1 %v11494_v48  ;;  %7929 = vmatprep.subr.bf16.mxu0 %v11499_v50 }
 0x3ae   : > { %7970 = vmatprep.subr.bf16.mxu1 %v11502_v53 }
 0x3b0   : > { %7930 = vmatpush1.bf16.msra.mxu0 %v11497_v54 }
 0x3b1   : > { %7971 = vmatpush1.bf16.msra.mxu1 %v11500_v55  ;;  %7931 = vmatprep.subr.bf16.mxu0 %v11505_v7  ;;  %v11569_v55 = vld [vmem:[%s15162_s2 + $0x1cc8] ss:$16 sps:$4 sm:$0xff]  }
 0x3b2   : > { %7972 = vmatprep.subr.bf16.mxu1 %v11508_v3  ;;  %v11572_v7 = vld [vmem:[%s15162_s2 + $0x1ec8] ss:$16 sps:$4 sm:$0xff]  }
 0x3b4   : > { %7932 = vmatpush1.bf16.msra.mxu0 %v11503_v14 }
 0x3b5   : > { %7973 = vmatpush1.bf16.msra.mxu1 %v11506_v61  ;;  %7933 = vmatprep.subr.bf16.mxu0 %v11511_v57 }
 0x3b6   : > { %7974 = vmatprep.subr.bf16.mxu1 %v11514_v62 }
 0x3b8   : > { %7934 = vmatpush1.bf16.msra.mxu0 %v11509_v23 }
 0x3b9   : > { %7975 = vmatpush1.bf16.msra.mxu1 %v11512_v30  ;;  %7935 = vmatprep.subr.bf16.mxu0 %v11517_v41  ;;  %v11575_v30 = vld [vmem:[%s15162_s2 + $0x1ce8] ss:$16 sps:$4 sm:$0xff]  }
 0x3ba   : > { %7976 = vmatprep.subr.bf16.mxu1 %v11520_v52  ;;  %v11578_v41 = vld [vmem:[%s15162_s2 + $0x1ee8] ss:$16 sps:$4 sm:$0xff]  }
 0x3bb   : > { %v11581_v52 = vld [vmem:[%s15162_s2 + $0x1d08] ss:$16 sps:$4 sm:$0xff]  }
 0x3bc   : > { %7936 = vmatpush1.bf16.msra.mxu0 %v11515_v58  ;;  %v11584_v58 = vld [vmem:[%s15162_s2 + $0x1f08] ss:$16 sps:$4 sm:$0xff]  }
 0x3bd   : > { %7977 = vmatpush1.bf16.msra.mxu1 %v11518_v26  ;;  %7937 = vmatprep.subr.bf16.mxu0 %v11523_v25  ;;  %v11589_v26 = vld [vmem:[%s15162_s2 + $0x1d2c] ss:$16 sps:$4 sm:$0xff]  }
 0x3be   : > { %7978 = vmatprep.subr.bf16.mxu1 %v11526_v33  ;;  %v11592_v25 = vld [vmem:[%s15162_s2 + $0x1f2c] ss:$16 sps:$4 sm:$0xff]   ;;  %v11587_v33 = vld [vmem:[%s15162_s2 + $0x1d28] ss:$16 sps:$4 sm:$0xff]  }
 0x3c0   : > { %7938 = vmatpush1.bf16.msra.mxu0 %v11521_v34  ;;  %v11590_v34 = vld [vmem:[%s15162_s2 + $0x1f28] ss:$16 sps:$4 sm:$0xff]  }
 0x3c1   : > { %7979 = vmatpush1.bf16.msra.mxu1 %v11524_v20  ;;  %7939 = vmatprep.subr.bf16.mxu0 %v11529_v27  ;;  %v11595_v20 = vld [vmem:[%s15162_s2 + $0x1d4c] ss:$16 sps:$4 sm:$0xff]  }
 0x3c2   : > { %7980 = vmatprep.subr.bf16.mxu1 %v11532_v56  ;;  %v11598_v27 = vld [vmem:[%s15162_s2 + $0x1f4c] ss:$16 sps:$4 sm:$0xff]   ;;  %v11593_v56 = vld [vmem:[%s15162_s2 + $0x1d48] ss:$16 sps:$4 sm:$0xff]  }
 0x3c4   : > { %7940 = vmatpush1.bf16.msra.mxu0 %v11527_v2  ;;  %v11596_v2 = vld [vmem:[%s15162_s2 + $0x1f48] ss:$16 sps:$4 sm:$0xff]  }
 0x3c5   : > { %7981 = vmatpush1.bf16.msra.mxu1 %v11530_v8  ;;  %7991 = vmatprep.subr.bf16.mxu0 %v11535_v0  ;;  %v11601_v8 = vld [vmem:[%s15162_s2 + $0x1d6c] ss:$16 sps:$4 sm:$0xff]  }
 0x3c6   : > { %8032 = vmatprep.subr.bf16.mxu1 %v11538_v1  ;;  %v11604_v0 = vld [vmem:[%s15162_s2 + $0x1f6c] ss:$16 sps:$4 sm:$0xff]   ;;  %v11599_v1 = vld [vmem:[%s15162_s2 + $0x1d68] ss:$16 sps:$4 sm:$0xff]  }
 0x3c7   : > { %7942 = vmatmul.mubr.bf16.vlgmr.msra.gmra.mrb[56].mxu0 %v14497_v43  ;;  %v11550_v43 = vld [vmem:[%s15162_s2 + $0x1e4c] ss:$16 sps:$4 sm:$0xff]  }
 0x3c8   : > { %7983 = vmatmul.mubr.bf16.vlgmr.msra.gmra.mrb[56].mxu1 %v14516_v13  ;;  %7992 = vmatpush1.bf16.msra.mxu0 %v11533_v32  ;;  %v11545_v13 = vld [vmem:[%s15162_s2 + $0x1c48] ss:$16 sps:$4 sm:$0xff]  }
 0x3c9   : > { %8033 = vmatpush1.bf16.msra.mxu1 %v11536_v4  ;;  %7993 = vmatprep.subr.bf16.mxu0 %v11541_v9  ;;  %v11602_v32 = vld [vmem:[%s15162_s2 + $0x1f68] ss:$16 sps:$4 sm:$0xff]   ;;  %v11607_v4 = vld [vmem:[%s15162_s2 + $0x1d8c] ss:$16 sps:$4 sm:$0xff]  }
 0x3ca   : > { %8034 = vmatprep.subr.bf16.mxu1 %v11544_v40  ;;  %8023 = vmatprep.mubr.bf16.mxu0 %v14512_v42  ;;  %v11556_v42 = vld [vmem:[%s15162_s2 + $0x1e6c] ss:$16 sps:$4 sm:$0xff]   ;;  %v11605_v40 = vld [vmem:[%s15162_s2 + $0x1d88] ss:$16 sps:$4 sm:$0xff]  }
 0x3cb   : > { %8064 = vmatprep.mubr.bf16.mxu1 %v14532_v21  ;;  %v11551_v21 = vld [vmem:[%s15162_s2 + $0x1c68] ss:$16 sps:$4 sm:$0xff]   ;;  %v11610_v9 = vld [vmem:[%s15162_s2 + $0x1f8c] ss:$16 sps:$4 sm:$0xff]  }
 0x3cc   : > { %7994 = vmatpush1.bf16.msra.mxu0 %v11539_v11  ;;  %v11608_v11 = vld [vmem:[%s15162_s2 + $0x1f88] ss:$16 sps:$4 sm:$0xff]  }
 0x3cd   : > { %8035 = vmatpush1.bf16.msra.mxu1 %v11542_v45  ;;  %7995 = vmatprep.subr.bf16.mxu0 %v11547_v15  ;;  %v11613_v45 = vld [vmem:[%s15162_s2 + $0x1dac] ss:$16 sps:$4 sm:$0xff]  }
 0x3ce   : > { %8036 = vmatprep.subr.bf16.mxu1 %v11550_v43  ;;  %v11616_v15 = vld [vmem:[%s15162_s2 + $0x1fac] ss:$16 sps:$4 sm:$0xff]   ;;  %v11611_v43 = vld [vmem:[%s15162_s2 + $0x1da8] ss:$16 sps:$4 sm:$0xff]  }
 0x3d0   : > { %7996 = vmatpush1.bf16.msra.mxu0 %v11545_v13  ;;  %v11614_v13 = vld [vmem:[%s15162_s2 + $0x1fa8] ss:$16 sps:$4 sm:$0xff]  }
 0x3d1   : > { %8037 = vmatpush1.bf16.msra.mxu1 %v11548_v24  ;;  %7997 = vmatprep.subr.bf16.mxu0 %v11553_v60  ;;  %v11619_v24 = vld [vmem:[%s15162_s2 + $0x1dcc] ss:$16 sps:$4 sm:$0xff]  }
 0x3d2   : > { %8038 = vmatprep.subr.bf16.mxu1 %v11556_v42  ;;  %v11622_v60 = vld [vmem:[%s15162_s2 + $0x1fcc] ss:$16 sps:$4 sm:$0xff]   ;;  %v11617_v42 = vld [vmem:[%s15162_s2 + $0x1dc8] ss:$16 sps:$4 sm:$0xff]  }
 0x3d4   : > { %7998 = vmatpush1.bf16.msra.mxu0 %v11551_v21  ;;  %v11620_v21 = vld [vmem:[%s15162_s2 + $0x1fc8] ss:$16 sps:$4 sm:$0xff]  }
 0x3d5   : > { %8039 = vmatpush1.bf16.msra.mxu1 %v11554_v31  ;;  %7999 = vmatprep.subr.bf16.mxu0 %v11559_v5  ;;  %v11625_v31 = vld [vmem:[%s15162_s2 + $0x1dec] ss:$16 sps:$4 sm:$0xff]  }
 0x3d6   : > { %8040 = vmatprep.subr.bf16.mxu1 %v11562_v36  ;;  %v11628_v5 = vld [vmem:[%s15162_s2 + $0x1fec] ss:$16 sps:$4 sm:$0xff]   ;;  %v11623_v36 = vld [vmem:[%s15162_s2 + $0x1de8] ss:$16 sps:$4 sm:$0xff]  }
 0x3d8   : > { %8000 = vmatpush1.bf16.msra.mxu0 %v11557_v17  ;;  %v11626_v17 = vld [vmem:[%s15162_s2 + $0x1fe8] ss:$16 sps:$4 sm:$0xff]  }
 0x3d9   : > { %8041 = vmatpush1.bf16.msra.mxu1 %v11560_v35  ;;  %8001 = vmatprep.subr.bf16.mxu0 %v11565_v16 }
 0x3da   : > { %8042 = vmatprep.subr.bf16.mxu1 %v11568_v22  ;;  %v6088_v39 = vpop.f32.mrb[44].mxu0 }
 0x3db   : > { %v6129_v44 = vpop.f32.mrb[44].mxu1  ;;  %v6089_v46 = vadd.f32 %v6088_v39, %v14810_v12  ;;  %v6090_v47 = vpop.f32.mrb[45].mxu0  ;;  %v11577_v12 = vld [vmem:[%s15162_s2 + $0x1cec] ss:$16 sps:$4 sm:$0xff]  }
 0x3dc   : > { %v6131_v48 = vpop.f32.mrb[45].mxu1  ;;  %v6091_v50 = vadd.f32 %v6090_v47, %v14812_v18  ;;  %v6092_v53 = vpop.f32.mrb[46].mxu0  ;;  %8002 = vmatpush1.bf16.msra.mxu0 %v11563_v6  ;;  %v11580_v18 = vld [vmem:[%s15162_s2 + $0x1eec] ss:$16 sps:$4 sm:$0xff]   ;;  %v8081_v47 = vsub.s32 0, %v11855_v49 }
 0x3dd   : > { %v6133_v54 = vpop.f32.mrb[46].mxu1  ;;  %8043 = vmatpush1.bf16.msra.mxu1 %v11566_v37  ;;  %v6130_v3 = vadd.f32 %v6129_v44, %v6089_v46  ;;  %v6093_v14 = vpop.f32.mrb[47].mxu0  ;;  %8003 = vmatprep.subr.bf16.mxu0 %v11571_v28 }
 0x3de   : > { %v6134_v61 = vpop.f32.mrb[47].mxu1  ;;  %8044 = vmatprep.subr.bf16.mxu1 %v11574_v38  ;;  %v6132_v57 = vadd.f32 %v6131_v48, %v6091_v50 }
 0x3df   : > { %v15025_v62 = vadd.f32 %v6130_v3, %v14161_v63  ;;  %v11583_v63 = vld [vmem:[%s15162_s2 + $0x1d0c] ss:$16 sps:$4 sm:$0xff]  }
 0x3e0   : > { %v15028_v23 = vadd.f32 %v6132_v57, %v14169_v29  ;;  %8004 = vmatpush1.bf16.msra.mxu0 %v11569_v55  ;;  %v11586_v29 = vld [vmem:[%s15162_s2 + $0x1f0c] ss:$16 sps:$4 sm:$0xff]  }
 0x3e1   : > { %8045 = vmatpush1.bf16.msra.mxu1 %v11572_v7  ;;  %8005 = vmatprep.subr.bf16.mxu0 %v11577_v12 }
 0x3e2   : > { %8046 = vmatprep.subr.bf16.mxu1 %v11580_v18 }
 0x3e4   : > { %8006 = vmatpush1.bf16.msra.mxu0 %v11575_v30 }
 0x3e5   : > { %8047 = vmatpush1.bf16.msra.mxu1 %v11578_v41  ;;  %8007 = vmatprep.subr.bf16.mxu0 %v11583_v63 }
 0x3e6   : > { %8048 = vmatprep.subr.bf16.mxu1 %v11586_v29 }
 0x3e8   : > { %8008 = vmatpush1.bf16.msra.mxu0 %v11581_v52 }
 0x3e9   : > { %8049 = vmatpush1.bf16.msra.mxu1 %v11584_v58  ;;  %8009 = vmatprep.subr.bf16.mxu0 %v11589_v26 }
 0x3ea   : > { %8050 = vmatprep.subr.bf16.mxu1 %v11592_v25 }
 0x3ec   : > { %8010 = vmatpush1.bf16.msra.mxu0 %v11587_v33 }
 0x3ed   : > { %8051 = vmatpush1.bf16.msra.mxu1 %v11590_v34  ;;  %8011 = vmatprep.subr.bf16.mxu0 %v11595_v20 }
 0x3ee   : > { %8052 = vmatprep.subr.bf16.mxu1 %v11598_v27 }
 0x3f0   : > { %8012 = vmatpush1.bf16.msra.mxu0 %v11593_v56 }
 0x3f1   : > { %8053 = vmatpush1.bf16.msra.mxu1 %v11596_v2  ;;  %8013 = vmatprep.subr.bf16.mxu0 %v11601_v8 }
 0x3f2   : > { %8054 = vmatprep.subr.bf16.mxu1 %v11604_v0 }
 0x3f4   : > { %8014 = vmatpush1.bf16.msra.mxu0 %v11599_v1 }
 0x3f5   : > { %8055 = vmatpush1.bf16.msra.mxu1 %v11602_v32  ;;  %8015 = vmatprep.subr.bf16.mxu0 %v11607_v4  ;;  %v8089_v32 = vsub.s32 2, %v11855_v49  ;;  %v11661_v4 = vmov 1983009808  }
 0x3f6   : > { %8056 = vmatprep.subr.bf16.mxu1 %v11610_v9  ;;  %v8110_v9 = vunpack.c.l.s4 %v11661_v4 }
 0x3f8   : > { %8016 = vmatpush1.bf16.msra.mxu0 %v11605_v40 }
 0x3f9   : > { %8057 = vmatpush1.bf16.msra.mxu1 %v11608_v11  ;;  %8017 = vmatprep.subr.bf16.mxu0 %v11613_v45 }
 0x3fa   : > { %8058 = vmatprep.subr.bf16.mxu1 %v11616_v15 }
 0x3fc   : > { %8018 = vmatpush1.bf16.msra.mxu0 %v11611_v43 }
 0x3fd   : > { %8059 = vmatpush1.bf16.msra.mxu1 %v11614_v13  ;;  %8019 = vmatprep.subr.bf16.mxu0 %v11619_v24 }
 0x3fe   : > { %8060 = vmatprep.subr.bf16.mxu1 %v11622_v60 }
 0x400   : > { %8020 = vmatpush1.bf16.msra.mxu0 %v11617_v42 }
 0x401   : > { %8061 = vmatpush1.bf16.msra.mxu1 %v11620_v21  ;;  %8021 = vmatprep.subr.bf16.mxu0 %v11625_v31 }
 0x402   : > { %8062 = vmatprep.subr.bf16.mxu1 %v11628_v5  ;;  %v8111_v5 = vunpack.c.0.s8 %v8110_v9 }
 0x404   : > { %8022 = vmatpush1.bf16.msra.mxu0 %v11623_v36 }
 0x405   : > { %8063 = vmatpush1.bf16.msra.mxu1 %v11626_v17 }
 0x407   : > { %8024 = vmatmul.mubr.bf16.vlgmr.msra.gmra.mrb[60].mxu0 %v14716_v51  ;;  %v8077_v51 = vld [vmem:[%s15163_s3] sm:$0xf] }
 0x408   : > { %8065 = vmatmul.mubr.bf16.vlgmr.msra.gmra.mrb[60].mxu1 %v14732_v19  ;;  %v8085_v19 = vsub.s32 1, %v11855_v49  ;;  %v8082_v12 = vrot.slane %v8077_v51, %v8081_v47  ;;  %v8090_v42 = vrot.slane %v8077_v51, %v8089_v32 }
 0x40a   : > { %v8086_v41 = vrot.slane %v8077_v51, %v8085_v19 }
 0x41a   : > { %v7779_v35 = vpop.f32.mrb[48].mxu0 }
 0x41b   : > { %v7820_v16 = vpop.f32.mrb[48].mxu1  ;;  %v7781_v6 = vpop.f32.mrb[49].mxu0 }
 0x41c   : > { %v7821_v22 = vadd.f32 %v7820_v16, %v7779_v35  ;;  %v7822_v37 = vpop.f32.mrb[49].mxu1  ;;  %v7783_v38 = vpop.f32.mrb[50].mxu0 }
 0x41d   : > { %v7823_v28 = vadd.f32 %v7822_v37, %v7781_v6  ;;  %v7824_v39 = vpop.f32.mrb[50].mxu1  ;;  %v7784_v44 = vpop.f32.mrb[51].mxu0  ;;  %v8114_v6 = vsub.s32 %v8111_v5, %v11855_v49 }
 0x41e   : > { %v7825_v46 = vpop.f32.mrb[51].mxu1 }
 0x45a   : > { %v7861_v48 = vpop.f32.mrb[52].mxu0 }
 0x45b   : > { %v7902_v50 = vpop.f32.mrb[52].mxu1  ;;  %v7862_v53 = vadd.f32 %v7861_v48, %v7821_v22  ;;  %v7863_v54 = vpop.f32.mrb[53].mxu0 }
 0x45c   : > { %v7904_v55 = vpop.f32.mrb[53].mxu1  ;;  %v7864_v7 = vadd.f32 %v7863_v54, %v7823_v28  ;;  %v7865_v3 = vpop.f32.mrb[54].mxu0 }
 0x45d   : > { %v7906_v14 = vpop.f32.mrb[54].mxu1  ;;  %v7903_v61 = vadd.f32 %v7902_v50, %v7862_v53  ;;  %v7866_v18 = vpop.f32.mrb[55].mxu0 }
 0x45e   : > { %v7907_v57 = vpop.f32.mrb[55].mxu1  ;;  %v7905_v30 = vadd.f32 %v7904_v55, %v7864_v7 }
 0x45f   : > { %v8073_v63 = vadd.f32 %v7903_v61, %v14613_v59 }
 0x460   : > { %v8074_v29 = vadd.f32 %v7905_v30, %v14616_v10  ;;  %v8093_v10 = vsub.s32 3, %v11855_v49 }
 0x461   : > { %v8099_v52 = vadd.f32 %v8082_v12, %v8073_v63 }
 0x462   : > { %v8100_v58 = vadd.f32 %v8086_v41, %v8074_v29  ;;  %v8094_v17 = vrot.slane %v8077_v51, %v8093_v10 }
 0x464   : > { %v8107_v26 = vcombine.low %v8099_v52, %v8100_v58 }
 0x466   : > { %v8115_v38 = vrot.slane %v8107_v26, %v8114_v6 }
 0x49a   : > { %v7943_v25 = vpop.f32.mrb[56].mxu0 }
 0x49b   : > { %v7984_v33 = vpop.f32.mrb[56].mxu1  ;;  %v7945_v20 = vpop.f32.mrb[57].mxu0 }
 0x49c   : > { %v7985_v34 = vadd.f32 %v7984_v33, %v7943_v25  ;;  %v7986_v27 = vpop.f32.mrb[57].mxu1  ;;  %v7947_v2 = vpop.f32.mrb[58].mxu0 }
 0x49d   : > { %v7987_v56 = vadd.f32 %v7986_v27, %v7945_v20  ;;  %v7988_v8 = vpop.f32.mrb[58].mxu1  ;;  %v7948_v0 = vpop.f32.mrb[59].mxu0 }
 0x49e   : > { %v7989_v1 = vpop.f32.mrb[59].mxu1 }
 0x4da   : > { %v8025_v59 = vpop.f32.mrb[60].mxu0 }
 0x4db   : > { %v8066_v40 = vpop.f32.mrb[60].mxu1  ;;  %v8026_v11 = vadd.f32 %v8025_v59, %v7985_v34  ;;  %v8027_v45 = vpop.f32.mrb[61].mxu0 }
 0x4dc   : > { %v8068_v15 = vpop.f32.mrb[61].mxu1  ;;  %v8028_v43 = vadd.f32 %v8027_v45, %v7987_v56  ;;  %v8029_v13 = vpop.f32.mrb[62].mxu0 }
 0x4dd   : > { %v8070_v24 = vpop.f32.mrb[62].mxu1  ;;  %v8067_v60 = vadd.f32 %v8066_v40, %v8026_v11  ;;  %v8030_v21 = vpop.f32.mrb[63].mxu0 }
 0x4de   : > { %v8071_v31 = vpop.f32.mrb[63].mxu1  ;;  %v8069_v36 = vadd.f32 %v8068_v15, %v8028_v43 }
 0x4df   : > { %v8075_v35 = vadd.f32 %v8067_v60, %v15025_v62 }
 0x4e0   : > { %v8076_v16 = vadd.f32 %v8069_v36, %v15028_v23 }
 0x4e1   : > { %v8101_v22 = vadd.f32 %v8090_v42, %v8075_v35 }
 0x4e2   : > { %v8102_v37 = vadd.f32 %v8094_v17, %v8076_v16 }
 0x4e4   : > { %v8108_v28 = vcombine.low %v8101_v22, %v8102_v37 }
 0x4e6   : > { %v8122_v39 = vrot.slane %v8108_v28, %v8114_v6 }
 0x4e8   : > { %v8123_v44 = vcombine.low %v8115_v38, %v8122_v39  ;;  %v8124_v46 = vcombine.high %v8115_v38, %v8122_v39 }
 0x4ea   : > { %8127 = vst [vmem:[%s274_s28] sm:$0xff] %v8123_v44  ;;  %8128 = vst [vmem:[%s274_s28 + $0x8] sm:$0xff] %v8124_v46 }
 0x4eb PF: > { %s14_s17 = sadd.s32 1, %s11658_s17   ;;  %s15167_s15 = smov %s11654_s16 }
 0x4ec   : > { %p11_p5 = scmp.ge.s32.totalorder %s14_s17, 4   ;;  %s15168_s16 = smov %s15170_s18 }
 0x4ee   :  { %13 = sbr.rel (!%p11_p5) target bundleno = 2 (0x2), region = 72 }

// kernel: discriminator_local.15
= control target key start
LH: loop header
LB: loop body
LE: loop exit
PB: predicated region body
PF: predicated region fallthrough
CT: control target
= control target key end

     0   :  { %v1117_v30 = vlaneseq  ;;  %v7840_v37 = vmov 1966171168   ;;  %s9653_s0 = inlined_call_operand.vmem [shape: bf16[2,8192], index: 0, kind: input, shape index: {}]   ;;  %s9654_s1 = inlined_call_operand.vmem [shape: bf16[8192,128], index: 1, kind: input, shape index: {}]   ;;  %s9655_s2 = inlined_call_operand.vmem [shape: f32[1,128], index: 2, kind: input, shape index: {}]   ;;  %s9656_s3 = inlined_call_operand.vmem [shape: f32[2,128], index: 3, kind: output, shape index: {}]  }
   0x1   :  { %v7328_v0 = vld [vmem:[%s9654_s1 + $0x40] sm:$0xff]   ;;  %v7332_v4 = vld [vmem:[%s9654_s1 + $0x48] sm:$0xff]   ;;  %v7336_v8 = vld [vmem:[%s9654_s1 + $0x50] sm:$0xff]   ;;  %v1115_v38 = vunpack.c.l.s4 %v7840_v37 }
   0x2   :  { %v7329_v1 = vld [vmem:[%s9654_s1 + $0xc0] sm:$0xff]   ;;  %6623 = vmatprep.subr.bf16.mxu0 %v7328_v0  ;;  %v7333_v5 = vld [vmem:[%s9654_s1 + $0xc8] sm:$0xff]   ;;  %v7337_v9 = vld [vmem:[%s9654_s1 + $0xd0] sm:$0xff]   ;;  %v1118_v39 = vshrl.u32 %v1117_v30, 7 }
   0x3   :  { %v7330_v2 = vld [vmem:[%s9654_s1] sm:$0xff]   ;;  %6645 = vmatprep.subr.bf16.mxu1 %v7329_v1  ;;  %v7334_v6 = vld [vmem:[%s9654_s1 + $0x8] sm:$0xff]   ;;  %v7338_v10 = vld [vmem:[%s9654_s1 + $0x10] sm:$0xff]   ;;  %v1116_v45 = vunpack.c.0.s8 %v1115_v38 }
   0x4   :  { %v7331_v3 = vld [vmem:[%s9654_s1 + $0x80] sm:$0xff]   ;;  %6624 = vmatpush3.bf16.msra.mxu0 %v7330_v2  ;;  %v7335_v7 = vld [vmem:[%s9654_s1 + $0x88] sm:$0xff]   ;;  %v7339_v11 = vld [vmem:[%s9654_s1 + $0x90] sm:$0xff]  }
   0x5   :  { %6646 = vmatpush3.bf16.msra.mxu1 %v7331_v3  ;;  %6625 = vmatprep.subr.bf16.mxu0 %v7332_v4  ;;  %v7340_v12 = vld [vmem:[%s9654_s1 + $0x58] sm:$0xff]   ;;  %v7344_v16 = vld [vmem:[%s9654_s1 + $0x60] sm:$0xff]   ;;  %v7348_v20 = vld [vmem:[%s9654_s1 + $0x68] sm:$0xff]   ;;  %v7975_v47 = vsub.s32 %v1116_v45, %v1118_v39 }
   0x6   :  { %6647 = vmatprep.subr.bf16.mxu1 %v7333_v5  ;;  %v7341_v13 = vld [vmem:[%s9654_s1 + $0xd8] sm:$0xff]   ;;  %v7345_v17 = vld [vmem:[%s9654_s1 + $0xe0] sm:$0xff]   ;;  %v7349_v21 = vld [vmem:[%s9654_s1 + $0xe8] sm:$0xff]  }
   0x7   :  { %v7342_v14 = vld [vmem:[%s9654_s1 + $0x18] sm:$0xff]   ;;  %v7346_v18 = vld [vmem:[%s9654_s1 + $0x20] sm:$0xff]   ;;  %v7350_v22 = vld [vmem:[%s9654_s1 + $0x28] sm:$0xff]  }
   0x8   :  { %6626 = vmatpush3.bf16.msra.mxu0 %v7334_v6  ;;  %v7343_v15 = vld [vmem:[%s9654_s1 + $0x98] sm:$0xff]   ;;  %v7347_v19 = vld [vmem:[%s9654_s1 + $0xa0] sm:$0xff]   ;;  %v7351_v23 = vld [vmem:[%s9654_s1 + $0xa8] sm:$0xff]  }
   0x9   :  { %6648 = vmatpush3.bf16.msra.mxu1 %v7335_v7  ;;  %6627 = vmatprep.subr.bf16.mxu0 %v7336_v8  ;;  %v7352_v24 = vld [vmem:[%s9654_s1 + $0x70] sm:$0xff]   ;;  %v7356_v28 = vld [vmem:[%s9654_s1 + $0x78] sm:$0xff]   ;;  %v15_v33 = vld [vmem:[%s9653_s0] sm:$0xff] }
   0xa   :  { %6649 = vmatprep.subr.bf16.mxu1 %v7337_v9  ;;  %v7353_v25 = vld [vmem:[%s9654_s1 + $0xf0] sm:$0xff]   ;;  %v7357_v29 = vld [vmem:[%s9654_s1 + $0xf8] sm:$0xff]   ;;  %v23_v34 = vld [vmem:[%s9653_s0 + $0x40] sm:$0xff] }
   0xb   :  { %v7354_v26 = vld [vmem:[%s9654_s1 + $0x30] sm:$0xff]   ;;  %v7358_v31 = vld [vmem:[%s9654_s1 + $0x38] sm:$0xff]   ;;  %v31_v35 = vld [vmem:[%s9653_s0 + $0x80] sm:$0xff]  ;;  %v1110_v40 = vcombine.low %v15_v33, %v23_v34  ;;  %v1111_v42 = vcombine.high %v15_v33, %v23_v34 }
   0xc   :  { %6628 = vmatpush3.bf16.msra.mxu0 %v7338_v10  ;;  %v7355_v27 = vld [vmem:[%s9654_s1 + $0xb0] sm:$0xff]   ;;  %v7359_v32 = vld [vmem:[%s9654_s1 + $0xb8] sm:$0xff]   ;;  %v39_v36 = vld [vmem:[%s9653_s0 + $0xc0] sm:$0xff] }
   0xd   :  { %6650 = vmatpush3.bf16.msra.mxu1 %v7339_v11  ;;  %6629 = vmatprep.subr.bf16.mxu0 %v7340_v12  ;;  %v7360_v41 = vld [vmem:[%s9654_s1 + $0x140] sm:$0xff]   ;;  %v1112_v43 = vcombine.low %v31_v35, %v39_v36  ;;  %v1113_v44 = vcombine.high %v31_v35, %v39_v36  ;;  %v1120_v48 = vrot.slane %v1110_v40, %v7975_v47  ;;  %v7364_v60 = vld [vmem:[%s9654_s1 + $0x148] sm:$0xff]   ;;  %v7368_v3 = vld [vmem:[%s9654_s1 + $0x150] sm:$0xff]  }
   0xe   :  { %6651 = vmatprep.subr.bf16.mxu1 %v7341_v13  ;;  %v7361_v46 = vld [vmem:[%s9654_s1 + $0x1c0] sm:$0xff]   ;;  %v7980_v50 = vrot.slane %v1111_v42, %v7975_v47  ;;  %v7365_v63 = vld [vmem:[%s9654_s1 + $0x1c8] sm:$0xff]   ;;  %v7369_v4 = vld [vmem:[%s9654_s1 + $0x1d0] sm:$0xff]  }
   0xf   :  { %v1134_v49 = vrot.slane %v1112_v43, %v7975_v47  ;;  %v7983_v51 = vrot.slane %v1113_v44, %v7975_v47  ;;  %v7362_v55 = vld [vmem:[%s9654_s1 + $0x100] sm:$0xff]   ;;  %v7366_v0 = vld [vmem:[%s9654_s1 + $0x108] sm:$0xff]   ;;  %v7370_v5 = vld [vmem:[%s9654_s1 + $0x110] sm:$0xff]  }
  0x10   :  { %6630 = vmatpush3.bf16.msra.mxu0 %v7342_v14  ;;  %v7363_v58 = vld [vmem:[%s9654_s1 + $0x180] sm:$0xff]   ;;  %v7367_v2 = vld [vmem:[%s9654_s1 + $0x188] sm:$0xff]   ;;  %v7371_v6 = vld [vmem:[%s9654_s1 + $0x190] sm:$0xff]  }
  0x11   :  { %6652 = vmatpush3.bf16.msra.mxu1 %v7343_v15  ;;  %6631 = vmatprep.subr.bf16.mxu0 %v7344_v16  ;;  %v1143_v52 = vcombine.high %v1120_v48, %v1134_v49  ;;  %v1142_v53 = vcombine.low %v1120_v48, %v1134_v49  ;;  %v1145_v54 = vcombine.high %v7980_v50, %v7983_v51  ;;  %v7372_v7 = vld [vmem:[%s9654_s1 + $0x158] sm:$0xff]   ;;  %v7376_v11 = vld [vmem:[%s9654_s1 + $0x160] sm:$0xff]   ;;  %v7380_v15 = vld [vmem:[%s9654_s1 + $0x168] sm:$0xff]  }
  0x12   :  { %6653 = vmatprep.subr.bf16.mxu1 %v7345_v17  ;;  %v7373_v8 = vld [vmem:[%s9654_s1 + $0x1d8] sm:$0xff]   ;;  %v7377_v12 = vld [vmem:[%s9654_s1 + $0x1e0] sm:$0xff]   ;;  %v7381_v16 = vld [vmem:[%s9654_s1 + $0x1e8] sm:$0xff]  }
  0x13   :  { %v1166_v56 = vrot.slane %v1143_v52, %v7975_v47  ;;  %v1152_v57 = vrot.slane %v1142_v53, %v7975_v47  ;;  %v1173_v59 = vrot.slane %v1145_v54, %v7975_v47  ;;  %v7374_v9 = vld [vmem:[%s9654_s1 + $0x118] sm:$0xff]   ;;  %v7378_v13 = vld [vmem:[%s9654_s1 + $0x120] sm:$0xff]   ;;  %v7382_v17 = vld [vmem:[%s9654_s1 + $0x128] sm:$0xff]  }
  0x14   :  { %6632 = vmatpush3.bf16.msra.mxu0 %v7346_v18  ;;  %v7375_v10 = vld [vmem:[%s9654_s1 + $0x198] sm:$0xff]   ;;  %v7379_v14 = vld [vmem:[%s9654_s1 + $0x1a0] sm:$0xff]   ;;  %v7383_v18 = vld [vmem:[%s9654_s1 + $0x1a8] sm:$0xff]  }
  0x15   :  { %6654 = vmatpush3.bf16.msra.mxu1 %v7347_v19  ;;  %6633 = vmatprep.subr.bf16.mxu0 %v7348_v20  ;;  %v1176_v61 = vcombine.high %v1166_v56, %v1166_v56  ;;  %v1174_v62 = vcombine.high %v1152_v57, %v1152_v57  ;;  %v1177_v1 = vcombine.high %v1173_v59, %v1173_v59  ;;  %v7384_v19 = vld [vmem:[%s9654_s1 + $0x170] sm:$0xff]   ;;  %v7393_v30 = vld [vmem:[%s9654_s1 + $0x2c0] sm:$0xff]   ;;  %v7396_v34 = vld [vmem:[%s9654_s1 + $0x248] sm:$0xff]  }
  0x16   :  { %6655 = vmatprep.subr.bf16.mxu1 %v7349_v21  ;;  %4822 = vmatprep.mubr.bf16.mxu0 %v1166_v56  ;;  %v7385_v20 = vld [vmem:[%s9654_s1 + $0x1f0] sm:$0xff]   ;;  %v7397_v35 = vld [vmem:[%s9654_s1 + $0x2c8] sm:$0xff]   ;;  %v7404_v42 = vld [vmem:[%s9654_s1 + $0x258] sm:$0xff]  }
  0x17   :  { %4862 = vmatprep.mubr.bf16.mxu1 %v1176_v61  ;;  %v7386_v21 = vld [vmem:[%s9654_s1 + $0x130] sm:$0xff]   ;;  %v7398_v36 = vld [vmem:[%s9654_s1 + $0x208] sm:$0xff]   ;;  %v7405_v43 = vld [vmem:[%s9654_s1 + $0x2d8] sm:$0xff]  }
  0x18   :  { %6634 = vmatpush3.bf16.msra.mxu0 %v7350_v22  ;;  %v7387_v22 = vld [vmem:[%s9654_s1 + $0x1b0] sm:$0xff]   ;;  %v7399_v37 = vld [vmem:[%s9654_s1 + $0x288] sm:$0xff]   ;;  %v7406_v44 = vld [vmem:[%s9654_s1 + $0x218] sm:$0xff]  }
  0x19   :  { %6656 = vmatpush3.bf16.msra.mxu1 %v7351_v23  ;;  %6635 = vmatprep.subr.bf16.mxu0 %v7352_v24  ;;  %v7388_v23 = vld [vmem:[%s9654_s1 + $0x178] sm:$0xff]   ;;  %v1144_v24 = vcombine.low %v7980_v50, %v7983_v51  ;;  %v7400_v38 = vld [vmem:[%s9654_s1 + $0x250] sm:$0xff]   ;;  %v7409_v48 = vld [vmem:[%s9654_s1 + $0x2e0] sm:$0xff]  }
  0x1a   :  { %6657 = vmatprep.subr.bf16.mxu1 %v7353_v25  ;;  %v7389_v25 = vld [vmem:[%s9654_s1 + $0x1f8] sm:$0xff]   ;;  %v7401_v39 = vld [vmem:[%s9654_s1 + $0x2d0] sm:$0xff]   ;;  %v7410_v49 = vld [vmem:[%s9654_s1 + $0x220] sm:$0xff]  }
  0x1b   :  { %v7402_v40 = vld [vmem:[%s9654_s1 + $0x210] sm:$0xff]   ;;  %v7407_v45 = vld [vmem:[%s9654_s1 + $0x298] sm:$0xff]   ;;  %v7411_v50 = vld [vmem:[%s9654_s1 + $0x2a0] sm:$0xff]  }
  0x1c   :  { %6636 = vmatpush3.bf16.msra.mxu0 %v7354_v26  ;;  %v7390_v26 = vld [vmem:[%s9654_s1 + $0x138] sm:$0xff]   ;;  %v7412_v51 = vld [vmem:[%s9654_s1 + $0x268] sm:$0xff]   ;;  %v7417_v56 = vld [vmem:[%s9654_s1 + $0x2f0] sm:$0xff]  }
  0x1d   :  { %6658 = vmatpush3.bf16.msra.mxu1 %v7355_v27  ;;  %6637 = vmatprep.subr.bf16.mxu0 %v7356_v28  ;;  %v7391_v27 = vld [vmem:[%s9654_s1 + $0x1b8] sm:$0xff]   ;;  %v1159_v28 = vrot.slane %v1144_v24, %v7975_v47  ;;  %v7413_v52 = vld [vmem:[%s9654_s1 + $0x2e8] sm:$0xff]  }
  0x1e   :  { %6659 = vmatprep.subr.bf16.mxu1 %v7357_v29  ;;  %v7392_v29 = vld [vmem:[%s9654_s1 + $0x240] sm:$0xff]   ;;  %v7414_v53 = vld [vmem:[%s9654_s1 + $0x228] sm:$0xff]  }
  0x1f   :  { %v1175_v33 = vcombine.high %v1159_v28, %v1159_v28  ;;  %v7415_v54 = vld [vmem:[%s9654_s1 + $0x2a8] sm:$0xff]  }
  0x20   :  { %6638 = vmatpush3.bf16.msra.mxu0 %v7358_v31  ;;  %v7394_v31 = vld [vmem:[%s9654_s1 + $0x200] sm:$0xff]   ;;  %v40_v61 = vld [vmem:[%s9653_s0 + $0xc8] sm:$0xff] }
  0x21   :  { %6660 = vmatpush3.bf16.msra.mxu1 %v7359_v32  ;;  %6667 = vmatprep.subr.bf16.mxu0 %v7360_v41  ;;  %v7395_v32 = vld [vmem:[%s9654_s1 + $0x280] sm:$0xff]   ;;  %v7403_v41 = vld [vmem:[%s9654_s1 + $0x290] sm:$0xff]   ;;  %v7429_v24 = vld [vmem:[%s9654_s1 + $0x3c8] sm:$0xff]  }
  0x22   :  { %6689 = vmatprep.subr.bf16.mxu1 %v7361_v46  ;;  %v7408_v46 = vld [vmem:[%s9654_s1 + $0x260] sm:$0xff]  }
  0x23   :  { %4823 = vmatmul.mubr.bf16.vlgmr.msra.gmra.mrb[0].mxu0 %v1152_v57  ;;  %v7418_v57 = vld [vmem:[%s9654_s1 + $0x230] sm:$0xff]  }
  0x24   :  { %6668 = vmatpush3.bf16.msra.mxu0 %v7362_v55  ;;  %4863 = vmatmul.mubr.bf16.vlgmr.msra.gmra.mrb[0].mxu1 %v1174_v62  ;;  %v7416_v55 = vld [vmem:[%s9654_s1 + $0x270] sm:$0xff]  }
  0x25   :  { %6669 = vmatprep.subr.bf16.mxu0 %v7364_v60  ;;  %6690 = vmatpush3.bf16.msra.mxu1 %v7363_v58  ;;  %v16_v58 = vld [vmem:[%s9653_s0 + $0x8] sm:$0xff] }
  0x26   :  { %4902 = vmatprep.mubr.bf16.mxu0 %v1173_v59  ;;  %6691 = vmatprep.subr.bf16.mxu1 %v7365_v63  ;;  %v24_v59 = vld [vmem:[%s9653_s0 + $0x48] sm:$0xff] }
  0x27   :  { %4942 = vmatprep.mubr.bf16.mxu1 %v1177_v1  ;;  %v32_v60 = vld [vmem:[%s9653_s0 + $0x88] sm:$0xff]  ;;  %v1178_v62 = vcombine.low %v16_v58, %v24_v59  ;;  %v1179_v63 = vcombine.high %v16_v58, %v24_v59  ;;  %v7459_v58 = vld [vmem:[%s9654_s1 + $0x480] sm:$0xff]  }
  0x28   :  { %6670 = vmatpush3.bf16.msra.mxu0 %v7366_v0  ;;  %v7419_v0 = vld [vmem:[%s9654_s1 + $0x2b0] sm:$0xff]   ;;  %v1180_v1 = vcombine.low %v32_v60, %v40_v61 }
  0x29   :  { %6671 = vmatprep.subr.bf16.mxu0 %v7368_v3  ;;  %6692 = vmatpush3.bf16.msra.mxu1 %v7367_v2  ;;  %v1181_v2 = vcombine.high %v32_v60, %v40_v61  ;;  %v7420_v3 = vld [vmem:[%s9654_s1 + $0x278] sm:$0xff]   ;;  %v7460_v60 = vld [vmem:[%s9654_s1 + $0x448] sm:$0xff]  }
  0x2a   :  { %6693 = vmatprep.subr.bf16.mxu1 %v7369_v4  ;;  %v1188_v4 = vrot.slane %v1178_v62, %v7975_v47  ;;  %v7461_v61 = vld [vmem:[%s9654_s1 + $0x4c8] sm:$0xff]  }
  0x2b   :  { %v7462_v62 = vld [vmem:[%s9654_s1 + $0x408] sm:$0xff]  }
  0x2c   :  { %6672 = vmatpush3.bf16.msra.mxu0 %v7370_v5  ;;  %v8184_v5 = vrot.slane %v1179_v63, %v7975_v47  ;;  %v7463_v63 = vld [vmem:[%s9654_s1 + $0x488] sm:$0xff]  }
  0x2d   :  { %6673 = vmatprep.subr.bf16.mxu0 %v7372_v7  ;;  %6694 = vmatpush3.bf16.msra.mxu1 %v7371_v6  ;;  %v7421_v6 = vld [vmem:[%s9654_s1 + $0x2f8] sm:$0xff]   ;;  %v1202_v7 = vrot.slane %v1180_v1, %v7975_v47  ;;  %v7465_v1 = vld [vmem:[%s9654_s1 + $0x4d0] sm:$0xff]  }
  0x2e   :  { %6695 = vmatprep.subr.bf16.mxu1 %v7373_v8  ;;  %v8191_v8 = vrot.slane %v1181_v2, %v7975_v47  ;;  %v7466_v2 = vld [vmem:[%s9654_s1 + $0x410] sm:$0xff]  }
  0x30   :  { %6674 = vmatpush3.bf16.msra.mxu0 %v7374_v9  ;;  %v7422_v9 = vld [vmem:[%s9654_s1 + $0x238] sm:$0xff]  }
  0x31   :  { %6675 = vmatprep.subr.bf16.mxu0 %v7376_v11  ;;  %6696 = vmatpush3.bf16.msra.mxu1 %v7375_v10  ;;  %v7423_v10 = vld [vmem:[%s9654_s1 + $0x2b8] sm:$0xff]   ;;  %v1211_v11 = vcombine.high %v1188_v4, %v1202_v7 }
  0x32   :  { %6697 = vmatprep.subr.bf16.mxu1 %v7377_v12  ;;  %v1210_v12 = vcombine.low %v1188_v4, %v1202_v7  ;;  %v7468_v4 = vld [vmem:[%s9654_s1 + $0x458] sm:$0xff]  }
  0x33   :  { %v7471_v7 = vld [vmem:[%s9654_s1 + $0x498] sm:$0xff]  }
  0x34   :  { %6676 = vmatpush3.bf16.msra.mxu0 %v7378_v13  ;;  %v1213_v13 = vcombine.high %v8184_v5, %v8191_v8 }
  0x35   :  { %6677 = vmatprep.subr.bf16.mxu0 %v7380_v15  ;;  %6698 = vmatpush3.bf16.msra.mxu1 %v7379_v14  ;;  %v7424_v14 = vld [vmem:[%s9654_s1 + $0x340] sm:$0xff]   ;;  %v1234_v15 = vrot.slane %v1211_v11, %v7975_v47 }
  0x36   :  { %6699 = vmatprep.subr.bf16.mxu1 %v7381_v16  ;;  %v1220_v16 = vrot.slane %v1210_v12, %v7975_v47  ;;  %v7475_v11 = vld [vmem:[%s9654_s1 + $0x4a0] sm:$0xff]   ;;  %v7476_v12 = vld [vmem:[%s9654_s1 + $0x468] sm:$0xff]  }
  0x38   :  { %6678 = vmatpush3.bf16.msra.mxu0 %v7382_v17  ;;  %v7425_v17 = vld [vmem:[%s9654_s1 + $0x3c0] sm:$0xff]  }
  0x39   :  { %6679 = vmatprep.subr.bf16.mxu0 %v7384_v19  ;;  %6700 = vmatpush3.bf16.msra.mxu1 %v7383_v18  ;;  %v1241_v18 = vrot.slane %v1213_v13, %v7975_v47  ;;  %v7426_v19 = vld [vmem:[%s9654_s1 + $0x300] sm:$0xff]   ;;  %v7477_v13 = vld [vmem:[%s9654_s1 + $0x4e8] sm:$0xff]  }
  0x3a   :  { %6701 = vmatprep.subr.bf16.mxu1 %v7385_v20  ;;  %v1244_v20 = vcombine.high %v1234_v15, %v1234_v15 }
  0x3c   :  { %6680 = vmatpush3.bf16.msra.mxu0 %v7386_v21  ;;  %v7427_v21 = vld [vmem:[%s9654_s1 + $0x380] sm:$0xff]  }
  0x3d   :  { %6681 = vmatprep.subr.bf16.mxu0 %v7388_v23  ;;  %6702 = vmatpush3.bf16.msra.mxu1 %v7387_v22  ;;  %v1242_v22 = vcombine.high %v1220_v16, %v1220_v16  ;;  %v7428_v23 = vld [vmem:[%s9654_s1 + $0x348] sm:$0xff]  }
  0x3e   :  { %6703 = vmatprep.subr.bf16.mxu1 %v7389_v25  ;;  %v1245_v25 = vcombine.high %v1241_v18, %v1241_v18 }
  0x40   :  { %6682 = vmatpush3.bf16.msra.mxu0 %v7390_v26  ;;  %v7430_v26 = vld [vmem:[%s9654_s1 + $0x308] sm:$0xff]  }
  0x41   :  { %6711 = vmatprep.subr.bf16.mxu0 %v7392_v29  ;;  %6704 = vmatpush3.bf16.msra.mxu1 %v7391_v27  ;;  %v7431_v27 = vld [vmem:[%s9654_s1 + $0x388] sm:$0xff]   ;;  %v7433_v29 = vld [vmem:[%s9654_s1 + $0x3d0] sm:$0xff]  }
  0x42   :  { %6733 = vmatprep.subr.bf16.mxu1 %v7393_v30  ;;  %v7434_v30 = vld [vmem:[%s9654_s1 + $0x310] sm:$0xff]  }
  0x43   :  { %4903 = vmatmul.mubr.bf16.vlgmr.msra.gmra.mrb[4].mxu0 %v1159_v28  ;;  %v7432_v28 = vld [vmem:[%s9654_s1 + $0x350] sm:$0xff]  }
  0x44   :  { %6712 = vmatpush3.bf16.msra.mxu0 %v7394_v31  ;;  %4943 = vmatmul.mubr.bf16.vlgmr.msra.gmra.mrb[4].mxu1 %v1175_v33  ;;  %v7435_v31 = vld [vmem:[%s9654_s1 + $0x390] sm:$0xff]   ;;  %v7437_v33 = vld [vmem:[%s9654_s1 + $0x3d8] sm:$0xff]  }
  0x45   :  { %6713 = vmatprep.subr.bf16.mxu0 %v7396_v34  ;;  %6734 = vmatpush3.bf16.msra.mxu1 %v7395_v32  ;;  %v7436_v32 = vld [vmem:[%s9654_s1 + $0x358] sm:$0xff]  }
  0x46   :  { %6735 = vmatprep.subr.bf16.mxu1 %v7397_v35  ;;  %4982 = vmatprep.mubr.bf16.mxu0 %v1234_v15  ;;  %v7438_v34 = vld [vmem:[%s9654_s1 + $0x318] sm:$0xff]   ;;  %v7479_v15 = vld [vmem:[%s9654_s1 + $0x4a8] sm:$0xff]  }
  0x47   :  { %5022 = vmatprep.mubr.bf16.mxu1 %v1244_v20  ;;  %v7439_v35 = vld [vmem:[%s9654_s1 + $0x398] sm:$0xff]   ;;  %v7483_v20 = vld [vmem:[%s9654_s1 + $0x4b0] sm:$0xff]  }
  0x48   :  { %6714 = vmatpush3.bf16.msra.mxu0 %v7398_v36  ;;  %v7440_v36 = vld [vmem:[%s9654_s1 + $0x360] sm:$0xff]  }
  0x49   :  { %6715 = vmatprep.subr.bf16.mxu0 %v7400_v38  ;;  %6736 = vmatpush3.bf16.msra.mxu1 %v7399_v37  ;;  %v7441_v37 = vld [vmem:[%s9654_s1 + $0x3e0] sm:$0xff]  }
  0x4a   :  { %6737 = vmatprep.subr.bf16.mxu1 %v7401_v39  ;;  %v7442_v38 = vld [vmem:[%s9654_s1 + $0x320] sm:$0xff]  }
  0x4b   :  { %v7443_v39 = vld [vmem:[%s9654_s1 + $0x3a0] sm:$0xff]  }
  0x4c   :  { %6716 = vmatpush3.bf16.msra.mxu0 %v7402_v40  ;;  %v7444_v40 = vld [vmem:[%s9654_s1 + $0x368] sm:$0xff]  }
  0x4d   :  { %6717 = vmatprep.subr.bf16.mxu0 %v7404_v42  ;;  %6738 = vmatpush3.bf16.msra.mxu1 %v7403_v41  ;;  %v7445_v41 = vld [vmem:[%s9654_s1 + $0x3e8] sm:$0xff]  }
  0x4e   :  { %6739 = vmatprep.subr.bf16.mxu1 %v7405_v43  ;;  %v7446_v42 = vld [vmem:[%s9654_s1 + $0x328] sm:$0xff]  }
  0x4f   :  { %v7447_v43 = vld [vmem:[%s9654_s1 + $0x3a8] sm:$0xff]  }
  0x50   :  { %6718 = vmatpush3.bf16.msra.mxu0 %v7406_v44  ;;  %v7448_v44 = vld [vmem:[%s9654_s1 + $0x370] sm:$0xff]  }
  0x51   :  { %6719 = vmatprep.subr.bf16.mxu0 %v7408_v46  ;;  %6740 = vmatpush3.bf16.msra.mxu1 %v7407_v45  ;;  %v7449_v45 = vld [vmem:[%s9654_s1 + $0x3f0] sm:$0xff]  }
  0x52   :  { %6741 = vmatprep.subr.bf16.mxu1 %v7409_v48  ;;  %v7450_v46 = vld [vmem:[%s9654_s1 + $0x330] sm:$0xff]  }
  0x53   :  { %v7451_v48 = vld [vmem:[%s9654_s1 + $0x3b0] sm:$0xff]  }
  0x54   :  { %6720 = vmatpush3.bf16.msra.mxu0 %v7410_v49  ;;  %v7452_v49 = vld [vmem:[%s9654_s1 + $0x378] sm:$0xff]  }
  0x55   :  { %6721 = vmatprep.subr.bf16.mxu0 %v7412_v51  ;;  %6742 = vmatpush3.bf16.msra.mxu1 %v7411_v50  ;;  %v1212_v50 = vcombine.low %v8184_v5, %v8191_v8  ;;  %v7453_v51 = vld [vmem:[%s9654_s1 + $0x3f8] sm:$0xff]   ;;  %v7472_v8 = vld [vmem:[%s9654_s1 + $0x460] sm:$0xff]  }
  0x56   :  { %6743 = vmatprep.subr.bf16.mxu1 %v7413_v52  ;;  %v7454_v52 = vld [vmem:[%s9654_s1 + $0x338] sm:$0xff]  }
  0x57   :  { %v7469_v5 = vld [vmem:[%s9654_s1 + $0x4d8] sm:$0xff]  }
  0x58   :  { %6722 = vmatpush3.bf16.msra.mxu0 %v7414_v53  ;;  %v7455_v53 = vld [vmem:[%s9654_s1 + $0x3b8] sm:$0xff]  }
  0x59   :  { %6723 = vmatprep.subr.bf16.mxu0 %v7416_v55  ;;  %6744 = vmatpush3.bf16.msra.mxu1 %v7415_v54  ;;  %v1227_v54 = vrot.slane %v1212_v50, %v7975_v47  ;;  %v7456_v55 = vld [vmem:[%s9654_s1 + $0x440] sm:$0xff]   ;;  %v7493_v50 = vld [vmem:[%s9654_s1 + $0x5c8] sm:$0xff]  }
  0x5a   :  { %6745 = vmatprep.subr.bf16.mxu1 %v7417_v56  ;;  %v7457_v56 = vld [vmem:[%s9654_s1 + $0x4c0] sm:$0xff]  }
  0x5b   :  { %v1243_v59 = vcombine.high %v1227_v54, %v1227_v54 }
  0x5c   :  { %6724 = vmatpush3.bf16.msra.mxu0 %v7418_v57  ;;  %v7458_v57 = vld [vmem:[%s9654_s1 + $0x400] sm:$0xff]  }
  0x5d   :  { %6725 = vmatprep.subr.bf16.mxu0 %v7420_v3  ;;  %6746 = vmatpush3.bf16.msra.mxu1 %v7419_v0  ;;  %v7464_v0 = vld [vmem:[%s9654_s1 + $0x450] sm:$0xff]  }
  0x5e   :  { %6747 = vmatprep.subr.bf16.mxu1 %v7421_v6  ;;  %v7467_v3 = vld [vmem:[%s9654_s1 + $0x490] sm:$0xff]   ;;  %v7470_v6 = vld [vmem:[%s9654_s1 + $0x418] sm:$0xff]  }
  0x60   :  { %6726 = vmatpush3.bf16.msra.mxu0 %v7422_v9  ;;  %v7473_v9 = vld [vmem:[%s9654_s1 + $0x4e0] sm:$0xff]  }
  0x61   :  { %6755 = vmatprep.subr.bf16.mxu0 %v7424_v14  ;;  %6748 = vmatpush3.bf16.msra.mxu1 %v7423_v10  ;;  %v7474_v10 = vld [vmem:[%s9654_s1 + $0x420] sm:$0xff]   ;;  %v7478_v14 = vld [vmem:[%s9654_s1 + $0x428] sm:$0xff]  }
  0x62   :  { %6777 = vmatprep.subr.bf16.mxu1 %v7425_v17  ;;  %v7481_v17 = vld [vmem:[%s9654_s1 + $0x4f0] sm:$0xff]  }
  0x63   :  { %4983 = vmatmul.mubr.bf16.vlgmr.msra.gmra.mrb[8].mxu0 %v1220_v16  ;;  %v7480_v16 = vld [vmem:[%s9654_s1 + $0x470] sm:$0xff]  }
  0x64   :  { %6756 = vmatpush3.bf16.msra.mxu0 %v7426_v19  ;;  %5062 = vmatprep.mubr.bf16.mxu0 %v1241_v18  ;;  %v7482_v18 = vld [vmem:[%s9654_s1 + $0x430] sm:$0xff]  }
  0x65   :  { %5023 = vmatmul.mubr.bf16.vlgmr.msra.gmra.mrb[8].mxu1 %v1242_v22  ;;  %6757 = vmatprep.subr.bf16.mxu0 %v7428_v23  ;;  %v17_v19 = vld [vmem:[%s9653_s0 + $0x10] sm:$0xff] }
  0x66   :  { %6778 = vmatpush3.bf16.msra.mxu1 %v7427_v21  ;;  %5102 = vmatprep.mubr.bf16.mxu1 %v1245_v25  ;;  %v25_v21 = vld [vmem:[%s9653_s0 + $0x50] sm:$0xff] }
  0x67   :  { %6779 = vmatprep.subr.bf16.mxu1 %v7429_v24  ;;  %v33_v22 = vld [vmem:[%s9653_s0 + $0x90] sm:$0xff]  ;;  %v7484_v24 = vld [vmem:[%s9654_s1 + $0x478] sm:$0xff]   ;;  %v1246_v25 = vcombine.low %v17_v19, %v25_v21 }
  0x68   :  { %6758 = vmatpush3.bf16.msra.mxu0 %v7430_v26  ;;  %v41_v23 = vld [vmem:[%s9653_s0 + $0xd0] sm:$0xff] }
  0x69   :  { %6759 = vmatprep.subr.bf16.mxu0 %v7432_v28  ;;  %v1248_v26 = vcombine.low %v33_v22, %v41_v23  ;;  %v1249_v28 = vcombine.high %v33_v22, %v41_v23  ;;  %v7525_v22 = vld [vmem:[%s9654_s1 + $0x6c8] sm:$0xff]  }
  0x6a   :  { %6780 = vmatpush3.bf16.msra.mxu1 %v7431_v27  ;;  %v1247_v27 = vcombine.high %v17_v19, %v25_v21  ;;  %v7523_v19 = vld [vmem:[%s9654_s1 + $0x680] sm:$0xff]   ;;  %v7524_v21 = vld [vmem:[%s9654_s1 + $0x648] sm:$0xff]  }
  0x6b   :  { %6781 = vmatprep.subr.bf16.mxu1 %v7433_v29  ;;  %v7485_v29 = vld [vmem:[%s9654_s1 + $0x4f8] sm:$0xff]   ;;  %v7526_v23 = vld [vmem:[%s9654_s1 + $0x608] sm:$0xff]  }
  0x6c   :  { %6760 = vmatpush3.bf16.msra.mxu0 %v7434_v30  ;;  %v7486_v30 = vld [vmem:[%s9654_s1 + $0x438] sm:$0xff]  }
  0x6d   :  { %6761 = vmatprep.subr.bf16.mxu0 %v7436_v32  ;;  %v1270_v32 = vrot.slane %v1248_v26, %v7975_v47  ;;  %v7529_v26 = vld [vmem:[%s9654_s1 + $0x6d0] sm:$0xff]  }
  0x6e   :  { %6782 = vmatpush3.bf16.msra.mxu1 %v7435_v31  ;;  %v1256_v31 = vrot.slane %v1246_v25, %v7975_v47  ;;  %v7528_v25 = vld [vmem:[%s9654_s1 + $0x650] sm:$0xff]  }
  0x6f   :  { %6783 = vmatprep.subr.bf16.mxu1 %v7437_v33  ;;  %v8411_v33 = vrot.slane %v1247_v27, %v7975_v47  ;;  %v7530_v27 = vld [vmem:[%s9654_s1 + $0x610] sm:$0xff]  }
  0x70   :  { %6762 = vmatpush3.bf16.msra.mxu0 %v7438_v34  ;;  %v8414_v34 = vrot.slane %v1249_v28, %v7975_v47  ;;  %v7531_v28 = vld [vmem:[%s9654_s1 + $0x690] sm:$0xff]  }
  0x71   :  { %6763 = vmatprep.subr.bf16.mxu0 %v7440_v36  ;;  %v1279_v36 = vcombine.high %v1256_v31, %v1270_v32 }
  0x72   :  { %6784 = vmatpush3.bf16.msra.mxu1 %v7439_v35  ;;  %v7487_v35 = vld [vmem:[%s9654_s1 + $0x4b8] sm:$0xff]  }
  0x73   :  { %6785 = vmatprep.subr.bf16.mxu1 %v7441_v37  ;;  %v1278_v37 = vcombine.low %v1256_v31, %v1270_v32  ;;  %v7534_v31 = vld [vmem:[%s9654_s1 + $0x618] sm:$0xff]  }
  0x74   :  { %6764 = vmatpush3.bf16.msra.mxu0 %v7442_v38  ;;  %v7488_v38 = vld [vmem:[%s9654_s1 + $0x540] sm:$0xff]   ;;  %v7535_v32 = vld [vmem:[%s9654_s1 + $0x698] sm:$0xff]  }
  0x75   :  { %6765 = vmatprep.subr.bf16.mxu0 %v7444_v40  ;;  %v7489_v40 = vld [vmem:[%s9654_s1 + $0x5c0] sm:$0xff]  }
  0x76   :  { %6786 = vmatpush3.bf16.msra.mxu1 %v7443_v39  ;;  %v1281_v39 = vcombine.high %v8411_v33, %v8414_v34 }
  0x77   :  { %6787 = vmatprep.subr.bf16.mxu1 %v7445_v41  ;;  %v1302_v41 = vrot.slane %v1279_v36, %v7975_v47  ;;  %v7539_v36 = vld [vmem:[%s9654_s1 + $0x6a0] sm:$0xff]  }
  0x78   :  { %6766 = vmatpush3.bf16.msra.mxu0 %v7446_v42  ;;  %v1288_v42 = vrot.slane %v1278_v37, %v7975_v47  ;;  %v7540_v37 = vld [vmem:[%s9654_s1 + $0x668] sm:$0xff]  }
  0x79   :  { %6767 = vmatprep.subr.bf16.mxu0 %v7448_v44  ;;  %v1309_v44 = vrot.slane %v1281_v39, %v7975_v47  ;;  %v7542_v39 = vld [vmem:[%s9654_s1 + $0x628] sm:$0xff]  }
  0x7a   :  { %6788 = vmatpush3.bf16.msra.mxu1 %v7447_v43  ;;  %v7490_v43 = vld [vmem:[%s9654_s1 + $0x500] sm:$0xff]  }
  0x7b   :  { %6789 = vmatprep.subr.bf16.mxu1 %v7449_v45  ;;  %v7491_v45 = vld [vmem:[%s9654_s1 + $0x580] sm:$0xff]  }
  0x7c   :  { %6768 = vmatpush3.bf16.msra.mxu0 %v7450_v46  ;;  %v1312_v46 = vcombine.high %v1302_v41, %v1302_v41 }
  0x7d   :  { %6769 = vmatprep.subr.bf16.mxu0 %v7452_v49  ;;  %v7492_v49 = vld [vmem:[%s9654_s1 + $0x548] sm:$0xff]  }
  0x7e   :  { %6790 = vmatpush3.bf16.msra.mxu1 %v7451_v48  ;;  %v1310_v48 = vcombine.high %v1288_v42, %v1288_v42 }
  0x7f   :  { %6791 = vmatprep.subr.bf16.mxu1 %v7453_v51  ;;  %v7494_v51 = vld [vmem:[%s9654_s1 + $0x508] sm:$0xff]  }
  0x80   :  { %6770 = vmatpush3.bf16.msra.mxu0 %v7454_v52  ;;  %v1313_v52 = vcombine.high %v1309_v44, %v1309_v44 }
  0x81   :  { %6799 = vmatprep.subr.bf16.mxu0 %v7456_v55  ;;  %v7497_v55 = vld [vmem:[%s9654_s1 + $0x5d0] sm:$0xff]  }
  0x82   :  { %6792 = vmatpush3.bf16.msra.mxu1 %v7455_v53  ;;  %v7495_v53 = vld [vmem:[%s9654_s1 + $0x588] sm:$0xff]  }
  0x83   :  { %5063 = vmatmul.mubr.bf16.vlgmr.msra.gmra.mrb[12].mxu0 %v1227_v54  ;;  %6821 = vmatprep.subr.bf16.mxu1 %v7457_v56  ;;  %v7496_v54 = vld [vmem:[%s9654_s1 + $0x550] sm:$0xff]  }
  0x84   :  { %6800 = vmatpush3.bf16.msra.mxu0 %v7458_v57  ;;  %5142 = vmatprep.mubr.bf16.mxu0 %v1302_v41  ;;  %v7498_v56 = vld [vmem:[%s9654_s1 + $0x510] sm:$0xff]  }
  0x85   :  { %5103 = vmatmul.mubr.bf16.vlgmr.msra.gmra.mrb[12].mxu1 %v1243_v59  ;;  %6801 = vmatprep.subr.bf16.mxu0 %v7460_v60  ;;  %v7499_v57 = vld [vmem:[%s9654_s1 + $0x590] sm:$0xff]   ;;  %v7501_v59 = vld [vmem:[%s9654_s1 + $0x5d8] sm:$0xff]  }
  0x86   :  { %6822 = vmatpush3.bf16.msra.mxu1 %v7459_v58  ;;  %5182 = vmatprep.mubr.bf16.mxu1 %v1312_v46  ;;  %v7500_v58 = vld [vmem:[%s9654_s1 + $0x558] sm:$0xff]   ;;  %v7544_v41 = vld [vmem:[%s9654_s1 + $0x670] sm:$0xff]  }
  0x87   :  { %6823 = vmatprep.subr.bf16.mxu1 %v7461_v61  ;;  %v7502_v60 = vld [vmem:[%s9654_s1 + $0x518] sm:$0xff]  }
  0x88   :  { %6802 = vmatpush3.bf16.msra.mxu0 %v7462_v62  ;;  %v7503_v61 = vld [vmem:[%s9654_s1 + $0x598] sm:$0xff]   ;;  %v7504_v62 = vld [vmem:[%s9654_s1 + $0x560] sm:$0xff]  }
  0x89   :  { %6803 = vmatprep.subr.bf16.mxu0 %v7464_v0  ;;  %v7506_v0 = vld [vmem:[%s9654_s1 + $0x520] sm:$0xff]   ;;  %v18_v46 = vld [vmem:[%s9653_s0 + $0x18] sm:$0xff] }
  0x8a   :  { %6824 = vmatpush3.bf16.msra.mxu1 %v7463_v63  ;;  %v7505_v63 = vld [vmem:[%s9654_s1 + $0x5e0] sm:$0xff]  }
  0x8b   :  { %6825 = vmatprep.subr.bf16.mxu1 %v7465_v1  ;;  %v7507_v1 = vld [vmem:[%s9654_s1 + $0x5a0] sm:$0xff]  }
  0x8c   :  { %6804 = vmatpush3.bf16.msra.mxu0 %v7466_v2  ;;  %v7508_v2 = vld [vmem:[%s9654_s1 + $0x568] sm:$0xff]  }
  0x8d   :  { %6805 = vmatprep.subr.bf16.mxu0 %v7468_v4  ;;  %v7510_v4 = vld [vmem:[%s9654_s1 + $0x528] sm:$0xff]  }
  0x8e   :  { %6826 = vmatpush3.bf16.msra.mxu1 %v7467_v3  ;;  %v7509_v3 = vld [vmem:[%s9654_s1 + $0x5e8] sm:$0xff]  }
  0x8f   :  { %6827 = vmatprep.subr.bf16.mxu1 %v7469_v5  ;;  %v7511_v5 = vld [vmem:[%s9654_s1 + $0x5a8] sm:$0xff]  }
  0x90   :  { %6806 = vmatpush3.bf16.msra.mxu0 %v7470_v6  ;;  %v7512_v6 = vld [vmem:[%s9654_s1 + $0x570] sm:$0xff]  }
  0x91   :  { %6807 = vmatprep.subr.bf16.mxu0 %v7472_v8  ;;  %v7514_v8 = vld [vmem:[%s9654_s1 + $0x530] sm:$0xff]  }
  0x92   :  { %6828 = vmatpush3.bf16.msra.mxu1 %v7471_v7  ;;  %v7513_v7 = vld [vmem:[%s9654_s1 + $0x5f0] sm:$0xff]  }
  0x93   :  { %6829 = vmatprep.subr.bf16.mxu1 %v7473_v9  ;;  %v7515_v9 = vld [vmem:[%s9654_s1 + $0x5b0] sm:$0xff]  }
  0x94   :  { %6808 = vmatpush3.bf16.msra.mxu0 %v7474_v10  ;;  %v7516_v10 = vld [vmem:[%s9654_s1 + $0x578] sm:$0xff]  }
  0x95   :  { %6809 = vmatprep.subr.bf16.mxu0 %v7476_v12  ;;  %v7517_v12 = vld [vmem:[%s9654_s1 + $0x5f8] sm:$0xff]  }
  0x96   :  { %6830 = vmatpush3.bf16.msra.mxu1 %v7475_v11  ;;  %v1280_v11 = vcombine.low %v8411_v33, %v8414_v34  ;;  %v7536_v33 = vld [vmem:[%s9654_s1 + $0x660] sm:$0xff]  }
  0x97   :  { %6831 = vmatprep.subr.bf16.mxu1 %v7477_v13  ;;  %v7518_v13 = vld [vmem:[%s9654_s1 + $0x538] sm:$0xff]   ;;  %v7537_v34 = vld [vmem:[%s9654_s1 + $0x6e0] sm:$0xff]  }
  0x98   :  { %6810 = vmatpush3.bf16.msra.mxu0 %v7478_v14  ;;  %v7519_v14 = vld [vmem:[%s9654_s1 + $0x5b8] sm:$0xff]  }
  0x99   :  { %6811 = vmatprep.subr.bf16.mxu0 %v7480_v16  ;;  %v7520_v16 = vld [vmem:[%s9654_s1 + $0x640] sm:$0xff]  }
  0x9a   :  { %6832 = vmatpush3.bf16.msra.mxu1 %v7479_v15  ;;  %v1295_v15 = vrot.slane %v1280_v11, %v7975_v47  ;;  %v7557_v11 = vld [vmem:[%s9654_s1 + $0x7c8] sm:$0xff]  }
  0x9b   :  { %6833 = vmatprep.subr.bf16.mxu1 %v7481_v17  ;;  %v7521_v17 = vld [vmem:[%s9654_s1 + $0x6c0] sm:$0xff]  }
  0x9c   :  { %6812 = vmatpush3.bf16.msra.mxu0 %v7482_v18  ;;  %v7522_v18 = vld [vmem:[%s9654_s1 + $0x600] sm:$0xff]  }
  0x9d   :  { %6813 = vmatprep.subr.bf16.mxu0 %v7484_v24  ;;  %v7527_v24 = vld [vmem:[%s9654_s1 + $0x688] sm:$0xff]  }
  0x9e   :  { %6834 = vmatpush3.bf16.msra.mxu1 %v7483_v20  ;;  %v1311_v20 = vcombine.high %v1295_v15, %v1295_v15 }
  0x9f   :  { %6835 = vmatprep.subr.bf16.mxu1 %v7485_v29  ;;  %v7532_v29 = vld [vmem:[%s9654_s1 + $0x658] sm:$0xff]  }
  0xa0   :  { %6814 = vmatpush3.bf16.msra.mxu0 %v7486_v30  ;;  %v7533_v30 = vld [vmem:[%s9654_s1 + $0x6d8] sm:$0xff]  }
  0xa1   :  { %6843 = vmatprep.subr.bf16.mxu0 %v7488_v38  ;;  %v7541_v38 = vld [vmem:[%s9654_s1 + $0x6e8] sm:$0xff]  }
  0xa2   :  { %6836 = vmatpush3.bf16.msra.mxu1 %v7487_v35  ;;  %v7538_v35 = vld [vmem:[%s9654_s1 + $0x620] sm:$0xff]  }
  0xa3   :  { %5143 = vmatmul.mubr.bf16.vlgmr.msra.gmra.mrb[16].mxu0 %v1288_v42  ;;  %6865 = vmatprep.subr.bf16.mxu1 %v7489_v40  ;;  %v7543_v40 = vld [vmem:[%s9654_s1 + $0x6a8] sm:$0xff]   ;;  %v7545_v42 = vld [vmem:[%s9654_s1 + $0x6f0] sm:$0xff]  }
  0xa4   :  { %6844 = vmatpush3.bf16.msra.mxu0 %v7490_v43  ;;  %5222 = vmatprep.mubr.bf16.mxu0 %v1309_v44  ;;  %v7546_v43 = vld [vmem:[%s9654_s1 + $0x630] sm:$0xff]  }
  0xa5   :  { %5183 = vmatmul.mubr.bf16.vlgmr.msra.gmra.mrb[16].mxu1 %v1310_v48  ;;  %6845 = vmatprep.subr.bf16.mxu0 %v7492_v49  ;;  %v7547_v44 = vld [vmem:[%s9654_s1 + $0x6b0] sm:$0xff]   ;;  %v26_v48 = vld [vmem:[%s9653_s0 + $0x58] sm:$0xff] }
  0xa6   :  { %6866 = vmatpush3.bf16.msra.mxu1 %v7491_v45  ;;  %5262 = vmatprep.mubr.bf16.mxu1 %v1313_v52  ;;  %v7548_v45 = vld [vmem:[%s9654_s1 + $0x678] sm:$0xff]   ;;  %v1315_v52 = vcombine.high %v18_v46, %v26_v48 }
  0xa7   :  { %6867 = vmatprep.subr.bf16.mxu1 %v7493_v50  ;;  %v34_v49 = vld [vmem:[%s9653_s0 + $0x98] sm:$0xff] }
  0xa8   :  { %6846 = vmatpush3.bf16.msra.mxu0 %v7494_v51  ;;  %v42_v50 = vld [vmem:[%s9653_s0 + $0xd8] sm:$0xff]  ;;  %v1314_v51 = vcombine.low %v18_v46, %v26_v48 }
  0xa9   :  { %6847 = vmatprep.subr.bf16.mxu0 %v7496_v54  ;;  %v1316_v54 = vcombine.low %v34_v49, %v42_v50  ;;  %v7580_v46 = vld [vmem:[%s9654_s1 + $0x778] sm:$0xff]  }
  0xaa   :  { %6868 = vmatpush3.bf16.msra.mxu1 %v7495_v53  ;;  %v7549_v53 = vld [vmem:[%s9654_s1 + $0x6f8] sm:$0xff]  }
  0xab   :  { %6869 = vmatprep.subr.bf16.mxu1 %v7497_v55  ;;  %v1317_v55 = vcombine.high %v34_v49, %v42_v50  ;;  %v7581_v50 = vld [vmem:[%s9654_s1 + $0x7f8] sm:$0xff]  }
  0xac   :  { %6848 = vmatpush3.bf16.msra.mxu0 %v7498_v56  ;;  %v7550_v56 = vld [vmem:[%s9654_s1 + $0x638] sm:$0xff]  }
  0xad   :  { %6849 = vmatprep.subr.bf16.mxu0 %v7500_v58  ;;  %v8630_v58 = vrot.slane %v1315_v52, %v7975_v47  ;;  %v7582_v52 = vld [vmem:[%s9654_s1 + $0x738] sm:$0xff]  }
  0xae   :  { %6870 = vmatpush3.bf16.msra.mxu1 %v7499_v57  ;;  %v1324_v57 = vrot.slane %v1314_v51, %v7975_v47 }
  0xaf   :  { %6871 = vmatprep.subr.bf16.mxu1 %v7501_v59  ;;  %v1338_v59 = vrot.slane %v1316_v54, %v7975_v47 }
  0xb0   :  { %6850 = vmatpush3.bf16.msra.mxu0 %v7502_v60  ;;  %v7552_v60 = vld [vmem:[%s9654_s1 + $0x740] sm:$0xff]  }
  0xb1   :  { %6851 = vmatprep.subr.bf16.mxu0 %v7504_v62  ;;  %v7551_v62 = vld [vmem:[%s9654_s1 + $0x6b8] sm:$0xff]  }
  0xb2   :  { %6872 = vmatpush3.bf16.msra.mxu1 %v7503_v61  ;;  %v8637_v61 = vrot.slane %v1317_v55, %v7975_v47  ;;  %v7584_v55 = vld [vmem:[%s9654_s1 + $0x840] sm:$0xff]  }
  0xb3   :  { %6873 = vmatprep.subr.bf16.mxu1 %v7505_v63  ;;  %v1347_v63 = vcombine.high %v1324_v57, %v1338_v59 }
  0xb4   :  { %6852 = vmatpush3.bf16.msra.mxu0 %v7506_v0  ;;  %v1346_v0 = vcombine.low %v1324_v57, %v1338_v59  ;;  %v1348_v48 = vcombine.low %v8630_v58, %v8637_v61  ;;  %v7586_v57 = vld [vmem:[%s9654_s1 + $0x800] sm:$0xff]  }
  0xb5   :  { %6853 = vmatprep.subr.bf16.mxu0 %v7508_v2  ;;  %v1349_v2 = vcombine.high %v8630_v58, %v8637_v61  ;;  %v7587_v58 = vld [vmem:[%s9654_s1 + $0x880] sm:$0xff]   ;;  %v7589_v61 = vld [vmem:[%s9654_s1 + $0x8c8] sm:$0xff]  }
  0xb6   :  { %6874 = vmatpush3.bf16.msra.mxu1 %v7507_v1  ;;  %v7553_v1 = vld [vmem:[%s9654_s1 + $0x7c0] sm:$0xff]   ;;  %v1363_v54 = vrot.slane %v1348_v48, %v7975_v47 }
  0xb7   :  { %6875 = vmatprep.subr.bf16.mxu1 %v7509_v3  ;;  %v1370_v3 = vrot.slane %v1347_v63, %v7975_v47  ;;  %v7591_v63 = vld [vmem:[%s9654_s1 + $0x888] sm:$0xff]  }
  0xb8   :  { %6854 = vmatpush3.bf16.msra.mxu0 %v7510_v4  ;;  %v1356_v4 = vrot.slane %v1346_v0, %v7975_v47  ;;  %v1379_v59 = vcombine.high %v1363_v54, %v1363_v54  ;;  %v7592_v0 = vld [vmem:[%s9654_s1 + $0x850] sm:$0xff]  }
  0xb9   :  { %6855 = vmatprep.subr.bf16.mxu0 %v7512_v6  ;;  %v1377_v6 = vrot.slane %v1349_v2, %v7975_v47  ;;  %v7594_v2 = vld [vmem:[%s9654_s1 + $0x810] sm:$0xff]  }
  0xba   :  { %6876 = vmatpush3.bf16.msra.mxu1 %v7511_v5  ;;  %v7554_v5 = vld [vmem:[%s9654_s1 + $0x700] sm:$0xff]  }
  0xbb   :  { %6877 = vmatprep.subr.bf16.mxu1 %v7513_v7  ;;  %v7556_v7 = vld [vmem:[%s9654_s1 + $0x748] sm:$0xff]  }
  0xbc   :  { %6856 = vmatpush3.bf16.msra.mxu0 %v7514_v8  ;;  %v1380_v8 = vcombine.high %v1370_v3, %v1370_v3 }
  0xbd   :  { %6857 = vmatprep.subr.bf16.mxu0 %v7516_v10  ;;  %v7555_v10 = vld [vmem:[%s9654_s1 + $0x780] sm:$0xff]  }
  0xbe   :  { %6878 = vmatpush3.bf16.msra.mxu1 %v7515_v9  ;;  %v1378_v9 = vcombine.high %v1356_v4, %v1356_v4 }
  0xbf   :  { %6879 = vmatprep.subr.bf16.mxu1 %v7517_v12  ;;  %v1381_v12 = vcombine.high %v1377_v6, %v1377_v6 }
  0xc0   :  { %6858 = vmatpush3.bf16.msra.mxu0 %v7518_v13  ;;  %v7558_v13 = vld [vmem:[%s9654_s1 + $0x708] sm:$0xff]  }
  0xc1   :  { %6887 = vmatprep.subr.bf16.mxu0 %v7520_v16  ;;  %v7561_v16 = vld [vmem:[%s9654_s1 + $0x7d0] sm:$0xff]  }
  0xc2   :  { %6880 = vmatpush3.bf16.msra.mxu1 %v7519_v14  ;;  %v7560_v14 = vld [vmem:[%s9654_s1 + $0x750] sm:$0xff]  }
  0xc3   :  { %5223 = vmatmul.mubr.bf16.vlgmr.msra.gmra.mrb[20].mxu0 %v1295_v15  ;;  %6909 = vmatprep.subr.bf16.mxu1 %v7521_v17  ;;  %v7559_v15 = vld [vmem:[%s9654_s1 + $0x788] sm:$0xff]   ;;  %v7562_v17 = vld [vmem:[%s9654_s1 + $0x710] sm:$0xff]  }
  0xc4   :  { %6888 = vmatpush3.bf16.msra.mxu0 %v7522_v18  ;;  %5302 = vmatprep.mubr.bf16.mxu0 %v1370_v3  ;;  %v7564_v18 = vld [vmem:[%s9654_s1 + $0x758] sm:$0xff]   ;;  %v7595_v3 = vld [vmem:[%s9654_s1 + $0x890] sm:$0xff]  }
  0xc5   :  { %5263 = vmatmul.mubr.bf16.vlgmr.msra.gmra.mrb[20].mxu1 %v1311_v20  ;;  %6889 = vmatprep.subr.bf16.mxu0 %v7524_v21  ;;  %v7565_v20 = vld [vmem:[%s9654_s1 + $0x7d8] sm:$0xff]  }
  0xc6   :  { %6910 = vmatpush3.bf16.msra.mxu1 %v7523_v19  ;;  %5342 = vmatprep.mubr.bf16.mxu1 %v1380_v8  ;;  %v7563_v19 = vld [vmem:[%s9654_s1 + $0x790] sm:$0xff]   ;;  %v7566_v21 = vld [vmem:[%s9654_s1 + $0x718] sm:$0xff]   ;;  %v7600_v8 = vld [vmem:[%s9654_s1 + $0x860] sm:$0xff]  }
  0xc7   :  { %6911 = vmatprep.subr.bf16.mxu1 %v7525_v22  ;;  %v7568_v22 = vld [vmem:[%s9654_s1 + $0x760] sm:$0xff]  }
  0xc8   :  { %6890 = vmatpush3.bf16.msra.mxu0 %v7526_v23  ;;  %v7567_v23 = vld [vmem:[%s9654_s1 + $0x798] sm:$0xff]  }
  0xc9   :  { %6891 = vmatprep.subr.bf16.mxu0 %v7528_v25  ;;  %v7570_v25 = vld [vmem:[%s9654_s1 + $0x720] sm:$0xff]  }
  0xca   :  { %6912 = vmatpush3.bf16.msra.mxu1 %v7527_v24  ;;  %v7569_v24 = vld [vmem:[%s9654_s1 + $0x7e0] sm:$0xff]  }
  0xcb   :  { %6913 = vmatprep.subr.bf16.mxu1 %v7529_v26  ;;  %v7572_v26 = vld [vmem:[%s9654_s1 + $0x768] sm:$0xff]  }
  0xcc   :  { %6892 = vmatpush3.bf16.msra.mxu0 %v7530_v27  ;;  %v7571_v27 = vld [vmem:[%s9654_s1 + $0x7a0] sm:$0xff]  }
  0xcd   :  { %6893 = vmatprep.subr.bf16.mxu0 %v7532_v29  ;;  %v6110_v29 = vld [vmem:[%s9655_s2] ss:$0 sm:$0xff] }
  0xce   :  { %6914 = vmatpush3.bf16.msra.mxu1 %v7531_v28  ;;  %v7573_v28 = vld [vmem:[%s9654_s1 + $0x7e8] sm:$0xff]  }
  0xcf   :  { %6915 = vmatprep.subr.bf16.mxu1 %v7533_v30  ;;  %v7574_v30 = vld [vmem:[%s9654_s1 + $0x728] sm:$0xff]  }
  0xd0   :  { %6894 = vmatpush3.bf16.msra.mxu0 %v7534_v31 }
  0xd1   :  { %6895 = vmatprep.subr.bf16.mxu0 %v7536_v33 }
  0xd2   :  { %6916 = vmatpush3.bf16.msra.mxu1 %v7535_v32  ;;  %v7576_v32 = vld [vmem:[%s9654_s1 + $0x770] sm:$0xff]  }
  0xd3   :  { %6917 = vmatprep.subr.bf16.mxu1 %v7537_v34  ;;  %v7575_v34 = vld [vmem:[%s9654_s1 + $0x7a8] sm:$0xff]  }
  0xd4   :  { %6896 = vmatpush3.bf16.msra.mxu0 %v7538_v35 }
  0xd5   :  { %6897 = vmatprep.subr.bf16.mxu0 %v7540_v37 }
  0xd6   :  { %6918 = vmatpush3.bf16.msra.mxu1 %v7539_v36 }
  0xd7   :  { %6919 = vmatprep.subr.bf16.mxu1 %v7541_v38  ;;  %v7577_v38 = vld [vmem:[%s9654_s1 + $0x7f0] sm:$0xff]  }
  0xd8   :  { %6898 = vmatpush3.bf16.msra.mxu0 %v7542_v39  ;;  %v7578_v39 = vld [vmem:[%s9654_s1 + $0x730] sm:$0xff]  }
  0xd9   :  { %6899 = vmatprep.subr.bf16.mxu0 %v7544_v41 }
  0xda   :  { %6920 = vmatpush3.bf16.msra.mxu1 %v7543_v40 }
  0xdb   :  { %6921 = vmatprep.subr.bf16.mxu1 %v7545_v42  ;;  %v7579_v42 = vld [vmem:[%s9654_s1 + $0x7b0] sm:$0xff]  }
  0xdc   :  { %6900 = vmatpush3.bf16.msra.mxu0 %v7546_v43 }
  0xdd   :  { %6901 = vmatprep.subr.bf16.mxu0 %v7548_v45 }
  0xde   :  { %6922 = vmatpush3.bf16.msra.mxu1 %v7547_v44 }
  0xdf   :  { %6923 = vmatprep.subr.bf16.mxu1 %v7549_v53  ;;  %v7583_v53 = vld [vmem:[%s9654_s1 + $0x7b8] sm:$0xff]  }
  0xe0   :  { %6902 = vmatpush3.bf16.msra.mxu0 %v7550_v56  ;;  %v7585_v56 = vld [vmem:[%s9654_s1 + $0x8c0] sm:$0xff]  }
  0xe1   :  { %6931 = vmatprep.subr.bf16.mxu0 %v7552_v60  ;;  %v7588_v60 = vld [vmem:[%s9654_s1 + $0x848] sm:$0xff]  }
  0xe2   :  { %6924 = vmatpush3.bf16.msra.mxu1 %v7551_v62  ;;  %v7590_v62 = vld [vmem:[%s9654_s1 + $0x808] sm:$0xff]  }
  0xe3   :  { %6953 = vmatprep.subr.bf16.mxu1 %v7553_v1  ;;  %5303 = vmatmul.mubr.bf16.vlgmr.msra.gmra.mrb[24].mxu0 %v1356_v4  ;;  %v7593_v1 = vld [vmem:[%s9654_s1 + $0x8d0] sm:$0xff]   ;;  %v7596_v4 = vld [vmem:[%s9654_s1 + $0x858] sm:$0xff]  }
  0xe4   :  { %6932 = vmatpush3.bf16.msra.mxu0 %v7554_v5  ;;  %5382 = vmatprep.mubr.bf16.mxu0 %v1377_v6  ;;  %v7597_v5 = vld [vmem:[%s9654_s1 + $0x8d8] sm:$0xff]  }
  0xe5   :  { %5343 = vmatmul.mubr.bf16.vlgmr.msra.gmra.mrb[24].mxu1 %v1378_v9  ;;  %6933 = vmatprep.subr.bf16.mxu0 %v7556_v7  ;;  %v7598_v6 = vld [vmem:[%s9654_s1 + $0x818] sm:$0xff]   ;;  %v7601_v9 = vld [vmem:[%s9654_s1 + $0x8e0] sm:$0xff]  }
  0xe6   :  { %6954 = vmatpush3.bf16.msra.mxu1 %v7555_v10  ;;  %5422 = vmatprep.mubr.bf16.mxu1 %v1381_v12  ;;  %v7599_v7 = vld [vmem:[%s9654_s1 + $0x898] sm:$0xff]   ;;  %v7602_v10 = vld [vmem:[%s9654_s1 + $0x820] sm:$0xff]   ;;  %v7604_v12 = vld [vmem:[%s9654_s1 + $0x868] sm:$0xff]  }
  0xe7   :  { %6955 = vmatprep.subr.bf16.mxu1 %v7557_v11  ;;  %v7603_v11 = vld [vmem:[%s9654_s1 + $0x8a0] sm:$0xff]  }
  0xe8   :  { %6934 = vmatpush3.bf16.msra.mxu0 %v7558_v13  ;;  %v7605_v13 = vld [vmem:[%s9654_s1 + $0x8e8] sm:$0xff]  }
  0xe9   :  { %6935 = vmatprep.subr.bf16.mxu0 %v7560_v14  ;;  %v7606_v14 = vld [vmem:[%s9654_s1 + $0x828] sm:$0xff]  }
  0xea   :  { %6956 = vmatpush3.bf16.msra.mxu1 %v7559_v15  ;;  %v7607_v15 = vld [vmem:[%s9654_s1 + $0x8a8] sm:$0xff]  }
  0xeb   :  { %6957 = vmatprep.subr.bf16.mxu1 %v7561_v16  ;;  %v7608_v16 = vld [vmem:[%s9654_s1 + $0x870] sm:$0xff]  }
  0xec   :  { %6936 = vmatpush3.bf16.msra.mxu0 %v7562_v17 }
  0xed   :  { %6937 = vmatprep.subr.bf16.mxu0 %v7564_v18  ;;  %v7609_v18 = vld [vmem:[%s9654_s1 + $0x8f0] sm:$0xff]  }
  0xee   :  { %6958 = vmatpush3.bf16.msra.mxu1 %v7563_v19 }
  0xef   :  { %6959 = vmatprep.subr.bf16.mxu1 %v7565_v20  ;;  %v7610_v20 = vld [vmem:[%s9654_s1 + $0x830] sm:$0xff]  }
  0xf0   :  { %6938 = vmatpush3.bf16.msra.mxu0 %v7566_v21 }
  0xf1   :  { %6939 = vmatprep.subr.bf16.mxu0 %v7568_v22 }
  0xf2   :  { %6960 = vmatpush3.bf16.msra.mxu1 %v7567_v23 }
  0xf3   :  { %6961 = vmatprep.subr.bf16.mxu1 %v7569_v24 }
  0xf4   :  { %6940 = vmatpush3.bf16.msra.mxu0 %v7570_v25 }
  0xf5   :  { %6941 = vmatprep.subr.bf16.mxu0 %v7572_v26  ;;  %v7611_v26 = vld [vmem:[%s9654_s1 + $0x8b0] sm:$0xff]  }
  0xf6   :  { %v6639_v31 = vpop.f32.mrb[0].mxu0  ;;  %6962 = vmatpush3.bf16.msra.mxu1 %v7571_v27  ;;  %v7612_v27 = vld [vmem:[%s9654_s1 + $0x878] sm:$0xff]  }
  0xf7   :  { %v6640_v33 = vpop.f32.mrb[1].mxu0  ;;  %v6661_v35 = vpop.f32.mrb[0].mxu1  ;;  %6963 = vmatprep.subr.bf16.mxu1 %v7573_v28 }
  0xf8   :  { %v6641_v36 = vadd.f32 %v6640_v33, %v6639_v31  ;;  %v6642_v37 = vpop.f32.mrb[2].mxu0  ;;  %v6662_v40 = vpop.f32.mrb[1].mxu1  ;;  %6942 = vmatpush3.bf16.msra.mxu0 %v7574_v30  ;;  %v7613_v31 = vld [vmem:[%s9654_s1 + $0x8f8] sm:$0xff]   ;;  %v19_v33 = vld [vmem:[%s9653_s0 + $0x20] sm:$0xff] }
  0xf9   :  { %v6643_v41 = vpop.f32.mrb[3].mxu0  ;;  %v6663_v44 = vadd.f32 %v6662_v40, %v6661_v35  ;;  %v6664_v45 = vpop.f32.mrb[2].mxu1  ;;  %6943 = vmatprep.subr.bf16.mxu0 %v7576_v32  ;;  %v43_v37 = vld [vmem:[%s9653_s0 + $0xe0] sm:$0xff]  ;;  %v7614_v40 = vld [vmem:[%s9654_s1 + $0x838] sm:$0xff]  }
  0xfa   :  { %v4825_v43 = vadd.f32 %v6641_v36, %v6110_v29  ;;  %6964 = vmatpush3.bf16.msra.mxu1 %v7575_v34  ;;  %v6665_v49 = vpop.f32.mrb[3].mxu1  ;;  %v27_v34 = vld [vmem:[%s9653_s0 + $0x60] sm:$0xff] }
  0xfb   :  { %6965 = vmatprep.subr.bf16.mxu1 %v7577_v38  ;;  %v35_v36 = vld [vmem:[%s9653_s0 + $0xa0] sm:$0xff]  ;;  %v1382_v38 = vcombine.low %v19_v33, %v27_v34 }
  0xfc   :  { %v8739_v51 = vadd.f32 %v6663_v44, %v4825_v43  ;;  %6944 = vmatpush3.bf16.msra.mxu0 %v7578_v39  ;;  %v1383_v39 = vcombine.high %v19_v33, %v27_v34  ;;  %v1384_v41 = vcombine.low %v35_v36, %v43_v37  ;;  %v7616_v44 = vld [vmem:[%s9654_s1 + $0x940] sm:$0xff]   ;;  %v7644_v34 = vld [vmem:[%s9654_s1 + $0x978] sm:$0xff]  }
  0xfd   :  { %6945 = vmatprep.subr.bf16.mxu0 %v7580_v46  ;;  %v1392_v43 = vrot.slane %v1382_v38, %v7975_v47  ;;  %v7615_v46 = vld [vmem:[%s9654_s1 + $0x8b8] sm:$0xff]  }
  0xfe   :  { %6966 = vmatpush3.bf16.msra.mxu1 %v7579_v42  ;;  %v1385_v42 = vcombine.high %v35_v36, %v43_v37  ;;  %v8861_v45 = vrot.slane %v1383_v39, %v7975_v47  ;;  %v1406_v48 = vrot.slane %v1384_v41, %v7975_v47  ;;  %v7645_v36 = vld [vmem:[%s9654_s1 + $0x9f8] sm:$0xff]   ;;  %v7649_v41 = vld [vmem:[%s9654_s1 + $0xac0] sm:$0xff]  }
  0xff   :  { %6967 = vmatprep.subr.bf16.mxu1 %v7581_v50  ;;  %v7617_v50 = vld [vmem:[%s9654_s1 + $0x9c0] sm:$0xff]   ;;  %v7646_v37 = vld [vmem:[%s9654_s1 + $0x938] sm:$0xff]  }
 0x100   :  { %6946 = vmatpush3.bf16.msra.mxu0 %v7582_v52  ;;  %v8868_v49 = vrot.slane %v1385_v42, %v7975_v47  ;;  %v1414_v52 = vcombine.low %v1392_v43, %v1406_v48  ;;  %v7647_v38 = vld [vmem:[%s9654_s1 + $0x9b8] sm:$0xff]   ;;  %v7650_v42 = vld [vmem:[%s9654_s1 + $0xa00] sm:$0xff]  }
 0x101   :  { %6975 = vmatprep.subr.bf16.mxu0 %v7584_v55 }
 0x102   :  { %6968 = vmatpush3.bf16.msra.mxu1 %v7583_v53  ;;  %v1417_v53 = vcombine.high %v8861_v45, %v8868_v49 }
 0x103   :  { %5383 = vmatmul.mubr.bf16.vlgmr.msra.gmra.mrb[28].mxu0 %v1363_v54  ;;  %6997 = vmatprep.subr.bf16.mxu1 %v7585_v56  ;;  %v7618_v54 = vld [vmem:[%s9654_s1 + $0x900] sm:$0xff]   ;;  %v1424_v56 = vrot.slane %v1414_v52, %v7975_v47  ;;  %v7658_v52 = vld [vmem:[%s9654_s1 + $0xa10] sm:$0xff]  }
 0x104   :  { %6976 = vmatpush3.bf16.msra.mxu0 %v7586_v57  ;;  %v7619_v57 = vld [vmem:[%s9654_s1 + $0x980] sm:$0xff]  }
 0x105   :  { %5423 = vmatmul.mubr.bf16.vlgmr.msra.gmra.mrb[28].mxu1 %v1379_v59  ;;  %6977 = vmatprep.subr.bf16.mxu0 %v7588_v60  ;;  %v7620_v59 = vld [vmem:[%s9654_s1 + $0x948] sm:$0xff]  }
 0x106   :  { %6998 = vmatpush3.bf16.msra.mxu1 %v7587_v58  ;;  %v1445_v58 = vrot.slane %v1417_v53, %v7975_v47  ;;  %v7659_v53 = vld [vmem:[%s9654_s1 + $0xa90] sm:$0xff]  }
 0x107   :  { %6999 = vmatprep.subr.bf16.mxu1 %v7589_v61  ;;  %v1446_v61 = vcombine.high %v1424_v56, %v1424_v56 }
 0x108   :  { %6978 = vmatpush3.bf16.msra.mxu0 %v7590_v62  ;;  %v7621_v62 = vld [vmem:[%s9654_s1 + $0x9c8] sm:$0xff]  }
 0x109   :  { %6979 = vmatprep.subr.bf16.mxu0 %v7592_v0  ;;  %v1449_v0 = vcombine.high %v1445_v58, %v1445_v58 }
 0x10a   :  { %7000 = vmatpush3.bf16.msra.mxu1 %v7591_v63  ;;  %v7622_v63 = vld [vmem:[%s9654_s1 + $0x908] sm:$0xff]  }
 0x10b   :  { %7001 = vmatprep.subr.bf16.mxu1 %v7593_v1  ;;  %v7623_v1 = vld [vmem:[%s9654_s1 + $0x988] sm:$0xff]  }
 0x10c   :  { %6980 = vmatpush3.bf16.msra.mxu0 %v7594_v2  ;;  %v7624_v2 = vld [vmem:[%s9654_s1 + $0x950] sm:$0xff]  }
 0x10d   :  { %6981 = vmatprep.subr.bf16.mxu0 %v7596_v4  ;;  %v7626_v4 = vld [vmem:[%s9654_s1 + $0x910] sm:$0xff]  }
 0x10e   :  { %7002 = vmatpush3.bf16.msra.mxu1 %v7595_v3  ;;  %v7625_v3 = vld [vmem:[%s9654_s1 + $0x9d0] sm:$0xff]  }
 0x10f   :  { %7003 = vmatprep.subr.bf16.mxu1 %v7597_v5  ;;  %v7627_v5 = vld [vmem:[%s9654_s1 + $0x990] sm:$0xff]  }
 0x110   :  { %6982 = vmatpush3.bf16.msra.mxu0 %v7598_v6  ;;  %v7628_v6 = vld [vmem:[%s9654_s1 + $0x958] sm:$0xff]  }
 0x111   :  { %6983 = vmatprep.subr.bf16.mxu0 %v7600_v8  ;;  %v7630_v8 = vld [vmem:[%s9654_s1 + $0x918] sm:$0xff]  }
 0x112   :  { %7004 = vmatpush3.bf16.msra.mxu1 %v7599_v7  ;;  %v7629_v7 = vld [vmem:[%s9654_s1 + $0x9d8] sm:$0xff]  }
 0x113   :  { %7005 = vmatprep.subr.bf16.mxu1 %v7601_v9  ;;  %v7631_v9 = vld [vmem:[%s9654_s1 + $0x998] sm:$0xff]  }
 0x114   :  { %6984 = vmatpush3.bf16.msra.mxu0 %v7602_v10  ;;  %v7632_v10 = vld [vmem:[%s9654_s1 + $0x960] sm:$0xff]  }
 0x115   :  { %6985 = vmatprep.subr.bf16.mxu0 %v7604_v12  ;;  %v7634_v12 = vld [vmem:[%s9654_s1 + $0x920] sm:$0xff]  }
 0x116   :  { %v6683_v17 = vpop.f32.mrb[4].mxu0  ;;  %7006 = vmatpush3.bf16.msra.mxu1 %v7603_v11  ;;  %v7633_v11 = vld [vmem:[%s9654_s1 + $0x9e0] sm:$0xff]  }
 0x117   :  { %v6684_v19 = vpop.f32.mrb[5].mxu0  ;;  %v6705_v21 = vpop.f32.mrb[4].mxu1  ;;  %7007 = vmatprep.subr.bf16.mxu1 %v7605_v13  ;;  %v7635_v13 = vld [vmem:[%s9654_s1 + $0x9a0] sm:$0xff]  }
 0x118   :  { %v6685_v22 = vadd.f32 %v6684_v19, %v6683_v17  ;;  %v6686_v23 = vpop.f32.mrb[6].mxu0  ;;  %v6706_v24 = vpop.f32.mrb[5].mxu1  ;;  %6986 = vmatpush3.bf16.msra.mxu0 %v7606_v14  ;;  %v7636_v14 = vld [vmem:[%s9654_s1 + $0x968] sm:$0xff]  }
 0x119   :  { %v6687_v25 = vpop.f32.mrb[7].mxu0  ;;  %v6707_v29 = vadd.f32 %v6706_v24, %v6705_v21  ;;  %v6708_v30 = vpop.f32.mrb[6].mxu1  ;;  %6987 = vmatprep.subr.bf16.mxu0 %v7608_v16  ;;  %v7638_v17 = vld [vmem:[%s9654_s1 + $0x928] sm:$0xff]   ;;  %v7640_v23 = vld [vmem:[%s9654_s1 + $0x970] sm:$0xff]  }
 0x11a   :  { %v4905_v28 = vadd.f32 %v6685_v22, %v8739_v51  ;;  %7008 = vmatpush3.bf16.msra.mxu1 %v7607_v15  ;;  %v6709_v32 = vpop.f32.mrb[7].mxu1  ;;  %v1415_v51 = vcombine.high %v1392_v43, %v1406_v48  ;;  %v7637_v15 = vld [vmem:[%s9654_s1 + $0x9e8] sm:$0xff]   ;;  %v7641_v24 = vld [vmem:[%s9654_s1 + $0x9f0] sm:$0xff]   ;;  %v7651_v43 = vld [vmem:[%s9654_s1 + $0xa80] sm:$0xff]  }
 0x11b   :  { %7009 = vmatprep.subr.bf16.mxu1 %v7609_v18  ;;  %v7639_v19 = vld [vmem:[%s9654_s1 + $0x9a8] sm:$0xff]   ;;  %v7642_v30 = vld [vmem:[%s9654_s1 + $0x930] sm:$0xff]  }
 0x11c   :  { %v8845_v35 = vadd.f32 %v6707_v29, %v4905_v28  ;;  %6988 = vmatpush3.bf16.msra.mxu0 %v7610_v20  ;;  %v1438_v55 = vrot.slane %v1415_v51, %v7975_v47  ;;  %v7643_v32 = vld [vmem:[%s9654_s1 + $0x9b0] sm:$0xff]   ;;  %v7654_v48 = vld [vmem:[%s9654_s1 + $0xa08] sm:$0xff]  }
 0x11d   :  { %6989 = vmatprep.subr.bf16.mxu0 %v7612_v27  ;;  %v7657_v51 = vld [vmem:[%s9654_s1 + $0xad0] sm:$0xff]  }
 0x11e   :  { %7010 = vmatpush3.bf16.msra.mxu1 %v7611_v26  ;;  %5462 = vmatprep.mubr.bf16.mxu0 %v1438_v55  ;;  %v1448_v60 = vcombine.high %v1438_v55, %v1438_v55  ;;  %v7661_v55 = vld [vmem:[%s9654_s1 + $0xad8] sm:$0xff]  }
 0x11f   :  { %7011 = vmatprep.subr.bf16.mxu1 %v7613_v31 }
 0x120   :  { %6990 = vmatpush3.bf16.msra.mxu0 %v7614_v40  ;;  %5502 = vmatprep.mubr.bf16.mxu1 %v1448_v60  ;;  %v7648_v40 = vld [vmem:[%s9654_s1 + $0xa40] sm:$0xff]  }
 0x121   :  { %7019 = vmatprep.subr.bf16.mxu0 %v7616_v44  ;;  %v7666_v60 = vld [vmem:[%s9654_s1 + $0xa20] sm:$0xff]  }
 0x122   :  { %7012 = vmatpush3.bf16.msra.mxu1 %v7615_v46  ;;  %v7653_v46 = vld [vmem:[%s9654_s1 + $0xac8] sm:$0xff]  }
 0x123   :  { %7041 = vmatprep.subr.bf16.mxu1 %v7617_v50  ;;  %5463 = vmatmul.mubr.bf16.vlgmr.msra.gmra.mrb[32].mxu0 %v1424_v56  ;;  %v7656_v50 = vld [vmem:[%s9654_s1 + $0xa50] sm:$0xff]   ;;  %v7662_v56 = vld [vmem:[%s9654_s1 + $0xa18] sm:$0xff]  }
 0x124   :  { %7020 = vmatpush3.bf16.msra.mxu0 %v7618_v54  ;;  %5542 = vmatprep.mubr.bf16.mxu0 %v1445_v58  ;;  %v7660_v54 = vld [vmem:[%s9654_s1 + $0xa58] sm:$0xff]   ;;  %v7664_v58 = vld [vmem:[%s9654_s1 + $0xa60] sm:$0xff]  }
 0x125   :  { %5503 = vmatmul.mubr.bf16.vlgmr.msra.gmra.mrb[32].mxu1 %v1446_v61  ;;  %7021 = vmatprep.subr.bf16.mxu0 %v7620_v59  ;;  %v7665_v59 = vld [vmem:[%s9654_s1 + $0xae0] sm:$0xff]  }
 0x126   :  { %7042 = vmatpush3.bf16.msra.mxu1 %v7619_v57  ;;  %5582 = vmatprep.mubr.bf16.mxu1 %v1449_v0  ;;  %v7663_v57 = vld [vmem:[%s9654_s1 + $0xa98] sm:$0xff]   ;;  %v7667_v61 = vld [vmem:[%s9654_s1 + $0xaa0] sm:$0xff]  }
 0x127   :  { %7043 = vmatprep.subr.bf16.mxu1 %v7621_v62  ;;  %v7668_v62 = vld [vmem:[%s9654_s1 + $0xa68] sm:$0xff]  }
 0x128   :  { %7022 = vmatpush3.bf16.msra.mxu0 %v7622_v63  ;;  %v7669_v63 = vld [vmem:[%s9654_s1 + $0xae8] sm:$0xff]  }
 0x129   :  { %7023 = vmatprep.subr.bf16.mxu0 %v7624_v2 }
 0x12a   :  { %7044 = vmatpush3.bf16.msra.mxu1 %v7623_v1  ;;  %v7670_v1 = vld [vmem:[%s9654_s1 + $0xa28] sm:$0xff]  }
 0x12b   :  { %7045 = vmatprep.subr.bf16.mxu1 %v7625_v3  ;;  %v7672_v3 = vld [vmem:[%s9654_s1 + $0xa70] sm:$0xff]  }
 0x12c   :  { %7024 = vmatpush3.bf16.msra.mxu0 %v7626_v4 }
 0x12d   :  { %7025 = vmatprep.subr.bf16.mxu0 %v7628_v6 }
 0x12e   :  { %7046 = vmatpush3.bf16.msra.mxu1 %v7627_v5 }
 0x12f   :  { %7047 = vmatprep.subr.bf16.mxu1 %v7629_v7 }
 0x130   :  { %7026 = vmatpush3.bf16.msra.mxu0 %v7630_v8  ;;  %v7671_v8 = vld [vmem:[%s9654_s1 + $0xaa8] sm:$0xff]  }
 0x131   :  { %7027 = vmatprep.subr.bf16.mxu0 %v7632_v10  ;;  %v7673_v10 = vld [vmem:[%s9654_s1 + $0xaf0] sm:$0xff]  }
 0x132   :  { %7048 = vmatpush3.bf16.msra.mxu1 %v7631_v9 }
 0x133   :  { %7049 = vmatprep.subr.bf16.mxu1 %v7633_v11 }
 0x134   :  { %7028 = vmatpush3.bf16.msra.mxu0 %v7634_v12 }
 0x135   :  { %7029 = vmatprep.subr.bf16.mxu0 %v7636_v14  ;;  %v7674_v14 = vld [vmem:[%s9654_s1 + $0xa30] sm:$0xff]  }
 0x136   :  { %v6727_v16 = vpop.f32.mrb[8].mxu0  ;;  %7050 = vmatpush3.bf16.msra.mxu1 %v7635_v13 }
 0x137   :  { %v6728_v18 = vpop.f32.mrb[9].mxu0  ;;  %7051 = vmatprep.subr.bf16.mxu1 %v7637_v15 }
 0x138   :  { %v6749_v20 = vpop.f32.mrb[8].mxu1  ;;  %v6729_v21 = vadd.f32 %v6728_v18, %v6727_v16  ;;  %v6730_v22 = vpop.f32.mrb[10].mxu0  ;;  %7030 = vmatpush3.bf16.msra.mxu0 %v7638_v17  ;;  %v7675_v16 = vld [vmem:[%s9654_s1 + $0xab0] sm:$0xff]   ;;  %v7676_v17 = vld [vmem:[%s9654_s1 + $0xa78] sm:$0xff]  }
 0x139   :  { %v6750_v25 = vpop.f32.mrb[9].mxu1  ;;  %v6731_v26 = vpop.f32.mrb[11].mxu0  ;;  %7031 = vmatprep.subr.bf16.mxu0 %v7640_v23  ;;  %v36_v22 = vld [vmem:[%s9653_s0 + $0xa8] sm:$0xff] }
 0x13a   :  { %v4985_v27 = vadd.f32 %v6729_v21, %v8845_v35  ;;  %v6751_v28 = vadd.f32 %v6750_v25, %v6749_v20  ;;  %v6752_v29 = vpop.f32.mrb[10].mxu1  ;;  %v1416_v35 = vcombine.low %v8861_v45, %v8868_v49  ;;  %7052 = vmatpush3.bf16.msra.mxu1 %v7639_v19  ;;  %v7652_v45 = vld [vmem:[%s9654_s1 + $0xa48] sm:$0xff]   ;;  %v7677_v19 = vld [vmem:[%s9654_s1 + $0xaf8] sm:$0xff]  }
 0x13b   :  { %v6753_v31 = vpop.f32.mrb[11].mxu1  ;;  %7053 = vmatprep.subr.bf16.mxu1 %v7641_v24  ;;  %v7655_v49 = vld [vmem:[%s9654_s1 + $0xa88] sm:$0xff]   ;;  %v7678_v26 = vld [vmem:[%s9654_s1 + $0xa38] sm:$0xff]  }
 0x13c   :  { %v8957_v33 = vadd.f32 %v6751_v28, %v4985_v27  ;;  %7032 = vmatpush3.bf16.msra.mxu0 %v7642_v30  ;;  %v1431_v39 = vrot.slane %v1416_v35, %v7975_v47  ;;  %v20_v20 = vld [vmem:[%s9653_s0 + $0x28] sm:$0xff]  ;;  %v7680_v30 = vld [vmem:[%s9654_s1 + $0xb40] sm:$0xff]  }
 0x13d   :  { %7033 = vmatprep.subr.bf16.mxu0 %v7644_v34  ;;  %v28_v21 = vld [vmem:[%s9653_s0 + $0x68] sm:$0xff]  ;;  %v7681_v35 = vld [vmem:[%s9654_s1 + $0xbc0] sm:$0xff]  }
 0x13e   :  { %7054 = vmatpush3.bf16.msra.mxu1 %v7643_v32  ;;  %v1447_v44 = vcombine.high %v1431_v39, %v1431_v39  ;;  %v44_v23 = vld [vmem:[%s9653_s0 + $0xe8] sm:$0xff]  ;;  %v1450_v24 = vcombine.low %v20_v20, %v28_v21  ;;  %v1451_v25 = vcombine.high %v20_v20, %v28_v21  ;;  %v7679_v32 = vld [vmem:[%s9654_s1 + $0xab8] sm:$0xff]  }
 0x13f   :  { %7055 = vmatprep.subr.bf16.mxu1 %v7645_v36  ;;  %v1452_v27 = vcombine.low %v36_v22, %v44_v23  ;;  %v1453_v28 = vcombine.high %v36_v22, %v44_v23  ;;  %v7708_v20 = vld [vmem:[%s9654_s1 + $0xb78] sm:$0xff]  }
 0x140   :  { %7034 = vmatpush3.bf16.msra.mxu0 %v7646_v37  ;;  %v1460_v29 = vrot.slane %v1450_v24, %v7975_v47  ;;  %v9087_v31 = vrot.slane %v1451_v25, %v7975_v47  ;;  %v7709_v22 = vld [vmem:[%s9654_s1 + $0xbf8] sm:$0xff]  }
 0x141   :  { %7063 = vmatprep.subr.bf16.mxu0 %v7648_v40  ;;  %v9094_v34 = vrot.slane %v1453_v28, %v7975_v47  ;;  %v7710_v23 = vld [vmem:[%s9654_s1 + $0xb38] sm:$0xff]   ;;  %v7714_v28 = vld [vmem:[%s9654_s1 + $0xc00] sm:$0xff]  }
 0x142   :  { %7056 = vmatpush3.bf16.msra.mxu1 %v7647_v38  ;;  %v7711_v24 = vld [vmem:[%s9654_s1 + $0xbb8] sm:$0xff]  }
 0x143   :  { %5543 = vmatmul.mubr.bf16.vlgmr.msra.gmra.mrb[36].mxu0 %v1431_v39  ;;  %7085 = vmatprep.subr.bf16.mxu1 %v7649_v41  ;;  %v1485_v38 = vcombine.high %v9087_v31, %v9094_v34  ;;  %v7682_v41 = vld [vmem:[%s9654_s1 + $0xb00] sm:$0xff]   ;;  %v1484_v21 = vcombine.low %v9087_v31, %v9094_v34  ;;  %v7716_v31 = vld [vmem:[%s9654_s1 + $0xc48] sm:$0xff]  }
 0x144   :  { %7064 = vmatpush3.bf16.msra.mxu0 %v7650_v42  ;;  %v7719_v34 = vld [vmem:[%s9654_s1 + $0xc88] sm:$0xff]  }
 0x145   :  { %5583 = vmatmul.mubr.bf16.vlgmr.msra.gmra.mrb[36].mxu1 %v1447_v44  ;;  %7065 = vmatprep.subr.bf16.mxu0 %v7652_v45  ;;  %v1513_v42 = vrot.slane %v1485_v38, %v7975_v47  ;;  %v1499_v25 = vrot.slane %v1484_v21, %v7975_v47  ;;  %v7723_v38 = vld [vmem:[%s9654_s1 + $0xc90] sm:$0xff]   ;;  %v7745_v21 = vld [vmem:[%s9654_s1 + $0xdc0] sm:$0xff]  }
 0x146   :  { %7086 = vmatpush3.bf16.msra.mxu1 %v7651_v43  ;;  %v7684_v43 = vld [vmem:[%s9654_s1 + $0xb48] sm:$0xff]  }
 0x147   :  { %7087 = vmatprep.subr.bf16.mxu1 %v7653_v46  ;;  %v7683_v46 = vld [vmem:[%s9654_s1 + $0xb80] sm:$0xff]  }
 0x148   :  { %7066 = vmatpush3.bf16.msra.mxu0 %v7654_v48  ;;  %v7685_v48 = vld [vmem:[%s9654_s1 + $0xbc8] sm:$0xff]  }
 0x149   :  { %7067 = vmatprep.subr.bf16.mxu0 %v7656_v50  ;;  %v7686_v50 = vld [vmem:[%s9654_s1 + $0xb08] sm:$0xff]  }
 0x14a   :  { %7088 = vmatpush3.bf16.msra.mxu1 %v7655_v49  ;;  %v1517_v49 = vcombine.high %v1513_v42, %v1513_v42 }
 0x14b   :  { %7089 = vmatprep.subr.bf16.mxu1 %v7657_v51  ;;  %v7688_v51 = vld [vmem:[%s9654_s1 + $0xb50] sm:$0xff]  }
 0x14c   :  { %7068 = vmatpush3.bf16.msra.mxu0 %v7658_v52  ;;  %v7687_v52 = vld [vmem:[%s9654_s1 + $0xb88] sm:$0xff]  }
 0x14d   :  { %7069 = vmatprep.subr.bf16.mxu0 %v7660_v54  ;;  %v7690_v54 = vld [vmem:[%s9654_s1 + $0xb10] sm:$0xff]  }
 0x14e   :  { %7090 = vmatpush3.bf16.msra.mxu1 %v7659_v53  ;;  %v7689_v53 = vld [vmem:[%s9654_s1 + $0xbd0] sm:$0xff]  }
 0x14f   :  { %7091 = vmatprep.subr.bf16.mxu1 %v7661_v55  ;;  %v7692_v55 = vld [vmem:[%s9654_s1 + $0xb58] sm:$0xff]  }
 0x150   :  { %7070 = vmatpush3.bf16.msra.mxu0 %v7662_v56  ;;  %v7691_v56 = vld [vmem:[%s9654_s1 + $0xb90] sm:$0xff]  }
 0x151   :  { %7071 = vmatprep.subr.bf16.mxu0 %v7664_v58  ;;  %v7694_v58 = vld [vmem:[%s9654_s1 + $0xb18] sm:$0xff]  }
 0x152   :  { %7092 = vmatpush3.bf16.msra.mxu1 %v7663_v57  ;;  %v7693_v57 = vld [vmem:[%s9654_s1 + $0xbd8] sm:$0xff]  }
 0x153   :  { %7093 = vmatprep.subr.bf16.mxu1 %v7665_v59  ;;  %v7696_v59 = vld [vmem:[%s9654_s1 + $0xb60] sm:$0xff]  }
 0x154   :  { %7072 = vmatpush3.bf16.msra.mxu0 %v7666_v60  ;;  %v7695_v60 = vld [vmem:[%s9654_s1 + $0xb98] sm:$0xff]  }
 0x155   :  { %7073 = vmatprep.subr.bf16.mxu0 %v7668_v62  ;;  %v7698_v62 = vld [vmem:[%s9654_s1 + $0xb20] sm:$0xff]  }
 0x156   :  { %v6771_v0 = vpop.f32.mrb[12].mxu0  ;;  %7094 = vmatpush3.bf16.msra.mxu1 %v7667_v61  ;;  %v7697_v61 = vld [vmem:[%s9654_s1 + $0xbe0] sm:$0xff]  }
 0x157   :  { %v6772_v2 = vpop.f32.mrb[13].mxu0  ;;  %7095 = vmatprep.subr.bf16.mxu1 %v7669_v63 }
 0x158   :  { %v6793_v4 = vpop.f32.mrb[12].mxu1  ;;  %v6773_v5 = vadd.f32 %v6772_v2, %v6771_v0  ;;  %v6774_v6 = vpop.f32.mrb[14].mxu0  ;;  %7074 = vmatpush3.bf16.msra.mxu0 %v7670_v1  ;;  %v7700_v0 = vld [vmem:[%s9654_s1 + $0xb68] sm:$0xff]   ;;  %v7699_v1 = vld [vmem:[%s9654_s1 + $0xba0] sm:$0xff]  }
 0x159   :  { %v6794_v7 = vpop.f32.mrb[13].mxu1  ;;  %v6775_v9 = vpop.f32.mrb[15].mxu0  ;;  %7075 = vmatprep.subr.bf16.mxu0 %v7672_v3 }
 0x15a   :  { %v5065_v11 = vadd.f32 %v6773_v5, %v8957_v33  ;;  %v6795_v12 = vadd.f32 %v6794_v7, %v6793_v4  ;;  %v6796_v13 = vpop.f32.mrb[14].mxu1  ;;  %7096 = vmatpush3.bf16.msra.mxu1 %v7671_v8  ;;  %v1474_v33 = vrot.slane %v1452_v27, %v7975_v47  ;;  %v7701_v5 = vld [vmem:[%s9654_s1 + $0xbe8] sm:$0xff]   ;;  %v7713_v27 = vld [vmem:[%s9654_s1 + $0xcc0] sm:$0xff]  }
 0x15b   :  { %v6797_v15 = vpop.f32.mrb[15].mxu1  ;;  %7097 = vmatprep.subr.bf16.mxu1 %v7673_v10  ;;  %v7702_v7 = vld [vmem:[%s9654_s1 + $0xb28] sm:$0xff]  }
 0x15c   :  { %v9062_v18 = vadd.f32 %v6795_v12, %v5065_v11  ;;  %7076 = vmatpush3.bf16.msra.mxu0 %v7674_v14  ;;  %v1483_v36 = vcombine.high %v1460_v29, %v1474_v33  ;;  %v1482_v37 = vcombine.low %v1460_v29, %v1474_v33  ;;  %v7703_v9 = vld [vmem:[%s9654_s1 + $0xba8] sm:$0xff]   ;;  %v7704_v14 = vld [vmem:[%s9654_s1 + $0xb70] sm:$0xff]   ;;  %v7715_v29 = vld [vmem:[%s9654_s1 + $0xc80] sm:$0xff]  }
 0x15d   :  { %7077 = vmatprep.subr.bf16.mxu0 %v7676_v17  ;;  %v7718_v33 = vld [vmem:[%s9654_s1 + $0xc08] sm:$0xff]  }
 0x15e   :  { %7098 = vmatpush3.bf16.msra.mxu1 %v7675_v16  ;;  %v1506_v39 = vrot.slane %v1483_v36, %v7975_v47  ;;  %v1492_v40 = vrot.slane %v1482_v37, %v7975_v47  ;;  %v7705_v16 = vld [vmem:[%s9654_s1 + $0xbf0] sm:$0xff]  }
 0x15f   :  { %7099 = vmatprep.subr.bf16.mxu1 %v7677_v19  ;;  %v7707_v19 = vld [vmem:[%s9654_s1 + $0xbb0] sm:$0xff]  }
 0x160   :  { %7078 = vmatpush3.bf16.msra.mxu0 %v7678_v26  ;;  %5622 = vmatprep.mubr.bf16.mxu0 %v1506_v39  ;;  %v1516_v44 = vcombine.high %v1506_v39, %v1506_v39  ;;  %v1514_v45 = vcombine.high %v1492_v40, %v1492_v40  ;;  %v7712_v26 = vld [vmem:[%s9654_s1 + $0xc40] sm:$0xff]   ;;  %v7721_v36 = vld [vmem:[%s9654_s1 + $0xcd0] sm:$0xff]   ;;  %v7724_v39 = vld [vmem:[%s9654_s1 + $0xc58] sm:$0xff]  }
 0x161   :  { %7107 = vmatprep.subr.bf16.mxu0 %v7680_v30  ;;  %v1515_v30 = vcombine.high %v1499_v25, %v1499_v25  ;;  %v7722_v37 = vld [vmem:[%s9654_s1 + $0xc10] sm:$0xff]  }
 0x162   :  { %7100 = vmatpush3.bf16.msra.mxu1 %v7679_v32  ;;  %5662 = vmatprep.mubr.bf16.mxu1 %v1516_v44  ;;  %v7717_v32 = vld [vmem:[%s9654_s1 + $0xcc8] sm:$0xff]   ;;  %v7729_v44 = vld [vmem:[%s9654_s1 + $0xce0] sm:$0xff]  }
 0x163   :  { %7129 = vmatprep.subr.bf16.mxu1 %v7681_v35  ;;  %5623 = vmatmul.mubr.bf16.vlgmr.msra.gmra.mrb[40].mxu0 %v1492_v40  ;;  %v7720_v35 = vld [vmem:[%s9654_s1 + $0xc50] sm:$0xff]   ;;  %v7725_v40 = vld [vmem:[%s9654_s1 + $0xcd8] sm:$0xff]  }
 0x164   :  { %7108 = vmatpush3.bf16.msra.mxu0 %v7682_v41  ;;  %5702 = vmatprep.mubr.bf16.mxu0 %v1513_v42  ;;  %v7726_v41 = vld [vmem:[%s9654_s1 + $0xc18] sm:$0xff]  }
 0x165   :  { %5663 = vmatmul.mubr.bf16.vlgmr.msra.gmra.mrb[40].mxu1 %v1514_v45  ;;  %7109 = vmatprep.subr.bf16.mxu0 %v7684_v43  ;;  %v7727_v42 = vld [vmem:[%s9654_s1 + $0xc98] sm:$0xff]   ;;  %v7728_v43 = vld [vmem:[%s9654_s1 + $0xc60] sm:$0xff]  }
 0x166   :  { %7130 = vmatpush3.bf16.msra.mxu1 %v7683_v46  ;;  %5742 = vmatprep.mubr.bf16.mxu1 %v1517_v49  ;;  %v7730_v45 = vld [vmem:[%s9654_s1 + $0xc20] sm:$0xff]  }
 0x167   :  { %7131 = vmatprep.subr.bf16.mxu1 %v7685_v48  ;;  %v7731_v46 = vld [vmem:[%s9654_s1 + $0xca0] sm:$0xff]   ;;  %v7732_v48 = vld [vmem:[%s9654_s1 + $0xc68] sm:$0xff]  }
 0x168   :  { %7110 = vmatpush3.bf16.msra.mxu0 %v7686_v50  ;;  %v7733_v50 = vld [vmem:[%s9654_s1 + $0xce8] sm:$0xff]  }
 0x169   :  { %7111 = vmatprep.subr.bf16.mxu0 %v7688_v51 }
 0x16a   :  { %7132 = vmatpush3.bf16.msra.mxu1 %v7687_v52  ;;  %v7734_v52 = vld [vmem:[%s9654_s1 + $0xc28] sm:$0xff]  }
 0x16b   :  { %7133 = vmatprep.subr.bf16.mxu1 %v7689_v53 }
 0x16c   :  { %7112 = vmatpush3.bf16.msra.mxu0 %v7690_v54 }
 0x16d   :  { %7113 = vmatprep.subr.bf16.mxu0 %v7692_v55 }
 0x16e   :  { %7134 = vmatpush3.bf16.msra.mxu1 %v7691_v56 }
 0x16f   :  { %7135 = vmatprep.subr.bf16.mxu1 %v7693_v57  ;;  %v7735_v57 = vld [vmem:[%s9654_s1 + $0xca8] sm:$0xff]  }
 0x170   :  { %7114 = vmatpush3.bf16.msra.mxu0 %v7694_v58 }
 0x171   :  { %7115 = vmatprep.subr.bf16.mxu0 %v7696_v59  ;;  %v7736_v59 = vld [vmem:[%s9654_s1 + $0xc70] sm:$0xff]  }
 0x172   :  { %7136 = vmatpush3.bf16.msra.mxu1 %v7695_v60 }
 0x173   :  { %7137 = vmatprep.subr.bf16.mxu1 %v7697_v61 }
 0x174   :  { %7116 = vmatpush3.bf16.msra.mxu0 %v7698_v62 }
 0x175   :  { %7117 = vmatprep.subr.bf16.mxu0 %v7700_v0 }
 0x176   :  { %v6815_v63 = vpop.f32.mrb[16].mxu0  ;;  %7138 = vmatpush3.bf16.msra.mxu1 %v7699_v1  ;;  %v7738_v1 = vld [vmem:[%s9654_s1 + $0xc30] sm:$0xff]  }
 0x177   :  { %v6816_v2 = vpop.f32.mrb[17].mxu0  ;;  %7139 = vmatprep.subr.bf16.mxu1 %v7701_v5  ;;  %v7741_v5 = vld [vmem:[%s9654_s1 + $0xcf8] sm:$0xff]  }
 0x178   :  { %v6837_v3 = vpop.f32.mrb[16].mxu1  ;;  %v6817_v4 = vadd.f32 %v6816_v2, %v6815_v63  ;;  %v6818_v6 = vpop.f32.mrb[18].mxu0  ;;  %7118 = vmatpush3.bf16.msra.mxu0 %v7702_v7  ;;  %v7737_v63 = vld [vmem:[%s9654_s1 + $0xcf0] sm:$0xff]  }
 0x179   :  { %v6838_v8 = vpop.f32.mrb[17].mxu1  ;;  %v6819_v10 = vpop.f32.mrb[19].mxu0  ;;  %7119 = vmatprep.subr.bf16.mxu0 %v7704_v14  ;;  %v21_v6 = vld [vmem:[%s9653_s0 + $0x30] sm:$0xff] }
 0x17a   :  { %v5145_v11 = vadd.f32 %v6817_v4, %v9062_v18  ;;  %v6839_v12 = vadd.f32 %v6838_v8, %v6837_v3  ;;  %v6840_v13 = vpop.f32.mrb[18].mxu1  ;;  %v7706_v18 = vld [vmem:[%s9654_s1 + $0xb30] sm:$0xff]   ;;  %7140 = vmatpush3.bf16.msra.mxu1 %v7703_v9  ;;  %v7740_v4 = vld [vmem:[%s9654_s1 + $0xc78] sm:$0xff]  }
 0x17b   :  { %v6841_v15 = vpop.f32.mrb[19].mxu1  ;;  %7141 = vmatprep.subr.bf16.mxu1 %v7705_v16  ;;  %v7739_v3 = vld [vmem:[%s9654_s1 + $0xcb0] sm:$0xff]   ;;  %v7744_v16 = vld [vmem:[%s9654_s1 + $0xd40] sm:$0xff]  }
 0x17c   :  { %v9177_v17 = vadd.f32 %v6839_v12, %v5145_v11  ;;  %7120 = vmatpush3.bf16.msra.mxu0 %v7706_v18  ;;  %v29_v7 = vld [vmem:[%s9653_s0 + $0x70] sm:$0xff]  ;;  %v7742_v12 = vld [vmem:[%s9654_s1 + $0xc38] sm:$0xff]  }
 0x17d   :  { %7121 = vmatprep.subr.bf16.mxu0 %v7708_v20  ;;  %v37_v8 = vld [vmem:[%s9653_s0 + $0xb0] sm:$0xff]  ;;  %v1518_v10 = vcombine.low %v21_v6, %v29_v7  ;;  %v1519_v11 = vcombine.high %v21_v6, %v29_v7  ;;  %v7743_v18 = vld [vmem:[%s9654_s1 + $0xcb8] sm:$0xff]  }
 0x17e   :  { %7142 = vmatpush3.bf16.msra.mxu1 %v7707_v19  ;;  %v45_v9 = vld [vmem:[%s9653_s0 + $0xf0] sm:$0xff]  ;;  %v7772_v6 = vld [vmem:[%s9654_s1 + $0xd78] sm:$0xff]  }
 0x17f   :  { %7143 = vmatprep.subr.bf16.mxu1 %v7709_v22  ;;  %v1520_v13 = vcombine.low %v37_v8, %v45_v9  ;;  %v1521_v14 = vcombine.high %v37_v8, %v45_v9  ;;  %v1528_v15 = vrot.slane %v1518_v10, %v7975_v47  ;;  %v7773_v8 = vld [vmem:[%s9654_s1 + $0xdf8] sm:$0xff]  }
 0x180   :  { %7122 = vmatpush3.bf16.msra.mxu0 %v7710_v23  ;;  %v7774_v9 = vld [vmem:[%s9654_s1 + $0xd38] sm:$0xff]  }
 0x181   :  { %7151 = vmatprep.subr.bf16.mxu0 %v7712_v26  ;;  %v1542_v19 = vrot.slane %v1520_v13, %v7975_v47  ;;  %v9320_v20 = vrot.slane %v1521_v14, %v7975_v47  ;;  %v7775_v10 = vld [vmem:[%s9654_s1 + $0xdb8] sm:$0xff]   ;;  %v7777_v13 = vld [vmem:[%s9654_s1 + $0xec0] sm:$0xff]  }
 0x182   :  { %7144 = vmatpush3.bf16.msra.mxu1 %v7711_v24  ;;  %v7778_v14 = vld [vmem:[%s9654_s1 + $0xe00] sm:$0xff]  }
 0x183   :  { %5703 = vmatmul.mubr.bf16.vlgmr.msra.gmra.mrb[44].mxu0 %v1499_v25  ;;  %7173 = vmatprep.subr.bf16.mxu1 %v7713_v27  ;;  %v1551_v22 = vcombine.high %v1528_v15, %v1542_v19  ;;  %v1550_v23 = vcombine.low %v1528_v15, %v1542_v19  ;;  %v7746_v25 = vld [vmem:[%s9654_s1 + $0xd00] sm:$0xff]   ;;  %v7782_v19 = vld [vmem:[%s9654_s1 + $0xe08] sm:$0xff]  }
 0x184   :  { %7152 = vmatpush3.bf16.msra.mxu0 %v7714_v28  ;;  %v7747_v28 = vld [vmem:[%s9654_s1 + $0xd80] sm:$0xff]  }
 0x185   :  { %5743 = vmatmul.mubr.bf16.vlgmr.msra.gmra.mrb[44].mxu1 %v1515_v30  ;;  %7153 = vmatprep.subr.bf16.mxu0 %v7716_v31  ;;  %v1574_v26 = vrot.slane %v1551_v22, %v7975_v47  ;;  %v1560_v27 = vrot.slane %v1550_v23, %v7975_v47  ;;  %v7748_v30 = vld [vmem:[%s9654_s1 + $0xd48] sm:$0xff]   ;;  %v7779_v15 = vld [vmem:[%s9654_s1 + $0xe80] sm:$0xff]   ;;  %v7785_v22 = vld [vmem:[%s9654_s1 + $0xed0] sm:$0xff]  }
 0x186   :  { %7174 = vmatpush3.bf16.msra.mxu1 %v7715_v29  ;;  %v7786_v23 = vld [vmem:[%s9654_s1 + $0xe10] sm:$0xff]  }
 0x187   :  { %7175 = vmatprep.subr.bf16.mxu1 %v7717_v32  ;;  %5782 = vmatprep.mubr.bf16.mxu0 %v1574_v26  ;;  %v1584_v31 = vcombine.high %v1574_v26, %v1574_v26  ;;  %v1582_v32 = vcombine.high %v1560_v27, %v1560_v27  ;;  %v7789_v26 = vld [vmem:[%s9654_s1 + $0xed8] sm:$0xff]  }
 0x188   :  { %7154 = vmatpush3.bf16.msra.mxu0 %v7718_v33  ;;  %v7749_v33 = vld [vmem:[%s9654_s1 + $0xdc8] sm:$0xff]  }
 0x189   :  { %7155 = vmatprep.subr.bf16.mxu0 %v7720_v35  ;;  %5822 = vmatprep.mubr.bf16.mxu1 %v1584_v31  ;;  %v7794_v31 = vld [vmem:[%s9654_s1 + $0xe20] sm:$0xff]  }
 0x18a   :  { %7176 = vmatpush3.bf16.msra.mxu1 %v7719_v34  ;;  %v7750_v34 = vld [vmem:[%s9654_s1 + $0xd08] sm:$0xff]  }
 0x18b   :  { %7177 = vmatprep.subr.bf16.mxu1 %v7721_v36  ;;  %v7751_v36 = vld [vmem:[%s9654_s1 + $0xd88] sm:$0xff]  }
 0x18c   :  { %7156 = vmatpush3.bf16.msra.mxu0 %v7722_v37  ;;  %v7752_v37 = vld [vmem:[%s9654_s1 + $0xd50] sm:$0xff]  }
 0x18d   :  { %7157 = vmatprep.subr.bf16.mxu0 %v7724_v39  ;;  %v7754_v39 = vld [vmem:[%s9654_s1 + $0xd10] sm:$0xff]  }
 0x18e   :  { %7178 = vmatpush3.bf16.msra.mxu1 %v7723_v38  ;;  %v7753_v38 = vld [vmem:[%s9654_s1 + $0xdd0] sm:$0xff]  }
 0x18f   :  { %7179 = vmatprep.subr.bf16.mxu1 %v7725_v40  ;;  %v7755_v40 = vld [vmem:[%s9654_s1 + $0xd90] sm:$0xff]  }
 0x190   :  { %7158 = vmatpush3.bf16.msra.mxu0 %v7726_v41  ;;  %v7756_v41 = vld [vmem:[%s9654_s1 + $0xd58] sm:$0xff]  }
 0x191   :  { %7159 = vmatprep.subr.bf16.mxu0 %v7728_v43  ;;  %v7758_v43 = vld [vmem:[%s9654_s1 + $0xd18] sm:$0xff]  }
 0x192   :  { %7180 = vmatpush3.bf16.msra.mxu1 %v7727_v42  ;;  %v7757_v42 = vld [vmem:[%s9654_s1 + $0xdd8] sm:$0xff]  }
 0x193   :  { %7181 = vmatprep.subr.bf16.mxu1 %v7729_v44  ;;  %v7759_v44 = vld [vmem:[%s9654_s1 + $0xd98] sm:$0xff]  }
 0x194   :  { %7160 = vmatpush3.bf16.msra.mxu0 %v7730_v45  ;;  %v7760_v45 = vld [vmem:[%s9654_s1 + $0xd60] sm:$0xff]  }
 0x195   :  { %7161 = vmatprep.subr.bf16.mxu0 %v7732_v48  ;;  %v7762_v48 = vld [vmem:[%s9654_s1 + $0xd20] sm:$0xff]  }
 0x196   :  { %v6859_v49 = vpop.f32.mrb[20].mxu0  ;;  %7182 = vmatpush3.bf16.msra.mxu1 %v7731_v46  ;;  %v7761_v46 = vld [vmem:[%s9654_s1 + $0xde0] sm:$0xff]  }
 0x197   :  { %v6860_v51 = vpop.f32.mrb[21].mxu0  ;;  %7183 = vmatprep.subr.bf16.mxu1 %v7733_v50 }
 0x198   :  { %v6881_v53 = vpop.f32.mrb[20].mxu1  ;;  %v6861_v54 = vadd.f32 %v6860_v51, %v6859_v49  ;;  %v6862_v55 = vpop.f32.mrb[22].mxu0  ;;  %7162 = vmatpush3.bf16.msra.mxu0 %v7734_v52  ;;  %v7763_v49 = vld [vmem:[%s9654_s1 + $0xda0] sm:$0xff]   ;;  %v7764_v52 = vld [vmem:[%s9654_s1 + $0xd68] sm:$0xff]  }
 0x199   :  { %v6882_v56 = vpop.f32.mrb[21].mxu1  ;;  %v6863_v58 = vpop.f32.mrb[23].mxu0  ;;  %7163 = vmatprep.subr.bf16.mxu0 %v7736_v59  ;;  %v7765_v55 = vld [vmem:[%s9654_s1 + $0xde8] sm:$0xff]  }
 0x19a   :  { %v5225_v60 = vadd.f32 %v6861_v54, %v9177_v17  ;;  %v6883_v61 = vadd.f32 %v6882_v56, %v6881_v53  ;;  %v6884_v62 = vpop.f32.mrb[22].mxu1  ;;  %7184 = vmatpush3.bf16.msra.mxu1 %v7735_v57  ;;  %v9313_v17 = vrot.slane %v1519_v11, %v7975_v47  ;;  %v7766_v57 = vld [vmem:[%s9654_s1 + $0xd28] sm:$0xff]  }
 0x19b   :  { %v6885_v0 = vpop.f32.mrb[23].mxu1  ;;  %7185 = vmatprep.subr.bf16.mxu1 %v7737_v63  ;;  %v7767_v63 = vld [vmem:[%s9654_s1 + $0xda8] sm:$0xff]  }
 0x19c   :  { %v9282_v2 = vadd.f32 %v6883_v61, %v5225_v60  ;;  %7164 = vmatpush3.bf16.msra.mxu0 %v7738_v1  ;;  %v1553_v24 = vcombine.high %v9313_v17, %v9320_v20  ;;  %v7768_v1 = vld [vmem:[%s9654_s1 + $0xd70] sm:$0xff]   ;;  %v1552_v7 = vcombine.low %v9313_v17, %v9320_v20  ;;  %v7780_v17 = vld [vmem:[%s9654_s1 + $0xe48] sm:$0xff]  }
 0x19d   :  { %7165 = vmatprep.subr.bf16.mxu0 %v7740_v4  ;;  %v7769_v4 = vld [vmem:[%s9654_s1 + $0xdf0] sm:$0xff]   ;;  %v7783_v20 = vld [vmem:[%s9654_s1 + $0xe88] sm:$0xff]  }
 0x19e   :  { %7186 = vmatpush3.bf16.msra.mxu1 %v7739_v3  ;;  %v1581_v29 = vrot.slane %v1553_v24, %v7975_v47  ;;  %v1567_v11 = vrot.slane %v1552_v7, %v7975_v47  ;;  %v7787_v24 = vld [vmem:[%s9654_s1 + $0xe90] sm:$0xff]   ;;  %v7809_v7 = vld [vmem:[%s9654_s1 + $0xfc0] sm:$0xff]  }
 0x19f   :  { %7187 = vmatprep.subr.bf16.mxu1 %v7741_v5  ;;  %v7771_v5 = vld [vmem:[%s9654_s1 + $0xdb0] sm:$0xff]  }
 0x1a0   :  { %7166 = vmatpush3.bf16.msra.mxu0 %v7742_v12  ;;  %v1585_v35 = vcombine.high %v1581_v29, %v1581_v29  ;;  %v7776_v12 = vld [vmem:[%s9654_s1 + $0xe40] sm:$0xff]  }
 0x1a1   :  { %7195 = vmatprep.subr.bf16.mxu0 %v7744_v16  ;;  %v1583_v16 = vcombine.high %v1567_v11, %v1567_v11 }
 0x1a2   :  { %7188 = vmatpush3.bf16.msra.mxu1 %v7743_v18  ;;  %v7781_v18 = vld [vmem:[%s9654_s1 + $0xec8] sm:$0xff]  }
 0x1a3   :  { %7217 = vmatprep.subr.bf16.mxu1 %v7745_v21  ;;  %5783 = vmatmul.mubr.bf16.vlgmr.msra.gmra.mrb[48].mxu0 %v1560_v27  ;;  %v7784_v21 = vld [vmem:[%s9654_s1 + $0xe50] sm:$0xff]   ;;  %v7790_v27 = vld [vmem:[%s9654_s1 + $0xe18] sm:$0xff]  }
 0x1a4   :  { %7196 = vmatpush3.bf16.msra.mxu0 %v7746_v25  ;;  %5862 = vmatprep.mubr.bf16.mxu0 %v1581_v29  ;;  %v7788_v25 = vld [vmem:[%s9654_s1 + $0xe58] sm:$0xff]   ;;  %v7792_v29 = vld [vmem:[%s9654_s1 + $0xe60] sm:$0xff]  }
 0x1a5   :  { %5823 = vmatmul.mubr.bf16.vlgmr.msra.gmra.mrb[48].mxu1 %v1582_v32  ;;  %7197 = vmatprep.subr.bf16.mxu0 %v7748_v30  ;;  %v7793_v30 = vld [vmem:[%s9654_s1 + $0xee0] sm:$0xff]  }
 0x1a6   :  { %7218 = vmatpush3.bf16.msra.mxu1 %v7747_v28  ;;  %5902 = vmatprep.mubr.bf16.mxu1 %v1585_v35  ;;  %v7791_v28 = vld [vmem:[%s9654_s1 + $0xe98] sm:$0xff]   ;;  %v7795_v32 = vld [vmem:[%s9654_s1 + $0xea0] sm:$0xff]   ;;  %v7796_v35 = vld [vmem:[%s9654_s1 + $0xe68] sm:$0xff]  }
 0x1a7   :  { %7219 = vmatprep.subr.bf16.mxu1 %v7749_v33 }
 0x1a8   :  { %7198 = vmatpush3.bf16.msra.mxu0 %v7750_v34 }
 0x1a9   :  { %7199 = vmatprep.subr.bf16.mxu0 %v7752_v37 }
 0x1aa   :  { %7220 = vmatpush3.bf16.msra.mxu1 %v7751_v36 }
 0x1ab   :  { %7221 = vmatprep.subr.bf16.mxu1 %v7753_v38 }
 0x1ac   :  { %7200 = vmatpush3.bf16.msra.mxu0 %v7754_v39 }
 0x1ad   :  { %7201 = vmatprep.subr.bf16.mxu0 %v7756_v41  ;;  %v7798_v41 = vld [vmem:[%s9654_s1 + $0xe28] sm:$0xff]  }
 0x1ae   :  { %7222 = vmatpush3.bf16.msra.mxu1 %v7755_v40  ;;  %v7797_v40 = vld [vmem:[%s9654_s1 + $0xee8] sm:$0xff]  }
 0x1af   :  { %7223 = vmatprep.subr.bf16.mxu1 %v7757_v42 }
 0x1b0   :  { %7202 = vmatpush3.bf16.msra.mxu0 %v7758_v43 }
 0x1b1   :  { %7203 = vmatprep.subr.bf16.mxu0 %v7760_v45 }
 0x1b2   :  { %7224 = vmatpush3.bf16.msra.mxu1 %v7759_v44 }
 0x1b3   :  { %7225 = vmatprep.subr.bf16.mxu1 %v7761_v46  ;;  %v7799_v46 = vld [vmem:[%s9654_s1 + $0xea8] sm:$0xff]  }
 0x1b4   :  { %7204 = vmatpush3.bf16.msra.mxu0 %v7762_v48  ;;  %v7800_v48 = vld [vmem:[%s9654_s1 + $0xe70] sm:$0xff]  }
 0x1b5   :  { %7205 = vmatprep.subr.bf16.mxu0 %v7764_v52  ;;  %v7802_v52 = vld [vmem:[%s9654_s1 + $0xe30] sm:$0xff]  }
 0x1b6   :  { %v6903_v50 = vpop.f32.mrb[24].mxu0  ;;  %7226 = vmatpush3.bf16.msra.mxu1 %v7763_v49 }
 0x1b7   :  { %v6904_v51 = vpop.f32.mrb[25].mxu0  ;;  %7227 = vmatprep.subr.bf16.mxu1 %v7765_v55  ;;  %v7805_v55 = vld [vmem:[%s9654_s1 + $0xef8] sm:$0xff]  }
 0x1b8   :  { %v6925_v53 = vpop.f32.mrb[24].mxu1  ;;  %v6905_v54 = vadd.f32 %v6904_v51, %v6903_v50  ;;  %v6906_v56 = vpop.f32.mrb[26].mxu0  ;;  %7206 = vmatpush3.bf16.msra.mxu0 %v7766_v57  ;;  %v7801_v50 = vld [vmem:[%s9654_s1 + $0xef0] sm:$0xff]   ;;  %v30_v57 = vld [vmem:[%s9653_s0 + $0x78] sm:$0xff] }
 0x1b9   :  { %v6926_v58 = vpop.f32.mrb[25].mxu1  ;;  %v6907_v59 = vpop.f32.mrb[27].mxu0  ;;  %7207 = vmatprep.subr.bf16.mxu0 %v7768_v1  ;;  %v22_v56 = vld [vmem:[%s9653_s0 + $0x38] sm:$0xff] }
 0x1ba   :  { %v5305_v60 = vadd.f32 %v6905_v54, %v9282_v2  ;;  %v6927_v61 = vadd.f32 %v6926_v58, %v6925_v53  ;;  %v6928_v62 = vpop.f32.mrb[26].mxu1  ;;  %v7770_v2 = vld [vmem:[%s9654_s1 + $0xd30] sm:$0xff]   ;;  %7228 = vmatpush3.bf16.msra.mxu1 %v7767_v63  ;;  %v7804_v54 = vld [vmem:[%s9654_s1 + $0xe78] sm:$0xff]  }
 0x1bb   :  { %v6929_v0 = vpop.f32.mrb[27].mxu1  ;;  %7229 = vmatprep.subr.bf16.mxu1 %v7769_v4  ;;  %v7803_v53 = vld [vmem:[%s9654_s1 + $0xeb0] sm:$0xff]   ;;  %v38_v58 = vld [vmem:[%s9653_s0 + $0xb8] sm:$0xff] }
 0x1bc   :  { %v9400_v3 = vadd.f32 %v6927_v61, %v5305_v60  ;;  %7208 = vmatpush3.bf16.msra.mxu0 %v7770_v2  ;;  %v46_v59 = vld [vmem:[%s9653_s0 + $0xf8] sm:$0xff]  ;;  %v1586_v60 = vcombine.low %v22_v56, %v30_v57  ;;  %v1587_v61 = vcombine.high %v22_v56, %v30_v57  ;;  %v7835_v57 = vld [vmem:[%s9654_s1 + $0xfb0] sm:$0xff]  }
 0x1bd   :  { %7209 = vmatprep.subr.bf16.mxu0 %v7772_v6  ;;  %v7806_v62 = vld [vmem:[%s9654_s1 + $0xe38] sm:$0xff]   ;;  %v1588_v63 = vcombine.low %v38_v58, %v46_v59  ;;  %v1589_v0 = vcombine.high %v38_v58, %v46_v59 }
 0x1be   :  { %7230 = vmatpush3.bf16.msra.mxu1 %v7771_v5  ;;  %v1596_v1 = vrot.slane %v1586_v60, %v7975_v47  ;;  %v9539_v4 = vrot.slane %v1587_v61, %v7975_v47  ;;  %v7807_v2 = vld [vmem:[%s9654_s1 + $0xeb8] sm:$0xff]  }
 0x1bf   :  { %7231 = vmatprep.subr.bf16.mxu1 %v7773_v8  ;;  %v1610_v5 = vrot.slane %v1588_v63, %v7975_v47  ;;  %v9546_v6 = vrot.slane %v1589_v0, %v7975_v47  ;;  %v7837_v58 = vld [vmem:[%s9654_s1 + $0xff8] sm:$0xff]  }
 0x1c0   :  { %7210 = vmatpush3.bf16.msra.mxu0 %v7774_v9  ;;  %v7838_v59 = vld [vmem:[%s9654_s1 + $0xf38] sm:$0xff]  }
 0x1c1   :  { %7239 = vmatprep.subr.bf16.mxu0 %v7776_v12  ;;  %v1619_v8 = vcombine.high %v1596_v1, %v1610_v5  ;;  %v1618_v9 = vcombine.low %v1596_v1, %v1610_v5  ;;  %v1620_v56 = vcombine.low %v9539_v4, %v9546_v6  ;;  %v7839_v61 = vld [vmem:[%s9654_s1 + $0xfb8] sm:$0xff]  }
 0x1c2   :  { %7232 = vmatpush3.bf16.msra.mxu1 %v7775_v10  ;;  %v1621_v10 = vcombine.high %v9539_v4, %v9546_v6 }
 0x1c3   :  { %5863 = vmatmul.mubr.bf16.vlgmr.msra.gmra.mrb[52].mxu0 %v1567_v11  ;;  %7261 = vmatprep.subr.bf16.mxu1 %v7777_v13  ;;  %v1642_v11 = vrot.slane %v1619_v8, %v7975_v47  ;;  %v1628_v12 = vrot.slane %v1618_v9, %v7975_v47  ;;  %v7810_v13 = vld [vmem:[%s9654_s1 + $0xf00] sm:$0xff]   ;;  %v1635_v60 = vrot.slane %v1620_v56, %v7975_v47 }
 0x1c4   :  { %7240 = vmatpush3.bf16.msra.mxu0 %v7778_v14  ;;  %v1649_v14 = vrot.slane %v1621_v10, %v7975_v47 }
 0x1c5   :  { %5903 = vmatmul.mubr.bf16.vlgmr.msra.gmra.mrb[52].mxu1 %v1583_v16  ;;  %7241 = vmatprep.subr.bf16.mxu0 %v7780_v17  ;;  %v1652_v16 = vcombine.high %v1642_v11, %v1642_v11  ;;  %v1650_v17 = vcombine.high %v1628_v12, %v1628_v12 }
 0x1c6   :  { %7262 = vmatpush3.bf16.msra.mxu1 %v7779_v15  ;;  %v7812_v15 = vld [vmem:[%s9654_s1 + $0xf48] sm:$0xff]   ;;  %5942 = vmatprep.mubr.bf16.mxu0 %v1642_v11 }
 0x1c7   :  { %7263 = vmatprep.subr.bf16.mxu1 %v7781_v18  ;;  %v7811_v18 = vld [vmem:[%s9654_s1 + $0xf80] sm:$0xff]   ;;  %5982 = vmatprep.mubr.bf16.mxu1 %v1652_v16 }
 0x1c8   :  { %7242 = vmatpush3.bf16.msra.mxu0 %v7782_v19  ;;  %v7813_v19 = vld [vmem:[%s9654_s1 + $0xfc8] sm:$0xff]  }
 0x1c9   :  { %7243 = vmatprep.subr.bf16.mxu0 %v7784_v21  ;;  %v7814_v21 = vld [vmem:[%s9654_s1 + $0xf08] sm:$0xff]  }
 0x1ca   :  { %7264 = vmatpush3.bf16.msra.mxu1 %v7783_v20  ;;  %v1653_v20 = vcombine.high %v1649_v14, %v1649_v14 }
 0x1cb   :  { %7265 = vmatprep.subr.bf16.mxu1 %v7785_v22  ;;  %v7816_v22 = vld [vmem:[%s9654_s1 + $0xf50] sm:$0xff]  }
 0x1cc   :  { %7244 = vmatpush3.bf16.msra.mxu0 %v7786_v23  ;;  %v7815_v23 = vld [vmem:[%s9654_s1 + $0xf88] sm:$0xff]  }
 0x1cd   :  { %7245 = vmatprep.subr.bf16.mxu0 %v7788_v25  ;;  %v7818_v25 = vld [vmem:[%s9654_s1 + $0xf10] sm:$0xff]  }
 0x1ce   :  { %7266 = vmatpush3.bf16.msra.mxu1 %v7787_v24  ;;  %v7817_v24 = vld [vmem:[%s9654_s1 + $0xfd0] sm:$0xff]  }
 0x1cf   :  { %7267 = vmatprep.subr.bf16.mxu1 %v7789_v26  ;;  %v7820_v26 = vld [vmem:[%s9654_s1 + $0xf58] sm:$0xff]  }
 0x1d0   :  { %7246 = vmatpush3.bf16.msra.mxu0 %v7790_v27  ;;  %v7819_v27 = vld [vmem:[%s9654_s1 + $0xf90] sm:$0xff]  }
 0x1d1   :  { %7247 = vmatprep.subr.bf16.mxu0 %v7792_v29  ;;  %v7822_v29 = vld [vmem:[%s9654_s1 + $0xf18] sm:$0xff]  }
 0x1d2   :  { %7268 = vmatpush3.bf16.msra.mxu1 %v7791_v28  ;;  %v7821_v28 = vld [vmem:[%s9654_s1 + $0xfd8] sm:$0xff]  }
 0x1d3   :  { %7269 = vmatprep.subr.bf16.mxu1 %v7793_v30  ;;  %v7824_v30 = vld [vmem:[%s9654_s1 + $0xf60] sm:$0xff]  }
 0x1d4   :  { %7248 = vmatpush3.bf16.msra.mxu0 %v7794_v31  ;;  %v7823_v31 = vld [vmem:[%s9654_s1 + $0xf98] sm:$0xff]  }
 0x1d5   :  { %7249 = vmatprep.subr.bf16.mxu0 %v7796_v35 }
 0x1d6   :  { %v6947_v33 = vpop.f32.mrb[28].mxu0  ;;  %7270 = vmatpush3.bf16.msra.mxu1 %v7795_v32  ;;  %v7825_v32 = vld [vmem:[%s9654_s1 + $0xfe0] sm:$0xff]  }
 0x1d7   :  { %v6948_v34 = vpop.f32.mrb[29].mxu0  ;;  %7271 = vmatprep.subr.bf16.mxu1 %v7797_v40  ;;  %v7829_v40 = vld [vmem:[%s9654_s1 + $0xfe8] sm:$0xff]  }
 0x1d8   :  { %v6969_v36 = vpop.f32.mrb[28].mxu1  ;;  %v6949_v37 = vadd.f32 %v6948_v34, %v6947_v33  ;;  %v6950_v38 = vpop.f32.mrb[30].mxu0  ;;  %7250 = vmatpush3.bf16.msra.mxu0 %v7798_v41  ;;  %v7826_v33 = vld [vmem:[%s9654_s1 + $0xf20] sm:$0xff]  }
 0x1d9   :  { %v6970_v39 = vpop.f32.mrb[29].mxu1  ;;  %v6951_v42 = vpop.f32.mrb[31].mxu0  ;;  %7251 = vmatprep.subr.bf16.mxu0 %v7800_v48  ;;  %v7830_v48 = vld [vmem:[%s9654_s1 + $0xf28] sm:$0xff]  }
 0x1da   :  { %v5385_v43 = vadd.f32 %v6949_v37, %v9400_v3  ;;  %v6971_v44 = vadd.f32 %v6970_v39, %v6969_v36  ;;  %v6972_v45 = vpop.f32.mrb[30].mxu1  ;;  %7272 = vmatpush3.bf16.msra.mxu1 %v7799_v46  ;;  %v7808_v3 = vld [vmem:[%s9654_s1 + $0xf40] sm:$0xff]   ;;  %v7828_v36 = vld [vmem:[%s9654_s1 + $0xf68] sm:$0xff]  }
 0x1db   :  { %v6973_v49 = vpop.f32.mrb[31].mxu1  ;;  %7273 = vmatprep.subr.bf16.mxu1 %v7801_v50  ;;  %v7827_v37 = vld [vmem:[%s9654_s1 + $0xfa0] sm:$0xff]   ;;  %v7832_v50 = vld [vmem:[%s9654_s1 + $0xf70] sm:$0xff]  }
 0x1dc   :  { %v9505_v51 = vadd.f32 %v6971_v44, %v5385_v43  ;;  %7252 = vmatpush3.bf16.msra.mxu0 %v7802_v52 }
 0x1dd   :  { %7253 = vmatprep.subr.bf16.mxu0 %v7804_v54  ;;  %v7834_v54 = vld [vmem:[%s9654_s1 + $0xf30] sm:$0xff]  }
 0x1de   :  { %7274 = vmatpush3.bf16.msra.mxu1 %v7803_v53  ;;  %v7831_v53 = vld [vmem:[%s9654_s1 + $0xfa8] sm:$0xff]  }
 0x1df   :  { %7275 = vmatprep.subr.bf16.mxu1 %v7805_v55  ;;  %v7836_v55 = vld [vmem:[%s9654_s1 + $0xf78] sm:$0xff]  }
 0x1e0   :  { %7254 = vmatpush3.bf16.msra.mxu0 %v7806_v62  ;;  %v1651_v62 = vcombine.high %v1635_v60, %v1635_v60 }
 0x1e1   :  { %7283 = vmatprep.subr.bf16.mxu0 %v7808_v3 }
 0x1e2   :  { %7276 = vmatpush3.bf16.msra.mxu1 %v7807_v2 }
 0x1e3   :  { %7305 = vmatprep.subr.bf16.mxu1 %v7809_v7  ;;  %5943 = vmatmul.mubr.bf16.vlgmr.msra.gmra.mrb[56].mxu0 %v1628_v12 }
 0x1e4   :  { %7284 = vmatpush3.bf16.msra.mxu0 %v7810_v13  ;;  %6022 = vmatprep.mubr.bf16.mxu0 %v1649_v14 }
 0x1e5   :  { %5983 = vmatmul.mubr.bf16.vlgmr.msra.gmra.mrb[56].mxu1 %v1650_v17  ;;  %7285 = vmatprep.subr.bf16.mxu0 %v7812_v15 }
 0x1e6   :  { %7306 = vmatpush3.bf16.msra.mxu1 %v7811_v18  ;;  %6062 = vmatprep.mubr.bf16.mxu1 %v1653_v20 }
 0x1e7   :  { %7307 = vmatprep.subr.bf16.mxu1 %v7813_v19 }
 0x1e8   :  { %7286 = vmatpush3.bf16.msra.mxu0 %v7814_v21 }
 0x1e9   :  { %7287 = vmatprep.subr.bf16.mxu0 %v7816_v22 }
 0x1ea   :  { %7308 = vmatpush3.bf16.msra.mxu1 %v7815_v23 }
 0x1eb   :  { %7309 = vmatprep.subr.bf16.mxu1 %v7817_v24 }
 0x1ec   :  { %7288 = vmatpush3.bf16.msra.mxu0 %v7818_v25 }
 0x1ed   :  { %7289 = vmatprep.subr.bf16.mxu0 %v7820_v26 }
 0x1ee   :  { %7310 = vmatpush3.bf16.msra.mxu1 %v7819_v27 }
 0x1ef   :  { %7311 = vmatprep.subr.bf16.mxu1 %v7821_v28 }
 0x1f0   :  { %7290 = vmatpush3.bf16.msra.mxu0 %v7822_v29 }
 0x1f1   :  { %7291 = vmatprep.subr.bf16.mxu0 %v7824_v30 }
 0x1f2   :  { %7312 = vmatpush3.bf16.msra.mxu1 %v7823_v31 }
 0x1f3   :  { %7313 = vmatprep.subr.bf16.mxu1 %v7825_v32 }
 0x1f4   :  { %7292 = vmatpush3.bf16.msra.mxu0 %v7826_v33 }
 0x1f5   :  { %7293 = vmatprep.subr.bf16.mxu0 %v7828_v36 }
 0x1f6   :  { %v6991_v34 = vpop.f32.mrb[32].mxu0  ;;  %7314 = vmatpush3.bf16.msra.mxu1 %v7827_v37 }
 0x1f7   :  { %v6992_v35 = vpop.f32.mrb[33].mxu0  ;;  %7315 = vmatprep.subr.bf16.mxu1 %v7829_v40 }
 0x1f8   :  { %v7013_v38 = vpop.f32.mrb[32].mxu1  ;;  %v6993_v39 = vadd.f32 %v6992_v35, %v6991_v34  ;;  %v6994_v41 = vpop.f32.mrb[34].mxu0  ;;  %7294 = vmatpush3.bf16.msra.mxu0 %v7830_v48 }
 0x1f9   :  { %v7014_v42 = vpop.f32.mrb[33].mxu1  ;;  %v6995_v43 = vpop.f32.mrb[35].mxu0  ;;  %7295 = vmatprep.subr.bf16.mxu0 %v7832_v50 }
 0x1fa   :  { %v5465_v44 = vadd.f32 %v6993_v39, %v9505_v51  ;;  %v7015_v45 = vadd.f32 %v7014_v42, %v7013_v38  ;;  %v7016_v46 = vpop.f32.mrb[34].mxu1  ;;  %v7833_v51 = vld [vmem:[%s9654_s1 + $0xff0] sm:$0xff]   ;;  %7316 = vmatpush3.bf16.msra.mxu1 %v7831_v53 }
 0x1fb   :  { %v7017_v49 = vpop.f32.mrb[35].mxu1  ;;  %7317 = vmatprep.subr.bf16.mxu1 %v7833_v51 }
 0x1fc   :  { %v5505_v52 = vadd.f32 %v7015_v45, %v5465_v44  ;;  %7296 = vmatpush3.bf16.msra.mxu0 %v7834_v54 }
 0x1fd   :  { %7297 = vmatprep.subr.bf16.mxu0 %v7836_v55 }
 0x1fe   :  { %7318 = vmatpush3.bf16.msra.mxu1 %v7835_v57 }
 0x1ff   :  { %7319 = vmatprep.subr.bf16.mxu1 %v7837_v58 }
 0x200   :  { %7298 = vmatpush3.bf16.msra.mxu0 %v7838_v59 }
 0x202   :  { %7320 = vmatpush3.bf16.msra.mxu1 %v7839_v61 }
 0x203   :  { %6023 = vmatmul.mubr.bf16.vlgmr.msra.gmra.mrb[60].mxu0 %v1635_v60 }
 0x205   :  { %6063 = vmatmul.mubr.bf16.vlgmr.msra.gmra.mrb[60].mxu1 %v1651_v62 }
 0x216   :  { %v7035_v63 = vpop.f32.mrb[36].mxu0 }
 0x217   :  { %v7036_v0 = vpop.f32.mrb[37].mxu0 }
 0x218   :  { %v7057_v1 = vpop.f32.mrb[36].mxu1  ;;  %v7037_v3 = vadd.f32 %v7036_v0, %v7035_v63  ;;  %v7038_v4 = vpop.f32.mrb[38].mxu0 }
 0x219   :  { %v7058_v2 = vpop.f32.mrb[37].mxu1  ;;  %v7039_v5 = vpop.f32.mrb[39].mxu0 }
 0x21a   :  { %v5545_v6 = vadd.f32 %v7037_v3, %v5505_v52  ;;  %v7059_v47 = vadd.f32 %v7058_v2, %v7057_v1  ;;  %v7060_v7 = vpop.f32.mrb[38].mxu1 }
 0x21b   :  { %v7061_v8 = vpop.f32.mrb[39].mxu1 }
 0x21c   :  { %v5585_v9 = vadd.f32 %v7059_v47, %v5545_v6 }
 0x236   :  { %v7079_v10 = vpop.f32.mrb[40].mxu0 }
 0x237   :  { %v7080_v11 = vpop.f32.mrb[41].mxu0 }
 0x238   :  { %v7101_v12 = vpop.f32.mrb[40].mxu1  ;;  %v7081_v13 = vadd.f32 %v7080_v11, %v7079_v10  ;;  %v7082_v14 = vpop.f32.mrb[42].mxu0 }
 0x239   :  { %v7102_v15 = vpop.f32.mrb[41].mxu1  ;;  %v7083_v16 = vpop.f32.mrb[43].mxu0 }
 0x23a   :  { %v5625_v17 = vadd.f32 %v7081_v13, %v5585_v9  ;;  %v7103_v18 = vadd.f32 %v7102_v15, %v7101_v12  ;;  %v7104_v19 = vpop.f32.mrb[42].mxu1 }
 0x23b   :  { %v7105_v20 = vpop.f32.mrb[43].mxu1 }
 0x23c   :  { %v5665_v21 = vadd.f32 %v7103_v18, %v5625_v17 }
 0x256   :  { %v7123_v22 = vpop.f32.mrb[44].mxu0 }
 0x257   :  { %v7124_v23 = vpop.f32.mrb[45].mxu0 }
 0x258   :  { %v7145_v24 = vpop.f32.mrb[44].mxu1  ;;  %v7125_v25 = vadd.f32 %v7124_v23, %v7123_v22  ;;  %v7126_v26 = vpop.f32.mrb[46].mxu0 }
 0x259   :  { %v7146_v27 = vpop.f32.mrb[45].mxu1  ;;  %v7127_v28 = vpop.f32.mrb[47].mxu0 }
 0x25a   :  { %v5705_v29 = vadd.f32 %v7125_v25, %v5665_v21  ;;  %v7147_v30 = vadd.f32 %v7146_v27, %v7145_v24  ;;  %v7148_v31 = vpop.f32.mrb[46].mxu1 }
 0x25b   :  { %v7149_v32 = vpop.f32.mrb[47].mxu1 }
 0x25c   :  { %v5745_v33 = vadd.f32 %v7147_v30, %v5705_v29 }
 0x276   :  { %v7167_v34 = vpop.f32.mrb[48].mxu0 }
 0x277   :  { %v7168_v35 = vpop.f32.mrb[49].mxu0 }
 0x278   :  { %v7189_v36 = vpop.f32.mrb[48].mxu1  ;;  %v7169_v37 = vadd.f32 %v7168_v35, %v7167_v34  ;;  %v7170_v38 = vpop.f32.mrb[50].mxu0 }
 0x279   :  { %v7190_v39 = vpop.f32.mrb[49].mxu1  ;;  %v7171_v40 = vpop.f32.mrb[51].mxu0 }
 0x27a   :  { %v5785_v41 = vadd.f32 %v7169_v37, %v5745_v33  ;;  %v7191_v42 = vadd.f32 %v7190_v39, %v7189_v36  ;;  %v7192_v43 = vpop.f32.mrb[50].mxu1 }
 0x27b   :  { %v7193_v44 = vpop.f32.mrb[51].mxu1 }
 0x27c   :  { %v5825_v45 = vadd.f32 %v7191_v42, %v5785_v41 }
 0x296   :  { %v7211_v46 = vpop.f32.mrb[52].mxu0 }
 0x297   :  { %v7212_v48 = vpop.f32.mrb[53].mxu0 }
 0x298   :  { %v7233_v49 = vpop.f32.mrb[52].mxu1  ;;  %v7213_v50 = vadd.f32 %v7212_v48, %v7211_v46  ;;  %v7214_v52 = vpop.f32.mrb[54].mxu0 }
 0x299   :  { %v7234_v53 = vpop.f32.mrb[53].mxu1  ;;  %v7215_v51 = vpop.f32.mrb[55].mxu0 }
 0x29a   :  { %v5865_v54 = vadd.f32 %v7213_v50, %v5825_v45  ;;  %v7235_v55 = vadd.f32 %v7234_v53, %v7233_v49  ;;  %v7236_v56 = vpop.f32.mrb[54].mxu1 }
 0x29b   :  { %v7237_v57 = vpop.f32.mrb[55].mxu1 }
 0x29c   :  { %v5905_v58 = vadd.f32 %v7235_v55, %v5865_v54 }
 0x2b6   :  { %v7255_v59 = vpop.f32.mrb[56].mxu0 }
 0x2b7   :  { %v7256_v60 = vpop.f32.mrb[57].mxu0 }
 0x2b8   :  { %v7277_v61 = vpop.f32.mrb[56].mxu1  ;;  %v7257_v62 = vadd.f32 %v7256_v60, %v7255_v59  ;;  %v7258_v63 = vpop.f32.mrb[58].mxu0 }
 0x2b9   :  { %v7278_v0 = vpop.f32.mrb[57].mxu1  ;;  %v7259_v1 = vpop.f32.mrb[59].mxu0 }
 0x2ba   :  { %v5945_v3 = vadd.f32 %v7257_v62, %v5905_v58  ;;  %v7279_v4 = vadd.f32 %v7278_v0, %v7277_v61  ;;  %v7280_v2 = vpop.f32.mrb[58].mxu1 }
 0x2bb   :  { %v7281_v5 = vpop.f32.mrb[59].mxu1 }
 0x2bc   :  { %v5985_v6 = vadd.f32 %v7279_v4, %v5945_v3 }
 0x2d6   :  { %v7299_v47 = vpop.f32.mrb[60].mxu0 }
 0x2d7   :  { %v7300_v7 = vpop.f32.mrb[61].mxu0 }
 0x2d8   :  { %v7321_v8 = vpop.f32.mrb[60].mxu1  ;;  %v7301_v9 = vadd.f32 %v7300_v7, %v7299_v47  ;;  %v7302_v10 = vpop.f32.mrb[62].mxu0 }
 0x2d9   :  { %v7322_v11 = vpop.f32.mrb[61].mxu1  ;;  %v7303_v12 = vpop.f32.mrb[63].mxu0 }
 0x2da   :  { %v6025_v13 = vadd.f32 %v7301_v9, %v5985_v6  ;;  %v7323_v14 = vadd.f32 %v7322_v11, %v7321_v8  ;;  %v7324_v15 = vpop.f32.mrb[62].mxu1 }
 0x2db   :  { %v7325_v16 = vpop.f32.mrb[63].mxu1 }
 0x2dc   :  { %v6065_v17 = vadd.f32 %v7323_v14, %v6025_v13 }
 0x2de   :  { %6070 = vst [vmem:[#allocation2] sm:$0xff] %v6065_v17 }
 0x2e5   :  { %v6088_v18 = vld [vmem:[#allocation2] sm:$0x3] }
 0x2e6   :  { %6089 = vst [vmem:[%s9656_s3] sm:$0x3] %v6088_v18 }

</bundles_post_ra>
